<compile_context>
chip_gen: v6e
topology: v6e:2x2x1
jax: 0.10.0
libtpu: 0.0.40
codegen_flags: <defaults>
</compile_context>

<pallas_src>
import functools

import jax
import jax.numpy as jnp
from jax.experimental import pallas as pl
from jax.experimental.pallas import tpu as pltpu

_PAR = pltpu.CompilerParams(dimension_semantics=("parallel",))


# --------------------------------------------------------------------------
# kernel 1: transposed conv (kernel_size == stride) == per-pixel matmul
# --------------------------------------------------------------------------
def _transp_conv_kernel(x_ref, w_ref, o_ref):
    # x: (1, H*W, Cin) bf16, w: (Cin, k*k*Cout) bf16 -> o: (1, H*W, k*k*Cout) bf16
    y = jnp.dot(x_ref[0], w_ref[...], preferred_element_type=jnp.float32)
    o_ref[0] = y.astype(o_ref.dtype)


def transp_conv(x_tok, tw, *, up_k, c_out):
    """x_tok: (N, H*W, Cin) bf16; tw: (Cin, k*k*Cout) bf16 -> (N, H*W, k*k*Cout) bf16."""
    N, HW, Cin = x_tok.shape
    KC = up_k * up_k * c_out
    return pl.pallas_call(
        _transp_conv_kernel,
        out_shape=jax.ShapeDtypeStruct((N, HW, KC), jnp.bfloat16),
        grid=(N,),
        in_specs=[
            pl.BlockSpec((1, HW, Cin), lambda n: (n, 0, 0)),
            pl.BlockSpec((Cin, KC), lambda n: (0, 0)),
        ],
        out_specs=pl.BlockSpec((1, HW, KC), lambda n: (n, 0, 0)),
        compiler_params=_PAR,
    )(x_tok, tw)


# --------------------------------------------------------------------------
# kernel 2: fused channel-concat kxk conv (no bias) -> LeakyReLU -> InstanceNorm
# --------------------------------------------------------------------------
def _conv_act_norm_kernel(up_ref, skip_ref, wa_ref, wb_ref, o_ref, su_ref, ss_ref,
                          *, kh, kw, pad, eps, neg_slope):
    _, Hk, Wk, C = up_ref.shape

    # Zero-padded halo tiles in VMEM: replaces host-side jnp.pad HBM copies and the
    # kh*kw-fold im2col materialization of the previous version.
    su_ref[...] = jnp.zeros(su_ref.shape, su_ref.dtype)
    ss_ref[...] = jnp.zeros(ss_ref.shape, ss_ref.dtype)
    su_ref[pad:pad + Hk, pad:pad + Wk, :] = up_ref[0]
    ss_ref[pad:pad + Hk, pad:pad + Wk, :] = skip_ref[0]

    # conv over the channel-concat [up, skip] with split weights:
    #   y = sum_taps  up_shift @ wa[tap] + skip_shift @ wb[tap]
    # bf16 MXU operands, f32 accumulation.
    acc = jnp.zeros((Hk * Wk, C), jnp.float32)
    t = 0
    for ti in range(kh):
        for tj in range(kw):
            a = su_ref[ti:ti + Hk, tj:tj + Wk, :].reshape(Hk * Wk, C)
            b = ss_ref[ti:ti + Hk, tj:tj + Wk, :].reshape(Hk * Wk, C)
            acc = acc + jnp.dot(a, wa_ref[t], preferred_element_type=jnp.float32)
            acc = acc + jnp.dot(b, wb_ref[t], preferred_element_type=jnp.float32)
            t += 1

    # LeakyReLU(0.01) then InstanceNorm (per-channel over spatial, no affine), f32 epilogue.
    y = jnp.where(acc >= 0.0, acc, neg_slope * acc)
    mu = jnp.mean(y, axis=0, keepdims=True)
    var = jnp.mean(jnp.square(y - mu), axis=0, keepdims=True)
    y = (y - mu) * jax.lax.rsqrt(var + eps)
    o_ref[0] = y.reshape(Hk, Wk, C)


def conv_act_norm(up, skip, wa, wb, *, kernel_size, eps=1e-5, neg_slope=0.01):
    """up/skip: (N, Hk, Wk, Cout) bf16; wa/wb: (k*k, Cout, Cout) bf16 -> (N, Hk, Wk, Cout) f32."""
    N, Hk, Wk, C = up.shape
    kh = kw = kernel_size
    pad = kernel_size // 2            # MONAI get_padding(kernel_size, stride=1) for odd k
    kern = functools.partial(_conv_act_norm_kernel, kh=kh, kw=kw, pad=pad,
                             eps=eps, neg_slope=neg_slope)
    return pl.pallas_call(
        kern,
        out_shape=jax.ShapeDtypeStruct((N, Hk, Wk, C), jnp.float32),
        grid=(N,),
        in_specs=[
            pl.BlockSpec((1, Hk, Wk, C), lambda n: (n, 0, 0, 0)),
            pl.BlockSpec((1, Hk, Wk, C), lambda n: (n, 0, 0, 0)),
            pl.BlockSpec((kh * kw, C, C), lambda n: (0, 0, 0)),
            pl.BlockSpec((kh * kw, C, C), lambda n: (0, 0, 0)),
        ],
        out_specs=pl.BlockSpec((1, Hk, Wk, C), lambda n: (n, 0, 0, 0)),
        scratch_shapes=[
            pltpu.VMEM((Hk + 2 * pad, Wk + 2 * pad, C), jnp.bfloat16),
            pltpu.VMEM((Hk + 2 * pad, Wk + 2 * pad, C), jnp.bfloat16),
        ],
        compiler_params=_PAR,
    )(up, skip, wa, wb)


# --------------------------------------------------------------------------
# parameters (synthetic, deterministic)
# --------------------------------------------------------------------------
def init_params(key, in_channels, out_channels, up_k, kernel_size):
    k1, k2, k3 = jax.random.split(key, 3)
    # ConvTranspose2d weight: torch layout (Cin, Cout, k, k); stored here pre-permuted as
    # (Cin, k, k, Cout) flattened to (Cin, k*k*Cout)  [permute(0, 2, 3, 1) to load a checkpoint].
    tw = 0.05 * jax.random.normal(k1, (in_channels, up_k * up_k * out_channels), jnp.float32)
    # Conv2d weight: torch layout (Cout, 2*Cout, kh, kw); split along input channels into the
    # upsample branch (wa) and skip branch (wb), each stored as (kh*kw, Cout, Cout)
    # [permute(2, 3, 1, 0) of each half to load a checkpoint].
    # TODO(synk): bias omitted -- MONAI dynunet get_conv_layer defaults to bias=False.
    wa = 0.05 * jax.random.normal(
        k2, (kernel_size * kernel_size, out_channels, out_channels), jnp.float32)
    wb = 0.05 * jax.random.normal(
        k3, (kernel_size * kernel_size, out_channels, out_channels), jnp.float32)
    return {"tw": tw.astype(jnp.bfloat16),
            "wa": wa.astype(jnp.bfloat16),
            "wb": wb.astype(jnp.bfloat16)}


# --------------------------------------------------------------------------
# forward
# --------------------------------------------------------------------------
def simple_upsample_forward(inp_nchw, skip_nchw, params, *, up_k, kernel_size):
    """inp: (N, Cin, H, W), skip: (N, Cout, H*up_k, W*up_k) -> (N, Cout, H*up_k, W*up_k)."""
    N, Cin, H, W = inp_nchw.shape
    Cout = params["tw"].shape[1] // (up_k * up_k)
    Hk, Wk = H * up_k, W * up_k

    # NCHW -> NHWC token layout; cast MXU operands to bf16 once at the boundary.
    x_tok = jnp.transpose(inp_nchw, (0, 2, 3, 1)).reshape(N, H * W, Cin).astype(jnp.bfloat16)
    skip = jnp.transpose(skip_nchw, (0, 2, 3, 1)).astype(jnp.bfloat16)

    # (1) transposed conv (kernel == stride): one lane-dense MXU matmul per sample.
    up_blk = transp_conv(x_tok, params["tw"], up_k=up_k, c_out=Cout)
    # TODO(synk): the (k,k) phase interleave below is a single small host-side relayout;
    # an in-kernel strided scatter would remove it but is not portably lowerable.
    up = up_blk.reshape(N, H, W, up_k, up_k, Cout).transpose(0, 1, 3, 2, 4, 5)
    up = up.reshape(N, Hk, Wk, Cout)

    # (2) fused: concat -> kxk conv (no bias) -> LeakyReLU(0.01) -> InstanceNorm(1e-5, no affine).
    # TODO(synk): norm_name assumed "instance"; dropout=None and upsameple_only=True path not modeled.
    y = conv_act_norm(up, skip, params["wa"], params["wb"], kernel_size=kernel_size)
    return jnp.transpose(y, (0, 3, 1, 2))


# --------------------------------------------------------------------------
# main
# --------------------------------------------------------------------------
if __name__ == "__main__":
    key = jax.random.PRNGKey(0)
    N, Cin, Cout = 2, 64, 32
    H = W = 8
    up_k, kernel_size = 2, 3

    pkey, xkey, skey = jax.random.split(key, 3)
    params = init_params(pkey, Cin, Cout, up_k, kernel_size)
    inp = jax.random.normal(xkey, (N, Cin, H, W), jnp.float32)
    skip = jax.random.normal(skey, (N, Cout, H * up_k, W * up_k), jnp.float32)

    fwd = jax.jit(functools.partial(simple_upsample_forward,
                                    up_k=up_k, kernel_size=kernel_size))
    out = jax.block_until_ready(fwd(inp, skip, params))
    assert out.shape == (N, Cout, H * up_k, W * up_k), out.shape
    assert bool(jnp.all(jnp.isfinite(out)))
    print("KERNEL_OK")
</pallas_src>

<mosaic_0001>
module attributes {stable_mosaic.version = 11 : i64} {
  func.func @_transp_conv_kernel(%arg0: i32, %arg1: memref<1x64x64xbf16, #tpu.memory_space<vmem>>, %arg2: memref<64x128xbf16, #tpu.memory_space<vmem>>, %arg3: memref<1x64x128xbf16, #tpu.memory_space<vmem>>) attributes {dimension_semantics = [#tpu.dimension_semantics<parallel>], iteration_bounds = array<i64: 2>, scalar_prefetch = 0 : i64, scratch_operands = 0 : i64, tpu.core_type = #tpu.core_type<tc>, window_params = [{transform_indices = @transform_0, window_bounds = array<i64: 1, 64, 64>}, {pipeline_mode = #tpu.pipeline_mode<synchronous>, transform_indices = @transform_1, window_bounds = array<i64: 64, 128>}, {transform_indices = @transform_2, window_bounds = array<i64: 1, 64, 128>}]} {
    %c0 = arith.constant 0 : index
    %c0_0 = arith.constant 0 : index
    %c0_1 = arith.constant 0 : index
    %0 = vector.load %arg1[%c0, %c0_0, %c0_1] : memref<1x64x64xbf16, #tpu.memory_space<vmem>>, vector<1x64x64xbf16>
    %1 = vector.shape_cast %0 : vector<1x64x64xbf16> to vector<64x64xbf16>
    %c0_2 = arith.constant 0 : index
    %c0_3 = arith.constant 0 : index
    %2 = vector.load %arg2[%c0_2, %c0_3] : memref<64x128xbf16, #tpu.memory_space<vmem>>, vector<64x128xbf16>
    %cst = arith.constant dense<0.000000e+00> : vector<64x128xf32>
    %3 = tpu.matmul %1, %2, %cst {dimension_numbers = #tpu.dot_dimension_numbers<[1], [0], [0], [1], [0, 0, 1, 1], [], []>} : vector<64x64xbf16>, vector<64x128xbf16>, vector<64x128xf32> -> vector<64x128xf32>
    %4 = arith.truncf %3 : vector<64x128xf32> to vector<64x128xbf16>
    %c0_4 = arith.constant 0 : index
    %c0_5 = arith.constant 0 : index
    %c0_6 = arith.constant 0 : index
    %5 = vector.load %arg3[%c0_4, %c0_5, %c0_6] : memref<1x64x128xbf16, #tpu.memory_space<vmem>>, vector<1x64x128xbf16>
    %6 = vector.shape_cast %5 : vector<1x64x128xbf16> to vector<64x128xbf16>
    %7 = vector.shape_cast %4 : vector<64x128xbf16> to vector<1x64x128xbf16>
    tpu.vector_store %arg3[%c0_4, %c0_5, %c0_6], %7 {strides = array<i32>} : memref<1x64x128xbf16, #tpu.memory_space<vmem>>, vector<1x64x128xbf16>,
    return
  }
  func.func @transform_0(%arg0: i32) -> (i32, i32, i32) {
    %c0_i32 = arith.constant 0 : i32
    %c0_i32_0 = arith.constant 0 : i32
    %c0_i32_1 = arith.constant 0 : i32
    return %arg0, %c0_i32, %c0_i32_0 : i32, i32, i32
  }
  func.func @transform_1(%arg0: i32) -> (i32, i32) {
    %c0_i32 = arith.constant 0 : i32
    %c0_i32_0 = arith.constant 0 : i32
    %c0_i32_1 = arith.constant 0 : i32
    return %c0_i32, %c0_i32_0 : i32, i32
  }
  func.func @transform_2(%arg0: i32) -> (i32, i32, i32) {
    %c0_i32 = arith.constant 0 : i32
    %c0_i32_0 = arith.constant 0 : i32
    %c0_i32_1 = arith.constant 0 : i32
    return %arg0, %c0_i32, %c0_i32_0 : i32, i32, i32
  }
}

module attributes {stable_mosaic.version = 11 : i64} {
  func.func @_conv_act_norm_kernel(%arg0: i32, %arg1: memref<1x16x16x32xbf16, #tpu.memory_space<vmem>>, %arg2: memref<1x16x16x32xbf16, #tpu.memory_space<vmem>>, %arg3: memref<9x32x32xbf16, #tpu.memory_space<vmem>>, %arg4: memref<9x32x32xbf16, #tpu.memory_space<vmem>>, %arg5: memref<1x16x16x32xf32, #tpu.memory_space<vmem>>, %arg6: memref<18x18x32xbf16, #tpu.memory_space<vmem>>, %arg7: memref<18x18x32xbf16, #tpu.memory_space<vmem>>) attributes {dimension_semantics = [#tpu.dimension_semantics<parallel>], iteration_bounds = array<i64: 2>, scalar_prefetch = 0 : i64, scratch_operands = 2 : i64, tpu.core_type = #tpu.core_type<tc>, window_params = [{transform_indices = @transform_0, window_bounds = array<i64: 1, 16, 16, 32>}, {transform_indices = @transform_1, window_bounds = array<i64: 1, 16, 16, 32>}, {pipeline_mode = #tpu.pipeline_mode<synchronous>, transform_indices = @transform_2, window_bounds = array<i64: 9, 32, 32>}, {pipeline_mode = #tpu.pipeline_mode<synchronous>, transform_indices = @transform_3, window_bounds = array<i64: 9, 32, 32>}, {transform_indices = @transform_4, window_bounds = array<i64: 1, 16, 16, 32>}]} {
    %cst = arith.constant 0.000000e+00 : bf16
    %0 = vector.broadcast %cst : bf16 to vector<18x18x32xbf16>
    %c0 = arith.constant 0 : index
    %c0_0 = arith.constant 0 : index
    %c0_1 = arith.constant 0 : index
    %1 = vector.load %arg6[%c0, %c0_0, %c0_1] : memref<18x18x32xbf16, #tpu.memory_space<vmem>>, vector<18x18x32xbf16>
    tpu.vector_store %arg6[%c0, %c0_0, %c0_1], %0 {strides = array<i32>} : memref<18x18x32xbf16, #tpu.memory_space<vmem>>, vector<18x18x32xbf16>,
    %cst_2 = arith.constant 0.000000e+00 : bf16
    %2 = vector.broadcast %cst_2 : bf16 to vector<18x18x32xbf16>
    %c0_3 = arith.constant 0 : index
    %c0_4 = arith.constant 0 : index
    %c0_5 = arith.constant 0 : index
    %3 = vector.load %arg7[%c0_3, %c0_4, %c0_5] : memref<18x18x32xbf16, #tpu.memory_space<vmem>>, vector<18x18x32xbf16>
    tpu.vector_store %arg7[%c0_3, %c0_4, %c0_5], %2 {strides = array<i32>} : memref<18x18x32xbf16, #tpu.memory_space<vmem>>, vector<18x18x32xbf16>,
    %c0_6 = arith.constant 0 : index
    %c0_7 = arith.constant 0 : index
    %c0_8 = arith.constant 0 : index
    %c0_9 = arith.constant 0 : index
    %4 = vector.load %arg1[%c0_6, %c0_7, %c0_8, %c0_9] : memref<1x16x16x32xbf16, #tpu.memory_space<vmem>>, vector<1x16x16x32xbf16>
    %5 = vector.shape_cast %4 : vector<1x16x16x32xbf16> to vector<16x16x32xbf16>
    %c1 = arith.constant 1 : index
    %c1_10 = arith.constant 1 : index
    %c0_11 = arith.constant 0 : index
    %6 = vector.load %arg6[%c1, %c1_10, %c0_11] : memref<18x18x32xbf16, #tpu.memory_space<vmem>>, vector<16x16x32xbf16>
    tpu.vector_store %arg6[%c1, %c1_10, %c0_11], %5 {strides = array<i32>} : memref<18x18x32xbf16, #tpu.memory_space<vmem>>, vector<16x16x32xbf16>,
    %c0_12 = arith.constant 0 : index
    %c0_13 = arith.constant 0 : index
    %c0_14 = arith.constant 0 : index
    %c0_15 = arith.constant 0 : index
    %7 = vector.load %arg2[%c0_12, %c0_13, %c0_14, %c0_15] : memref<1x16x16x32xbf16, #tpu.memory_space<vmem>>, vector<1x16x16x32xbf16>
    %8 = vector.shape_cast %7 : vector<1x16x16x32xbf16> to vector<16x16x32xbf16>
    %c1_16 = arith.constant 1 : index
    %c1_17 = arith.constant 1 : index
    %c0_18 = arith.constant 0 : index
    %9 = vector.load %arg7[%c1_16, %c1_17, %c0_18] : memref<18x18x32xbf16, #tpu.memory_space<vmem>>, vector<16x16x32xbf16>
    tpu.vector_store %arg7[%c1_16, %c1_17, %c0_18], %8 {strides = array<i32>} : memref<18x18x32xbf16, #tpu.memory_space<vmem>>, vector<16x16x32xbf16>,
    %cst_19 = arith.constant 0.000000e+00 : f32
    %10 = vector.broadcast %cst_19 : f32 to vector<256x32xf32>
    %c0_20 = arith.constant 0 : index
    %c0_21 = arith.constant 0 : index
    %c0_22 = arith.constant 0 : index
    %11 = vector.load %arg6[%c0_20, %c0_21, %c0_22] : memref<18x18x32xbf16, #tpu.memory_space<vmem>>, vector<16x16x32xbf16>
    %12 = vector.shape_cast %11 : vector<16x16x32xbf16> to vector<256x32xbf16>
    %c0_23 = arith.constant 0 : index
    %c0_24 = arith.constant 0 : index
    %c0_25 = arith.constant 0 : index
    %13 = vector.load %arg7[%c0_23, %c0_24, %c0_25] : memref<18x18x32xbf16, #tpu.memory_space<vmem>>, vector<16x16x32xbf16>
    %14 = vector.shape_cast %13 : vector<16x16x32xbf16> to vector<256x32xbf16>
    %c0_26 = arith.constant 0 : index
    %c0_27 = arith.constant 0 : index
    %c0_28 = arith.constant 0 : index
    %15 = vector.load %arg3[%c0_26, %c0_27, %c0_28] : memref<9x32x32xbf16, #tpu.memory_space<vmem>>, vector<1x32x32xbf16>
    %16 = vector.shape_cast %15 : vector<1x32x32xbf16> to vector<32x32xbf16>
    %cst_29 = arith.constant dense<0.000000e+00> : vector<256x32xf32>
    %17 = tpu.matmul %12, %16, %cst_29 {dimension_numbers = #tpu.dot_dimension_numbers<[1], [0], [0], [1], [0, 0, 1, 1], [], []>} : vector<256x32xbf16>, vector<32x32xbf16>, vector<256x32xf32> -> vector<256x32xf32>
    %18 = arith.addf %10, %17 : vector<256x32xf32>
    %c0_30 = arith.constant 0 : index
    %c0_31 = arith.constant 0 : index
    %c0_32 = arith.constant 0 : index
    %19 = vector.load %arg4[%c0_30, %c0_31, %c0_32] : memref<9x32x32xbf16, #tpu.memory_space<vmem>>, vector<1x32x32xbf16>
    %20 = vector.shape_cast %19 : vector<1x32x32xbf16> to vector<32x32xbf16>
    %cst_33 = arith.constant dense<0.000000e+00> : vector<256x32xf32>
    %21 = tpu.matmul %14, %20, %cst_33 {dimension_numbers = #tpu.dot_dimension_numbers<[1], [0], [0], [1], [0, 0, 1, 1], [], []>} : vector<256x32xbf16>, vector<32x32xbf16>, vector<256x32xf32> -> vector<256x32xf32>
    %22 = arith.addf %18, %21 : vector<256x32xf32>
    %c0_34 = arith.constant 0 : index
    %c1_35 = arith.constant 1 : index
    %c0_36 = arith.constant 0 : index
    %23 = vector.load %arg6[%c0_34, %c1_35, %c0_36] : memref<18x18x32xbf16, #tpu.memory_space<vmem>>, vector<16x16x32xbf16>
    %24 = vector.shape_cast %23 : vector<16x16x32xbf16> to vector<256x32xbf16>
    %c0_37 = arith.constant 0 : index
    %c1_38 = arith.constant 1 : index
    %c0_39 = arith.constant 0 : index
    %25 = vector.load %arg7[%c0_37, %c1_38, %c0_39] : memref<18x18x32xbf16, #tpu.memory_space<vmem>>, vector<16x16x32xbf16>
    %26 = vector.shape_cast %25 : vector<16x16x32xbf16> to vector<256x32xbf16>
    %c1_40 = arith.constant 1 : index
    %c0_41 = arith.constant 0 : index
    %c0_42 = arith.constant 0 : index
    %27 = vector.load %arg3[%c1_40, %c0_41, %c0_42] : memref<9x32x32xbf16, #tpu.memory_space<vmem>>, vector<1x32x32xbf16>
    %28 = vector.shape_cast %27 : vector<1x32x32xbf16> to vector<32x32xbf16>
    %cst_43 = arith.constant dense<0.000000e+00> : vector<256x32xf32>
    %29 = tpu.matmul %24, %28, %cst_43 {dimension_numbers = #tpu.dot_dimension_numbers<[1], [0], [0], [1], [0, 0, 1, 1], [], []>} : vector<256x32xbf16>, vector<32x32xbf16>, vector<256x32xf32> -> vector<256x32xf32>
    %30 = arith.addf %22, %29 : vector<256x32xf32>
    %c1_44 = arith.constant 1 : index
    %c0_45 = arith.constant 0 : index
    %c0_46 = arith.constant 0 : index
    %31 = vector.load %arg4[%c1_44, %c0_45, %c0_46] : memref<9x32x32xbf16, #tpu.memory_space<vmem>>, vector<1x32x32xbf16>
    %32 = vector.shape_cast %31 : vector<1x32x32xbf16> to vector<32x32xbf16>
    %cst_47 = arith.constant dense<0.000000e+00> : vector<256x32xf32>
    %33 = tpu.matmul %26, %32, %cst_47 {dimension_numbers = #tpu.dot_dimension_numbers<[1], [0], [0], [1], [0, 0, 1, 1], [], []>} : vector<256x32xbf16>, vector<32x32xbf16>, vector<256x32xf32> -> vector<256x32xf32>
    %34 = arith.addf %30, %33 : vector<256x32xf32>
    %c0_48 = arith.constant 0 : index
    %c2 = arith.constant 2 : index
    %c0_49 = arith.constant 0 : index
    %35 = vector.load %arg6[%c0_48, %c2, %c0_49] : memref<18x18x32xbf16, #tpu.memory_space<vmem>>, vector<16x16x32xbf16>
    %36 = vector.shape_cast %35 : vector<16x16x32xbf16> to vector<256x32xbf16>
    %c0_50 = arith.constant 0 : index
    %c2_51 = arith.constant 2 : index
    %c0_52 = arith.constant 0 : index
    %37 = vector.load %arg7[%c0_50, %c2_51, %c0_52] : memref<18x18x32xbf16, #tpu.memory_space<vmem>>, vector<16x16x32xbf16>
    %38 = vector.shape_cast %37 : vector<16x16x32xbf16> to vector<256x32xbf16>
    %c2_53 = arith.constant 2 : index
    %c0_54 = arith.constant 0 : index
    %c0_55 = arith.constant 0 : index
    %39 = vector.load %arg3[%c2_53, %c0_54, %c0_55] : memref<9x32x32xbf16, #tpu.memory_space<vmem>>, vector<1x32x32xbf16>
    %40 = vector.shape_cast %39 : vector<1x32x32xbf16> to vector<32x32xbf16>
    %cst_56 = arith.constant dense<0.000000e+00> : vector<256x32xf32>
    %41 = tpu.matmul %36, %40, %cst_56 {dimension_numbers = #tpu.dot_dimension_numbers<[1], [0], [0], [1], [0, 0, 1, 1], [], []>} : vector<256x32xbf16>, vector<32x32xbf16>, vector<256x32xf32> -> vector<256x32xf32>
    %42 = arith.addf %34, %41 : vector<256x32xf32>
    %c2_57 = arith.constant 2 : index
    %c0_58 = arith.constant 0 : index
    %c0_59 = arith.constant 0 : index
    %43 = vector.load %arg4[%c2_57, %c0_58, %c0_59] : memref<9x32x32xbf16, #tpu.memory_space<vmem>>, vector<1x32x32xbf16>
    %44 = vector.shape_cast %43 : vector<1x32x32xbf16> to vector<32x32xbf16>
    %cst_60 = arith.constant dense<0.000000e+00> : vector<256x32xf32>
    %45 = tpu.matmul %38, %44, %cst_60 {dimension_numbers = #tpu.dot_dimension_numbers<[1], [0], [0], [1], [0, 0, 1, 1], [], []>} : vector<256x32xbf16>, vector<32x32xbf16>, vector<256x32xf32> -> vector<256x32xf32>
    %46 = arith.addf %42, %45 : vector<256x32xf32>
    %c1_61 = arith.constant 1 : index
    %c0_62 = arith.constant 0 : index
    %c0_63 = arith.constant 0 : index
    %47 = vector.load %arg6[%c1_61, %c0_62, %c0_63] : memref<18x18x32xbf16, #tpu.memory_space<vmem>>, vector<16x16x32xbf16>
    %48 = vector.shape_cast %47 : vector<16x16x32xbf16> to vector<256x32xbf16>
    %c1_64 = arith.constant 1 : index
    %c0_65 = arith.constant 0 : index
    %c0_66 = arith.constant 0 : index
    %49 = vector.load %arg7[%c1_64, %c0_65, %c0_66] : memref<18x18x32xbf16, #tpu.memory_space<vmem>>, vector<16x16x32xbf16>
    %50 = vector.shape_cast %49 : vector<16x16x32xbf16> to vector<256x32xbf16>
    %c3 = arith.constant 3 : index
    %c0_67 = arith.constant 0 : index
    %c0_68 = arith.constant 0 : index
    %51 = vector.load %arg3[%c3, %c0_67, %c0_68] : memref<9x32x32xbf16, #tpu.memory_space<vmem>>, vector<1x32x32xbf16>
    %52 = vector.shape_cast %51 : vector<1x32x32xbf16> to vector<32x32xbf16>
    %cst_69 = arith.constant dense<0.000000e+00> : vector<256x32xf32>
    %53 = tpu.matmul %48, %52, %cst_69 {dimension_numbers = #tpu.dot_dimension_numbers<[1], [0], [0], [1], [0, 0, 1, 1], [], []>} : vector<256x32xbf16>, vector<32x32xbf16>, vector<256x32xf32> -> vector<256x32xf32>
    %54 = arith.addf %46, %53 : vector<256x32xf32>
    %c3_70 = arith.constant 3 : index
    %c0_71 = arith.constant 0 : index
    %c0_72 = arith.constant 0 : index
    %55 = vector.load %arg4[%c3_70, %c0_71, %c0_72] : memref<9x32x32xbf16, #tpu.memory_space<vmem>>, vector<1x32x32xbf16>
    %56 = vector.shape_cast %55 : vector<1x32x32xbf16> to vector<32x32xbf16>
    %cst_73 = arith.constant dense<0.000000e+00> : vector<256x32xf32>
    %57 = tpu.matmul %50, %56, %cst_73 {dimension_numbers = #tpu.dot_dimension_numbers<[1], [0], [0], [1], [0, 0, 1, 1], [], []>} : vector<256x32xbf16>, vector<32x32xbf16>, vector<256x32xf32> -> vector<256x32xf32>
    %58 = arith.addf %54, %57 : vector<256x32xf32>
    %c1_74 = arith.constant 1 : index
    %c1_75 = arith.constant 1 : index
    %c0_76 = arith.constant 0 : index
    %59 = vector.load %arg6[%c1_74, %c1_75, %c0_76] : memref<18x18x32xbf16, #tpu.memory_space<vmem>>, vector<16x16x32xbf16>
    %60 = vector.shape_cast %59 : vector<16x16x32xbf16> to vector<256x32xbf16>
    %c1_77 = arith.constant 1 : index
    %c1_78 = arith.constant 1 : index
    %c0_79 = arith.constant 0 : index
    %61 = vector.load %arg7[%c1_77, %c1_78, %c0_79] : memref<18x18x32xbf16, #tpu.memory_space<vmem>>, vector<16x16x32xbf16>
    %62 = vector.shape_cast %61 : vector<16x16x32xbf16> to vector<256x32xbf16>
    %c4 = arith.constant 4 : index
    %c0_80 = arith.constant 0 : index
    %c0_81 = arith.constant 0 : index
    %63 = vector.load %arg3[%c4, %c0_80, %c0_81] : memref<9x32x32xbf16, #tpu.memory_space<vmem>>, vector<1x32x32xbf16>
    %64 = vector.shape_cast %63 : vector<1x32x32xbf16> to vector<32x32xbf16>
    %cst_82 = arith.constant dense<0.000000e+00> : vector<256x32xf32>
    %65 = tpu.matmul %60, %64, %cst_82 {dimension_numbers = #tpu.dot_dimension_numbers<[1], [0], [0], [1], [0, 0, 1, 1], [], []>} : vector<256x32xbf16>, vector<32x32xbf16>, vector<256x32xf32> -> vector<256x32xf32>
    %66 = arith.addf %58, %65 : vector<256x32xf32>
    %c4_83 = arith.constant 4 : index
    %c0_84 = arith.constant 0 : index
    %c0_85 = arith.constant 0 : index
    %67 = vector.load %arg4[%c4_83, %c0_84, %c0_85] : memref<9x32x32xbf16, #tpu.memory_space<vmem>>, vector<1x32x32xbf16>
    %68 = vector.shape_cast %67 : vector<1x32x32xbf16> to vector<32x32xbf16>
    %cst_86 = arith.constant dense<0.000000e+00> : vector<256x32xf32>
    %69 = tpu.matmul %62, %68, %cst_86 {dimension_numbers = #tpu.dot_dimension_numbers<[1], [0], [0], [1], [0, 0, 1, 1], [], []>} : vector<256x32xbf16>, vector<32x32xbf16>, vector<256x32xf32> -> vector<256x32xf32>
    %70 = arith.addf %66, %69 : vector<256x32xf32>
    %c1_87 = arith.constant 1 : index
    %c2_88 = arith.constant 2 : index
    %c0_89 = arith.constant 0 : index
    %71 = vector.load %arg6[%c1_87, %c2_88, %c0_89] : memref<18x18x32xbf16, #tpu.memory_space<vmem>>, vector<16x16x32xbf16>
    %72 = vector.shape_cast %71 : vector<16x16x32xbf16> to vector<256x32xbf16>
    %c1_90 = arith.constant 1 : index
    %c2_91 = arith.constant 2 : index
    %c0_92 = arith.constant 0 : index
    %73 = vector.load %arg7[%c1_90, %c2_91, %c0_92] : memref<18x18x32xbf16, #tpu.memory_space<vmem>>, vector<16x16x32xbf16>
    %74 = vector.shape_cast %73 : vector<16x16x32xbf16> to vector<256x32xbf16>
    %c5 = arith.constant 5 : index
    %c0_93 = arith.constant 0 : index
    %c0_94 = arith.constant 0 : index
    %75 = vector.load %arg3[%c5, %c0_93, %c0_94] : memref<9x32x32xbf16, #tpu.memory_space<vmem>>, vector<1x32x32xbf16>
    %76 = vector.shape_cast %75 : vector<1x32x32xbf16> to vector<32x32xbf16>
    %cst_95 = arith.constant dense<0.000000e+00> : vector<256x32xf32>
    %77 = tpu.matmul %72, %76, %cst_95 {dimension_numbers = #tpu.dot_dimension_numbers<[1], [0], [0], [1], [0, 0, 1, 1], [], []>} : vector<256x32xbf16>, vector<32x32xbf16>, vector<256x32xf32> -> vector<256x32xf32>
    %78 = arith.addf %70, %77 : vector<256x32xf32>
    %c5_96 = arith.constant 5 : index
    %c0_97 = arith.constant 0 : index
    %c0_98 = arith.constant 0 : index
    %79 = vector.load %arg4[%c5_96, %c0_97, %c0_98] : memref<9x32x32xbf16, #tpu.memory_space<vmem>>, vector<1x32x32xbf16>
    %80 = vector.shape_cast %79 : vector<1x32x32xbf16> to vector<32x32xbf16>
    %cst_99 = arith.constant dense<0.000000e+00> : vector<256x32xf32>
    %81 = tpu.matmul %74, %80, %cst_99 {dimension_numbers = #tpu.dot_dimension_numbers<[1], [0], [0], [1], [0, 0, 1, 1], [], []>} : vector<256x32xbf16>, vector<32x32xbf16>, vector<256x32xf32> -> vector<256x32xf32>
    %82 = arith.addf %78, %81 : vector<256x32xf32>
    %c2_100 = arith.constant 2 : index
    %c0_101 = arith.constant 0 : index
    %c0_102 = arith.constant 0 : index
    %83 = vector.load %arg6[%c2_100, %c0_101, %c0_102] : memref<18x18x32xbf16, #tpu.memory_space<vmem>>, vector<16x16x32xbf16>
    %84 = vector.shape_cast %83 : vector<16x16x32xbf16> to vector<256x32xbf16>
    %c2_103 = arith.constant 2 : index
    %c0_104 = arith.constant 0 : index
    %c0_105 = arith.constant 0 : index
    %85 = vector.load %arg7[%c2_103, %c0_104, %c0_105] : memref<18x18x32xbf16, #tpu.memory_space<vmem>>, vector<16x16x32xbf16>
    %86 = vector.shape_cast %85 : vector<16x16x32xbf16> to vector<256x32xbf16>
    %c6 = arith.constant 6 : index
    %c0_106 = arith.constant 0 : index
    %c0_107 = arith.constant 0 : index
    %87 = vector.load %arg3[%c6, %c0_106, %c0_107] : memref<9x32x32xbf16, #tpu.memory_space<vmem>>, vector<1x32x32xbf16>
    %88 = vector.shape_cast %87 : vector<1x32x32xbf16> to vector<32x32xbf16>
    %cst_108 = arith.constant dense<0.000000e+00> : vector<256x32xf32>
    %89 = tpu.matmul %84, %88, %cst_108 {dimension_numbers = #tpu.dot_dimension_numbers<[1], [0], [0], [1], [0, 0, 1, 1], [], []>} : vector<256x32xbf16>, vector<32x32xbf16>, vector<256x32xf32> -> vector<256x32xf32>
    %90 = arith.addf %82, %89 : vector<256x32xf32>
    %c6_109 = arith.constant 6 : index
    %c0_110 = arith.constant 0 : index
    %c0_111 = arith.constant 0 : index
    %91 = vector.load %arg4[%c6_109, %c0_110, %c0_111] : memref<9x32x32xbf16, #tpu.memory_space<vmem>>, vector<1x32x32xbf16>
    %92 = vector.shape_cast %91 : vector<1x32x32xbf16> to vector<32x32xbf16>
    %cst_112 = arith.constant dense<0.000000e+00> : vector<256x32xf32>
    %93 = tpu.matmul %86, %92, %cst_112 {dimension_numbers = #tpu.dot_dimension_numbers<[1], [0], [0], [1], [0, 0, 1, 1], [], []>} : vector<256x32xbf16>, vector<32x32xbf16>, vector<256x32xf32> -> vector<256x32xf32>
    %94 = arith.addf %90, %93 : vector<256x32xf32>
    %c2_113 = arith.constant 2 : index
    %c1_114 = arith.constant 1 : index
    %c0_115 = arith.constant 0 : index
    %95 = vector.load %arg6[%c2_113, %c1_114, %c0_115] : memref<18x18x32xbf16, #tpu.memory_space<vmem>>, vector<16x16x32xbf16>
    %96 = vector.shape_cast %95 : vector<16x16x32xbf16> to vector<256x32xbf16>
    %c2_116 = arith.constant 2 : index
    %c1_117 = arith.constant 1 : index
    %c0_118 = arith.constant 0 : index
    %97 = vector.load %arg7[%c2_116, %c1_117, %c0_118] : memref<18x18x32xbf16, #tpu.memory_space<vmem>>, vector<16x16x32xbf16>
    %98 = vector.shape_cast %97 : vector<16x16x32xbf16> to vector<256x32xbf16>
    %c7 = arith.constant 7 : index
    %c0_119 = arith.constant 0 : index
    %c0_120 = arith.constant 0 : index
    %99 = vector.load %arg3[%c7, %c0_119, %c0_120] : memref<9x32x32xbf16, #tpu.memory_space<vmem>>, vector<1x32x32xbf16>
    %100 = vector.shape_cast %99 : vector<1x32x32xbf16> to vector<32x32xbf16>
    %cst_121 = arith.constant dense<0.000000e+00> : vector<256x32xf32>
    %101 = tpu.matmul %96, %100, %cst_121 {dimension_numbers = #tpu.dot_dimension_numbers<[1], [0], [0], [1], [0, 0, 1, 1], [], []>} : vector<256x32xbf16>, vector<32x32xbf16>, vector<256x32xf32> -> vector<256x32xf32>
    %102 = arith.addf %94, %101 : vector<256x32xf32>
    %c7_122 = arith.constant 7 : index
    %c0_123 = arith.constant 0 : index
    %c0_124 = arith.constant 0 : index
    %103 = vector.load %arg4[%c7_122, %c0_123, %c0_124] : memref<9x32x32xbf16, #tpu.memory_space<vmem>>, vector<1x32x32xbf16>
    %104 = vector.shape_cast %103 : vector<1x32x32xbf16> to vector<32x32xbf16>
    %cst_125 = arith.constant dense<0.000000e+00> : vector<256x32xf32>
    %105 = tpu.matmul %98, %104, %cst_125 {dimension_numbers = #tpu.dot_dimension_numbers<[1], [0], [0], [1], [0, 0, 1, 1], [], []>} : vector<256x32xbf16>, vector<32x32xbf16>, vector<256x32xf32> -> vector<256x32xf32>
    %106 = arith.addf %102, %105 : vector<256x32xf32>
    %c2_126 = arith.constant 2 : index
    %c2_127 = arith.constant 2 : index
    %c0_128 = arith.constant 0 : index
    %107 = vector.load %arg6[%c2_126, %c2_127, %c0_128] : memref<18x18x32xbf16, #tpu.memory_space<vmem>>, vector<16x16x32xbf16>
    %108 = vector.shape_cast %107 : vector<16x16x32xbf16> to vector<256x32xbf16>
    %c2_129 = arith.constant 2 : index
    %c2_130 = arith.constant 2 : index
    %c0_131 = arith.constant 0 : index
    %109 = vector.load %arg7[%c2_129, %c2_130, %c0_131] : memref<18x18x32xbf16, #tpu.memory_space<vmem>>, vector<16x16x32xbf16>
    %110 = vector.shape_cast %109 : vector<16x16x32xbf16> to vector<256x32xbf16>
    %c8 = arith.constant 8 : index
    %c0_132 = arith.constant 0 : index
    %c0_133 = arith.constant 0 : index
    %111 = vector.load %arg3[%c8, %c0_132, %c0_133] : memref<9x32x32xbf16, #tpu.memory_space<vmem>>, vector<1x32x32xbf16>
    %112 = vector.shape_cast %111 : vector<1x32x32xbf16> to vector<32x32xbf16>
    %cst_134 = arith.constant dense<0.000000e+00> : vector<256x32xf32>
    %113 = tpu.matmul %108, %112, %cst_134 {dimension_numbers = #tpu.dot_dimension_numbers<[1], [0], [0], [1], [0, 0, 1, 1], [], []>} : vector<256x32xbf16>, vector<32x32xbf16>, vector<256x32xf32> -> vector<256x32xf32>
    %114 = arith.addf %106, %113 : vector<256x32xf32>
    %c8_135 = arith.constant 8 : index
    %c0_136 = arith.constant 0 : index
    %c0_137 = arith.constant 0 : index
    %115 = vector.load %arg4[%c8_135, %c0_136, %c0_137] : memref<9x32x32xbf16, #tpu.memory_space<vmem>>, vector<1x32x32xbf16>
    %116 = vector.shape_cast %115 : vector<1x32x32xbf16> to vector<32x32xbf16>
    %cst_138 = arith.constant dense<0.000000e+00> : vector<256x32xf32>
    %117 = tpu.matmul %110, %116, %cst_138 {dimension_numbers = #tpu.dot_dimension_numbers<[1], [0], [0], [1], [0, 0, 1, 1], [], []>} : vector<256x32xbf16>, vector<32x32xbf16>, vector<256x32xf32> -> vector<256x32xf32>
    %118 = arith.addf %114, %117 : vector<256x32xf32>
    %cst_139 = arith.constant 0.000000e+00 : f32
    %119 = vector.broadcast %cst_139 : f32 to vector<256x32xf32>
    %120 = arith.cmpf oge, %118, %119 : vector<256x32xf32>
    %cst_140 = arith.constant 0.00999999977 : f32
    %121 = vector.broadcast %cst_140 : f32 to vector<256x32xf32>
    %122 = arith.mulf %121, %118 : vector<256x32xf32>
    %123 = arith.select %120, %118, %122 : vector<256x32xi1>, vector<256x32xf32>
    %cst_141 = arith.constant dense<0.000000e+00> : vector<32xf32>
    %124 = vector.multi_reduction <add>, %123, %cst_141 [0] : vector<256x32xf32> to vector<32xf32>
    %125 = vector.shape_cast %124 : vector<32xf32> to vector<1x32xf32>
    %cst_142 = arith.constant 2.560000e+02 : f32
    %126 = vector.broadcast %cst_142 : f32 to vector<1x32xf32>
    %127 = arith.divf %125, %126 : vector<1x32xf32>
    %128 = vector.broadcast %127 : vector<1x32xf32> to vector<256x32xf32>
    %129 = arith.subf %123, %128 : vector<256x32xf32>
    %130 = arith.mulf %129, %129 : vector<256x32xf32>
    %cst_143 = arith.constant dense<0.000000e+00> : vector<32xf32>
    %131 = vector.multi_reduction <add>, %130, %cst_143 [0] : vector<256x32xf32> to vector<32xf32>
    %132 = vector.shape_cast %131 : vector<32xf32> to vector<1x32xf32>
    %cst_144 = arith.constant 2.560000e+02 : f32
    %133 = vector.broadcast %cst_144 : f32 to vector<1x32xf32>
    %134 = arith.divf %132, %133 : vector<1x32xf32>
    %135 = vector.broadcast %127 : vector<1x32xf32> to vector<256x32xf32>
    %136 = arith.subf %123, %135 : vector<256x32xf32>
    %cst_145 = arith.constant 9.99999974E-6 : f32
    %137 = vector.broadcast %cst_145 : f32 to vector<1x32xf32>
    %138 = arith.addf %134, %137 : vector<1x32xf32>
    %139 = math.rsqrt %138 : vector<1x32xf32>
    %140 = vector.broadcast %139 : vector<1x32xf32> to vector<256x32xf32>
    %141 = arith.mulf %136, %140 : vector<256x32xf32>
    %142 = vector.shape_cast %141 : vector<256x32xf32> to vector<16x16x32xf32>
    %c0_146 = arith.constant 0 : index
    %c0_147 = arith.constant 0 : index
    %c0_148 = arith.constant 0 : index
    %c0_149 = arith.constant 0 : index
    %143 = vector.load %arg5[%c0_146, %c0_147, %c0_148, %c0_149] : memref<1x16x16x32xf32, #tpu.memory_space<vmem>>, vector<1x16x16x32xf32>
    %144 = vector.shape_cast %143 : vector<1x16x16x32xf32> to vector<16x16x32xf32>
    %145 = vector.shape_cast %142 : vector<16x16x32xf32> to vector<1x16x16x32xf32>
    tpu.vector_store %arg5[%c0_146, %c0_147, %c0_148, %c0_149], %145 {strides = array<i32>} : memref<1x16x16x32xf32, #tpu.memory_space<vmem>>, vector<1x16x16x32xf32>,
    return
  }
  func.func @transform_0(%arg0: i32) -> (i32, i32, i32, i32) {
    %c0_i32 = arith.constant 0 : i32
    %c0_i32_0 = arith.constant 0 : i32
    %c0_i32_1 = arith.constant 0 : i32
    %c0_i32_2 = arith.constant 0 : i32
    return %arg0, %c0_i32, %c0_i32_0, %c0_i32_1 : i32, i32, i32, i32
  }
  func.func @transform_1(%arg0: i32) -> (i32, i32, i32, i32) {
    %c0_i32 = arith.constant 0 : i32
    %c0_i32_0 = arith.constant 0 : i32
    %c0_i32_1 = arith.constant 0 : i32
    %c0_i32_2 = arith.constant 0 : i32
    return %arg0, %c0_i32, %c0_i32_0, %c0_i32_1 : i32, i32, i32, i32
  }
  func.func @transform_2(%arg0: i32) -> (i32, i32, i32) {
    %c0_i32 = arith.constant 0 : i32
    %c0_i32_0 = arith.constant 0 : i32
    %c0_i32_1 = arith.constant 0 : i32
    %c0_i32_2 = arith.constant 0 : i32
    return %c0_i32, %c0_i32_0, %c0_i32_1 : i32, i32, i32
  }
  func.func @transform_3(%arg0: i32) -> (i32, i32, i32) {
    %c0_i32 = arith.constant 0 : i32
    %c0_i32_0 = arith.constant 0 : i32
    %c0_i32_1 = arith.constant 0 : i32
    %c0_i32_2 = arith.constant 0 : i32
    return %c0_i32, %c0_i32_0, %c0_i32_1 : i32, i32, i32
  }
  func.func @transform_4(%arg0: i32) -> (i32, i32, i32, i32) {
    %c0_i32 = arith.constant 0 : i32
    %c0_i32_0 = arith.constant 0 : i32
    %c0_i32_1 = arith.constant 0 : i32
    %c0_i32_2 = arith.constant 0 : i32
    return %arg0, %c0_i32, %c0_i32_0, %c0_i32_1 : i32, i32, i32, i32
  }
}

</mosaic_0001>

<bundles_post_ra>
// kernel: simple_upsample_forward.2
= control target key start
LH: loop header
LB: loop body
LE: loop exit
PB: predicated region body
PF: predicated region fallthrough
CT: control target
= control target key end

     0   :  { %s513_s9 = smov 0   ;;  %s549_s0 = inlined_call_operand.vmem [shape: bf16[2,64,64], index: 0, kind: input, shape index: {}]   ;;  %s550_s1 = inlined_call_operand.vmem [shape: bf16[64,128], index: 1, kind: input, shape index: {}]   ;;  %s551_s2 = inlined_call_operand.vmem [shape: bf16[2,64,128], index: 2, kind: output, shape index: {}]  }
   0x1 LB: > { %s378_s10 = sadd.s32 4294967295, %s496_s9   ;;  %p382_p0 = scmp.ge.s32.totalorder %s496_s9, 1  ;;  %s496_s9 = sphi %s513_s9, %s12_s9  }
   0x2   : > { %p112_p1 = scmp.lt.s32.totalorder %s496_s9, 3 }
   0x4   : > { %p113_p2 = pnand %p382_p0, %p112_p1 }
   0x5   : > { %p134_p3 = scmp.lt.s32.totalorder (!%p113_p2), %s378_s10, 1 }
   0x6   : > { %116 = sbr.rel (%p113_p2) target bundleno = 230 (0xe6), region = 28 }
   0xb   : > { %v482_v0 = vld [vmem:[%s550_s1 + $0x18] sm:$0xff]   ;;  %v483_v1 = vld [vmem:[%s550_s1 + $0x10] sm:$0xff]   ;;  %s553_s10 = smov (!%p134_p3, %s378_s10), 1  ;;  %v484_v2 = vld [vmem:[%s550_s1 + $0x8] sm:$0xff]   ;;  %vm205_vm0 = vcmask 523264  }
   0xc   : > { %450 = vmatprep.subr.bf16.mxu0 %v482_v0  ;;  %466 = vmatprep.subr.bf16.mxu1 %v482_v0  ;;  %s409_s17 = sshll.u32 %s553_s10, 5  ;;  %v485_v5 = vld [vmem:[%s550_s1] sm:$0xff]  }
   0xd   : > { %451 = vmatpush3.bf16.msra.mxu0 %v482_v0  ;;  %470 = vmatpush3.bf16.msra.mxu1 %v482_v0  ;;  %s138_s20 = scalar_lea.vmem %s549_s0, %s409_s17  ;;  %s143_s25 = scalar_lea.vmem %s551_s2, %s409_s17 }
   0xe   : > { %452 = vmatprep.subr.bf16.mxu0 %v483_v1  ;;  %467 = vmatprep.subr.bf16.mxu1 %v483_v1  ;;  %v486_v3 = vld [vmem:[%s138_s20] sm:$0xff]   ;;  %v487_v4 = vld [vmem:[%s138_s20 + $0x10] sm:$0xff]   ;;  %v488_v6 = vld [vmem:[%s138_s20 + $0x8] sm:$0xff]  }
   0xf   : > { %458 = vmatprep.mubr.msk.bf16.mxu0 %vm205_vm0, %v486_v3  ;;  %462 = vmatprep.mubr.msk.bf16.mxu1 %vm205_vm0, %v487_v4  ;;  %v489_v7 = vld [vmem:[%s138_s20 + $0x18] sm:$0xff]  }
  0x11   : > { %453 = vmatpush3.bf16.msra.mxu0 %v483_v1  ;;  %471 = vmatpush3.bf16.msra.mxu1 %v483_v1 }
  0x12   : > { %454 = vmatprep.subr.bf16.mxu0 %v484_v2  ;;  %468 = vmatprep.subr.bf16.mxu1 %v484_v2 }
  0x15   : > { %455 = vmatpush3.bf16.msra.mxu0 %v484_v2  ;;  %472 = vmatpush3.bf16.msra.mxu1 %v484_v2 }
  0x16   : > { %456 = vmatprep.subr.bf16.mxu0 %v485_v5  ;;  %469 = vmatprep.subr.bf16.mxu1 %v485_v5 }
  0x19   : > { %457 = vmatpush3.bf16.msra.mxu0 %v485_v5  ;;  %473 = vmatpush3.bf16.msra.mxu1 %v485_v5 }
  0x1c   : > { %459 = vmatmul.mubr.msk.bf16.vlgmr.msra.gmra.mxu0 %vm205_vm0, %v488_v6  ;;  %463 = vmatmul.mubr.msk.bf16.vlgmr.msra.gmra.mxu1 %vm205_vm0, %v489_v7 }
  0xdc   : > { %v460_v8 = vpop.f32.mrf.mxu0  ;;  %v464_v9 = vpop.f32.mrf.mxu1 }
  0xde   : > { %v252_v10 = vpop.f32.mrf.mxu0  ;;  %v268_v11 = vpop.f32.mrf.mxu1 }
  0xe0   : > { %v461_v12 = vpop.f32.mrf.mxu0  ;;  %v465_v13 = vpop.f32.mrf.mxu1 }
  0xe1   : > { %v427_v14 = vpack.c.bf16 %v461_v12, %v460_v8  ;;  %v437_v15 = vpack.c.bf16 %v465_v13, %v464_v9 }
  0xe2   : > { %v255_v16 = vpop.f32.mrf.mxu0  ;;  %v271_v17 = vpop.f32.mrf.mxu1 }
  0xe3   : > { %439 = vst [vmem:[%s143_s25 + $0x8] sm:$0xff] %v427_v14   ;;  %441 = vst [vmem:[%s143_s25 + $0x18] sm:$0xff] %v437_v15   ;;  %v422_v18 = vpack.c.bf16 %v255_v16, %v252_v10  ;;  %v432_v19 = vpack.c.bf16 %v271_v17, %v268_v11 }
  0xe5   : > { %423 = vst [vmem:[%s143_s25] sm:$0xff] %v422_v18   ;;  %440 = vst [vmem:[%s143_s25 + $0x10] sm:$0xff] %v432_v19  }
  0xe6 PF: > { %s12_s9 = sadd.s32 1, %s496_s9  }
  0xe7   : > { %p9_p4 = scmp.ge.s32.totalorder %s12_s9, 4  }
  0xe9   :  { %11 = sbr.rel (!%p9_p4) target bundleno = 1 (0x1), region = 58 }

// kernel: simple_upsample_forward.3
= control target key start
LH: loop header
LB: loop body
LE: loop exit
PB: predicated region body
PF: predicated region fallthrough
CT: control target
= control target key end

     0   :  { %9 = vsyncpa [#allocation5], 0  ;;  %s17877_s0 = inlined_call_operand.vmem [shape: bf16[2,16,16,32], index: 0, kind: input, shape index: {}]   ;;  %s17878_s1 = inlined_call_operand.vmem [shape: bf16[2,16,16,32], index: 1, kind: input, shape index: {}]   ;;  %s17879_s2 = inlined_call_operand.vmem [shape: bf16[9,32,32], index: 2, kind: input, shape index: {}]   ;;  %s17880_s3 = inlined_call_operand.vmem [shape: bf16[9,32,32], index: 3, kind: input, shape index: {}]   ;;  %s17881_s4 = inlined_call_operand.hbm [shape: f32[2,16,16,32], index: 4, kind: output, shape index: {}]  }
   0x1   :  { %11 = vsyncpa [#allocation5 + $0x1], 0  ;;  %s13400_s15 = smov 0   ;;  %s13402_s16 = smov 0  }
   0x2   :  { %s13404_s17 = smov 0   ;;  %s13406_s18 = smov 0  }
   0x3 LB: > { %s13421_s19 = sadd.s32 4294967295, %s13369_s18   ;;  %s11203_s20 = sadd.s32 4294967294, %s13369_s18   ;;  %s13369_s18 = sphi %s13406_s18, %s18293_s18   ;;  %s13365_s17 = sphi %s13404_s17, %s18292_s17   ;;  %s13361_s16 = sphi %s13402_s16, %s18291_s16   ;;  %s13357_s15 = sphi %s13400_s15, %s18290_s15  }
   0x4   : > { %s13425_s21 = sadd.s32 1, %s13369_s18   ;;  %s118_s22 = sadd.s32 1, %s13365_s17 }
   0x5   : > { %s115_s23 = ssub.s32 %s13369_s18, %s13425_s21  ;;  %p128_p0 = scmp.ne.s32.totalorder %s13365_s17, %s13361_s16 }
   0x6   : > { %p116_p1 = scmp.eq.s32.totalorder %s115_s23, 0  ;;  %p129_p2 = scmp.eq.s32.totalorder %s13421_s19, 1 }
   0x7   : > { %p134_p3 = scmp.ne.s32.totalorder %s13361_s16, %s13357_s15  ;;  %p135_p4 = scmp.eq.s32.totalorder %s11203_s20, 1 }
   0x8   : > { %s13436_s24 = scalar_select %p116_p1, %s13365_s17, %s118_s22  }
   0x9   : > { %p13438_p5 = por %p129_p2, %p128_p0  ;;  %p13442_p6 = por %p135_p4, %p134_p3 }
   0xa   : > { %p11206_p7 = scmp.ge.s32.totalorder %s13369_s18, 1  ;;  %p175_p8 = scmp.lt.s32.totalorder %s13369_s18, 3 }
   0xc   : > { %p176_p9 = pnand %p11206_p7, %p175_p8 }
   0xe   : > { %179 = sbr.rel (%p176_p9) target bundleno = 1215 (0x4bf), region = 36 }
  0x13   : > { %v13451_v0 = vld [vmem:[%s17880_s3 + $0x8] sm:$0xff]   ;;  %vm217_vm0 = vcmask 257024   ;;  %v13462_v2 = vld [vmem:[%s17880_s3] sm:$0xff]   ;;  %v13371_v3 = vmov 0   ;;  %p206_p10 = scmp.lt.s32.totalorder %s13421_s19, 1  ;;  %v13619_v5 = vld [vmem:[%s17879_s2 + $0x18] sm:$0xff]  }
  0x14   : > { %v13456_v1 = vld [vmem:[%s17879_s2 + $0x8] sm:$0xff]   ;;  %12316 = vmatprep.subr.bf16.mxu0 %v13451_v0  ;;  %273 = vst.msk [vmem:[#allocation3] sm:$0xf] %vm217_vm0, %v13371_v3  ;;  %274 = vst.msk [vmem:[#allocation3 + $0x4] sm:$0xf] %vm217_vm0, %v13371_v3  ;;  %v13009_v4 = vld [vmem:[%s17879_s2] sm:$0xff]  }
  0x15   : > { %218 = vst.msk [vmem:[#allocation2] sm:$0xf] %vm217_vm0, %v13371_v3  ;;  %219 = vst.msk [vmem:[#allocation2 + $0x4] sm:$0xf] %vm217_vm0, %v13371_v3  ;;  %12317 = vmatpush3.bf16.msra.mxu0 %v13451_v0  ;;  %12352 = vmatprep.subr.bf16.mxu1 %v13456_v1  ;;  %vm220_vm1 = vcmask 253952   ;;  %s13622_s11 = scalar_select %p206_p10, %s13421_s19, 1 }
  0x16   : > { %222 = vst.msk [vmem:[#allocation2 + $0xc] sm:$0xf] %vm217_vm0, %v13371_v3  ;;  %223 = vst.msk [vmem:[#allocation2 + $0x10] sm:$0xf] %vm217_vm0, %v13371_v3  ;;  %12353 = vmatpush3.bf16.msra.mxu1 %v13456_v1  ;;  %12318 = vmatprep.subr.bf16.mxu0 %v13462_v2  ;;  %v13699_v6 = vld [vmem:[%s17880_s3 + $0x18] sm:$0xff]   ;;  %vm1429_vm2 = vcmask 261120  }
  0x17   : > { %225 = vst.msk [vmem:[#allocation2 + $0x18] sm:$0xf] %vm217_vm0, %v13371_v3  ;;  %226 = vst.msk [vmem:[#allocation2 + $0x1c] sm:$0xf] %vm217_vm0, %v13371_v3  ;;  %12354 = vmatprep.subr.bf16.mxu1 %v13009_v4  ;;  %s11989_s14 = sshll.u32 %s13622_s11, 7  ;;  %v17919_v11 = vmov 0 }
  0x18   : > { %228 = vst.msk [vmem:[#allocation2 + $0x24] sm:$0xf] %vm217_vm0, %v13371_v3  ;;  %229 = vst.msk [vmem:[#allocation2 + $0x28] sm:$0xf] %vm217_vm0, %v13371_v3  ;;  %s13707_s23 = scalar_lea.vmem %s17878_s1, %s11989_s14  ;;  %vm359_vm3 = vsmask.f32 256  ;;  %s13713_s29 = scalar_lea.vmem %s17877_s0, %s11989_s14 }
  0x19   : > { %231 = vst.msk [vmem:[#allocation2 + $0x30] sm:$0xf] %vm217_vm0, %v13371_v3  ;;  %232 = vst.msk [vmem:[#allocation2 + $0x34] sm:$0xf] %vm217_vm0, %v13371_v3  ;;  %12319 = vmatpush3.bf16.msra.mxu0 %v13462_v2  ;;  %vm360_vm4 = vsmask.f32 4368 }
  0x1a   : > { %234 = vst.msk [vmem:[#allocation2 + $0x3c] sm:$0xf] %vm217_vm0, %v13371_v3  ;;  %235 = vst.msk [vmem:[#allocation2 + $0x40] sm:$0xf] %vm217_vm0, %v13371_v3  ;;  %12355 = vmatpush3.bf16.msra.mxu1 %v13009_v4  ;;  %12388 = vmatprep.subr.bf16.mxu0 %v13619_v5  ;;  %vm684_vm5 = vsmask.f32 7938 }
  0x1b   : > { %237 = vst.msk [vmem:[#allocation2 + $0x48] sm:$0xf] %vm217_vm0, %v13371_v3  ;;  %238 = vst.msk [vmem:[#allocation2 + $0x4c] sm:$0xf] %vm217_vm0, %v13371_v3  ;;  %v13010_v7 = vld [vmem:[#allocation3] sm:$0xff]   ;;  %12424 = vmatprep.subr.bf16.mxu1 %v13699_v6  ;;  %v17922_v19 = vmov 0 }
  0x1c   : > { %240 = vst.msk [vmem:[#allocation2 + $0x54] sm:$0xf] %vm217_vm0, %v13371_v3  ;;  %241 = vst.msk [vmem:[#allocation2 + $0x58] sm:$0xf] %vm217_vm0, %v13371_v3  ;;  %v13011_v8 = vld [vmem:[#allocation2] sm:$0xff]   ;;  %12320 = vmatprep.mubr.msk.bf16.mxu0 %vm1429_vm2, %v13010_v7  ;;  %v17925_v25 = vmov 0 }
  0x1d   : > { %243 = vst.msk [vmem:[#allocation2 + $0x60] sm:$0xf] %vm217_vm0, %v13371_v3  ;;  %244 = vst.msk [vmem:[#allocation2 + $0x64] sm:$0xf] %vm217_vm0, %v13371_v3  ;;  %v800_v9 = vld [vmem:[%s13707_s23] sm:$0xf]  ;;  %12356 = vmatprep.mubr.msk.bf16.mxu1 %vm1429_vm2, %v13011_v8 }
  0x1e   : > { %246 = vst.msk [vmem:[#allocation2 + $0x6c] sm:$0xf] %vm217_vm0, %v13371_v3  ;;  %247 = vst.msk [vmem:[#allocation2 + $0x70] sm:$0xf] %vm217_vm0, %v13371_v3  ;;  %v801_v10 = vld [vmem:[%s13707_s23 + $0x4] sm:$0xf] }
  0x1f   : > { %249 = vst.msk [vmem:[#allocation2 + $0x78] sm:$0xf] %vm217_vm0, %v13371_v3  ;;  %250 = vst.msk [vmem:[#allocation2 + $0x7c] sm:$0xf] %vm217_vm0, %v13371_v3  ;;  %v833_v12 = vshrl.u32 %v800_v9, 16  ;;  %v836_v13 = vshll.u32 %v800_v9, 16 }
  0x20   : > { %252 = vst.msk [vmem:[#allocation2 + $0x84] sm:$0xf] %vm217_vm0, %v13371_v3  ;;  %253 = vst.msk [vmem:[#allocation2 + $0x88] sm:$0xf] %vm217_vm0, %v13371_v3  ;;  %v841_v14 = vshrl.u32 %v801_v10, 16  ;;  %v844_v15 = vshll.u32 %v801_v10, 16 }
  0x21   : > { %255 = vst.msk [vmem:[#allocation2 + $0x90] sm:$0xf] %vm217_vm0, %v13371_v3  ;;  %256 = vst.msk [vmem:[#allocation2 + $0x94] sm:$0xf] %vm217_vm0, %v13371_v3  ;;  %v327_v17 = vld [vmem:[%s13713_s29] sm:$0xf] }
  0x22   : > { %258 = vst.msk [vmem:[#allocation2 + $0x9c] sm:$0xf] %vm217_vm0, %v13371_v3  ;;  %259 = vst.msk [vmem:[#allocation2 + $0xa0] sm:$0xf] %vm217_vm0, %v13371_v3  ;;  %v328_v18 = vld [vmem:[%s13713_s29 + $0x4] sm:$0xf] }
  0x23   : > { %261 = vst.msk [vmem:[#allocation2 + $0xa8] sm:$0xf] %vm217_vm0, %v13371_v3  ;;  %262 = vst.msk [vmem:[#allocation2 + $0xac] sm:$0xf] %vm217_vm0, %v13371_v3  ;;  %v835_v20 = vrot.slane %v833_v12, 7  ;;  %v843_v21 = vrot.slane %v841_v14, 7 }
  0x24   : > { %264 = vst.msk [vmem:[#allocation2 + $0xb4] sm:$0xf] %vm217_vm0, %v13371_v3  ;;  %265 = vst.msk [vmem:[#allocation2 + $0xb8] sm:$0xf] %vm217_vm0, %v13371_v3  ;;  %v363_v23 = vshrl.u32 %v327_v17, 16  ;;  %v366_v24 = vshll.u32 %v327_v17, 16 }
  0x25   : > { %267 = vst.msk [vmem:[#allocation2 + $0xc0] sm:$0xf] %vm217_vm0, %v13371_v3  ;;  %268 = vst.msk [vmem:[#allocation2 + $0xc4] sm:$0xf] %vm217_vm0, %v13371_v3  ;;  %v371_v26 = vshrl.u32 %v328_v18, 16  ;;  %v374_v27 = vshll.u32 %v328_v18, 16  ;;  %v838_v30 = vor.u32 %v836_v13, %v835_v20  ;;  %v846_v32 = vor.u32 %v844_v15, %v843_v21 }
  0x26   : > { %270 = vst.msk [vmem:[#allocation2 + $0xcc] sm:$0xf] %vm217_vm0, %v13371_v3  ;;  %271 = vst.msk [vmem:[#allocation2 + $0xd0] sm:$0xf] %vm217_vm0, %v13371_v3  ;;  %v802_v28 = vld [vmem:[%s13707_s23 + $0x8] sm:$0xf] }
  0x27   : > { %276 = vst.msk [vmem:[#allocation3 + $0xc] sm:$0xf] %vm217_vm0, %v13371_v3  ;;  %277 = vst.msk [vmem:[#allocation3 + $0x10] sm:$0xf] %vm217_vm0, %v13371_v3  ;;  %v803_v29 = vld [vmem:[%s13707_s23 + $0xc] sm:$0xf] }
  0x28   : > { %279 = vst.msk [vmem:[#allocation3 + $0x18] sm:$0xf] %vm217_vm0, %v13371_v3  ;;  %280 = vst.msk [vmem:[#allocation3 + $0x1c] sm:$0xf] %vm217_vm0, %v13371_v3  ;;  %v839_v31 = vrot.slane %v835_v20, 4  ;;  %v848_v33 = vrot.slane %v843_v21, 4 }
  0x29   : > { %282 = vst.msk [vmem:[#allocation3 + $0x24] sm:$0xf] %vm217_vm0, %v13371_v3  ;;  %283 = vst.msk [vmem:[#allocation3 + $0x28] sm:$0xf] %vm217_vm0, %v13371_v3  ;;  %v365_v34 = vrot.slane %v363_v23, 7  ;;  %v373_v35 = vrot.slane %v371_v26, 7 }
  0x2a   : > { %285 = vst.msk [vmem:[#allocation3 + $0x30] sm:$0xf] %vm217_vm0, %v13371_v3  ;;  %286 = vst.msk [vmem:[#allocation3 + $0x34] sm:$0xf] %vm217_vm0, %v13371_v3  ;;  %v850_v36 = vshrl.u32 %v802_v28, 16  ;;  %v853_v37 = vshll.u32 %v802_v28, 16 }
  0x2b   : > { %288 = vst.msk [vmem:[#allocation3 + $0x3c] sm:$0xf] %vm217_vm0, %v13371_v3  ;;  %289 = vst.msk [vmem:[#allocation3 + $0x40] sm:$0xf] %vm217_vm0, %v13371_v3  ;;  %v329_v38 = vld [vmem:[%s13713_s29 + $0x8] sm:$0xf]  ;;  %v368_v45 = vor.u32 %v366_v24, %v365_v34  ;;  %v376_v47 = vor.u32 %v374_v27, %v373_v35 }
  0x2c   : > { %291 = vst.msk [vmem:[#allocation3 + $0x48] sm:$0xf] %vm217_vm0, %v13371_v3  ;;  %292 = vst.msk [vmem:[#allocation3 + $0x4c] sm:$0xf] %vm217_vm0, %v13371_v3  ;;  %v686_v42 = vld [vmem:[#allocation2 + $0xc] sm:$0xf] }
  0x2d   : > { %294 = vst.msk [vmem:[#allocation3 + $0x54] sm:$0xf] %vm217_vm0, %v13371_v3  ;;  %295 = vst.msk [vmem:[#allocation3 + $0x58] sm:$0xf] %vm217_vm0, %v13371_v3  ;;  %v858_v44 = vshrl.u32 %v803_v29, 16  ;;  %v369_v46 = vrot.slane %v365_v34, 4 }
  0x2e   : > { %297 = vst.msk [vmem:[#allocation3 + $0x60] sm:$0xf] %vm217_vm0, %v13371_v3  ;;  %298 = vst.msk [vmem:[#allocation3 + $0x64] sm:$0xf] %vm217_vm0, %v13371_v3  ;;  %v1153_v16 = vld [vmem:[#allocation3 + $0xc] sm:$0xf] }
  0x2f   : > { %300 = vst.msk [vmem:[#allocation3 + $0x6c] sm:$0xf] %vm217_vm0, %v13371_v3  ;;  %301 = vst.msk [vmem:[#allocation3 + $0x70] sm:$0xf] %vm217_vm0, %v13371_v3  ;;  %v378_v48 = vrot.slane %v373_v35, 4  ;;  %v852_v50 = vrot.slane %v850_v36, 7 }
  0x30   : > { %303 = vst.msk [vmem:[#allocation3 + $0x78] sm:$0xf] %vm217_vm0, %v13371_v3  ;;  %304 = vst.msk [vmem:[#allocation3 + $0x7c] sm:$0xf] %vm217_vm0, %v13371_v3  ;;  %v330_v49 = vld [vmem:[%s13713_s29 + $0xc] sm:$0xf] }
  0x31   : > { %306 = vst.msk [vmem:[#allocation3 + $0x84] sm:$0xf] %vm217_vm0, %v13371_v3  ;;  %307 = vst.msk [vmem:[#allocation3 + $0x88] sm:$0xf] %vm217_vm0, %v13371_v3  ;;  %v13748_v51 = vrot.slane %v858_v44, 7  ;;  %v861_v52 = vshll.u32 %v803_v29, 16  ;;  %v855_v61 = vor.u32 %v853_v37, %v852_v50 }
  0x32   : > { %309 = vst.msk [vmem:[#allocation3 + $0x90] sm:$0xf] %vm217_vm0, %v13371_v3  ;;  %310 = vst.msk [vmem:[#allocation3 + $0x94] sm:$0xf] %vm217_vm0, %v13371_v3  ;;  %v380_v53 = vshrl.u32 %v329_v38, 16  ;;  %v383_v59 = vshll.u32 %v329_v38, 16 }
  0x33   : > { %312 = vst.msk [vmem:[#allocation3 + $0x9c] sm:$0xf] %vm217_vm0, %v13371_v3  ;;  %313 = vst.msk [vmem:[#allocation3 + $0xa0] sm:$0xf] %vm217_vm0, %v13371_v3  ;;  %v804_v54 = vld [vmem:[%s13707_s23 + $0x10] sm:$0xf]  ;;  %v863_v63 = vor.u32 %v861_v52, %v13748_v51 }
  0x34   : > { %315 = vst.msk [vmem:[#allocation3 + $0xa8] sm:$0xf] %vm217_vm0, %v13371_v3  ;;  %316 = vst.msk [vmem:[#allocation3 + $0xac] sm:$0xf] %vm217_vm0, %v13371_v3  ;;  %v1160_v58 = vld [vmem:[#allocation3 + $0x18] sm:$0xf] }
  0x35   : > { %318 = vst.msk [vmem:[#allocation3 + $0xb4] sm:$0xf] %vm217_vm0, %v13371_v3  ;;  %319 = vst.msk [vmem:[#allocation3 + $0xb8] sm:$0xf] %vm217_vm0, %v13371_v3  ;;  %v805_v60 = vld [vmem:[%s13707_s23 + $0x14] sm:$0xf] }
  0x36   : > { %321 = vst.msk [vmem:[#allocation3 + $0xc0] sm:$0xf] %vm217_vm0, %v13371_v3  ;;  %322 = vst.msk [vmem:[#allocation3 + $0xc4] sm:$0xf] %vm217_vm0, %v13371_v3  ;;  %v856_v62 = vrot.slane %v852_v50, 4  ;;  %v865_v0 = vrot.slane %v13748_v51, 4 }
  0x37   : > { %324 = vst.msk [vmem:[#allocation3 + $0xcc] sm:$0xf] %vm217_vm0, %v13371_v3  ;;  %325 = vst.msk [vmem:[#allocation3 + $0xd0] sm:$0xf] %vm217_vm0, %v13371_v3  ;;  %v382_v1 = vrot.slane %v380_v53, 7  ;;  %v388_v2 = vshrl.u32 %v330_v49, 16 }
  0x38   : > { %278 = vst.msk [vmem:[#allocation3 + $0x14] sm:$0x1] %vm220_vm1, %v13371_v3  ;;  %221 = vst.msk [vmem:[#allocation2 + $0x8] sm:$0x1] %vm220_vm1, %v13371_v3  ;;  %v867_v4 = vshrl.u32 %v804_v54, 16  ;;  %v870_v10 = vshll.u32 %v804_v54, 16 }
  0x39   : > { %224 = vst.msk [vmem:[#allocation2 + $0x14] sm:$0x1] %vm220_vm1, %v13371_v3  ;;  %227 = vst.msk [vmem:[#allocation2 + $0x20] sm:$0x1] %vm220_vm1, %v13371_v3  ;;  %v695_v9 = vld [vmem:[#allocation2 + $0x18] sm:$0xf]  ;;  %v385_v14 = vor.u32 %v383_v59, %v382_v1 }
  0x3a   : > { %230 = vst.msk [vmem:[#allocation2 + $0x2c] sm:$0x1] %vm220_vm1, %v13371_v3  ;;  %233 = vst.msk [vmem:[#allocation2 + $0x38] sm:$0x1] %vm220_vm1, %v13371_v3  ;;  %v875_v12 = vshrl.u32 %v805_v60, 16  ;;  %v386_v15 = vrot.slane %v382_v1, 4 }
  0x3b   : > { %236 = vst.msk [vmem:[#allocation2 + $0x44] sm:$0x1] %vm220_vm1, %v13371_v3  ;;  %239 = vst.msk [vmem:[#allocation2 + $0x50] sm:$0x1] %vm220_vm1, %v13371_v3  ;;  %v1167_v13 = vld [vmem:[#allocation3 + $0x24] sm:$0xf] }
  0x3c   : > { %242 = vst.msk [vmem:[#allocation2 + $0x5c] sm:$0x1] %vm220_vm1, %v13371_v3  ;;  %245 = vst.msk [vmem:[#allocation2 + $0x68] sm:$0x1] %vm220_vm1, %v13371_v3  ;;  %v869_v17 = vrot.slane %v867_v4, 7  ;;  %v13030_v20 = vld [vmem:[%s17879_s2 + $0x10] sm:$0xff]  }
  0x3d   : > { %248 = vst.msk [vmem:[#allocation2 + $0x74] sm:$0x1] %vm220_vm1, %v13371_v3  ;;  %251 = vst.msk [vmem:[#allocation2 + $0x80] sm:$0x1] %vm220_vm1, %v13371_v3  ;;  %v331_v18 = vld [vmem:[%s13713_s29 + $0x10] sm:$0xf] }
  0x3e   : > { %254 = vst.msk [vmem:[#allocation2 + $0x8c] sm:$0x1] %vm220_vm1, %v13371_v3  ;;  %257 = vst.msk [vmem:[#allocation2 + $0x98] sm:$0x1] %vm220_vm1, %v13371_v3  ;;  %v872_v27 = vor.u32 %v870_v10, %v869_v17  ;;  %v332_v28 = vld [vmem:[%s13713_s29 + $0x14] sm:$0xf] }
  0x3f   : > { %260 = vst.msk [vmem:[#allocation2 + $0xa4] sm:$0x1] %vm220_vm1, %v13371_v3  ;;  %263 = vst.msk [vmem:[#allocation2 + $0xb0] sm:$0x1] %vm220_vm1, %v13371_v3  ;;  %v1157_v22 = vld [vmem:[#allocation3 + $0x14] sm:$0x1] }
  0x40   : > { %266 = vst.msk [vmem:[#allocation2 + $0xbc] sm:$0x1] %vm220_vm1, %v13371_v3  ;;  %269 = vst.msk [vmem:[#allocation2 + $0xc8] sm:$0x1] %vm220_vm1, %v13371_v3  ;;  %v692_v43 = vld [vmem:[#allocation2 + $0x14] sm:$0x1] }
  0x41   : > { %272 = vst.msk [vmem:[#allocation2 + $0xd4] sm:$0x1] %vm220_vm1, %v13371_v3  ;;  %275 = vst.msk [vmem:[#allocation3 + $0x8] sm:$0x1] %vm220_vm1, %v13371_v3  ;;  %v806_v29 = vld [vmem:[%s13707_s23 + $0x18] sm:$0xf] }
  0x42   : > { %281 = vst.msk [vmem:[#allocation3 + $0x20] sm:$0x1] %vm220_vm1, %v13371_v3  ;;  %284 = vst.msk [vmem:[#allocation3 + $0x2c] sm:$0x1] %vm220_vm1, %v13371_v3  ;;  %v397_v34 = vshrl.u32 %v331_v18, 16  ;;  %v408_v44 = vshll.u32 %v332_v28, 16 }
  0x43   : > { %287 = vst.msk [vmem:[#allocation3 + $0x38] sm:$0x1] %vm220_vm1, %v13371_v3  ;;  %290 = vst.msk [vmem:[#allocation3 + $0x44] sm:$0x1] %vm220_vm1, %v13371_v3  ;;  %v807_v35 = vld [vmem:[%s13707_s23 + $0x1c] sm:$0xf] }
  0x44   : > { %293 = vst.msk [vmem:[#allocation3 + $0x50] sm:$0x1] %vm220_vm1, %v13371_v3  ;;  %296 = vst.msk [vmem:[#allocation3 + $0x5c] sm:$0x1] %vm220_vm1, %v13371_v3  ;;  %v334_v50 = vld [vmem:[%s13713_s29 + $0x1c] sm:$0xf] }
  0x45   : > { %299 = vst.msk [vmem:[#allocation3 + $0x68] sm:$0x1] %vm220_vm1, %v13371_v3  ;;  %302 = vst.msk [vmem:[#allocation3 + $0x74] sm:$0x1] %vm220_vm1, %v13371_v3  ;;  %v425_v1 = vshll.u32 %v334_v50, 16  ;;  %vm3483_vm12 = vcmask 1042432  }
  0x46   : > { %305 = vst.msk [vmem:[#allocation3 + $0x80] sm:$0x1] %vm220_vm1, %v13371_v3  ;;  %308 = vst.msk [vmem:[#allocation3 + $0x8c] sm:$0x1] %vm220_vm1, %v13371_v3  ;;  %v809_v10 = vld [vmem:[%s13707_s23 + $0x24] sm:$0xf] }
  0x47   : > { %311 = vst.msk [vmem:[#allocation3 + $0x98] sm:$0x1] %vm220_vm1, %v13371_v3  ;;  %314 = vst.msk [vmem:[#allocation3 + $0xa4] sm:$0x1] %vm220_vm1, %v13371_v3  ;;  %vm1988_vm9 = vsmask.f32 3328 }
  0x48   : > { %317 = vst.msk [vmem:[#allocation3 + $0xb0] sm:$0x1] %vm220_vm1, %v13371_v3  ;;  %320 = vst.msk [vmem:[#allocation3 + $0xbc] sm:$0x1] %vm220_vm1, %v13371_v3  ;;  %vm1989_vm10 = vsmask.f32 7440 }
  0x49   : > { %323 = vst.msk [vmem:[#allocation3 + $0xc8] sm:$0x1] %vm220_vm1, %v13371_v3  ;;  %326 = vst.msk [vmem:[#allocation3 + $0xd4] sm:$0x1] %vm220_vm1, %v13371_v3  ;;  %v391_v3 = vshll.u32 %v330_v49, 16  ;;  %v895_v49 = vshll.u32 %v807_v35, 16 }
  0x4a   : > { %vm13720_vm6 = vmor %vm359_vm3, %vm360_vm4  ;;  %vm3484_vm13 = vcmask 1046532   ;;  %s203_s10 = sand.u32 1, %s13361_s16   ;;  %s11991_s13 = sshll.u32 %s13421_s19, 12 }
  0x4b   : > { %v17920_v11 = vsel %vm13720_vm6, 4294967295, %v17919_v11  ;;  %vm13727_vm7 = vmand %vm217_vm0, %vm684_vm5  ;;  %v847_v39 = vsel %vm13720_vm6, %v839_v31, %v846_v32  ;;  %v377_v55 = vsel %vm13720_vm6, %v369_v46, %v376_v47  ;;  %v864_v7 = vsel %vm13720_vm6, %v856_v62, %v863_v63  ;;  %s11207_s11 = sshll.u32 %s203_s10, 8  ;;  %s17803_s22 = scalar_lea.hbm %s17881_s4, %s11991_s13 }
  0x4c   : > { %17921 = vst [vmem:[#allocation7_spill] sm:$0xff] %v17920_v11  ;;  %v17923_v19 = vsel %vm13727_vm7, 4294967295, %v17922_v19  ;;  %vm13733_vm8 = vmand %vm220_vm1, %vm359_vm3  ;;  %v1154_v40 = vsel %vm13727_vm7, %v838_v30, %v1153_v16  ;;  %v687_v56 = vsel %vm13727_vm7, %v368_v45, %v686_v42  ;;  %v1161_v8 = vsel %vm13727_vm7, %v855_v61, %v1160_v58  ;;  %v13033_v30 = vld [vmem:[%s17880_s3 + $0x10] sm:$0xff]   ;;  %v333_v45 = vld [vmem:[%s13713_s29 + $0x18] sm:$0xf]  ;;  %s17736_s12 = scalar_lea.vmem [#allocation4], %s11207_s11 }
  0x4d   : > { %17924 = vst [vmem:[#allocation8_spill] sm:$0xff] %v17923_v19  ;;  %v17926_v25 = vsel %vm13733_vm8, 4294967295, %v17925_v25  ;;  %v1158_v41 = vsel %vm13733_vm8, %v848_v33, %v1157_v22  ;;  %1155 = vst [vmem:[#allocation3 + $0xc] sm:$0xf] %v1154_v40  ;;  %v693_v57 = vsel %vm13733_vm8, %v378_v48, %v692_v43  ;;  %v13766_v16 = vrot.slane %v388_v2, 7  ;;  %s11129_s14 = sshll.u32 %s17736_s12, 4  ;;  %s17805_s14 = int_to_ptr.vmem [resolvable:$true] %s11129_s14 }
  0x4e   : > { %17927 = vst [vmem:[#allocation9_spill] sm:$0xff] %v17926_v25  ;;  %1156 = vst.msk [vmem:[#allocation3 + $0x10] sm:$0xf] %vm217_vm0, %v847_v39  ;;  %v13772_v22 = vrot.slane %v875_v12, 7  ;;  %v696_v26 = vsel %vm13727_vm7, %v385_v14, %v695_v9  ;;  %v873_v31 = vrot.slane %v869_v17, 4  ;;  %v878_v32 = vshll.u32 %v805_v60, 16 }
  0x4f   : > { %1159 = vst [vmem:[#allocation3 + $0x14] sm:$0x1] %v1158_v41  ;;  %688 = vst [vmem:[#allocation2 + $0xc] sm:$0xf] %v687_v56  ;;  %v393_v23 = vor.u32 %v391_v3, %v13766_v16  ;;  %v395_v24 = vrot.slane %v13766_v16, 4  ;;  %v1168_v38 = vsel %vm13727_vm7, %v872_v27, %v1167_v13  ;;  %v400_v39 = vshll.u32 %v331_v18, 16 }
  0x50   : > { %689 = vst.msk [vmem:[#allocation2 + $0x10] sm:$0xf] %vm217_vm0, %v377_v55  ;;  %694 = vst [vmem:[#allocation2 + $0x14] sm:$0x1] %v693_v57  ;;  %v702_v40 = vld [vmem:[#allocation2 + $0x24] sm:$0xf]  ;;  %v880_v41 = vor.u32 %v878_v32, %v13772_v22 }
  0x51   : > { %1162 = vst [vmem:[#allocation3 + $0x18] sm:$0xf] %v1161_v8  ;;  %1163 = vst.msk [vmem:[#allocation3 + $0x1c] sm:$0xf] %vm217_vm0, %v864_v7  ;;  %v394_v37 = vsel %vm13720_vm6, %v386_v15, %v393_v23  ;;  %v399_v42 = vrot.slane %v397_v34, 7  ;;  %v405_v43 = vshrl.u32 %v332_v28, 16 }
  0x52   : > { %697 = vst [vmem:[#allocation2 + $0x18] sm:$0xf] %v696_v26  ;;  %698 = vst.msk [vmem:[#allocation2 + $0x1c] sm:$0xf] %vm217_vm0, %v394_v37  ;;  %v884_v46 = vshrl.u32 %v806_v29, 16  ;;  %v887_v47 = vshll.u32 %v806_v29, 16  ;;  %v881_v53 = vsel %vm13720_vm6, %v873_v31, %v880_v41 }
  0x53   : > { %1169 = vst [vmem:[#allocation3 + $0x24] sm:$0xf] %v1168_v38  ;;  %v892_v48 = vshrl.u32 %v807_v35, 16  ;;  %v402_v54 = vor.u32 %v400_v39, %v399_v42  ;;  %v403_v55 = vrot.slane %v399_v42, 4  ;;  %v1174_v56 = vld [vmem:[#allocation3 + $0x30] sm:$0xf]  ;;  %vm14102_vm11 = vmor %vm1988_vm9, %vm1989_vm10 }
  0x54   : > { %1170 = vst.msk [vmem:[#allocation3 + $0x28] sm:$0xf] %vm217_vm0, %v881_v53  ;;  %v13803_v57 = vrot.slane %v405_v43, 7  ;;  %v886_v58 = vrot.slane %v884_v46, 7  ;;  %v414_v60 = vshrl.u32 %v333_v45, 16  ;;  %v417_v62 = vshll.u32 %v333_v45, 16  ;;  %vm14486_vm14 = vmor %vm3483_vm12, %vm3484_vm13 }
  0x55   : > { %v13013_v21 = vld [vmem:[#allocation3 + $0xc] sm:$0xff]   ;;  %v13805_v59 = vrot.slane %v892_v48, 7  ;;  %v703_v61 = vsel %vm13727_vm7, %v402_v54, %v702_v40  ;;  %v422_v63 = vshrl.u32 %v334_v50, 16  ;;  %v808_v2 = vld [vmem:[%s13707_s23 + $0x20] sm:$0xf]  ;;  %v912_v41 = vshll.u32 %v809_v10, 16 }
  0x56   : > { %12321 = vmatmul.mubr.msk.bf16.vlgmr.msra.gmra.mxu0 %vm1429_vm2, %v13013_v21  ;;  %v410_v3 = vor.u32 %v408_v44, %v13803_v57  ;;  %v412_v4 = vrot.slane %v13803_v57, 4  ;;  %704 = vst [vmem:[#allocation2 + $0x24] sm:$0xf] %v703_v61  ;;  %v889_v7 = vor.u32 %v887_v47, %v886_v58  ;;  %v890_v8 = vrot.slane %v886_v58, 4  ;;  %v709_v9 = vld [vmem:[#allocation2 + $0x30] sm:$0xf] }
  0x57   : > { %v13014_v36 = vld [vmem:[#allocation2 + $0xc] sm:$0xff]   ;;  %12389 = vmatpush3.bf16.msra.mxu0 %v13619_v5  ;;  %v897_v12 = vor.u32 %v895_v49, %v13805_v59  ;;  %v416_v14 = vrot.slane %v414_v60, 7  ;;  %v13819_v15 = vrot.slane %v422_v63, 7  ;;  %v335_v17 = vld [vmem:[%s13713_s29 + $0x20] sm:$0xf]  ;;  %v901_v23 = vshrl.u32 %v808_v2, 16 }
  0x58   : > { %12390 = vmatprep.subr.bf16.mxu0 %v13030_v20  ;;  %v13046_v5 = vld [vmem:[%s17879_s2 + $0x28] sm:$0xff]   ;;  %12357 = vmatmul.mubr.msk.bf16.vlgmr.msra.gmra.mxu1 %vm1429_vm2, %v13014_v36  ;;  %v13016_v52 = vld [vmem:[#allocation3 + $0x18] sm:$0xff]   ;;  %v1175_v21 = vsel %vm13727_vm7, %v889_v7, %v1174_v56  ;;  %v336_v31 = vld [vmem:[%s13713_s29 + $0x24] sm:$0xf]  ;;  %v904_v35 = vshll.u32 %v808_v2, 16  ;;  %v909_v36 = vshrl.u32 %v809_v10, 16 }
  0x59   : > { %12425 = vmatpush3.bf16.msra.mxu1 %v13699_v6  ;;  %v13047_v6 = vld [vmem:[%s17880_s3 + $0x28] sm:$0xff]   ;;  %12324 = vmatprep.mubr.msk.bf16.mxu0 %vm1429_vm2, %v13016_v52  ;;  %v13017_v18 = vld [vmem:[#allocation2 + $0x18] sm:$0xff]   ;;  %v898_v26 = vsel %vm13720_vm6, %v890_v8, %v897_v12  ;;  %1176 = vst [vmem:[#allocation3 + $0x30] sm:$0xf] %v1175_v21  ;;  %v419_v27 = vor.u32 %v417_v62, %v416_v14  ;;  %v420_v28 = vrot.slane %v416_v14, 4  ;;  %v903_v34 = vrot.slane %v901_v23, 7 }
  0x5a   : > { %12426 = vmatprep.subr.bf16.mxu1 %v13033_v30  ;;  %v427_v29 = vor.u32 %v425_v1, %v13819_v15  ;;  %12360 = vmatprep.mubr.msk.bf16.mxu1 %vm1429_vm2, %v13017_v18  ;;  %1177 = vst.msk [vmem:[#allocation3 + $0x34] sm:$0xf] %vm217_vm0, %v898_v26  ;;  %v810_v37 = vld [vmem:[%s13707_s23 + $0x28] sm:$0xf]  ;;  %v431_v42 = vshrl.u32 %v335_v17, 16  ;;  %v13840_v45 = vrot.slane %v909_v36, 7 }
  0x5b   : > { %12391 = vmatpush3.bf16.msra.mxu0 %v13030_v20  ;;  %v411_v20 = vsel %vm13720_vm6, %v403_v55, %v410_v3  ;;  %v13018_v38 = vld [vmem:[#allocation3 + $0x24] sm:$0xff]   ;;  %v710_v40 = vsel %vm13727_vm7, %v419_v27, %v709_v9  ;;  %v906_v43 = vor.u32 %v904_v35, %v903_v34  ;;  %v907_v44 = vrot.slane %v903_v34, 4  ;;  %v811_v47 = vld [vmem:[%s13707_s23 + $0x2c] sm:$0xf]  ;;  %v337_v60 = vld [vmem:[%s13713_s29 + $0x28] sm:$0xf] }
  0x5c   : > { %12460 = vmatprep.subr.bf16.mxu0 %v13046_v5  ;;  %705 = vst.msk [vmem:[#allocation2 + $0x28] sm:$0xf] %vm217_vm0, %v411_v20  ;;  %v428_v39 = vsel %vm13720_vm6, %v420_v28, %v427_v29  ;;  %711 = vst [vmem:[#allocation2 + $0x30] sm:$0xf] %v710_v40  ;;  %v434_v5 = vshll.u32 %v335_v17, 16  ;;  %v433_v48 = vrot.slane %v431_v42, 7  ;;  %v914_v53 = vor.u32 %v912_v41, %v13840_v45 }
  0x5d   : > { %12427 = vmatpush3.bf16.msra.mxu1 %v13033_v30  ;;  %v1181_v30 = vld [vmem:[#allocation3 + $0x3c] sm:$0xf]  ;;  %712 = vst.msk [vmem:[#allocation2 + $0x34] sm:$0xf] %vm217_vm0, %v428_v39  ;;  %v716_v46 = vld [vmem:[#allocation2 + $0x3c] sm:$0xf] }
  0x5e   : > { %12496 = vmatprep.subr.bf16.mxu1 %v13047_v6  ;;  %12325 = vmatmul.mubr.msk.bf16.gmra.mxu0 %vm1429_vm2, %v13018_v38  ;;  %v439_v49 = vshrl.u32 %v336_v31, 16  ;;  %v442_v50 = vshll.u32 %v336_v31, 16  ;;  %v918_v52 = vshrl.u32 %v810_v37, 16  ;;  %v1182_v55 = vsel %vm13727_vm7, %v906_v43, %v1181_v30  ;;  %v1188_v58 = vld [vmem:[#allocation3 + $0x48] sm:$0xf]  ;;  %v13141_v57 = vld [vmem:[%s17880_s3 + $0x28] sm:$0xff]  }
  0x5f   : > { %v921_v56 = vshll.u32 %v810_v37, 16  ;;  %1183 = vst [vmem:[#allocation3 + $0x3c] sm:$0xf] %v1182_v55  ;;  %v436_v6 = vor.u32 %v434_v5, %v433_v48  ;;  %v437_v61 = vrot.slane %v433_v48, 4  ;;  %v338_v1 = vld [vmem:[%s13713_s29 + $0x2c] sm:$0xf]  ;;  %v915_v3 = vsel %vm13720_vm6, %v907_v44, %v914_v53 }
  0x60   : > { %v13849_v62 = vrot.slane %v439_v49, 7  ;;  %v920_v63 = vrot.slane %v918_v52, 7  ;;  %v926_v7 = vshrl.u32 %v811_v47, 16  ;;  %1184 = vst.msk [vmem:[#allocation3 + $0x40] sm:$0xf] %vm217_vm0, %v915_v3  ;;  %v929_v21 = vshll.u32 %v811_v47, 16 }
  0x61   : > { %v13020_v8 = vld [vmem:[#allocation3 + $0x30] sm:$0xff]   ;;  %v717_v12 = vsel %vm13727_vm7, %v436_v6, %v716_v46  ;;  %v812_v17 = vld [vmem:[%s13707_s23 + $0x30] sm:$0xf]  ;;  %v448_v23 = vshrl.u32 %v337_v60, 16  ;;  %v813_v26 = vld [vmem:[%s13707_s23 + $0x34] sm:$0xf] }
  0x62   : > { %v444_v9 = vor.u32 %v442_v50, %v13849_v62  ;;  %v923_v14 = vor.u32 %v921_v56, %v920_v63  ;;  %718 = vst [vmem:[#allocation2 + $0x3c] sm:$0xf] %v717_v12  ;;  %v924_v18 = vrot.slane %v920_v63, 4  ;;  %v13861_v20 = vrot.slane %v926_v7, 7  ;;  %12328 = vmatprep.mubr.msk.bf16.mxu0 %vm1429_vm2, %v13020_v8  ;;  %v339_v37 = vld [vmem:[%s13713_s29 + $0x30] sm:$0xf] }
  0x63   : > { %v13019_v2 = vld [vmem:[#allocation2 + $0x24] sm:$0xff]   ;;  %v451_v30 = vshll.u32 %v337_v60, 16  ;;  %v450_v35 = vrot.slane %v448_v23, 7  ;;  %v456_v36 = vshrl.u32 %v338_v1, 16  ;;  %v459_v38 = vshll.u32 %v338_v1, 16  ;;  %s17837_s27 = scalar_lea.sflag [#allocation5], %s203_s10 }
  0x64   : > { %12361 = vmatmul.mubr.msk.bf16.gmra.mxu1 %vm1429_vm2, %v13019_v2  ;;  %v13021_v27 = vld [vmem:[#allocation2 + $0x30] sm:$0xff]   ;;  %v445_v28 = vsel %vm13720_vm6, %v437_v61, %v444_v9  ;;  %v1189_v29 = vsel %vm13727_vm7, %v923_v14, %v1188_v58  ;;  %v931_v31 = vor.u32 %v929_v21, %v13861_v20  ;;  %v723_v39 = vld [vmem:[#allocation2 + $0x48] sm:$0xf]  ;;  %v935_v40 = vshrl.u32 %v812_v17, 16  ;;  %v1195_v47 = vld [vmem:[#allocation3 + $0x54] sm:$0xf] }
  0x65   : > { %719 = vst.msk [vmem:[#allocation2 + $0x40] sm:$0xf] %vm217_vm0, %v445_v28  ;;  %1190 = vst [vmem:[#allocation3 + $0x48] sm:$0xf] %v1189_v29  ;;  %12364 = vmatprep.mubr.msk.bf16.mxu1 %vm1429_vm2, %v13021_v27  ;;  %v938_v41 = vshll.u32 %v812_v17, 16  ;;  %v943_v42 = vshrl.u32 %v813_v26, 16  ;;  %v453_v44 = vor.u32 %v451_v30, %v450_v35 }
  0x66   : > { %v932_v43 = vsel %vm13720_vm6, %v924_v18, %v931_v31  ;;  %v454_v5 = vrot.slane %v450_v35, 4  ;;  %v13876_v46 = vrot.slane %v456_v36, 7  ;;  %v937_v48 = vrot.slane %v935_v40, 7  ;;  %v340_v52 = vld [vmem:[%s13713_s29 + $0x34] sm:$0xf]  ;;  %s13309_s28 = scalar_lea.vmem %s17805_s14, 4096 }
  0x67   : > { %1191 = vst.msk [vmem:[#allocation3 + $0x4c] sm:$0xf] %vm217_vm0, %v932_v43  ;;  %v13879_v49 = vrot.slane %v943_v42, 7  ;;  %v946_v50 = vshll.u32 %v813_v26, 16  ;;  %v465_v53 = vshrl.u32 %v339_v37, 16  ;;  %v13022_v55 = vld [vmem:[#allocation3 + $0x3c] sm:$0xff]   ;;  %v724_v58 = vsel %vm13727_vm7, %v453_v44, %v723_v39  ;;  %p13310_p11 = scmp.ne.s32.totalorder %s17805_s14, %s13309_s28 }
  0x68   : > { %v461_v56 = vor.u32 %v459_v38, %v13876_v46  ;;  %v468_v60 = vshll.u32 %v339_v37, 16  ;;  %v814_v6 = vld [vmem:[%s13707_s23 + $0x38] sm:$0xf]  ;;  %725 = vst [vmem:[#allocation2 + $0x48] sm:$0xf] %v724_v58  ;;  %v940_v63 = vor.u32 %v938_v41, %v937_v48  ;;  %v941_v1 = vrot.slane %v937_v48, 4  ;;  %12329 = vmatmul.mubr.msk.bf16.gmra.mxu0 %vm1429_vm2, %v13022_v55 }
  0x69   : > { %v948_v2 = vor.u32 %v946_v50, %v13879_v49  ;;  %v730_v3 = vld [vmem:[#allocation2 + $0x54] sm:$0xf]  ;;  %v815_v7 = vld [vmem:[%s13707_s23 + $0x3c] sm:$0xf]  ;;  %v467_v9 = vrot.slane %v465_v53, 7  ;;  %v473_v12 = vshrl.u32 %v340_v52, 16  ;;  %p13311_p12 = pnand %p13310_p11, %p13438_p5 }
  0x6a   : > { %v462_v8 = vsel %vm13720_vm6, %v454_v5, %v461_v56  ;;  %v476_v14 = vshll.u32 %v340_v52, 16  ;;  %v341_v17 = vld [vmem:[%s13713_s29 + $0x38] sm:$0xf]  ;;  %v1196_v23 = vsel %vm13727_vm7, %v940_v63, %v1195_v47  ;;  %v952_v26 = vshrl.u32 %v814_v6, 16  ;;  %v342_v35 = vld [vmem:[%s13713_s29 + $0x3c] sm:$0xf] }
  0x6b   : > { %726 = vst.msk [vmem:[#allocation2 + $0x4c] sm:$0xf] %vm217_vm0, %v462_v8  ;;  %v949_v21 = vsel %vm13720_vm6, %v941_v1, %v948_v2  ;;  %1197 = vst [vmem:[#allocation3 + $0x54] sm:$0xf] %v1196_v23  ;;  %v470_v27 = vor.u32 %v468_v60, %v467_v9  ;;  %v471_v28 = vrot.slane %v467_v9, 4  ;;  %v13899_v29 = vrot.slane %v473_v12, 7  ;;  %p13312_p13 = pneg %p13311_p12 }
  0x6c   : > { %v13023_v18 = vld [vmem:[#allocation2 + $0x3c] sm:$0xff]   ;;  %1198 = vst.msk [vmem:[#allocation3 + $0x58] sm:$0xf] %vm217_vm0, %v949_v21  ;;  %v955_v30 = vshll.u32 %v814_v6, 16  ;;  %v1202_v31 = vld [vmem:[#allocation3 + $0x60] sm:$0xf] }
  0x6d   : > { %12365 = vmatmul.mubr.msk.bf16.gmra.mxu1 %vm1429_vm2, %v13023_v18  ;;  %v954_v36 = vrot.slane %v952_v26, 7  ;;  %v960_v37 = vshrl.u32 %v815_v7, 16  ;;  %v963_v38 = vshll.u32 %v815_v7, 16  ;;  %v482_v39 = vshrl.u32 %v341_v17, 16  ;;  %v816_v40 = vld [vmem:[%s13707_s23 + $0x40] sm:$0xf] }
  0x6e   : > { %v13024_v41 = vld [vmem:[#allocation3 + $0x48] sm:$0xff]   ;;  %v478_v43 = vor.u32 %v476_v14, %v13899_v29  ;;  %v731_v44 = vsel %vm13727_vm7, %v470_v27, %v730_v3  ;;  %v485_v5 = vshll.u32 %v341_v17, 16  ;;  %v490_v56 = vshrl.u32 %v342_v35, 16  ;;  %v355_v42 = vld [vmem:[%s13713_s29 + $0x70] sm:$0xf]  ;;  %s13372_s30 = smov [#allocation4]  }
  0x6f   : > { %732 = vst [vmem:[#allocation2 + $0x54] sm:$0xf] %v731_v44  ;;  %v957_v47 = vor.u32 %v955_v30, %v954_v36  ;;  %v958_v48 = vrot.slane %v954_v36, 4  ;;  %v13908_v50 = vrot.slane %v960_v37, 7  ;;  %v484_v52 = vrot.slane %v482_v39, 7  ;;  %12332 = vmatprep.mubr.msk.bf16.mxu0 %vm1429_vm2, %v13024_v41  ;;  %s13313_s5 = sshll.u32 %s13372_s30, 4  ;;  %s13314_s5 = int_to_ptr.vmem [resolvable:$false] %s13313_s5 }
  0x70   : > { %v737_v53 = vld [vmem:[#allocation2 + $0x60] sm:$0xf]  ;;  %v479_v55 = vsel %vm13720_vm6, %v471_v28, %v478_v43  ;;  %v493_v58 = vshll.u32 %v342_v35, 16  ;;  %v969_v60 = vshrl.u32 %v816_v40, 16  ;;  %v817_v2 = vld [vmem:[%s13707_s23 + $0x44] sm:$0xf]  ;;  %p13316_p0 = scmp.lt.s32.totalorder %s17805_s14, %s13314_s5 }
  0x71   : > { %733 = vst.msk [vmem:[#allocation2 + $0x58] sm:$0xf] %vm217_vm0, %v479_v55  ;;  %v965_v6 = vor.u32 %v963_v38, %v13908_v50  ;;  %v1203_v63 = vsel %vm13727_vm7, %v957_v47, %v1202_v31  ;;  %v487_v1 = vor.u32 %v485_v5, %v484_v52  ;;  %v343_v3 = vld [vmem:[%s13713_s29 + $0x40] sm:$0xf]  ;;  %v344_v7 = vld [vmem:[%s13713_s29 + $0x44] sm:$0xf] }
  0x72   : > { %v13025_v8 = vld [vmem:[#allocation2 + $0x48] sm:$0xff]   ;;  %1204 = vst [vmem:[#allocation3 + $0x60] sm:$0xf] %v1203_v63  ;;  %v488_v9 = vrot.slane %v484_v52, 4  ;;  %v13920_v12 = vrot.slane %v490_v56, 7  ;;  %v971_v14 = vrot.slane %v969_v60, 7 }
  0x73   : > { %v13026_v17 = vld [vmem:[#allocation3 + $0x54] sm:$0xff]   ;;  %v966_v18 = vsel %vm13720_vm6, %v958_v48, %v965_v6  ;;  %v738_v21 = vsel %vm13727_vm7, %v487_v1, %v737_v53  ;;  %v972_v23 = vshll.u32 %v816_v40, 16  ;;  %12368 = vmatprep.mubr.msk.bf16.mxu1 %vm1429_vm2, %v13025_v8  ;;  %v977_v30 = vshrl.u32 %v817_v2, 16  ;;  %v1209_v31 = vld [vmem:[#allocation3 + $0x6c] sm:$0xf] }
  0x74   : > { %1205 = vst.msk [vmem:[#allocation3 + $0x64] sm:$0xf] %vm217_vm0, %v966_v18  ;;  %v495_v27 = vor.u32 %v493_v58, %v13920_v12  ;;  %739 = vst [vmem:[#allocation2 + $0x60] sm:$0xf] %v738_v21  ;;  %v975_v28 = vrot.slane %v971_v14, 4  ;;  %12333 = vmatmul.mubr.msk.bf16.gmra.mxu0 %vm1429_vm2, %v13026_v17  ;;  %v980_v36 = vshll.u32 %v817_v2, 16 }
  0x75   : > { %v974_v35 = vor.u32 %v972_v23, %v971_v14  ;;  %v499_v37 = vshrl.u32 %v343_v3, 16  ;;  %v502_v38 = vshll.u32 %v343_v3, 16  ;;  %v13933_v40 = vrot.slane %v977_v30, 7  ;;  %v744_v44 = vld [vmem:[#allocation2 + $0x6c] sm:$0xf] }
  0x76   : > { %v496_v39 = vsel %vm13720_vm6, %v488_v9, %v495_v27  ;;  %v507_v41 = vshrl.u32 %v344_v7, 16  ;;  %v510_v43 = vshll.u32 %v344_v7, 16  ;;  %v818_v52 = vld [vmem:[%s13707_s23 + $0x48] sm:$0xf]  ;;  %v819_v53 = vld [vmem:[%s13707_s23 + $0x4c] sm:$0xf] }
  0x77   : > { %740 = vst.msk [vmem:[#allocation2 + $0x64] sm:$0xf] %vm217_vm0, %v496_v39  ;;  %v1210_v47 = vsel %vm13727_vm7, %v974_v35, %v1209_v31  ;;  %v501_v48 = vrot.slane %v499_v37, 7  ;;  %v982_v58 = vor.u32 %v980_v36, %v13933_v40  ;;  %v986_v6 = vshrl.u32 %v818_v52, 16  ;;  %v1216_v17 = vld [vmem:[#allocation3 + $0x78] sm:$0xf] }
  0x78   : > { %v13027_v55 = vld [vmem:[#allocation2 + $0x54] sm:$0xff]   ;;  %1211 = vst [vmem:[#allocation3 + $0x6c] sm:$0xf] %v1210_v47  ;;  %v13943_v60 = vrot.slane %v507_v41, 7  ;;  %v989_v2 = vshll.u32 %v818_v52, 16  ;;  %v994_v3 = vshrl.u32 %v819_v53, 16 }
  0x79   : > { %v504_v63 = vor.u32 %v502_v38, %v501_v48  ;;  %v505_v1 = vrot.slane %v501_v48, 4  ;;  %12369 = vmatmul.mubr.msk.bf16.gmra.mxu1 %vm1429_vm2, %v13027_v55  ;;  %v983_v7 = vsel %vm13720_vm6, %v975_v28, %v982_v58  ;;  %v988_v14 = vrot.slane %v986_v6, 7  ;;  %v345_v18 = vld [vmem:[%s13713_s29 + $0x48] sm:$0xf]  ;;  %v346_v36 = vld [vmem:[%s13713_s29 + $0x4c] sm:$0xf] }
  0x7a   : > { %v512_v9 = vor.u32 %v510_v43, %v13943_v60  ;;  %1212 = vst.msk [vmem:[#allocation3 + $0x70] sm:$0xf] %vm217_vm0, %v983_v7  ;;  %v13954_v27 = vrot.slane %v994_v3, 7  ;;  %v997_v35 = vshll.u32 %v819_v53, 16  ;;  %v516_v38 = vshrl.u32 %v345_v18, 16 }
  0x7b   : > { %v13028_v21 = vld [vmem:[#allocation3 + $0x60] sm:$0xff]   ;;  %v745_v23 = vsel %vm13727_vm7, %v504_v63, %v744_v44  ;;  %v991_v28 = vor.u32 %v989_v2, %v988_v14  ;;  %v992_v31 = vrot.slane %v988_v14, 4  ;;  %v519_v39 = vshll.u32 %v345_v18, 16  ;;  %v820_v43 = vld [vmem:[%s13707_s23 + $0x50] sm:$0xf] }
  0x7c   : > { %v513_v30 = vsel %vm13720_vm6, %v505_v1, %v512_v9  ;;  %746 = vst [vmem:[#allocation2 + $0x6c] sm:$0xf] %v745_v23  ;;  %12336 = vmatprep.mubr.msk.bf16.mxu0 %vm1429_vm2, %v13028_v21  ;;  %v524_v41 = vshrl.u32 %v346_v36, 16  ;;  %v999_v47 = vor.u32 %v997_v35, %v13954_v27  ;;  %v527_v52 = vshll.u32 %v346_v36, 16  ;;  %v751_v53 = vld [vmem:[#allocation2 + $0x78] sm:$0xf] }
  0x7d   : > { %747 = vst.msk [vmem:[#allocation2 + $0x70] sm:$0xf] %vm217_vm0, %v513_v30  ;;  %v1217_v48 = vsel %vm13727_vm7, %v991_v28, %v1216_v17  ;;  %v821_v55 = vld [vmem:[%s13707_s23 + $0x54] sm:$0xf]  ;;  %v518_v6 = vrot.slane %v516_v38, 7  ;;  %v1003_v1 = vshrl.u32 %v820_v43, 16 }
  0x7e   : > { %v13029_v44 = vld [vmem:[#allocation2 + $0x60] sm:$0xff]   ;;  %1218 = vst [vmem:[#allocation3 + $0x78] sm:$0xf] %v1217_v48  ;;  %v13968_v63 = vrot.slane %v524_v41, 7  ;;  %v1000_v2 = vsel %vm13720_vm6, %v992_v31, %v999_v47  ;;  %v1006_v3 = vshll.u32 %v820_v43, 16  ;;  %v1011_v7 = vshrl.u32 %v821_v55, 16 }
  0x7f   : > { %12372 = vmatprep.mubr.msk.bf16.mxu1 %vm1429_vm2, %v13029_v44  ;;  %v1014_v9 = vshll.u32 %v821_v55, 16  ;;  %v347_v14 = vld [vmem:[%s13713_s29 + $0x50] sm:$0xf]  ;;  %1219 = vst.msk [vmem:[#allocation3 + $0x7c] sm:$0xf] %vm217_vm0, %v1000_v2  ;;  %v521_v17 = vor.u32 %v519_v39, %v518_v6  ;;  %v522_v18 = vrot.slane %v518_v6, 4 }
  0x80   : > { %v529_v21 = vor.u32 %v527_v52, %v13968_v63  ;;  %v1223_v30 = vld [vmem:[#allocation3 + $0x84] sm:$0xf]  ;;  %v348_v28 = vld [vmem:[%s13713_s29 + $0x54] sm:$0xf]  ;;  %v1005_v36 = vrot.slane %v1003_v1, 7  ;;  %v13978_v38 = vrot.slane %v1011_v7, 7 }
  0x81   : > { %v13031_v35 = vld [vmem:[#allocation3 + $0x6c] sm:$0xff]   ;;  %v533_v31 = vshrl.u32 %v347_v14, 16  ;;  %v752_v43 = vsel %vm13727_vm7, %v521_v17, %v751_v53  ;;  %v536_v39 = vshll.u32 %v347_v14, 16  ;;  %v541_v44 = vshrl.u32 %v348_v28, 16  ;;  %v822_v47 = vld [vmem:[%s13707_s23 + $0x58] sm:$0xf] }
  0x82   : > { %v530_v41 = vsel %vm13720_vm6, %v522_v18, %v529_v21  ;;  %12337 = vmatmul.mubr.msk.bf16.gmra.mxu0 %vm1429_vm2, %v13031_v35  ;;  %753 = vst [vmem:[#allocation2 + $0x78] sm:$0xf] %v752_v43  ;;  %v1008_v52 = vor.u32 %v1006_v3, %v1005_v36  ;;  %v1009_v55 = vrot.slane %v1005_v36, 4  ;;  %v1016_v6 = vor.u32 %v1014_v9, %v13978_v38  ;;  %v823_v14 = vld [vmem:[%s13707_s23 + $0x5c] sm:$0xf] }
  0x83   : > { %754 = vst.msk [vmem:[#allocation2 + $0x7c] sm:$0xf] %vm217_vm0, %v530_v41  ;;  %v535_v2 = vrot.slane %v533_v31, 7  ;;  %v13989_v7 = vrot.slane %v541_v44, 7  ;;  %v544_v53 = vshll.u32 %v348_v28, 16  ;;  %v1020_v17 = vshrl.u32 %v822_v47, 16 }
  0x84   : > { %v13032_v48 = vld [vmem:[#allocation2 + $0x6c] sm:$0xff]   ;;  %v1017_v18 = vsel %vm13720_vm6, %v1009_v55, %v1016_v6  ;;  %v1224_v3 = vsel %vm13727_vm7, %v1008_v52, %v1223_v30  ;;  %v758_v21 = vld [vmem:[#allocation2 + $0x84] sm:$0xf]  ;;  %v1023_v35 = vshll.u32 %v822_v47, 16  ;;  %v1028_v9 = vshrl.u32 %v823_v14, 16 }
  0x85   : > { %12373 = vmatmul.mubr.msk.bf16.gmra.mxu1 %vm1429_vm2, %v13032_v48  ;;  %1225 = vst [vmem:[#allocation3 + $0x84] sm:$0xf] %v1224_v3  ;;  %1226 = vst.msk [vmem:[#allocation3 + $0x88] sm:$0xf] %vm217_vm0, %v1017_v18  ;;  %v538_v36 = vor.u32 %v536_v39, %v535_v2  ;;  %v539_v31 = vrot.slane %v535_v2, 4  ;;  %v546_v28 = vor.u32 %v544_v53, %v13989_v7  ;;  %v1022_v48 = vrot.slane %v1020_v17, 7 }
  0x86   : > { %v349_v43 = vld [vmem:[%s13713_s29 + $0x58] sm:$0xf]  ;;  %v13034_v44 = vld [vmem:[#allocation3 + $0x78] sm:$0xff]   ;;  %v14001_v55 = vrot.slane %v1028_v9, 7  ;;  %v1031_v30 = vshll.u32 %v823_v14, 16 }
  0x87   : > { %v547_v47 = vsel %vm13720_vm6, %v539_v31, %v546_v28  ;;  %v759_v52 = vsel %vm13727_vm7, %v538_v36, %v758_v21  ;;  %v1230_v6 = vld [vmem:[#allocation3 + $0x90] sm:$0xf]  ;;  %v350_v39 = vld [vmem:[%s13713_s29 + $0x5c] sm:$0xf]  ;;  %v550_v2 = vshrl.u32 %v349_v43, 16  ;;  %v553_v18 = vshll.u32 %v349_v43, 16  ;;  %12340 = vmatprep.mubr.msk.bf16.mxu0 %vm1429_vm2, %v13034_v44 }
  0x88   : > { %760 = vst [vmem:[#allocation2 + $0x84] sm:$0xf] %v759_v52  ;;  %761 = vst.msk [vmem:[#allocation2 + $0x88] sm:$0xf] %vm217_vm0, %v547_v47  ;;  %v1025_v53 = vor.u32 %v1023_v35, %v1022_v48  ;;  %v1026_v17 = vrot.slane %v1022_v48, 4  ;;  %v1033_v14 = vor.u32 %v1031_v30, %v14001_v55  ;;  %v558_v43 = vshrl.u32 %v350_v39, 16 }
  0x89   : > { %v824_v9 = vld [vmem:[%s13707_s23 + $0x60] sm:$0xf]  ;;  %v552_v21 = vrot.slane %v550_v2, 7  ;;  %v561_v44 = vshll.u32 %v350_v39, 16  ;;  %v765_v52 = vld [vmem:[#allocation2 + $0x90] sm:$0xf] }
  0x8a   : > { %v13035_v31 = vld [vmem:[#allocation2 + $0x78] sm:$0xff]   ;;  %v1034_v36 = vsel %vm13720_vm6, %v1026_v17, %v1033_v14  ;;  %v1231_v28 = vsel %vm13727_vm7, %v1025_v53, %v1230_v6  ;;  %v825_v47 = vld [vmem:[%s13707_s23 + $0x64] sm:$0xf]  ;;  %v1037_v30 = vshrl.u32 %v824_v9, 16  ;;  %v1040_v2 = vshll.u32 %v824_v9, 16 }
  0x8b   : > { %12376 = vmatprep.mubr.msk.bf16.mxu1 %vm1429_vm2, %v13035_v31  ;;  %1232 = vst [vmem:[#allocation3 + $0x90] sm:$0xf] %v1231_v28  ;;  %1233 = vst.msk [vmem:[#allocation3 + $0x94] sm:$0xf] %vm217_vm0, %v1034_v36  ;;  %v555_v35 = vor.u32 %v553_v18, %v552_v21  ;;  %v556_v48 = vrot.slane %v552_v21, 4  ;;  %v14021_v14 = vrot.slane %v558_v43, 7 }
  0x8c   : > { %v351_v3 = vld [vmem:[%s13713_s29 + $0x60] sm:$0xf]  ;;  %v1237_v6 = vld [vmem:[#allocation3 + $0x9c] sm:$0xf]  ;;  %v1039_v53 = vrot.slane %v1037_v30, 7  ;;  %v1045_v1 = vshrl.u32 %v825_v47, 16 }
  0x8d   : > { %v13036_v17 = vld [vmem:[#allocation3 + $0x84] sm:$0xff]   ;;  %v766_v39 = vsel %vm13727_vm7, %v555_v35, %v765_v52  ;;  %v1048_v41 = vshll.u32 %v825_v47, 16  ;;  %v352_v31 = vld [vmem:[%s13713_s29 + $0x64] sm:$0xf]  ;;  %v563_v18 = vor.u32 %v561_v44, %v14021_v14  ;;  %v567_v21 = vshrl.u32 %v351_v3, 16 }
  0x8e   : > { %12341 = vmatmul.mubr.msk.bf16.gmra.mxu0 %vm1429_vm2, %v13036_v17  ;;  %767 = vst [vmem:[#allocation2 + $0x90] sm:$0xf] %v766_v39  ;;  %v570_v36 = vshll.u32 %v351_v3, 16  ;;  %v826_v28 = vld [vmem:[%s13707_s23 + $0x68] sm:$0xf]  ;;  %v1042_v58 = vor.u32 %v1040_v2, %v1039_v53  ;;  %v1043_v23 = vrot.slane %v1039_v53, 4 }
  0x8f   : > { %v13037_v43 = vld [vmem:[#allocation2 + $0x84] sm:$0xff]   ;;  %v772_v52 = vld [vmem:[#allocation2 + $0x9c] sm:$0xf]  ;;  %v564_v47 = vsel %vm13720_vm6, %v556_v48, %v563_v18  ;;  %v14032_v35 = vrot.slane %v1045_v1, 7  ;;  %v569_v30 = vrot.slane %v567_v21, 7  ;;  %v575_v17 = vshrl.u32 %v352_v31, 16 }
  0x90   : > { %v827_v8 = vld [vmem:[%s13707_s23 + $0x6c] sm:$0xf]  ;;  %12377 = vmatmul.mubr.msk.bf16.gmra.mxu1 %vm1429_vm2, %v13037_v43  ;;  %768 = vst.msk [vmem:[#allocation2 + $0x94] sm:$0xf] %vm217_vm0, %v564_v47  ;;  %v1238_v3 = vsel %vm13727_vm7, %v1042_v58, %v1237_v6  ;;  %v578_v44 = vshll.u32 %v352_v31, 16  ;;  %v1054_v2 = vshrl.u32 %v826_v28, 16 }
  0x91   : > { %v1057_v39 = vshll.u32 %v826_v28, 16  ;;  %v353_v53 = vld [vmem:[%s13713_s29 + $0x68] sm:$0xf]  ;;  %v1050_v1 = vor.u32 %v1048_v41, %v14032_v35  ;;  %1239 = vst [vmem:[#allocation3 + $0x9c] sm:$0xf] %v1238_v3  ;;  %v572_v18 = vor.u32 %v570_v36, %v569_v30  ;;  %v573_v21 = vrot.slane %v569_v30, 4 }
  0x92   : > { %v13038_v9 = vld [vmem:[#allocation3 + $0x90] sm:$0xff]   ;;  %v14042_v43 = vrot.slane %v575_v17, 7  ;;  %v1056_v37 = vrot.slane %v1054_v2, 7  ;;  %v1062_v47 = vshrl.u32 %v827_v8, 16  ;;  %v1065_v41 = vshll.u32 %v827_v8, 16 }
  0x93   : > { %v354_v5 = vld [vmem:[%s13713_s29 + $0x6c] sm:$0xf]  ;;  %12344 = vmatprep.mubr.msk.bf16.mxu0 %vm1429_vm2, %v13038_v9  ;;  %v1051_v58 = vsel %vm13720_vm6, %v1043_v23, %v1050_v1  ;;  %v773_v6 = vsel %vm13727_vm7, %v572_v18, %v772_v52  ;;  %v1244_v31 = vld [vmem:[#allocation3 + $0xa8] sm:$0xf]  ;;  %v584_v28 = vshrl.u32 %v353_v53, 16  ;;  %v587_v1 = vshll.u32 %v353_v53, 16 }
  0x94   : > { %v828_v3 = vld [vmem:[%s13707_s23 + $0x70] sm:$0xf]  ;;  %1240 = vst.msk [vmem:[#allocation3 + $0xa0] sm:$0xf] %vm217_vm0, %v1051_v58  ;;  %v580_v36 = vor.u32 %v578_v44, %v14042_v43  ;;  %774 = vst [vmem:[#allocation2 + $0x9c] sm:$0xf] %v773_v6  ;;  %v1059_v9 = vor.u32 %v1057_v39, %v1056_v37 }
  0x95   : > { %v1060_v17 = vrot.slane %v1056_v37, 4  ;;  %v14054_v2 = vrot.slane %v1062_v47, 7  ;;  %v586_v23 = vrot.slane %v584_v28, 7  ;;  %v592_v48 = vshrl.u32 %v354_v5, 16  ;;  %v829_v52 = vld [vmem:[%s13707_s23 + $0x74] sm:$0xf] }
  0x96   : > { %v581_v8 = vsel %vm13720_vm6, %v573_v21, %v580_v36  ;;  %v1245_v18 = vsel %vm13727_vm7, %v1059_v9, %v1244_v31  ;;  %v595_v58 = vshll.u32 %v354_v5, 16  ;;  %v779_v56 = vld [vmem:[#allocation2 + $0xa8] sm:$0xf]  ;;  %v1071_v44 = vshrl.u32 %v828_v3, 16  ;;  %v1251_v9 = vld [vmem:[#allocation3 + $0xb4] sm:$0xf] }
  0x97   : > { %v13039_v30 = vld [vmem:[#allocation2 + $0x90] sm:$0xff]   ;;  %775 = vst.msk [vmem:[#allocation2 + $0xa0] sm:$0xf] %vm217_vm0, %v581_v8  ;;  %v1067_v37 = vor.u32 %v1065_v41, %v14054_v2  ;;  %1246 = vst [vmem:[#allocation3 + $0xa8] sm:$0xf] %v1245_v18  ;;  %v589_v53 = vor.u32 %v587_v1, %v586_v23  ;;  %v590_v47 = vrot.slane %v586_v23, 4 }
  0x98   : > { %v14065_v6 = vrot.slane %v592_v48, 7  ;;  %v1073_v21 = vrot.slane %v1071_v44, 7  ;;  %v1074_v28 = vshll.u32 %v828_v3, 16  ;;  %v1079_v31 = vshrl.u32 %v829_v52, 16  ;;  %12380 = vmatprep.mubr.msk.bf16.mxu1 %vm1429_vm2, %v13039_v30  ;;  %v356_v18 = vld [vmem:[%s13713_s29 + $0x74] sm:$0xf] }
  0x99   : > { %v1068_v5 = vsel %vm13720_vm6, %v1060_v17, %v1067_v37  ;;  %v780_v36 = vsel %vm13727_vm7, %v589_v53, %v779_v56  ;;  %v1082_v41 = vshll.u32 %v829_v52, 16  ;;  %v601_v8 = vshrl.u32 %v355_v42, 16  ;;  %v786_v53 = vld [vmem:[#allocation2 + $0xb4] sm:$0xf]  ;;  %v2377_v34 = vld [vmem:[#allocation3 + $0x8] sm:$0x1] }
  0x9a   : > { %1247 = vst.msk [vmem:[#allocation3 + $0xac] sm:$0xf] %vm217_vm0, %v1068_v5  ;;  %v597_v48 = vor.u32 %v595_v58, %v14065_v6  ;;  %781 = vst [vmem:[#allocation2 + $0xa8] sm:$0xf] %v780_v36  ;;  %v1076_v3 = vor.u32 %v1074_v28, %v1073_v21  ;;  %v1077_v1 = vrot.slane %v1073_v21, 4  ;;  %v14076_v44 = vrot.slane %v1079_v31, 7 }
  0x9b   : > { %v13040_v30 = vld [vmem:[#allocation3 + $0x9c] sm:$0xff]   ;;  %v603_v52 = vrot.slane %v601_v8, 7  ;;  %v604_v37 = vshll.u32 %v355_v42, 16  ;;  %v1940_v58 = vld [vmem:[#allocation2] sm:$0xf]  ;;  %v609_v31 = vshrl.u32 %v356_v18, 16 }
  0x9c   : > { %v598_v56 = vsel %vm13720_vm6, %v590_v47, %v597_v48  ;;  %v1252_v17 = vsel %vm13727_vm7, %v1076_v3, %v1251_v9  ;;  %12345 = vmatmul.mubr.msk.bf16.gmra.mxu0 %vm1429_vm2, %v13040_v30  ;;  %v1084_v21 = vor.u32 %v1082_v41, %v14076_v44  ;;  %v612_v5 = vshll.u32 %v356_v18, 16  ;;  %v1941_v36 = vld [vmem:[#allocation2 + $0x4] sm:$0xf]  ;;  %v1942_v9 = vld [vmem:[#allocation2 + $0x8] sm:$0x1] }
  0x9d   : > { %782 = vst.msk [vmem:[#allocation2 + $0xac] sm:$0xf] %vm217_vm0, %v598_v56  ;;  %1253 = vst [vmem:[#allocation3 + $0xb4] sm:$0xf] %v1252_v17  ;;  %v606_v48 = vor.u32 %v604_v37, %v603_v52  ;;  %v607_v39 = vrot.slane %v603_v52, 4  ;;  %v14088_v3 = vrot.slane %v609_v31, 7 }
  0x9e   : > { %v13041_v47 = vld [vmem:[#allocation2 + $0x9c] sm:$0xff]   ;;  %v2375_v8 = vld [vmem:[#allocation3] sm:$0xf]  ;;  %v1085_v42 = vsel %vm13720_vm6, %v1077_v1, %v1084_v21  ;;  %v1992_v30 = vshrl.u32 %v1940_v58, 16  ;;  %v1995_v18 = vshll.u32 %v1940_v58, 16  ;;  %v2001_v17 = vshll.u32 %v1941_v36, 16 }
  0x9f   : > { %v2376_v56 = vld [vmem:[#allocation3 + $0x4] sm:$0xf]  ;;  %12381 = vmatmul.mubr.msk.bf16.gmra.mxu1 %vm1429_vm2, %v13041_v47  ;;  %1254 = vst.msk [vmem:[#allocation3 + $0xb8] sm:$0xf] %vm217_vm0, %v1085_v42  ;;  %v787_v41 = vsel %vm13727_vm7, %v606_v48, %v786_v53  ;;  %v2005_v52 = vshrl.u32 %v1941_v36, 16  ;;  %v614_v28 = vor.u32 %v612_v5, %v14088_v3  ;;  %v2011_v53 = vshll.u32 %v1942_v9, 16 }
  0xa0   : > { %788 = vst [vmem:[#allocation2 + $0xb4] sm:$0xf] %v787_v41  ;;  %v1994_v21 = vrot.slane %v1992_v30, 4  ;;  %v1997_v31 = vrot.slane %v1995_v18, 5  ;;  %v2003_v23 = vrot.slane %v2001_v17, 5  ;;  %v2424_v58 = vshrl.u32 %v2375_v8, 16 }
  0xa1   : > { %v13042_v37 = vld [vmem:[#allocation3 + $0xa8] sm:$0xff]   ;;  %v2007_v26 = vrot.slane %v2005_v52, 4  ;;  %v615_v47 = vsel %vm13720_vm6, %v607_v39, %v614_v28  ;;  %v2427_v48 = vshll.u32 %v2375_v8, 16  ;;  %v1943_v36 = vld [vmem:[#allocation2 + $0xc] sm:$0xf]  ;;  %v2433_v41 = vshll.u32 %v2376_v56, 16 }
  0xa2   : > { %12348 = vmatprep.mubr.msk.bf16.mxu0 %vm1429_vm2, %v13042_v37  ;;  %789 = vst.msk [vmem:[#allocation2 + $0xb8] sm:$0xf] %vm217_vm0, %v615_v47  ;;  %v1998_v5 = vor.u32 %v1997_v31, %v1994_v21  ;;  %v17928_v30 = vmov 0  ;;  %v2013_v18 = vrot.slane %v2011_v53, 5  ;;  %v2426_v17 = vrot.slane %v2424_v58, 4 }
  0xa3   : > { %v2008_v1 = vor.u32 %v2007_v26, %v2003_v23  ;;  %v17929_v30 = vsel %vm14102_vm11, 4294967295, %v17928_v30  ;;  %v2429_v52 = vrot.slane %v2427_v48, 5  ;;  %v2437_v39 = vshrl.u32 %v2376_v56, 16  ;;  %v1944_v28 = vld [vmem:[#allocation2 + $0x10] sm:$0xf] }
  0xa4   : > { %v13043_v42 = vld [vmem:[#allocation2 + $0xa8] sm:$0xff]   ;;  %17930 = vst [vmem:[#allocation10_spill] sm:$0xff] %v17929_v30  ;;  %v1999_v9 = vrot.slane %v1998_v5, 4  ;;  %v2435_v37 = vrot.slane %v2433_v41, 5  ;;  %v2443_v47 = vshll.u32 %v2377_v34, 16  ;;  %v2016_v54 = vshrl.u32 %v1943_v36, 16 }
  0xa5   : > { %12384 = vmatprep.mubr.msk.bf16.mxu1 %vm1429_vm2, %v13043_v42  ;;  %v2009_v8 = vrot.slane %v2008_v1, 4  ;;  %v1945_v21 = vld [vmem:[#allocation2 + $0x14] sm:$0x1]  ;;  %v2430_v31 = vor.u32 %v2429_v52, %v2426_v17  ;;  %v2439_v61 = vrot.slane %v2437_v39, 4  ;;  %v2019_v10 = vshll.u32 %v1943_v36, 16 }
  0xa6   : > { %v13044_v26 = vld [vmem:[#allocation3 + $0xb4] sm:$0xff]   ;;  %v2004_v13 = vsel %vm14102_vm11, %v1999_v9, %v2003_v23  ;;  %v2445_v56 = vrot.slane %v2443_v47, 5  ;;  %v2025_v58 = vshll.u32 %v1944_v28, 16  ;;  %v2378_v48 = vld [vmem:[#allocation3 + $0xc] sm:$0xf]  ;;  %v2018_v5 = vrot.slane %v2016_v54, 4 }
  0xa7   : > { %v2014_v53 = vsel %vm14102_vm11, %v2009_v8, %v2013_v18  ;;  %12349 = vmatmul.mubr.msk.bf16.gmra.mxu0 %vm1429_vm2, %v13044_v26  ;;  %v2431_v42 = vrot.slane %v2430_v31, 4  ;;  %v2440_v34 = vor.u32 %v2439_v61, %v2435_v37  ;;  %v2379_v41 = vld [vmem:[#allocation3 + $0x10] sm:$0xf]  ;;  %v2021_v17 = vrot.slane %v2019_v10, 5  ;;  %v2380_v32 = vld [vmem:[#allocation3 + $0x14] sm:$0x1] }
  0xa8   : > { %v11284_v1 = vcombine.low %v2004_v13, %v2014_v53  ;;  %v2027_v52 = vrot.slane %v2025_v58, 5  ;;  %v2029_v39 = vshrl.u32 %v1944_v28, 16  ;;  %v2035_v36 = vshll.u32 %v1945_v21, 16  ;;  %v699_v54 = vld [vmem:[#allocation2 + $0x20] sm:$0x1] }
  0xa9   : > { %v13045_v33 = vld [vmem:[#allocation2 + $0xb4] sm:$0xff]   ;;  %v2436_v23 = vsel %vm14102_vm11, %v2431_v42, %v2435_v37  ;;  %v2441_v18 = vrot.slane %v2440_v34, 4  ;;  %v2448_v9 = vshrl.u32 %v2378_v48, 16  ;;  %v2451_v8 = vshll.u32 %v2378_v48, 16  ;;  %v1947_v34 = vld [vmem:[#allocation2 + $0x1c] sm:$0xf] }
  0xaa   : > { %12392 = vmatprep.mubr.msk.bf16.mxu0 %vm1429_vm2, %v11284_v1  ;;  %v2022_v47 = vor.u32 %v2021_v17, %v2018_v5  ;;  %v2031_v13 = vrot.slane %v2029_v39, 4  ;;  %v2037_v26 = vrot.slane %v2035_v36, 5  ;;  %v2457_v61 = vshll.u32 %v2379_v41, 16  ;;  %12385 = vmatmul.mubr.msk.bf16.gmra.mxu1 %vm1429_vm2, %v13045_v33  ;;  %v1946_v53 = vld [vmem:[#allocation2 + $0x18] sm:$0xf] }
  0xab   : > { %v2446_v10 = vsel %vm14102_vm11, %v2441_v18, %v2445_v56  ;;  %v2450_v28 = vrot.slane %v2448_v9, 4  ;;  %v2453_v21 = vrot.slane %v2451_v8, 5  ;;  %v2461_v31 = vshrl.u32 %v2379_v41, 16 }
  0xac   : > { %v11322_v58 = vcombine.low %v2436_v23, %v2446_v10  ;;  %v2023_v1 = vrot.slane %v2022_v47, 4  ;;  %v2032_v37 = vor.u32 %v2031_v13, %v2027_v52  ;;  %v2459_v42 = vrot.slane %v2457_v61, 5  ;;  %v1164_v23 = vld [vmem:[#allocation3 + $0x20] sm:$0x1] }
  0xad   : > { %v2454_v48 = vor.u32 %v2453_v21, %v2450_v28  ;;  %v2463_v5 = vrot.slane %v2461_v31, 4  ;;  %v2467_v17 = vshll.u32 %v2380_v32, 16  ;;  %v700_v33 = vsel %vm13733_vm8, %v395_v24, %v699_v54  ;;  %v2381_v32 = vld [vmem:[#allocation3 + $0x18] sm:$0xf]  ;;  %v2382_v54 = vld [vmem:[#allocation3 + $0x1c] sm:$0xf] }
  0xae   : > { %12428 = vmatprep.mubr.msk.bf16.mxu1 %vm1429_vm2, %v11322_v58  ;;  %v2028_v56 = vsel %vm14102_vm11, %v2023_v1, %v2027_v52  ;;  %v2033_v41 = vrot.slane %v2032_v37, 4  ;;  %701 = vst [vmem:[#allocation2 + $0x20] sm:$0x1] %v700_v33  ;;  %v2040_v39 = vshrl.u32 %v1946_v53, 16  ;;  %v2043_v36 = vshll.u32 %v1946_v53, 16  ;;  %v13048_v31 = vld [vmem:[%s17879_s2 + $0x20] sm:$0xff]  }
  0xaf   : > { %v2455_v18 = vrot.slane %v2454_v48, 4  ;;  %v2464_v9 = vor.u32 %v2463_v5, %v2459_v42  ;;  %v2469_v8 = vrot.slane %v2467_v17, 5  ;;  %v2049_v47 = vshll.u32 %v1947_v34, 16  ;;  %v706_v37 = vld [vmem:[#allocation2 + $0x2c] sm:$0x1]  ;;  %v13049_v33 = vld [vmem:[%s17880_s3 + $0x20] sm:$0xff]  }
  0xb0   : > { %v2038_v16 = vsel %vm14102_vm11, %v2033_v41, %v2037_v26  ;;  %v2042_v13 = vrot.slane %v2040_v39, 4  ;;  %v2045_v24 = vrot.slane %v2043_v36, 5  ;;  %v2053_v61 = vshrl.u32 %v1947_v34, 16  ;;  %v1949_v17 = vld [vmem:[#allocation2 + $0x24] sm:$0xf] }
  0xb1   : > { %v11285_v10 = vcombine.low %v2028_v56, %v2038_v16  ;;  %v2460_v52 = vsel %vm14102_vm11, %v2455_v18, %v2459_v42  ;;  %v2465_v28 = vrot.slane %v2464_v9, 4  ;;  %v14129_v21 = vrot.slane %v2049_v47, 5  ;;  %v1950_v36 = vld [vmem:[#allocation2 + $0x28] sm:$0xf] }
  0xb2   : > { %v2046_v53 = vor.u32 %v2045_v24, %v2042_v13  ;;  %v2055_v58 = vrot.slane %v2053_v61, 4  ;;  %v1165_v26 = vsel %vm13733_vm8, %v865_v0, %v1164_v23  ;;  %v2472_v1 = vshrl.u32 %v2381_v32, 16  ;;  %v13140_v0 = vld [vmem:[%s17879_s2 + $0x28] sm:$0xff]   ;;  %v1171_v23 = vld [vmem:[#allocation3 + $0x2c] sm:$0x1] }
  0xb3   : > { %12393 = vmatmul.mubr.msk.bf16.vlgmr.msra.gmra.mxu0 %vm1429_vm2, %v11285_v10  ;;  %v2470_v42 = vsel %vm14102_vm11, %v2465_v28, %v2469_v8  ;;  %1166 = vst [vmem:[#allocation3 + $0x20] sm:$0x1] %v1165_v26  ;;  %v2475_v34 = vshll.u32 %v2381_v32, 16  ;;  %v2481_v48 = vshll.u32 %v2382_v54, 16  ;;  %v2485_v5 = vshrl.u32 %v2382_v54, 16  ;;  %v13050_v54 = vld [vmem:[%s17879_s2 + $0x38] sm:$0xff]  }
  0xb4   : > { %v11323_v51 = vcombine.low %v2460_v52, %v2470_v42  ;;  %12461 = vmatpush3.bf16.msra.mxu0 %v13140_v0  ;;  %v2047_v56 = vrot.slane %v2046_v53, 4  ;;  %v2056_v41 = vor.u32 %v2055_v58, %v14129_v21  ;;  %v2474_v39 = vrot.slane %v2472_v1, 4  ;;  %v2384_v53 = vld [vmem:[#allocation3 + $0x24] sm:$0xf]  ;;  %v2385_v42 = vld [vmem:[#allocation3 + $0x28] sm:$0xf] }
  0xb5   : > { %v1948_v18 = vld [vmem:[#allocation2 + $0x20] sm:$0x1]  ;;  %v2477_v9 = vrot.slane %v2475_v34, 5  ;;  %v14148_v8 = vrot.slane %v2481_v48, 5  ;;  %v2487_v47 = vrot.slane %v2485_v5, 4  ;;  %v707_v32 = vsel %vm13733_vm8, %v412_v4, %v706_v37  ;;  %12462 = vmatprep.subr.bf16.mxu0 %v13048_v31 }
  0xb6   : > { %12429 = vmatmul.mubr.msk.bf16.vlgmr.msra.gmra.mxu1 %vm1429_vm2, %v11323_v51  ;;  %v2052_v16 = vsel %vm14102_vm11, %v2047_v56, %v14129_v21  ;;  %v2057_v13 = vrot.slane %v2056_v41, 4  ;;  %v2059_v24 = vshll.u32 %v1948_v18, 16  ;;  %708 = vst [vmem:[#allocation2 + $0x2c] sm:$0x1] %v707_v32  ;;  %v2064_v61 = vshrl.u32 %v1949_v17, 16 }
  0xb7   : > { %12497 = vmatpush3.bf16.msra.mxu1 %v13141_v57  ;;  %v2478_v4 = vor.u32 %v2477_v9, %v2474_v39  ;;  %v2488_v10 = vor.u32 %v2487_v47, %v14148_v8  ;;  %v2067_v52 = vshll.u32 %v1949_v17, 16  ;;  %v2073_v28 = vshll.u32 %v1950_v36, 16  ;;  %v713_v0 = vld [vmem:[#allocation2 + $0x38] sm:$0x1] }
  0xb8   : > { %v2061_v21 = vrot.slane %v2059_v24, 5  ;;  %v2066_v58 = vrot.slane %v2064_v61, 4  ;;  %v2077_v26 = vshrl.u32 %v1950_v36, 16  ;;  %v17931_v1 = vrot.slane %v13772_v22, 4  ;;  %12463 = vmatpush3.bf16.msra.mxu0 %v13048_v31  ;;  %12498 = vmatprep.subr.bf16.mxu1 %v13049_v33  ;;  %v1952_v61 = vld [vmem:[#allocation2 + $0x30] sm:$0xf] }
  0xb9   : > { %v2479_v34 = vrot.slane %v2478_v4, 4  ;;  %v2489_v48 = vrot.slane %v2488_v10, 4  ;;  %v2069_v5 = vrot.slane %v2067_v52, 5  ;;  %v2075_v51 = vrot.slane %v2073_v28, 5  ;;  %12532 = vmatprep.subr.bf16.mxu0 %v13050_v54 }
  0xba   : > { %v1172_v37 = vsel %vm13733_vm8, %v17931_v1, %v1171_v23  ;;  %v2062_v17 = vsel %vm14102_vm11, %v2057_v13, %v2061_v21  ;;  %v2383_v56 = vld [vmem:[#allocation3 + $0x20] sm:$0x1]  ;;  %v2079_v41 = vrot.slane %v2077_v26, 4  ;;  %v2496_v39 = vshrl.u32 %v2384_v53, 16  ;;  %v1953_v21 = vld [vmem:[#allocation2 + $0x34] sm:$0xf] }
  0xbb   : > { %1173 = vst [vmem:[#allocation3 + $0x2c] sm:$0x1] %v1172_v37  ;;  %v2499_v22 = vshll.u32 %v2384_v53, 16  ;;  %v11286_v36 = vcombine.low %v2052_v16, %v2062_v17  ;;  %v2484_v31 = vsel %vm14102_vm11, %v2479_v34, %v14148_v8  ;;  %v2491_v23 = vshll.u32 %v2383_v56, 16  ;;  %12499 = vmatpush3.bf16.msra.mxu1 %v13049_v33  ;;  %v13051_v13 = vld [vmem:[%s17880_s3 + $0x38] sm:$0xff]  }
  0xbc   : > { %v2070_v18 = vor.u32 %v2069_v5, %v2066_v58  ;;  %v2080_v9 = vor.u32 %v2079_v41, %v2075_v51  ;;  %v2498_v47 = vrot.slane %v2496_v39, 4  ;;  %v2505_v24 = vshll.u32 %v2385_v42, 16  ;;  %12568 = vmatprep.subr.bf16.mxu1 %v13051_v13 }
  0xbd   : > { %v2501_v32 = vrot.slane %v2499_v22, 5  ;;  %12396 = vmatprep.mubr.msk.bf16.mxu0 %vm1429_vm2, %v11286_v36  ;;  %v2493_v54 = vrot.slane %v2491_v23, 5  ;;  %v1951_v16 = vld [vmem:[#allocation2 + $0x2c] sm:$0x1]  ;;  %v2509_v4 = vshrl.u32 %v2385_v42, 16  ;;  %v17932_v8 = vrot.slane %v13819_v15, 4 }
  0xbe   : > { %v2071_v57 = vrot.slane %v2070_v18, 4  ;;  %v2081_v10 = vrot.slane %v2080_v9, 4  ;;  %v2083_v52 = vshll.u32 %v1951_v16, 16  ;;  %v2507_v53 = vrot.slane %v2505_v24, 5  ;;  %v1178_v42 = vld [vmem:[#allocation3 + $0x38] sm:$0x1] }
  0xbf   : > { %v714_v33 = vsel %vm13733_vm8, %v17932_v8, %v713_v0  ;;  %v2502_v28 = vor.u32 %v2501_v32, %v2498_v47  ;;  %v2494_v58 = vsel %vm14102_vm11, %v2489_v48, %v2493_v54  ;;  %v2511_v1 = vrot.slane %v2509_v4, 4  ;;  %v2387_v36 = vld [vmem:[#allocation3 + $0x30] sm:$0xf]  ;;  %v720_v4 = vld [vmem:[#allocation2 + $0x44] sm:$0x1] }
  0xc0   : > { %715 = vst [vmem:[#allocation2 + $0x38] sm:$0x1] %v714_v33  ;;  %v2076_v26 = vsel %vm14102_vm11, %v2071_v57, %v2075_v51  ;;  %v2088_v37 = vshrl.u32 %v1952_v61, 16  ;;  %v11324_v15 = vcombine.low %v2484_v31, %v2494_v58  ;;  %v2085_v34 = vrot.slane %v2083_v52, 5  ;;  %v2388_v31 = vld [vmem:[#allocation3 + $0x34] sm:$0xf] }
  0xc1   : > { %v2503_v0 = vrot.slane %v2502_v28, 4  ;;  %v2091_v17 = vshll.u32 %v1952_v61, 16  ;;  %v2512_v56 = vor.u32 %v2511_v1, %v2507_v53  ;;  %v2097_v22 = vshll.u32 %v1953_v21, 16  ;;  %v1956_v1 = vld [vmem:[#allocation2 + $0x40] sm:$0xf] }
  0xc2   : > { %v2386_v5 = vld [vmem:[#allocation3 + $0x2c] sm:$0x1]  ;;  %v2090_v39 = vrot.slane %v2088_v37, 4  ;;  %12432 = vmatprep.mubr.msk.bf16.mxu1 %vm1429_vm2, %v11324_v15  ;;  %v2086_v48 = vsel %vm14102_vm11, %v2081_v10, %v2085_v34  ;;  %v2101_v18 = vshrl.u32 %v1953_v21, 16  ;;  %v17933_v54 = vrot.slane %v13805_v59, 4 }
  0xc3   : > { %v2515_v41 = vshll.u32 %v2386_v5, 16  ;;  %v2508_v51 = vsel %vm14102_vm11, %v2503_v0, %v2507_v53  ;;  %v2093_v23 = vrot.slane %v2091_v17, 5  ;;  %v11287_v9 = vcombine.low %v2076_v26, %v2086_v48  ;;  %v1955_v59 = vld [vmem:[#allocation2 + $0x3c] sm:$0xf] }
  0xc4   : > { %v2513_v47 = vrot.slane %v2512_v56, 4  ;;  %v2099_v24 = vrot.slane %v2097_v22, 5  ;;  %v2103_v13 = vrot.slane %v2101_v18, 4  ;;  %v1179_v16 = vsel %vm13733_vm8, %v17933_v54, %v1178_v42  ;;  %v1185_v5 = vld [vmem:[#allocation3 + $0x44] sm:$0x1] }
  0xc5   : > { %v2517_v32 = vrot.slane %v2515_v41, 5  ;;  %v2094_v61 = vor.u32 %v2093_v23, %v2090_v39  ;;  %v2520_v57 = vshrl.u32 %v2387_v36, 16  ;;  %12397 = vmatmul.mubr.msk.bf16.gmra.mxu0 %vm1429_vm2, %v11287_v9  ;;  %1180 = vst [vmem:[#allocation3 + $0x38] sm:$0x1] %v1179_v16  ;;  %v2523_v10 = vshll.u32 %v2387_v36, 16 }
  0xc6   : > { %v2529_v52 = vshll.u32 %v2388_v31, 16  ;;  %v2533_v28 = vshrl.u32 %v2388_v31, 16  ;;  %v2104_v58 = vor.u32 %v2103_v13, %v2099_v24  ;;  %v17934_v41 = vrot.slane %v13849_v62, 4  ;;  %v2390_v23 = vld [vmem:[#allocation3 + $0x3c] sm:$0xf] }
  0xc7   : > { %v2518_v8 = vsel %vm14102_vm11, %v2513_v47, %v2517_v32  ;;  %v1954_v33 = vld [vmem:[#allocation2 + $0x38] sm:$0x1]  ;;  %v2095_v21 = vrot.slane %v2094_v61, 4  ;;  %v2522_v37 = vrot.slane %v2520_v57, 4  ;;  %v2525_v42 = vrot.slane %v2523_v10, 5 }
  0xc8   : > { %v11325_v53 = vcombine.low %v2508_v51, %v2518_v8  ;;  %v2107_v26 = vshll.u32 %v1954_v33, 16  ;;  %v2531_v15 = vrot.slane %v2529_v52, 5  ;;  %v2535_v34 = vrot.slane %v2533_v28, 4  ;;  %v2391_v62 = vld [vmem:[#allocation3 + $0x40] sm:$0xf] }
  0xc9   : > { %v2100_v0 = vsel %vm14102_vm11, %v2095_v21, %v2099_v24  ;;  %v2105_v17 = vrot.slane %v2104_v58, 4  ;;  %v721_v39 = vsel %vm13733_vm8, %v17934_v41, %v720_v4  ;;  %v2526_v22 = vor.u32 %v2525_v42, %v2522_v37  ;;  %v727_v24 = vld [vmem:[#allocation2 + $0x50] sm:$0x1]  ;;  %v1958_v57 = vld [vmem:[#allocation2 + $0x48] sm:$0xf] }
  0xca   : > { %12433 = vmatmul.mubr.msk.bf16.gmra.mxu1 %vm1429_vm2, %v11325_v53  ;;  %v2109_v56 = vrot.slane %v2107_v26, 5  ;;  %v2536_v36 = vor.u32 %v2535_v34, %v2531_v15  ;;  %722 = vst [vmem:[#allocation2 + $0x44] sm:$0x1] %v721_v39  ;;  %v2112_v48 = vshrl.u32 %v1955_v59, 16  ;;  %v2115_v51 = vshll.u32 %v1955_v59, 16 }
  0xcb   : > { %v2121_v31 = vshll.u32 %v1956_v1, 16  ;;  %v2125_v9 = vshrl.u32 %v1956_v1, 16  ;;  %v17935_v47 = vrot.slane %v13840_v45, 4  ;;  %v2527_v13 = vrot.slane %v2526_v22, 4 }
  0xcc   : > { %v2110_v18 = vsel %vm14102_vm11, %v2105_v17, %v2109_v56  ;;  %v2537_v54 = vrot.slane %v2536_v36, 4  ;;  %v2114_v16 = vrot.slane %v2112_v48, 4  ;;  %v2389_v4 = vld [vmem:[#allocation3 + $0x38] sm:$0x1]  ;;  %v2117_v8 = vrot.slane %v2115_v51, 5 }
  0xcd   : > { %v1186_v32 = vsel %vm13733_vm8, %v17935_v47, %v1185_v5  ;;  %v11288_v61 = vcombine.low %v2100_v0, %v2110_v18  ;;  %v2123_v33 = vrot.slane %v2121_v31, 5  ;;  %v2127_v10 = vrot.slane %v2125_v9, 4  ;;  %v1959_v17 = vld [vmem:[#allocation2 + $0x4c] sm:$0xf]  ;;  %v1192_v18 = vld [vmem:[#allocation3 + $0x50] sm:$0x1] }
  0xce   : > { %1187 = vst [vmem:[#allocation3 + $0x44] sm:$0x1] %v1186_v32  ;;  %v2544_v52 = vshrl.u32 %v2390_v23, 16  ;;  %v2532_v45 = vsel %vm14102_vm11, %v2527_v13, %v2531_v15  ;;  %v2539_v28 = vshll.u32 %v2389_v4, 16  ;;  %v2547_v53 = vshll.u32 %v2390_v23, 16 }
  0xcf   : > { %12400 = vmatprep.mubr.msk.bf16.mxu0 %vm1429_vm2, %v11288_v61  ;;  %v2553_v21 = vshll.u32 %v2391_v62, 16  ;;  %v2118_v58 = vor.u32 %v2117_v8, %v2114_v16  ;;  %v2128_v26 = vor.u32 %v2127_v10, %v2123_v33  ;;  %v2557_v1 = vshrl.u32 %v2391_v62, 16  ;;  %v2393_v31 = vld [vmem:[#allocation3 + $0x48] sm:$0xf] }
  0xd0   : > { %v2546_v59 = vrot.slane %v2544_v52, 4  ;;  %v2541_v37 = vrot.slane %v2539_v28, 5  ;;  %v2549_v42 = vrot.slane %v2547_v53, 5  ;;  %v17936_v5 = vrot.slane %v13876_v46, 4 }
  0xd1   : > { %v2555_v34 = vrot.slane %v2553_v21, 5  ;;  %v1957_v56 = vld [vmem:[#allocation2 + $0x44] sm:$0x1]  ;;  %v2119_v41 = vrot.slane %v2118_v58, 4  ;;  %v2129_v39 = vrot.slane %v2128_v26, 4  ;;  %v2559_v15 = vrot.slane %v2557_v1, 4 }
  0xd2   : > { %v728_v0 = vsel %vm13733_vm8, %v17936_v5, %v727_v24  ;;  %v2136_v22 = vshrl.u32 %v1958_v57, 16  ;;  %v2542_v36 = vsel %vm14102_vm11, %v2537_v54, %v2541_v37  ;;  %v2131_v48 = vshll.u32 %v1957_v56, 16  ;;  %v2394_v24 = vld [vmem:[#allocation3 + $0x4c] sm:$0xf]  ;;  %v734_v21 = vld [vmem:[#allocation2 + $0x5c] sm:$0x1] }
  0xd3   : > { %729 = vst [vmem:[#allocation2 + $0x50] sm:$0x1] %v728_v0  ;;  %v2550_v51 = vor.u32 %v2549_v42, %v2546_v59  ;;  %v2139_v23 = vshll.u32 %v1958_v57, 16  ;;  %v11326_v9 = vcombine.low %v2532_v45, %v2542_v36  ;;  %v2124_v46 = vsel %vm14102_vm11, %v2119_v41, %v2123_v33  ;;  %v1961_v37 = vld [vmem:[#allocation2 + $0x54] sm:$0xf] }
  0xd4   : > { %v2560_v32 = vor.u32 %v2559_v15, %v2555_v34  ;;  %v2138_v62 = vrot.slane %v2136_v22, 4  ;;  %v2133_v61 = vrot.slane %v2131_v48, 5  ;;  %v2145_v8 = vshll.u32 %v1959_v17, 16  ;;  %v1962_v15 = vld [vmem:[#allocation2 + $0x58] sm:$0xf] }
  0xd5   : > { %v2392_v47 = vld [vmem:[#allocation3 + $0x44] sm:$0x1]  ;;  %v2551_v13 = vrot.slane %v2550_v51, 4  ;;  %v2141_v4 = vrot.slane %v2139_v23, 5  ;;  %12436 = vmatprep.mubr.msk.bf16.mxu1 %vm1429_vm2, %v11326_v9  ;;  %v2149_v10 = vshrl.u32 %v1959_v17, 16  ;;  %v17937_v57 = vrot.slane %v13861_v20, 4 }
  0xd6   : > { %v2563_v16 = vshll.u32 %v2392_v47, 16  ;;  %v2561_v54 = vrot.slane %v2560_v32, 4  ;;  %v2134_v33 = vsel %vm14102_vm11, %v2129_v39, %v2133_v61  ;;  %v2147_v26 = vrot.slane %v2145_v8, 5  ;;  %v1199_v23 = vld [vmem:[#allocation3 + $0x5c] sm:$0x1] }
  0xd7   : > { %v1193_v52 = vsel %vm13733_vm8, %v17937_v57, %v1192_v18  ;;  %v2556_v45 = vsel %vm14102_vm11, %v2551_v13, %v2555_v34  ;;  %v2142_v53 = vor.u32 %v2141_v4, %v2138_v62  ;;  %v11289_v58 = vcombine.low %v2124_v46, %v2134_v33 }
  0xd8   : > { %v2565_v28 = vrot.slane %v2563_v16, 5  ;;  %1194 = vst [vmem:[#allocation3 + $0x50] sm:$0x1] %v1193_v52  ;;  %v2151_v59 = vrot.slane %v2149_v10, 4  ;;  %v2568_v1 = vshrl.u32 %v2393_v31, 16  ;;  %v2571_v0 = vshll.u32 %v2393_v31, 16 }
  0xd9   : > { %v2143_v5 = vrot.slane %v2142_v53, 4  ;;  %v2577_v17 = vshll.u32 %v2394_v24, 16  ;;  %12401 = vmatmul.mubr.msk.bf16.gmra.mxu0 %vm1429_vm2, %v11289_v58  ;;  %v2581_v51 = vshrl.u32 %v2394_v24, 16  ;;  %v17938_v31 = vrot.slane %v13899_v29, 4  ;;  %v2396_v16 = vld [vmem:[#allocation3 + $0x54] sm:$0xf] }
  0xda   : > { %v2566_v20 = vsel %vm14102_vm11, %v2561_v54, %v2565_v28  ;;  %v1960_v42 = vld [vmem:[#allocation2 + $0x50] sm:$0x1]  ;;  %v2152_v34 = vor.u32 %v2151_v59, %v2147_v26  ;;  %v2570_v39 = vrot.slane %v2568_v1, 4  ;;  %v2573_v36 = vrot.slane %v2571_v0, 5  ;;  %v741_v59 = vld [vmem:[#allocation2 + $0x68] sm:$0x1] }
  0xdb   : > { %v11327_v56 = vcombine.low %v2556_v45, %v2566_v20  ;;  %v2155_v41 = vshll.u32 %v1960_v42, 16  ;;  %v2148_v22 = vsel %vm14102_vm11, %v2143_v5, %v2147_v26  ;;  %v2579_v48 = vrot.slane %v2577_v17, 5  ;;  %v2397_v28 = vld [vmem:[#allocation3 + $0x58] sm:$0xf] }
  0xdc   : > { %v2153_v18 = vrot.slane %v2152_v34, 4  ;;  %v735_v46 = vsel %vm13733_vm8, %v17938_v31, %v734_v21  ;;  %v2160_v47 = vshrl.u32 %v1961_v37, 16  ;;  %v2574_v32 = vor.u32 %v2573_v36, %v2570_v39  ;;  %v1965_v36 = vld [vmem:[#allocation2 + $0x64] sm:$0xf] }
  0xdd   : > { %12437 = vmatmul.mubr.msk.bf16.gmra.mxu1 %vm1429_vm2, %v11327_v56  ;;  %v2157_v9 = vrot.slane %v2155_v41, 5  ;;  %v2583_v62 = vrot.slane %v2581_v51, 4  ;;  %736 = vst [vmem:[#allocation2 + $0x5c] sm:$0x1] %v735_v46  ;;  %v2163_v61 = vshll.u32 %v1961_v37, 16  ;;  %v2169_v13 = vshll.u32 %v1962_v15, 16 }
  0xde   : > { %v2162_v54 = vrot.slane %v2160_v47, 4  ;;  %v2173_v8 = vshrl.u32 %v1962_v15, 16  ;;  %v17939_v10 = vrot.slane %v13879_v49, 4  ;;  %v2575_v52 = vrot.slane %v2574_v32, 4  ;;  %v1964_v56 = vld [vmem:[#allocation2 + $0x60] sm:$0xf] }
  0xdf   : > { %v2158_v24 = vsel %vm14102_vm11, %v2153_v18, %v2157_v9  ;;  %v2395_v4 = vld [vmem:[#allocation3 + $0x50] sm:$0x1]  ;;  %v2584_v33 = vor.u32 %v2583_v62, %v2579_v48  ;;  %v2165_v53 = vrot.slane %v2163_v61, 5  ;;  %v2171_v21 = vrot.slane %v2169_v13, 5  ;;  %v1206_v62 = vld [vmem:[#allocation3 + $0x68] sm:$0x1] }
  0xe0   : > { %v1200_v29 = vsel %vm13733_vm8, %v17939_v10, %v1199_v23  ;;  %v11290_v57 = vcombine.low %v2148_v22, %v2158_v24  ;;  %v2587_v45 = vshll.u32 %v2395_v4, 16  ;;  %v2175_v58 = vrot.slane %v2173_v8, 4 }
  0xe1   : > { %1201 = vst [vmem:[#allocation3 + $0x5c] sm:$0x1] %v1200_v29  ;;  %v2592_v26 = vshrl.u32 %v2396_v16, 16  ;;  %v2580_v1 = vsel %vm14102_vm11, %v2575_v52, %v2579_v48  ;;  %v2585_v49 = vrot.slane %v2584_v33, 4  ;;  %v2595_v20 = vshll.u32 %v2396_v16, 16 }
  0xe2   : > { %12404 = vmatprep.mubr.msk.bf16.mxu0 %vm1429_vm2, %v11290_v57  ;;  %v2589_v37 = vrot.slane %v2587_v45, 5  ;;  %v2166_v42 = vor.u32 %v2165_v53, %v2162_v54  ;;  %v2176_v5 = vor.u32 %v2175_v58, %v2171_v21  ;;  %v2601_v17 = vshll.u32 %v2397_v28, 16  ;;  %v2399_v29 = vld [vmem:[#allocation3 + $0x60] sm:$0xf] }
  0xe3   : > { %v2594_v0 = vrot.slane %v2592_v26, 4  ;;  %v2597_v41 = vrot.slane %v2595_v20, 5  ;;  %v2605_v39 = vshrl.u32 %v2397_v28, 16  ;;  %v17940_v15 = vrot.slane %v13920_v12, 4  ;;  %v2400_v28 = vld [vmem:[#allocation3 + $0x64] sm:$0xf] }
  0xe4   : > { %v2590_v34 = vsel %vm14102_vm11, %v2585_v49, %v2589_v37  ;;  %v1963_v51 = vld [vmem:[#allocation2 + $0x5c] sm:$0x1]  ;;  %v2167_v23 = vrot.slane %v2166_v42, 4  ;;  %v2177_v18 = vrot.slane %v2176_v5, 4  ;;  %v2603_v9 = vrot.slane %v2601_v17, 5 }
  0xe5   : > { %v742_v22 = vsel %vm13733_vm8, %v17940_v15, %v741_v59  ;;  %v11328_v48 = vcombine.low %v2580_v1, %v2590_v34  ;;  %v2179_v31 = vshll.u32 %v1963_v51, 16  ;;  %v2598_v46 = vor.u32 %v2597_v41, %v2594_v0  ;;  %v748_v42 = vld [vmem:[#allocation2 + $0x74] sm:$0x1]  ;;  %v1967_v5 = vld [vmem:[#allocation2 + $0x6c] sm:$0xf] }
  0xe6   : > { %743 = vst [vmem:[#allocation2 + $0x68] sm:$0x1] %v742_v22  ;;  %v2607_v47 = vrot.slane %v2605_v39, 4  ;;  %v2184_v32 = vshrl.u32 %v1964_v56, 16  ;;  %v2172_v12 = vsel %vm14102_vm11, %v2167_v23, %v2171_v21  ;;  %v2187_v13 = vshll.u32 %v1964_v56, 16 }
  0xe7   : > { %12440 = vmatprep.mubr.msk.bf16.mxu1 %vm1429_vm2, %v11328_v48  ;;  %v2193_v16 = vshll.u32 %v1965_v36, 16  ;;  %v2197_v24 = vshrl.u32 %v1965_v36, 16  ;;  %v2181_v4 = vrot.slane %v2179_v31, 5  ;;  %v2599_v54 = vrot.slane %v2598_v46, 4 }
  0xe8   : > { %v2398_v61 = vld [vmem:[#allocation3 + $0x5c] sm:$0x1]  ;;  %v2608_v8 = vor.u32 %v2607_v47, %v2603_v9  ;;  %v2186_v57 = vrot.slane %v2184_v32, 4  ;;  %v2189_v52 = vrot.slane %v2187_v13, 5  ;;  %v17941_v37 = vrot.slane %v13908_v50, 4 }
  0xe9   : > { %v2611_v10 = vshll.u32 %v2398_v61, 16  ;;  %v2195_v33 = vrot.slane %v2193_v16, 5  ;;  %v2199_v45 = vrot.slane %v2197_v24, 4  ;;  %v2182_v53 = vsel %vm14102_vm11, %v2177_v18, %v2181_v4  ;;  %v1968_v50 = vld [vmem:[#allocation2 + $0x70] sm:$0xf] }
  0xea   : > { %v2604_v21 = vsel %vm14102_vm11, %v2599_v54, %v2603_v9  ;;  %v2609_v58 = vrot.slane %v2608_v8, 4  ;;  %v11291_v59 = vcombine.low %v2172_v12, %v2182_v53  ;;  %v2190_v1 = vor.u32 %v2189_v52, %v2186_v57  ;;  %v1213_v9 = vld [vmem:[#allocation3 + $0x74] sm:$0x1]  ;;  %v2402_v24 = vld [vmem:[#allocation3 + $0x6c] sm:$0xf] }
  0xeb   : > { %v2613_v26 = vrot.slane %v2611_v10, 5  ;;  %v2200_v49 = vor.u32 %v2199_v45, %v2195_v33  ;;  %v1207_v20 = vsel %vm13733_vm8, %v17941_v37, %v1206_v62  ;;  %v2616_v56 = vshrl.u32 %v2399_v29, 16  ;;  %v2403_v45 = vld [vmem:[#allocation3 + $0x70] sm:$0xf] }
  0xec   : > { %1208 = vst [vmem:[#allocation3 + $0x68] sm:$0x1] %v1207_v20  ;;  %v2619_v34 = vshll.u32 %v2399_v29, 16  ;;  %v2625_v41 = vshll.u32 %v2400_v28, 16  ;;  %12405 = vmatmul.mubr.msk.bf16.gmra.mxu0 %vm1429_vm2, %v11291_v59  ;;  %v2191_v15 = vrot.slane %v2190_v1, 4  ;;  %v2629_v18 = vshrl.u32 %v2400_v28, 16 }
  0xed   : > { %v2614_v0 = vsel %vm14102_vm11, %v2609_v58, %v2613_v26  ;;  %v1966_v17 = vld [vmem:[#allocation2 + $0x68] sm:$0x1]  ;;  %v2201_v22 = vrot.slane %v2200_v49, 4  ;;  %v2618_v48 = vrot.slane %v2616_v56, 4  ;;  %v17942_v47 = vrot.slane %v13943_v60, 4 }
  0xee   : > { %v11329_v39 = vcombine.low %v2604_v21, %v2614_v0  ;;  %v2203_v36 = vshll.u32 %v1966_v17, 16  ;;  %v2621_v51 = vrot.slane %v2619_v34, 5  ;;  %v2627_v23 = vrot.slane %v2625_v41, 5  ;;  %v755_v28 = vld [vmem:[#allocation2 + $0x80] sm:$0x1] }
  0xef   : > { %v2196_v31 = vsel %vm14102_vm11, %v2191_v15, %v2195_v33  ;;  %v749_v32 = vsel %vm13733_vm8, %v17942_v47, %v748_v42  ;;  %v2208_v62 = vshrl.u32 %v1967_v5, 16  ;;  %v2631_v61 = vrot.slane %v2629_v18, 4  ;;  %v1970_v20 = vld [vmem:[#allocation2 + $0x78] sm:$0xf]  ;;  %v1971_v56 = vld [vmem:[#allocation2 + $0x7c] sm:$0xf] }
  0xf0   : > { %12441 = vmatmul.mubr.msk.bf16.gmra.mxu1 %vm1429_vm2, %v11329_v39  ;;  %v2205_v46 = vrot.slane %v2203_v36, 5  ;;  %v2622_v12 = vor.u32 %v2621_v51, %v2618_v48  ;;  %750 = vst [vmem:[#allocation2 + $0x74] sm:$0x1] %v749_v32  ;;  %v2211_v13 = vshll.u32 %v1967_v5, 16  ;;  %v2217_v16 = vshll.u32 %v1968_v50, 16 }
  0xf1   : > { %v2210_v54 = vrot.slane %v2208_v62, 4  ;;  %v2221_v8 = vshrl.u32 %v1968_v50, 16  ;;  %v17943_v10 = vrot.slane %v13933_v40, 4  ;;  %v2632_v52 = vor.u32 %v2631_v61, %v2627_v23  ;;  %v1220_v36 = vld [vmem:[#allocation3 + $0x80] sm:$0x1] }
  0xf2   : > { %v2206_v4 = vsel %vm14102_vm11, %v2201_v22, %v2205_v46  ;;  %v2623_v57 = vrot.slane %v2622_v12, 4  ;;  %v2213_v33 = vrot.slane %v2211_v13, 5  ;;  %v2219_v21 = vrot.slane %v2217_v16, 5 }
  0xf3   : > { %v1214_v60 = vsel %vm13733_vm8, %v17943_v10, %v1213_v9  ;;  %v11292_v29 = vcombine.low %v2196_v31, %v2206_v4  ;;  %v2401_v53 = vld [vmem:[#allocation3 + $0x68] sm:$0x1]  ;;  %v2223_v58 = vrot.slane %v2221_v8, 4  ;;  %v2640_v26 = vshrl.u32 %v2402_v24, 16 }
  0xf4   : > { %1215 = vst [vmem:[#allocation3 + $0x74] sm:$0x1] %v1214_v60  ;;  %v2643_v59 = vshll.u32 %v2402_v24, 16  ;;  %v2628_v40 = vsel %vm14102_vm11, %v2623_v57, %v2627_v23  ;;  %v2633_v1 = vrot.slane %v2632_v52, 4  ;;  %v2635_v49 = vshll.u32 %v2401_v53, 16 }
  0xf5   : > { %12408 = vmatprep.mubr.msk.bf16.mxu0 %vm1429_vm2, %v11292_v29  ;;  %v2214_v37 = vor.u32 %v2213_v33, %v2210_v54  ;;  %v2224_v42 = vor.u32 %v2223_v58, %v2219_v21  ;;  %v2642_v5 = vrot.slane %v2640_v26, 4  ;;  %v2649_v17 = vshll.u32 %v2403_v45, 16  ;;  %v2405_v54 = vld [vmem:[#allocation3 + $0x78] sm:$0xf]  ;;  %v2406_v52 = vld [vmem:[#allocation3 + $0x7c] sm:$0xf] }
  0xf6   : > { %v2645_v0 = vrot.slane %v2643_v59, 5  ;;  %v2637_v34 = vrot.slane %v2635_v49, 5  ;;  %v2653_v39 = vshrl.u32 %v2403_v45, 16  ;;  %v17944_v15 = vrot.slane %v13968_v63, 4 }
  0xf7   : > { %v2215_v41 = vrot.slane %v2214_v37, 4  ;;  %v1969_v50 = vld [vmem:[#allocation2 + $0x74] sm:$0x1]  ;;  %v2225_v48 = vrot.slane %v2224_v42, 4  ;;  %v2651_v23 = vrot.slane %v2649_v17, 5  ;;  %v2232_v18 = vshrl.u32 %v1970_v20, 16 }
  0xf8   : > { %v756_v22 = vsel %vm13733_vm8, %v17944_v15, %v755_v28  ;;  %v2646_v51 = vor.u32 %v2645_v0, %v2642_v5  ;;  %v2638_v9 = vsel %vm14102_vm11, %v2633_v1, %v2637_v34  ;;  %v2227_v46 = vshll.u32 %v1969_v50, 16  ;;  %v1974_v34 = vld [vmem:[#allocation2 + $0x88] sm:$0xf] }
  0xf9   : > { %757 = vst [vmem:[#allocation2 + $0x80] sm:$0x1] %v756_v22  ;;  %v2220_v31 = vsel %vm14102_vm11, %v2215_v41, %v2219_v21  ;;  %v2655_v47 = vrot.slane %v2653_v39, 4  ;;  %v11330_v32 = vcombine.low %v2628_v40, %v2638_v9  ;;  %v2234_v12 = vrot.slane %v2232_v18, 4  ;;  %v762_v40 = vld [vmem:[#allocation2 + $0x8c] sm:$0x1] }
  0xfa   : > { %v2647_v62 = vrot.slane %v2646_v51, 4  ;;  %v2235_v61 = vshll.u32 %v1970_v20, 16  ;;  %v2229_v13 = vrot.slane %v2227_v46, 5  ;;  %v2241_v4 = vshll.u32 %v1971_v56, 16 }
  0xfb   : > { %v2404_v63 = vld [vmem:[#allocation3 + $0x74] sm:$0x1]  ;;  %v2656_v16 = vor.u32 %v2655_v47, %v2651_v23  ;;  %12444 = vmatprep.mubr.msk.bf16.mxu1 %vm1429_vm2, %v11330_v32  ;;  %v2245_v60 = vshrl.u32 %v1971_v56, 16  ;;  %v17945_v29 = vrot.slane %v13954_v27, 4  ;;  %v2664_v59 = vshrl.u32 %v2405_v54, 16 }
  0xfc   : > { %v2659_v24 = vshll.u32 %v2404_v63, 16  ;;  %v2652_v8 = vsel %vm14102_vm11, %v2647_v62, %v2651_v23  ;;  %v2237_v10 = vrot.slane %v2235_v61, 5  ;;  %v2230_v33 = vsel %vm14102_vm11, %v2225_v48, %v2229_v13  ;;  %v1973_v56 = vld [vmem:[#allocation2 + $0x84] sm:$0xf] }
  0xfd   : > { %v1221_v57 = vsel %vm13733_vm8, %v17945_v29, %v1220_v36  ;;  %v2657_v45 = vrot.slane %v2656_v16, 4  ;;  %v2243_v53 = vrot.slane %v2241_v4, 5  ;;  %v11293_v21 = vcombine.low %v2220_v31, %v2230_v33  ;;  %v1227_v36 = vld [vmem:[#allocation3 + $0x8c] sm:$0x1] }
  0xfe   : > { %v2661_v28 = vrot.slane %v2659_v24, 5  ;;  %1222 = vst [vmem:[#allocation3 + $0x80] sm:$0x1] %v1221_v57  ;;  %v2238_v58 = vor.u32 %v2237_v10, %v2234_v12  ;;  %v2247_v26 = vrot.slane %v2245_v60, 4  ;;  %v2667_v49 = vshll.u32 %v2405_v54, 16 }
  0xff   : > { %v2673_v37 = vshll.u32 %v2406_v52, 16  ;;  %v2677_v20 = vshrl.u32 %v2406_v52, 16  ;;  %12409 = vmatmul.mubr.msk.bf16.gmra.mxu0 %vm1429_vm2, %v11293_v21  ;;  %v2666_v41 = vrot.slane %v2664_v59, 4  ;;  %v17946_v23 = vrot.slane %v13989_v7, 4  ;;  %v2408_v7 = vld [vmem:[#allocation3 + $0x84] sm:$0xf] }
 0x100   : > { %v2662_v1 = vsel %vm14102_vm11, %v2657_v45, %v2661_v28  ;;  %v1972_v27 = vld [vmem:[#allocation2 + $0x80] sm:$0x1]  ;;  %v2239_v5 = vrot.slane %v2238_v58, 4  ;;  %v2248_v0 = vor.u32 %v2247_v26, %v2243_v53  ;;  %v2669_v39 = vrot.slane %v2667_v49, 5  ;;  %v769_v52 = vld [vmem:[#allocation2 + $0x98] sm:$0x1] }
 0x101   : > { %v11331_v42 = vcombine.low %v2652_v8, %v2662_v1  ;;  %v2251_v17 = vshll.u32 %v1972_v27, 16  ;;  %v2675_v15 = vrot.slane %v2673_v37, 5  ;;  %v2679_v22 = vrot.slane %v2677_v20, 4  ;;  %v2409_v8 = vld [vmem:[#allocation3 + $0x88] sm:$0xf] }
 0x102   : > { %v2244_v50 = vsel %vm14102_vm11, %v2239_v5, %v2243_v53  ;;  %v2249_v48 = vrot.slane %v2248_v0, 4  ;;  %v763_v18 = vsel %vm13733_vm8, %v17946_v23, %v762_v40  ;;  %v2670_v9 = vor.u32 %v2669_v39, %v2666_v41  ;;  %v1976_v59 = vld [vmem:[#allocation2 + $0x90] sm:$0xf]  ;;  %v1977_v20 = vld [vmem:[#allocation2 + $0x94] sm:$0xf] }
 0x103   : > { %12445 = vmatmul.mubr.msk.bf16.gmra.mxu1 %vm1429_vm2, %v11331_v42  ;;  %v2253_v51 = vrot.slane %v2251_v17, 5  ;;  %v2680_v31 = vor.u32 %v2679_v22, %v2675_v15  ;;  %764 = vst [vmem:[#allocation2 + $0x8c] sm:$0x1] %v763_v18  ;;  %v2256_v46 = vshrl.u32 %v1973_v56, 16  ;;  %v2259_v47 = vshll.u32 %v1973_v56, 16 }
 0x104   : > { %v2265_v62 = vshll.u32 %v1974_v34, 16  ;;  %v2269_v12 = vshrl.u32 %v1974_v34, 16  ;;  %v17947_v61 = vrot.slane %v13978_v38, 4  ;;  %v2671_v24 = vrot.slane %v2670_v9, 4  ;;  %v1234_v22 = vld [vmem:[#allocation3 + $0x98] sm:$0x1] }
 0x105   : > { %v2254_v32 = vsel %vm14102_vm11, %v2249_v48, %v2253_v51  ;;  %v2407_v63 = vld [vmem:[#allocation3 + $0x80] sm:$0x1]  ;;  %v2681_v4 = vrot.slane %v2680_v31, 4  ;;  %v2258_v10 = vrot.slane %v2256_v46, 4  ;;  %v2261_v60 = vrot.slane %v2259_v47, 5 }
 0x106   : > { %v1228_v13 = vsel %vm13733_vm8, %v17947_v61, %v1227_v36  ;;  %v11294_v16 = vcombine.low %v2244_v50, %v2254_v32  ;;  %v2683_v54 = vshll.u32 %v2407_v63, 16  ;;  %v2267_v29 = vrot.slane %v2265_v62, 5  ;;  %v2411_v23 = vld [vmem:[#allocation3 + $0x90] sm:$0xf]  ;;  %v2412_v18 = vld [vmem:[#allocation3 + $0x94] sm:$0xf] }
 0x107   : > { %1229 = vst [vmem:[#allocation3 + $0x8c] sm:$0x1] %v1228_v13  ;;  %v2271_v57 = vrot.slane %v2269_v12, 4  ;;  %v2676_v38 = vsel %vm14102_vm11, %v2671_v24, %v2675_v15  ;;  %v2688_v45 = vshrl.u32 %v2408_v7, 16  ;;  %v2691_v28 = vshll.u32 %v2408_v7, 16 }
 0x108   : > { %12412 = vmatprep.mubr.msk.bf16.mxu0 %vm1429_vm2, %v11294_v16  ;;  %v2685_v33 = vrot.slane %v2683_v54, 5  ;;  %v2262_v53 = vor.u32 %v2261_v60, %v2258_v10  ;;  %v2697_v58 = vshll.u32 %v2409_v8, 16  ;;  %v2701_v26 = vshrl.u32 %v2409_v8, 16 }
 0x109   : > { %v2272_v21 = vor.u32 %v2271_v57, %v2267_v29  ;;  %v2690_v1 = vrot.slane %v2688_v45, 4  ;;  %v2693_v27 = vrot.slane %v2691_v28, 5  ;;  %v17948_v49 = vrot.slane %v14021_v14, 4  ;;  %v1979_v57 = vld [vmem:[#allocation2 + $0x9c] sm:$0xf] }
 0x10a   : > { %v2686_v40 = vsel %vm14102_vm11, %v2681_v4, %v2685_v33  ;;  %v1975_v5 = vld [vmem:[#allocation2 + $0x8c] sm:$0x1]  ;;  %v2263_v0 = vrot.slane %v2262_v53, 4  ;;  %v2699_v56 = vrot.slane %v2697_v58, 5  ;;  %v2703_v39 = vrot.slane %v2701_v26, 4 }
 0x10b   : > { %v770_v37 = vsel %vm13733_vm8, %v17948_v49, %v769_v52  ;;  %v11332_v42 = vcombine.low %v2676_v38, %v2686_v40  ;;  %v2273_v17 = vrot.slane %v2272_v21, 4  ;;  %v2275_v34 = vshll.u32 %v1975_v5, 16  ;;  %v1980_v40 = vld [vmem:[#allocation2 + $0xa0] sm:$0xf] }
 0x10c   : > { %771 = vst [vmem:[#allocation2 + $0x98] sm:$0x1] %v770_v37  ;;  %v2694_v41 = vor.u32 %v2693_v27, %v2690_v1  ;;  %v2280_v15 = vshrl.u32 %v1976_v59, 16  ;;  %v2268_v14 = vsel %vm14102_vm11, %v2263_v0, %v2267_v29  ;;  %v2283_v50 = vshll.u32 %v1976_v59, 16  ;;  %v776_v29 = vld [vmem:[#allocation2 + $0xa4] sm:$0x1] }
 0x10d   : > { %12448 = vmatprep.mubr.msk.bf16.mxu1 %vm1429_vm2, %v11332_v42  ;;  %v2289_v48 = vshll.u32 %v1977_v20, 16  ;;  %v2293_v51 = vshrl.u32 %v1977_v20, 16  ;;  %v2277_v9 = vrot.slane %v2275_v34, 5  ;;  %v2704_v46 = vor.u32 %v2703_v39, %v2699_v56  ;;  %v1241_v20 = vld [vmem:[#allocation3 + $0xa4] sm:$0x1] }
 0x10e   : > { %v2410_v36 = vld [vmem:[#allocation3 + $0x8c] sm:$0x1]  ;;  %v2695_v31 = vrot.slane %v2694_v41, 4  ;;  %v2282_v32 = vrot.slane %v2280_v15, 4  ;;  %v2285_v63 = vrot.slane %v2283_v50, 5  ;;  %v17949_v10 = vrot.slane %v14001_v55, 4 }
 0x10f   : > { %v2707_v47 = vshll.u32 %v2410_v36, 16  ;;  %v2291_v62 = vrot.slane %v2289_v48, 5  ;;  %v2295_v12 = vrot.slane %v2293_v51, 4  ;;  %v2278_v13 = vsel %vm14102_vm11, %v2273_v17, %v2277_v9  ;;  %v783_v9 = vld [vmem:[#allocation2 + $0xb0] sm:$0x1] }
 0x110   : > { %v2700_v7 = vsel %vm14102_vm11, %v2695_v31, %v2699_v56  ;;  %v2705_v16 = vrot.slane %v2704_v46, 4  ;;  %v11295_v4 = vcombine.low %v2268_v14, %v2278_v13  ;;  %v2286_v54 = vor.u32 %v2285_v63, %v2282_v32  ;;  %v2414_v14 = vld [vmem:[#allocation3 + $0x9c] sm:$0xf]  ;;  %v1982_v63 = vld [vmem:[#allocation2 + $0xa8] sm:$0xf] }
 0x111   : > { %v2709_v24 = vrot.slane %v2707_v47, 5  ;;  %v2296_v8 = vor.u32 %v2295_v12, %v2291_v62  ;;  %v1235_v60 = vsel %vm13733_vm8, %v17949_v10, %v1234_v22  ;;  %v2712_v45 = vshrl.u32 %v2411_v23, 16 }
 0x112   : > { %1236 = vst [vmem:[#allocation3 + $0x98] sm:$0x1] %v1235_v60  ;;  %v2715_v28 = vshll.u32 %v2411_v23, 16  ;;  %v2721_v53 = vshll.u32 %v2412_v18, 16  ;;  %12413 = vmatmul.mubr.msk.bf16.gmra.mxu0 %vm1429_vm2, %v11295_v4  ;;  %v2287_v58 = vrot.slane %v2286_v54, 4  ;;  %v2725_v37 = vshrl.u32 %v2412_v18, 16 }
 0x113   : > { %v2710_v38 = vsel %vm14102_vm11, %v2705_v16, %v2709_v24  ;;  %v1978_v33 = vld [vmem:[#allocation2 + $0x98] sm:$0x1]  ;;  %v2297_v26 = vrot.slane %v2296_v8, 4  ;;  %v2714_v1 = vrot.slane %v2712_v45, 4  ;;  %v17950_v0 = vrot.slane %v14042_v43, 4 }
 0x114   : > { %v11333_v55 = vcombine.low %v2700_v7, %v2710_v38  ;;  %v2299_v59 = vshll.u32 %v1978_v33, 16  ;;  %v2717_v27 = vrot.slane %v2715_v28, 5  ;;  %v14348_v49 = vrot.slane %v2721_v53, 5  ;;  %v14367_v18 = vld [vmem:[#allocation3 + $0xa0] sm:$0xf] }
 0x115   : > { %v2292_v42 = vsel %vm14102_vm11, %v2287_v58, %v2291_v62  ;;  %v777_v17 = vsel %vm13733_vm8, %v17950_v0, %v776_v29  ;;  %v2304_v56 = vshrl.u32 %v1979_v57, 16  ;;  %v2727_v39 = vrot.slane %v2725_v37, 4  ;;  %v14382_v33 = vld [vmem:[#allocation2 + $0xac] sm:$0xf]  ;;  %v2417_v0 = vld [vmem:[#allocation3 + $0xa8] sm:$0xf] }
 0x116   : > { %v14331_v61 = vpop.f32.mrf.mxu0  ;;  %12449 = vmatmul.mubr.msk.bf16.gmra.mxu1 %vm1429_vm2, %v11333_v55  ;;  %v2301_v5 = vrot.slane %v2299_v59, 5  ;;  %v2718_v41 = vor.u32 %v2717_v27, %v2714_v1  ;;  %778 = vst [vmem:[#allocation2 + $0xa4] sm:$0x1] %v777_v17  ;;  %v2307_v15 = vshll.u32 %v1979_v57, 16  ;;  %v2313_v22 = vshll.u32 %v1980_v40, 16 }
 0x117   : > { %v2306_v48 = vrot.slane %v2304_v56, 4  ;;  %v2317_v51 = vshrl.u32 %v1980_v40, 16  ;;  %v17951_v43 = vrot.slane %v14032_v35, 4  ;;  %v2728_v47 = vor.u32 %v2727_v39, %v14348_v49 }
 0x118   : > { %v14341_v52 = vpop.f32.mrf.mxu0  ;;  %v14345_v21 = vpop.f32.mrf.mxu1  ;;  %v2302_v50 = vsel %vm14102_vm11, %v2297_v26, %v2301_v5  ;;  %v2719_v46 = vrot.slane %v2718_v41, 4  ;;  %v2309_v32 = vrot.slane %v2307_v15, 5  ;;  %v2315_v12 = vrot.slane %v2313_v22, 5  ;;  %v1248_v26 = vld [vmem:[#allocation3 + $0xb0] sm:$0x1] }
 0x119   : > { %v1242_v23 = vsel %vm13733_vm8, %v17951_v43, %v1241_v20  ;;  %v11296_v31 = vcombine.low %v2292_v42, %v2302_v50  ;;  %v14370_v62 = vld [vmem:[#allocation3 + $0x98] sm:$0x1]  ;;  %v2319_v13 = vrot.slane %v2317_v51, 4  ;;  %v2736_v7 = vshrl.u32 %v2414_v14, 16 }
 0x11a   : > { %v14357_v34 = vpop.f32.mrf.mxu0  ;;  %v14359_v36 = vpop.f32.mrf.mxu1  ;;  %1243 = vst [vmem:[#allocation3 + $0xa4] sm:$0x1] %v1242_v23  ;;  %v2739_v16 = vshll.u32 %v2414_v14, 16  ;;  %v2724_v24 = vsel %vm14102_vm11, %v2719_v46, %v14348_v49  ;;  %v2729_v4 = vrot.slane %v2728_v47, 4  ;;  %v2731_v54 = vshll.u32 %v14370_v62, 16 }
 0x11b   : > { %12416 = vmatprep.mubr.msk.bf16.mxu0 %vm1429_vm2, %v11296_v31  ;;  %v2310_v8 = vor.u32 %v2309_v32, %v2306_v48  ;;  %v2320_v60 = vor.u32 %v2319_v13, %v2315_v12  ;;  %v2738_v29 = vrot.slane %v2736_v7, 4  ;;  %v2745_v38 = vshll.u32 %v14367_v18, 16  ;;  %v14402_v14 = vld [vmem:[#allocation3 + $0xac] sm:$0xf] }
 0x11c   : > { %v14372_v35 = vpop.f32.mrf.mxu0  ;;  %v14379_v10 = vpop.f32.mrf.mxu1  ;;  %v2741_v57 = vrot.slane %v2739_v16, 5  ;;  %v2733_v45 = vrot.slane %v2731_v54, 5  ;;  %v2749_v53 = vshrl.u32 %v14367_v18, 16  ;;  %v17952_v55 = vrot.slane %v14065_v6, 4  ;;  %v790_v16 = vld [vmem:[#allocation2 + $0xbc] sm:$0x1] }
 0x11d   : > { %v2311_v28 = vrot.slane %v2310_v8, 4  ;;  %v14389_v59 = vld [vmem:[#allocation2 + $0xa4] sm:$0x1]  ;;  %v2321_v40 = vrot.slane %v2320_v60, 4  ;;  %v2747_v27 = vrot.slane %v2745_v38, 5  ;;  %v2328_v49 = vshrl.u32 %v1982_v63, 16 }
 0x11e   : > { %v784_v58 = vsel %vm13733_vm8, %v17952_v55, %v783_v9  ;;  %v2742_v1 = vor.u32 %v2741_v57, %v2738_v29  ;;  %v14391_v37 = vpop.f32.mrf.mxu0  ;;  %v2734_v20 = vsel %vm14102_vm11, %v2729_v4, %v2733_v45  ;;  %v2323_v6 = vshll.u32 %v14389_v59, 16  ;;  %v14398_v17 = vpop.f32.mrf.mxu1  ;;  %v14428_v55 = vld [vmem:[#allocation2 + $0xb8] sm:$0xf] }
 0x11f   : > { %785 = vst [vmem:[#allocation2 + $0xb0] sm:$0x1] %v784_v58  ;;  %v2316_v42 = vsel %vm14102_vm11, %v2311_v28, %v2315_v12  ;;  %v2751_v5 = vrot.slane %v2749_v53, 4  ;;  %v11334_v56 = vcombine.low %v2724_v24, %v2734_v20  ;;  %v2330_v15 = vrot.slane %v2328_v49, 4  ;;  %v1255_v58 = vld [vmem:[#allocation3 + $0xbc] sm:$0x1] }
 0x120   : > { %v2743_v39 = vrot.slane %v2742_v1, 4  ;;  %v2331_v22 = vshll.u32 %v1982_v63, 16  ;;  %v14404_v50 = vpop.f32.mrf.mxu0  ;;  %v2325_v48 = vrot.slane %v2323_v6, 5  ;;  %v2337_v23 = vshll.u32 %v14382_v33, 16 }
 0x121   : > { %v14400_v41 = vld [vmem:[#allocation3 + $0xa4] sm:$0x1]  ;;  %v2752_v51 = vor.u32 %v2751_v5, %v2747_v27  ;;  %12452 = vmatprep.mubr.msk.bf16.mxu1 %vm1429_vm2, %v11334_v56  ;;  %v2341_v46 = vshrl.u32 %v14382_v33, 16  ;;  %v17953_v47 = vrot.slane %v14054_v2, 4  ;;  %v2760_v29 = vshrl.u32 %v2417_v0, 16 }
 0x122   : > { %v2755_v43 = vshll.u32 %v14400_v41, 16  ;;  %v2748_v9 = vsel %vm14102_vm11, %v2743_v39, %v2747_v27  ;;  %v2333_v31 = vrot.slane %v2331_v22, 5  ;;  %v2326_v63 = vsel %vm14102_vm11, %v2321_v40, %v2325_v48  ;;  %v14420_v4 = vpop.f32.mrf.mxu0  ;;  %v1985_v2 = vld [vmem:[#allocation2 + $0xb4] sm:$0xf] }
 0x123   : > { %v1249_v32 = vsel %vm13733_vm8, %v17953_v47, %v1248_v26  ;;  %v2753_v12 = vrot.slane %v2752_v51, 4  ;;  %v2339_v7 = vrot.slane %v2337_v23, 5  ;;  %v11297_v54 = vcombine.low %v2316_v42, %v2326_v63  ;;  %v14445_v47 = vld [vmem:[#allocation3 + $0xb8] sm:$0xf] }
 0x124   : > { %v2757_v13 = vrot.slane %v2755_v43, 5  ;;  %1250 = vst [vmem:[#allocation3 + $0xb0] sm:$0x1] %v1249_v32  ;;  %v14418_v24 = vpop.f32.mrf.mxu1  ;;  %v2334_v8 = vor.u32 %v2333_v31, %v2330_v15  ;;  %v2343_v60 = vrot.slane %v2341_v46, 4  ;;  %v2763_v45 = vshll.u32 %v2417_v0, 16  ;;  %v14436_v56 = vpop.f32.mrf.mxu0 }
 0x125   : > { %v2769_v28 = vshll.u32 %v14402_v14, 16  ;;  %v2773_v53 = vshrl.u32 %v14402_v14, 16  ;;  %12417 = vmatmul.mubr.msk.bf16.gmra.mxu0 %vm1429_vm2, %v11297_v54  ;;  %v2762_v20 = vrot.slane %v2760_v29, 4  ;;  %v17954_v48 = vrot.slane %v14088_v3, 4  ;;  %v2420_v43 = vld [vmem:[#allocation3 + $0xb4] sm:$0xf] }
 0x126   : > { %v2758_v57 = vsel %vm14102_vm11, %v2753_v12, %v2757_v13  ;;  %v14424_v38 = vld [vmem:[#allocation2 + $0xb0] sm:$0x1]  ;;  %v14430_v26 = vpop.f32.mrf.mxu1  ;;  %v2335_v1 = vrot.slane %v2334_v8, 4  ;;  %v2344_v27 = vor.u32 %v2343_v60, %v2339_v7  ;;  %v2765_v42 = vrot.slane %v2763_v45, 5 }
 0x127   : > { %v11335_v40 = vcombine.low %v2748_v9, %v2758_v57  ;;  %v2347_v49 = vshll.u32 %v14424_v38, 16  ;;  %v2771_v6 = vrot.slane %v2769_v28, 5  ;;  %v2775_v5 = vrot.slane %v2773_v53, 4 }
 0x128   : > { %v14434_v0 = vpop.f32.mrf.mxu1  ;;  %v2340_v39 = vsel %vm14102_vm11, %v2335_v1, %v2339_v7  ;;  %v2345_v15 = vrot.slane %v2344_v27, 4  ;;  %v791_v51 = vsel %vm13733_vm8, %v17954_v48, %v790_v16  ;;  %v2766_v23 = vor.u32 %v2765_v42, %v2762_v20  ;;  %v3419_v27 = vld [vmem:[#allocation2] sm:$0xe] }
 0x129   : > { %12453 = vmatmul.mubr.msk.bf16.gmra.mxu1 %vm1429_vm2, %v11335_v40  ;;  %v2349_v22 = vrot.slane %v2347_v49, 5  ;;  %v2776_v9 = vor.u32 %v2775_v5, %v2771_v6  ;;  %792 = vst [vmem:[#allocation2 + $0xbc] sm:$0x1] %v791_v51  ;;  %v2352_v31 = vshrl.u32 %v1985_v2, 16  ;;  %v2355_v46 = vshll.u32 %v1985_v2, 16  ;;  %v14460_v2 = vpop.f32.mrf.mxu0 }
 0x12a   : > { %v2361_v12 = vshll.u32 %v14428_v55, 16  ;;  %v2365_v3 = vshrl.u32 %v14428_v55, 16  ;;  %v17955_v13 = vrot.slane %v14076_v44, 4  ;;  %v14457_v16 = vpop.f32.mrf.mxu1  ;;  %v2767_v8 = vrot.slane %v2766_v23, 4 }
 0x12b   : > { %v2350_v32 = vsel %vm14102_vm11, %v2345_v15, %v2349_v22  ;;  %v14449_v63 = vld [vmem:[#allocation3 + $0xb0] sm:$0x1]  ;;  %v2777_v60 = vrot.slane %v2776_v9, 4  ;;  %v2354_v57 = vrot.slane %v2352_v31, 4  ;;  %v2357_v45 = vrot.slane %v2355_v46, 5  ;;  %v14465_v49 = vpop.f32.mrf.mxu0 }
 0x12c   : > { %v1256_v7 = vsel %vm13733_vm8, %v17955_v13, %v1255_v58  ;;  %v11298_v54 = vcombine.low %v2340_v39, %v2350_v32  ;;  %v2779_v29 = vshll.u32 %v14449_v63, 16  ;;  %v2363_v28 = vrot.slane %v2361_v12, 5 }
 0x12d   : > { %1257 = vst [vmem:[#allocation3 + $0xbc] sm:$0x1] %v1256_v7  ;;  %v2367_v53 = vrot.slane %v2365_v3, 4  ;;  %v2772_v44 = vsel %vm14102_vm11, %v2767_v8, %v2771_v6  ;;  %v2784_v40 = vshrl.u32 %v2420_v43, 16  ;;  %v2787_v1 = vshll.u32 %v2420_v43, 16  ;;  %v14469_v15 = vpop.f32.mrf.mxu1  ;;  %v14473_v23 = vpop.f32.mrf.mxu0 }
 0x12e   : > { %12420 = vmatprep.mubr.msk.bf16.mxu0 %vm1429_vm2, %v11298_v54  ;;  %v2781_v58 = vrot.slane %v2779_v29, 5  ;;  %v2358_v20 = vor.u32 %v2357_v45, %v2354_v57  ;;  %v2793_v5 = vshll.u32 %v14445_v47, 16  ;;  %v2797_v39 = vshrl.u32 %v14445_v47, 16  ;;  %v3598_v6 = vld [vmem:[#allocation3] sm:$0xe] }
 0x12f   : > { %v2368_v42 = vor.u32 %v2367_v53, %v2363_v28  ;;  %v2786_v48 = vrot.slane %v2784_v40, 4  ;;  %v2789_v51 = vrot.slane %v2787_v1, 5  ;;  %v14477_v12 = vpop.f32.mrf.mxu1  ;;  %v11356_v29 = vrot.slane %v3419_v27, 9  ;;  %v13142_v57 = vld [vmem:[#allocation2 + $0x4] sm:$0xf]  ;;  %v14490_v40 = vpop.f32.mrf.mxu0 }
 0x130   : > { %v2782_v22 = vsel %vm14102_vm11, %v2777_v60, %v2781_v58  ;;  %v14475_v9 = vld [vmem:[#allocation2 + $0xbc] sm:$0x1]  ;;  %v2359_v31 = vrot.slane %v2358_v20, 4  ;;  %v2795_v32 = vrot.slane %v2793_v5, 5  ;;  %v2799_v7 = vrot.slane %v2797_v39, 4  ;;  %17959 = vst [vmem:[#allocation12_spill] sm:$0xff] %v14490_v40 }
 0x131   : > { %v11336_v43 = vcombine.low %v2772_v44, %v2782_v22  ;;  %v2369_v46 = vrot.slane %v2368_v42, 4  ;;  %v2371_v3 = vshll.u32 %v14475_v9, 16  ;;  %v2790_v13 = vor.u32 %v2789_v51, %v2786_v48  ;;  %v13143_v53 = vld [vmem:[#allocation2 + $0x8] sm:$0x1]  ;;  %v3420_v58 = vld [vmem:[#allocation2 + $0xc] sm:$0xe]  ;;  %v14493_v39 = vpop.f32.mrf.mxu1 }
 0x132   : > { %v2364_v54 = vsel %vm14102_vm11, %v2359_v31, %v2363_v28  ;;  %v17956_v60 = vmov 0  ;;  %v3488_v45 = vrot.slane %v13142_v57, 5  ;;  %v3491_v44 = vrot.slane %v13143_v53, 5  ;;  %v3599_v5 = vld [vmem:[#allocation3 + $0xc] sm:$0xe] }
 0x133   : > { %12456 = vmatprep.mubr.msk.bf16.mxu1 %vm1429_vm2, %v11336_v43  ;;  %v17957_v60 = vsel %vm14486_vm14, 4294967295, %v17956_v60  ;;  %v2373_v1 = vrot.slane %v2371_v3, 5  ;;  %v2791_v20 = vrot.slane %v2790_v13, 4  ;;  %v2800_v42 = vor.u32 %v2799_v7, %v2795_v32  ;;  %v13144_v51 = vld [vmem:[#allocation3 + $0x4] sm:$0xf] }
 0x134   : > { %v14483_v8 = vld [vmem:[#allocation3 + $0xbc] sm:$0x1]  ;;  %17958 = vst [vmem:[#allocation11_spill] sm:$0xff] %v17957_v60  ;;  %v3489_v22 = vsel %vm14486_vm14, %v11356_v29, %v3488_v45  ;;  %v3490_v48 = vrot.slane %v3488_v45, 4  ;;  %v11372_v27 = vrot.slane %v3598_v6, 9  ;;  %v3664_v43 = vrot.slane %v13144_v51, 5  ;;  %v14505_v19 = vpop.f32.mrf.mxu0 }
 0x135   : > { %v2803_v28 = vshll.u32 %v14483_v8, 16  ;;  %v3421_v31 = vld [vmem:[#allocation2 + $0x18] sm:$0xe]  ;;  %v2374_v57 = vsel %vm14102_vm11, %v2369_v46, %v2373_v1  ;;  %v2796_v3 = vsel %vm14102_vm11, %v2791_v20, %v2795_v32  ;;  %v2801_v13 = vrot.slane %v2800_v42, 4  ;;  %v3600_v6 = vld [vmem:[#allocation3 + $0x18] sm:$0xe]  ;;  %v14509_v20 = vpop.f32.mrf.mxu1 }
 0x136   : > { %v11299_v53 = vcombine.low %v2364_v54, %v2374_v57  ;;  %v3492_v25 = vsel %vm14486_vm14, %v3490_v48, %v3491_v44  ;;  %v3665_v29 = vsel %vm14486_vm14, %v11372_v27, %v3664_v43  ;;  %v3666_v45 = vrot.slane %v3664_v43, 4  ;;  %17960 = vst [vmem:[#allocation13_spill] sm:$0xff] %v14505_v19  ;;  %v13145_v1 = vld [vmem:[#allocation3 + $0x8] sm:$0x1]  ;;  %17961 = vst [vmem:[#allocation14_spill] sm:$0xff] %v14509_v20 }
 0x137   : > { %v2805_v7 = vrot.slane %v2803_v28, 5  ;;  %v11392_v46 = vcombine.low %v3489_v22, %v3492_v25  ;;  %v3667_v11 = vrot.slane %v13145_v1, 5  ;;  %v11357_v32 = vrot.slane %v3420_v58, 9  ;;  %v13146_v44 = vld [vmem:[#allocation2 + $0x10] sm:$0xf]  ;;  %v14517_v1 = vpop.f32.mrf.mxu0 }
 0x138   : > { %12421 = vmatmul.mubr.msk.bf16.gmra.mxu0 %vm1429_vm2, %v11299_v53  ;;  %v3495_v42 = vrot.slane %v13146_v44, 5  ;;  %v13147_v28 = vld [vmem:[#allocation2 + $0x14] sm:$0x1]  ;;  %v11373_v27 = vrot.slane %v3599_v5, 9  ;;  %v14512_v43 = vld [vmem:[#allocation2 + $0x24] sm:$0xe] }
 0x139   : > { %v2806_v51 = vsel %vm14102_vm11, %v2801_v13, %v2805_v7  ;;  %v3498_v48 = vrot.slane %v13147_v28, 5  ;;  %12464 = vmatprep.mubr.msk.bf16.mxu0 %vm1429_vm2, %v11392_v46  ;;  %v3668_v25 = vsel %vm14486_vm14, %v3666_v45, %v3667_v11  ;;  %v13148_v22 = vld [vmem:[#allocation3 + $0x10] sm:$0xf]  ;;  %v13149_v58 = vld [vmem:[#allocation3 + $0x14] sm:$0x1]  ;;  %v11358_v7 = vrot.slane %v3421_v31, 9  ;;  %v14526_v30 = vpop.f32.mrf.mxu1 }
 0x13a   : > { %v11337_v54 = vcombine.low %v2796_v3, %v2806_v51  ;;  %v3671_v57 = vrot.slane %v13148_v22, 5  ;;  %v3674_v13 = vrot.slane %v13149_v58, 5  ;;  %17962 = vst [vmem:[#allocation15_spill] sm:$0xff] %v14517_v1  ;;  %v11430_v3 = vcombine.low %v3665_v29, %v3668_v25  ;;  %v13150_v51 = vld [vmem:[#allocation2 + $0x1c] sm:$0xf]  ;;  %17963 = vst [vmem:[#allocation16_spill] sm:$0xff] %v14526_v30  ;;  %v14540_v30 = vpop.f32.mrf.mxu0 }
 0x13b   : > { %v3496_v5 = vsel %vm14486_vm14, %v11357_v32, %v3495_v42  ;;  %v3497_v53 = vrot.slane %v3495_v42, 4  ;;  %v3502_v44 = vrot.slane %v13150_v51, 5  ;;  %v3601_v46 = vld [vmem:[#allocation3 + $0x24] sm:$0xe]  ;;  %v13151_v28 = vld [vmem:[#allocation2 + $0x20] sm:$0x1] }
 0x13c   : > { %12457 = vmatmul.mubr.msk.bf16.gmra.mxu1 %vm1429_vm2, %v11337_v54  ;;  %v3672_v11 = vsel %vm14486_vm14, %v11373_v27, %v3671_v57  ;;  %v3673_v45 = vrot.slane %v3671_v57, 4  ;;  %v3505_v22 = vrot.slane %v13151_v28, 5  ;;  %v11374_v58 = vrot.slane %v3600_v6, 9  ;;  %v14524_v31 = vld [vmem:[#allocation2 + $0x30] sm:$0xe]  ;;  %17965 = vst [vmem:[#allocation18_spill] sm:$0xff] %v14540_v30 }
 0x13d   : > { %12500 = vmatprep.mubr.msk.bf16.mxu1 %vm1429_vm2, %v11430_v3  ;;  %v3499_v29 = vsel %vm14486_vm14, %v3497_v53, %v3498_v48  ;;  %v3503_v32 = vsel %vm14486_vm14, %v11358_v7, %v3502_v44  ;;  %v3504_v54 = vrot.slane %v3502_v44, 4  ;;  %v13152_v42 = vld [vmem:[#allocation3 + $0x1c] sm:$0xf]  ;;  %v13153_v6 = vld [vmem:[#allocation3 + $0x20] sm:$0x1]  ;;  %v11359_v28 = vrot.slane %v14512_v43, 9  ;;  %v14538_v3 = vpop.f32.mrf.mxu1 }
 0x13e   : > { %v3678_v25 = vrot.slane %v13152_v42, 5  ;;  %v11393_v27 = vcombine.low %v3496_v5, %v3499_v29  ;;  %v3675_v57 = vsel %vm14486_vm14, %v3673_v45, %v3674_v13  ;;  %v3681_v51 = vrot.slane %v13153_v6, 5  ;;  %v14536_v1 = vld [vmem:[#allocation3 + $0x30] sm:$0xe]  ;;  %17964 = vst [vmem:[#allocation17_spill] sm:$0xff] %v14538_v3  ;;  %v13052_v13 = vld [vmem:[%s17879_s2 + $0x30] sm:$0xff]  }
 0x13f   : > { %v11431_v48 = vcombine.low %v3672_v11, %v3675_v57  ;;  %v3506_v7 = vsel %vm14486_vm14, %v3504_v54, %v3505_v22  ;;  %v13154_v43 = vld [vmem:[#allocation2 + $0x28] sm:$0xf]  ;;  %v13155_v29 = vld [vmem:[#allocation2 + $0x2c] sm:$0x1]  ;;  %v11375_v6 = vrot.slane %v3601_v46, 9  ;;  %v14554_v11 = vld [vmem:[%s17880_s3 + $0x30] sm:$0xff]   ;;  %v14556_v22 = vpop.f32.mrf.mxu1 }
 0x140   : > { %v3679_v5 = vsel %vm14486_vm14, %v11374_v58, %v3678_v25  ;;  %v3680_v53 = vrot.slane %v3678_v25, 4  ;;  %v11394_v44 = vcombine.low %v3503_v32, %v3506_v7  ;;  %v3509_v45 = vrot.slane %v13154_v43, 5  ;;  %v14549_v3 = vld [vmem:[#allocation2 + $0x3c] sm:$0xe]  ;;  %17966 = vst [vmem:[#allocation19_spill] sm:$0xff] %v14556_v22  ;;  %12465 = vmatmul.mubr.msk.bf16.vlgmr.msra.gmra.mxu0 %vm1429_vm2, %v11393_v27  ;;  %v14565_v7 = vld [vmem:[%s17879_s2 + $0x48] sm:$0xff]  }
 0x141   : > { %v3512_v42 = vrot.slane %v13155_v29, 5  ;;  %v13156_v32 = vld [vmem:[#allocation3 + $0x28] sm:$0xf]  ;;  %v13157_v25 = vld [vmem:[#allocation3 + $0x2c] sm:$0x1]  ;;  %v11360_v46 = vrot.slane %v14524_v31, 9 }
 0x142   : > { %v3682_v58 = vsel %vm14486_vm14, %v3680_v53, %v3681_v51  ;;  %v3685_v54 = vrot.slane %v13156_v32, 5  ;;  %v3688_v57 = vrot.slane %v13157_v25, 5  ;;  %17967 = vst [vmem:[#allocation20_spill] sm:$0xff] %v14565_v7  ;;  %v13158_v43 = vld [vmem:[%s17879_s2 + $0x38] sm:$0xff]   ;;  %12468 = vmatprep.mubr.msk.bf16.mxu0 %vm1429_vm2, %v11394_v44  ;;  %v3510_v51 = vsel %vm14486_vm14, %v11359_v28, %v3509_v45  ;;  %v13159_v29 = vld [vmem:[#allocation2 + $0x34] sm:$0xf]  ;;  %v14573_v25 = vpop.f32.mrf.mxu0 }
 0x143   : > { %12533 = vmatpush3.bf16.msra.mxu0 %v13158_v43  ;;  %v11432_v27 = vcombine.low %v3679_v5, %v3682_v58  ;;  %v3511_v53 = vrot.slane %v3509_v45, 4  ;;  %v3516_v32 = vrot.slane %v13159_v29, 5  ;;  %v3603_v31 = vld [vmem:[#allocation3 + $0x3c] sm:$0xe]  ;;  %17968 = vst [vmem:[#allocation21_spill] sm:$0xff] %v14573_v25  ;;  %v11376_v5 = vrot.slane %v14536_v1, 9  ;;  %v14596_v29 = vpop.f32.mrf.mxu1 }
 0x144   : > { %12501 = vmatmul.mubr.msk.bf16.vlgmr.msra.gmra.mxu1 %vm1429_vm2, %v11431_v48  ;;  %v14578_v22 = vsel %vm14486_vm14, %v11375_v6, %v3685_v54  ;;  %v3687_v30 = vrot.slane %v3685_v54, 4  ;;  %v13160_v43 = vld [vmem:[#allocation2 + $0x38] sm:$0x1]  ;;  %v14581_v44 = vld [vmem:[#allocation2 + $0x48] sm:$0xe]  ;;  %12534 = vmatprep.subr.bf16.mxu0 %v13052_v13  ;;  %17970 = vst [vmem:[#allocation23_spill] sm:$0xff] %v14596_v29 }
 0x145   : > { %v3519_v19 = vrot.slane %v13160_v43, 5  ;;  %v14586_v28 = vld [vmem:[%s17880_s3 + $0x48] sm:$0xff]   ;;  %v13161_v48 = vld [vmem:[%s17880_s3 + $0x38] sm:$0xff]   ;;  %12504 = vmatprep.mubr.msk.bf16.mxu1 %vm1429_vm2, %v11432_v27  ;;  %v3513_v45 = vsel %vm14486_vm14, %v3511_v53, %v3512_v42  ;;  %v3517_v1 = vsel %vm14486_vm14, %v11360_v46, %v3516_v32  ;;  %v3518_v6 = vrot.slane %v3516_v32, 4  ;;  %v13163_v20 = vld [vmem:[#allocation3 + $0x38] sm:$0x1] }
 0x146   : > { %17969 = vst [vmem:[#allocation22_spill] sm:$0xff] %v14586_v28  ;;  %12569 = vmatpush3.bf16.msra.mxu1 %v13161_v48  ;;  %v13162_v58 = vld [vmem:[#allocation3 + $0x34] sm:$0xf]  ;;  %v11395_v43 = vcombine.low %v3510_v51, %v3513_v45  ;;  %v3689_v25 = vsel %vm14486_vm14, %v3687_v30, %v3688_v57  ;;  %v3695_v40 = vrot.slane %v13163_v20, 5  ;;  %v11361_v48 = vrot.slane %v14549_v3, 9  ;;  %v14607_v51 = vpop.f32.mrf.mxu0 }
 0x147   : > { %v3692_v54 = vrot.slane %v13162_v58, 5  ;;  %v3604_v27 = vld [vmem:[#allocation3 + $0x48] sm:$0xe]  ;;  %12570 = vmatprep.subr.bf16.mxu1 %v14554_v11  ;;  %v11433_v42 = vcombine.low %v14578_v22, %v3689_v25  ;;  %v3520_v46 = vsel %vm14486_vm14, %v3518_v6, %v3519_v19  ;;  %12535 = vmatpush3.bf16.msra.mxu0 %v13052_v13  ;;  %17971 = vst [vmem:[#allocation24_spill] sm:$0xff] %v14607_v51  ;;  %v13165_v45 = vld [vmem:[#allocation2 + $0x44] sm:$0x1] }
 0x148   : > { %v11396_v30 = vcombine.low %v3517_v1, %v3520_v46  ;;  %v13164_v57 = vld [vmem:[#allocation2 + $0x40] sm:$0xf]  ;;  %v3526_v3 = vrot.slane %v13165_v45, 5  ;;  %v11377_v58 = vrot.slane %v3603_v31, 9  ;;  %v3426_v29 = vld [vmem:[#allocation2 + $0x54] sm:$0xe]  ;;  %12604 = vmatprep.subr.bf16.mxu0 %v14565_v7  ;;  %v14614_v1 = vpop.f32.mrf.mxu1  ;;  %12469 = vmatmul.mubr.msk.bf16.gmra.mxu0 %vm1429_vm2, %v11395_v43 }
 0x149   : > { %v3693_v53 = vsel %vm14486_vm14, %v11376_v5, %v3692_v54  ;;  %v3694_v32 = vrot.slane %v3692_v54, 4  ;;  %v3523_v20 = vrot.slane %v13164_v57, 5  ;;  %v13166_v19 = vld [vmem:[#allocation3 + $0x40] sm:$0xf]  ;;  %v13167_v6 = vld [vmem:[#allocation3 + $0x44] sm:$0x1]  ;;  %v14616_v54 = vpop.f32.mrf.mxu0 }
 0x14a   : > { %v3699_v25 = vrot.slane %v13166_v19, 5  ;;  %v3702_v5 = vrot.slane %v13167_v6, 5  ;;  %v11362_v13 = vrot.slane %v14581_v44, 9  ;;  %12571 = vmatpush3.bf16.msra.mxu1 %v14554_v11  ;;  %17972 = vst [vmem:[#allocation25_spill] sm:$0xff] %v14614_v1  ;;  %17973 = vst [vmem:[#allocation26_spill] sm:$0xff] %v14616_v54  ;;  %12472 = vmatprep.mubr.msk.bf16.mxu0 %vm1429_vm2, %v11396_v30  ;;  %v11378_v7 = vrot.slane %v3604_v27, 9 }
 0x14b   : > { %v3696_v22 = vsel %vm14486_vm14, %v3694_v32, %v3695_v40  ;;  %v3524_v46 = vsel %vm14486_vm14, %v11361_v48, %v3523_v20  ;;  %v3525_v57 = vrot.slane %v3523_v20, 4  ;;  %v13168_v40 = vld [vmem:[#allocation2 + $0x4c] sm:$0xf]  ;;  %12640 = vmatprep.subr.bf16.mxu1 %v14586_v28  ;;  %v13169_v19 = vld [vmem:[#allocation2 + $0x50] sm:$0x1] }
 0x14c   : > { %v11434_v31 = vcombine.low %v3693_v53, %v3696_v22  ;;  %v3530_v32 = vrot.slane %v13168_v40, 5  ;;  %v3605_v45 = vld [vmem:[#allocation3 + $0x54] sm:$0xe]  ;;  %v3700_v11 = vsel %vm14486_vm14, %v11377_v58, %v3699_v25  ;;  %v3701_v44 = vrot.slane %v3699_v25, 4  ;;  %v3427_v43 = vld [vmem:[#allocation2 + $0x60] sm:$0xe]  ;;  %v14625_v53 = vpop.f32.mrf.mxu1  ;;  %v14627_v22 = vpop.f32.mrf.mxu0  ;;  %12505 = vmatmul.mubr.msk.bf16.gmra.mxu1 %vm1429_vm2, %v11433_v42 }
 0x14d   : > { %v3533_v6 = vrot.slane %v13169_v19, 5  ;;  %17974 = vst [vmem:[#allocation27_spill] sm:$0xff] %v14625_v53  ;;  %17975 = vst [vmem:[#allocation28_spill] sm:$0xff] %v14627_v22  ;;  %v3527_v48 = vsel %vm14486_vm14, %v3525_v57, %v3526_v3  ;;  %v13170_v40 = vld [vmem:[#allocation3 + $0x4c] sm:$0xf]  ;;  %v11363_v22 = vrot.slane %v3426_v29, 9 }
 0x14e   : > { %v3531_v30 = vsel %vm14486_vm14, %v11362_v13, %v3530_v32  ;;  %v3532_v20 = vrot.slane %v3530_v32, 4  ;;  %v3706_v58 = vrot.slane %v13170_v40, 5  ;;  %12508 = vmatprep.mubr.msk.bf16.mxu1 %vm1429_vm2, %v11434_v31  ;;  %v11397_v25 = vcombine.low %v3524_v46, %v3527_v48  ;;  %v13171_v19 = vld [vmem:[#allocation3 + $0x50] sm:$0x1]  ;;  %v14641_v57 = vpop.f32.mrf.mxu1  ;;  %v13172_v40 = vld [vmem:[#allocation2 + $0x58] sm:$0xf] }
 0x14f   : > { %v3703_v27 = vsel %vm14486_vm14, %v3701_v44, %v3702_v5  ;;  %v3709_v28 = vrot.slane %v13171_v19, 5  ;;  %17976 = vst [vmem:[#allocation29_spill] sm:$0xff] %v14641_v57  ;;  %v3537_v31 = vrot.slane %v13172_v40, 5  ;;  %v13173_v46 = vld [vmem:[#allocation2 + $0x5c] sm:$0x1]  ;;  %v11379_v54 = vrot.slane %v3605_v45, 9  ;;  %v14643_v44 = vpop.f32.mrf.mxu0 }
 0x150   : > { %v11435_v53 = vcombine.low %v3700_v11, %v3703_v27  ;;  %v3534_v42 = vsel %vm14486_vm14, %v3532_v20, %v3533_v6  ;;  %v3707_v3 = vsel %vm14486_vm14, %v11378_v7, %v3706_v58  ;;  %v3708_v13 = vrot.slane %v3706_v58, 4  ;;  %v3606_v5 = vld [vmem:[#allocation3 + $0x60] sm:$0xe]  ;;  %17977 = vst [vmem:[#allocation30_spill] sm:$0xff] %v14643_v44  ;;  %v13174_v11 = vld [vmem:[#allocation3 + $0x58] sm:$0xf]  ;;  %12473 = vmatmul.mubr.msk.bf16.gmra.mxu0 %vm1429_vm2, %v11397_v25 }
 0x151   : > { %v11398_v32 = vcombine.low %v3531_v30, %v3534_v42  ;;  %v3540_v48 = vrot.slane %v13173_v46, 5  ;;  %v3713_v6 = vrot.slane %v13174_v11, 5  ;;  %v13175_v20 = vld [vmem:[#allocation3 + $0x5c] sm:$0x1]  ;;  %v11364_v7 = vrot.slane %v3427_v43, 9 }
 0x152   : > { %v3710_v29 = vsel %vm14486_vm14, %v3708_v13, %v3709_v28  ;;  %v3716_v27 = vrot.slane %v13175_v20, 5  ;;  %v3538_v30 = vsel %vm14486_vm14, %v11363_v22, %v3537_v31  ;;  %v3539_v19 = vrot.slane %v3537_v31, 4  ;;  %v13176_v42 = vld [vmem:[#allocation2 + $0x64] sm:$0xf]  ;;  %v3428_v46 = vld [vmem:[#allocation2 + $0x6c] sm:$0xe]  ;;  %v14654_v20 = vpop.f32.mrf.mxu1 }
 0x153   : > { %v11436_v58 = vcombine.low %v3707_v3, %v3710_v29  ;;  %v3544_v40 = vrot.slane %v13176_v42, 5  ;;  %v14652_v45 = vsel %vm14486_vm14, %v11379_v54, %v3713_v6  ;;  %v3715_v28 = vrot.slane %v3713_v6, 4  ;;  %v13177_v13 = vld [vmem:[#allocation2 + $0x68] sm:$0x1]  ;;  %17978 = vst [vmem:[#allocation31_spill] sm:$0xff] %v14654_v20  ;;  %12476 = vmatprep.mubr.msk.bf16.mxu0 %vm1429_vm2, %v11398_v32  ;;  %v14661_v54 = vpop.f32.mrf.mxu0 }
 0x154   : > { %v3547_v11 = vrot.slane %v13177_v13, 5  ;;  %v11380_v44 = vrot.slane %v3606_v5, 9  ;;  %v3541_v43 = vsel %vm14486_vm14, %v3539_v19, %v3540_v48  ;;  %v13178_v25 = vld [vmem:[#allocation3 + $0x64] sm:$0xf]  ;;  %v3607_v29 = vld [vmem:[#allocation3 + $0x6c] sm:$0xe]  ;;  %12509 = vmatmul.mubr.msk.bf16.gmra.mxu1 %vm1429_vm2, %v11435_v53 }
 0x155   : > { %v3545_v22 = vsel %vm14486_vm14, %v11364_v7, %v3544_v40  ;;  %v3546_v3 = vrot.slane %v3544_v40, 4  ;;  %v3720_v31 = vrot.slane %v13178_v25, 5  ;;  %17979 = vst [vmem:[#allocation32_spill] sm:$0xff] %v14661_v54  ;;  %v11399_v6 = vcombine.low %v3538_v30, %v3541_v43  ;;  %v13179_v42 = vld [vmem:[#allocation3 + $0x68] sm:$0x1]  ;;  %12512 = vmatprep.mubr.msk.bf16.mxu1 %vm1429_vm2, %v11436_v58  ;;  %v14676_v57 = vpop.f32.mrf.mxu0 }
 0x156   : > { %v3717_v5 = vsel %vm14486_vm14, %v3715_v28, %v3716_v27  ;;  %v3723_v32 = vrot.slane %v13179_v42, 5  ;;  %v11365_v13 = vrot.slane %v3428_v46, 9  ;;  %v3429_v20 = vld [vmem:[#allocation2 + $0x78] sm:$0xe]  ;;  %v3608_v53 = vld [vmem:[#allocation3 + $0x78] sm:$0xe]  ;;  %v14672_v46 = vpop.f32.mrf.mxu1 }
 0x157   : > { %v11437_v48 = vcombine.low %v14652_v45, %v3717_v5  ;;  %v3548_v7 = vsel %vm14486_vm14, %v3546_v3, %v3547_v11  ;;  %v3721_v19 = vsel %vm14486_vm14, %v11380_v44, %v3720_v31  ;;  %v3722_v40 = vrot.slane %v3720_v31, 4  ;;  %v13180_v43 = vld [vmem:[#allocation2 + $0x70] sm:$0xf]  ;;  %v13181_v27 = vld [vmem:[#allocation2 + $0x74] sm:$0x1]  ;;  %17980 = vst [vmem:[#allocation33_spill] sm:$0xff] %v14672_v46  ;;  %v14696_v46 = vpop.f32.mrf.mxu0 }
 0x158   : > { %v11400_v30 = vcombine.low %v3545_v22, %v3548_v7  ;;  %v3551_v25 = vrot.slane %v13180_v43, 5  ;;  %v3554_v28 = vrot.slane %v13181_v27, 5  ;;  %v11381_v42 = vrot.slane %v3607_v29, 9  ;;  %v13182_v45 = vld [vmem:[#allocation3 + $0x70] sm:$0xf]  ;;  %17981 = vst [vmem:[#allocation34_spill] sm:$0xff] %v14676_v57  ;;  %12477 = vmatmul.mubr.msk.bf16.gmra.mxu0 %vm1429_vm2, %v11399_v6 }
 0x159   : > { %v3724_v58 = vsel %vm14486_vm14, %v3722_v40, %v3723_v32  ;;  %v3727_v5 = vrot.slane %v13182_v45, 5  ;;  %v13183_v54 = vld [vmem:[#allocation3 + $0x74] sm:$0x1]  ;;  %v11366_v3 = vrot.slane %v3429_v20, 9  ;;  %v13184_v7 = vld [vmem:[#allocation2 + $0x7c] sm:$0xf] }
 0x15a   : > { %v3730_v11 = vrot.slane %v13183_v54, 5  ;;  %v11438_v44 = vcombine.low %v3721_v19, %v3724_v58  ;;  %v14680_v22 = vsel %vm14486_vm14, %v11365_v13, %v3551_v25  ;;  %v3553_v31 = vrot.slane %v3551_v25, 4  ;;  %v3430_v43 = vld [vmem:[#allocation2 + $0x84] sm:$0xe]  ;;  %v13185_v40 = vld [vmem:[#allocation2 + $0x80] sm:$0x1]  ;;  %12480 = vmatprep.mubr.msk.bf16.mxu0 %vm1429_vm2, %v11400_v30 }
 0x15b   : > { %v3558_v29 = vrot.slane %v13184_v7, 5  ;;  %v14684_v27 = vsel %vm14486_vm14, %v11381_v42, %v3727_v5  ;;  %v3729_v32 = vrot.slane %v3727_v5, 4  ;;  %v3561_v45 = vrot.slane %v13185_v40, 5  ;;  %v13186_v13 = vld [vmem:[#allocation3 + $0x7c] sm:$0xf]  ;;  %v14689_v7 = vpop.f32.mrf.mxu1  ;;  %17983 = vst [vmem:[#allocation36_spill] sm:$0xff] %v14696_v46 }
 0x15c   : > { %v11382_v54 = vrot.slane %v3608_v53, 9  ;;  %v3555_v20 = vsel %vm14486_vm14, %v3553_v31, %v3554_v28  ;;  %v3734_v58 = vrot.slane %v13186_v13, 5  ;;  %v3609_v25 = vld [vmem:[#allocation3 + $0x84] sm:$0xe]  ;;  %v3431_v57 = vld [vmem:[#allocation2 + $0x90] sm:$0xe]  ;;  %12513 = vmatmul.mubr.msk.bf16.gmra.mxu1 %vm1429_vm2, %v11437_v48 }
 0x15d   : > { %v3560_v19 = vrot.slane %v3558_v29, 4  ;;  %17982 = vst [vmem:[#allocation35_spill] sm:$0xff] %v14689_v7  ;;  %v3731_v42 = vsel %vm14486_vm14, %v3729_v32, %v3730_v11  ;;  %v3559_v53 = vsel %vm14486_vm14, %v11366_v3, %v3558_v29  ;;  %v13187_v5 = vld [vmem:[#allocation3 + $0x80] sm:$0x1]  ;;  %v11367_v40 = vrot.slane %v3430_v43, 9  ;;  %12516 = vmatprep.mubr.msk.bf16.mxu1 %vm1429_vm2, %v11438_v44 }
 0x15e   : > { %v3737_v6 = vrot.slane %v13187_v5, 5  ;;  %v11401_v28 = vcombine.low %v14680_v22, %v3555_v20  ;;  %v11439_v31 = vcombine.low %v14684_v27, %v3731_v42  ;;  %v3736_v13 = vrot.slane %v3734_v58, 4  ;;  %v13188_v3 = vld [vmem:[#allocation2 + $0x88] sm:$0xf]  ;;  %v13189_v43 = vld [vmem:[#allocation2 + $0x8c] sm:$0x1] }
 0x15f   : > { %v3562_v30 = vsel %vm14486_vm14, %v3560_v19, %v3561_v45  ;;  %v3735_v11 = vsel %vm14486_vm14, %v11382_v54, %v3734_v58  ;;  %v3565_v29 = vrot.slane %v13188_v3, 5  ;;  %v3568_v32 = vrot.slane %v13189_v43, 5  ;;  %v3610_v46 = vld [vmem:[#allocation3 + $0x90] sm:$0xe]  ;;  %v13190_v22 = vld [vmem:[#allocation3 + $0x88] sm:$0xf]  ;;  %v14708_v19 = vpop.f32.mrf.mxu1 }
 0x160   : > { %v11383_v5 = vrot.slane %v3609_v25, 9  ;;  %v3738_v48 = vsel %vm14486_vm14, %v3736_v13, %v3737_v6  ;;  %v3741_v27 = vrot.slane %v13190_v22, 5  ;;  %v13191_v20 = vld [vmem:[#allocation3 + $0x8c] sm:$0x1]  ;;  %v11368_v45 = vrot.slane %v3431_v57, 9  ;;  %v14714_v25 = vpop.f32.mrf.mxu0  ;;  %12481 = vmatmul.mubr.msk.bf16.gmra.mxu0 %vm1429_vm2, %v11401_v28 }
 0x161   : > { %v3744_v42 = vrot.slane %v13191_v20, 5  ;;  %v11402_v44 = vcombine.low %v3559_v53, %v3562_v30  ;;  %v14712_v54 = vsel %vm14486_vm14, %v11367_v40, %v3565_v29  ;;  %v3567_v58 = vrot.slane %v3565_v29, 4  ;;  %v13192_v3 = vld [vmem:[#allocation2 + $0x94] sm:$0xf]  ;;  %v13193_v6 = vld [vmem:[#allocation2 + $0x98] sm:$0x1] }
 0x162   : > { %v3572_v43 = vrot.slane %v13192_v3, 5  ;;  %v11440_v7 = vcombine.low %v3735_v11, %v3738_v48  ;;  %v3743_v1 = vrot.slane %v3741_v27, 4  ;;  %v3575_v13 = vrot.slane %v13193_v6, 5  ;;  %v3432_v51 = vld [vmem:[#allocation2 + $0x9c] sm:$0xe]  ;;  %v14729_v3 = vpop.f32.mrf.mxu1  ;;  %v14736_v6 = vpop.f32.mrf.mxu0 }
 0x163   : > { %v11384_v22 = vrot.slane %v3610_v46, 9  ;;  %v3569_v57 = vsel %vm14486_vm14, %v3567_v58, %v3568_v32  ;;  %v14720_v53 = vsel %vm14486_vm14, %v11383_v5, %v3741_v27  ;;  %v13194_v30 = vld [vmem:[#allocation3 + $0x94] sm:$0xf]  ;;  %v3611_v20 = vld [vmem:[#allocation3 + $0x9c] sm:$0xe]  ;;  %v3751_v32 = vrot.slane %v14370_v62, 5  ;;  %12484 = vmatprep.mubr.msk.bf16.mxu0 %vm1429_vm2, %v11402_v44 }
 0x164   : > { %v3574_v40 = vrot.slane %v3572_v43, 4  ;;  %v3748_v29 = vrot.slane %v13194_v30, 5  ;;  %v11403_v11 = vcombine.low %v14712_v54, %v3569_v57  ;;  %v3745_v48 = vsel %vm14486_vm14, %v3743_v1, %v3744_v42  ;;  %v3433_v58 = vld [vmem:[#allocation2 + $0xa8] sm:$0xe]  ;;  %12517 = vmatmul.mubr.msk.bf16.gmra.mxu1 %vm1429_vm2, %v11439_v31  ;;  %v13195_v62 = vld [vmem:[#allocation2 + $0xa0] sm:$0xf] }
 0x165   : > { %v3573_v46 = vsel %vm14486_vm14, %v11368_v45, %v3572_v43  ;;  %v11369_v54 = vrot.slane %v3432_v51, 9  ;;  %v11441_v1 = vcombine.low %v14720_v53, %v3745_v48  ;;  %v3579_v42 = vrot.slane %v13195_v62, 5  ;;  %v3612_v44 = vld [vmem:[#allocation3 + $0xa8] sm:$0xe]  ;;  %12520 = vmatprep.mubr.msk.bf16.mxu1 %vm1429_vm2, %v11440_v7 }
 0x166   : > { %v3576_v5 = vsel %vm14486_vm14, %v3574_v40, %v3575_v13  ;;  %v3749_v28 = vsel %vm14486_vm14, %v11384_v22, %v3748_v29  ;;  %v3750_v27 = vrot.slane %v3748_v29, 4  ;;  %v3582_v45 = vrot.slane %v14389_v59, 5  ;;  %v14746_v40 = vpop.f32.mrf.mxu0  ;;  %v3434_v59 = vld [vmem:[#allocation2 + $0xb4] sm:$0xe] }
 0x167   : > { %v11385_v43 = vrot.slane %v3611_v20, 9  ;;  %v3755_v22 = vrot.slane %v14367_v18, 5  ;;  %v3758_v51 = vrot.slane %v14400_v41, 5  ;;  %v11370_v57 = vrot.slane %v3433_v58, 9  ;;  %v14749_v20 = vpop.f32.mrf.mxu1 }
 0x168   : > { %v3752_v13 = vsel %vm14486_vm14, %v3750_v27, %v3751_v32  ;;  %v11404_v31 = vcombine.low %v3573_v46, %v3576_v5  ;;  %v3581_v30 = vrot.slane %v3579_v42, 4  ;;  %v3586_v29 = vrot.slane %v14382_v33, 5  ;;  %v14754_v27 = vpop.f32.mrf.mxu0  ;;  %v3613_v5 = vld [vmem:[#allocation3 + $0xb4] sm:$0xe]  ;;  %12485 = vmatmul.mubr.msk.bf16.gmra.mxu0 %vm1429_vm2, %v11403_v11 }
 0x169   : > { %v11442_v53 = vcombine.low %v3749_v28, %v3752_v13  ;;  %v3580_v7 = vsel %vm14486_vm14, %v11369_v54, %v3579_v42  ;;  %v3757_v48 = vrot.slane %v3755_v22, 4  ;;  %v3589_v32 = vrot.slane %v14424_v38, 5  ;;  %v14763_v28 = vpop.f32.mrf.mxu1 }
 0x16a   : > { %v11386_v18 = vrot.slane %v3612_v44, 9  ;;  %v3583_v41 = vsel %vm14486_vm14, %v3581_v30, %v3582_v45  ;;  %v14760_v46 = vsel %vm14486_vm14, %v11385_v43, %v3755_v22  ;;  %v3588_v33 = vrot.slane %v3586_v29, 4  ;;  %12488 = vmatprep.mubr.msk.bf16.mxu0 %vm1429_vm2, %v11404_v31  ;;  %v14779_v30 = vpop.f32.mrf.mxu0 }
 0x16b   : > { %v3762_v58 = vrot.slane %v14402_v14, 5  ;;  %v3759_v54 = vsel %vm14486_vm14, %v3757_v48, %v3758_v51  ;;  %v3587_v38 = vsel %vm14486_vm14, %v11370_v57, %v3586_v29  ;;  %v3765_v62 = vrot.slane %v14449_v63, 5  ;;  %v12383_v57 = vpop.f32.mrf.mxu1 }
 0x16c   : > { %v11371_v42 = vrot.slane %v3434_v59, 9  ;;  %v11405_v45 = vcombine.low %v3580_v7, %v3583_v41  ;;  %v3590_v43 = vsel %vm14486_vm14, %v3588_v33, %v3589_v32  ;;  %v11443_v13 = vcombine.low %v14760_v46, %v3759_v54  ;;  %12521 = vmatmul.mubr.msk.bf16.gmra.mxu1 %vm1429_vm2, %v11441_v1  ;;  %v17986_v41 = vld [vmem:[#allocation13_spill] sm:$0xff]  ;;  %v17987_v46 = vld [vmem:[#allocation16_spill] sm:$0xff] }
 0x16d   : > { %v3763_v14 = vsel %vm14486_vm14, %v11386_v18, %v3762_v58  ;;  %v3764_v44 = vrot.slane %v3762_v58, 4  ;;  %v3593_v22 = vrot.slane %v14428_v55, 5  ;;  %v3596_v51 = vrot.slane %v14475_v9, 5  ;;  %12524 = vmatprep.mubr.msk.bf16.mxu1 %vm1429_vm2, %v11442_v53  ;;  %v12350_v18 = vpop.f32.mrf.mxu0  ;;  %v17989_v33 = vld [vmem:[#allocation17_spill] sm:$0xff] }
 0x16e   : > { %v11387_v63 = vrot.slane %v3613_v5, 9  ;;  %v11406_v11 = vcombine.low %v3587_v38, %v3590_v43  ;;  %v3769_v59 = vrot.slane %v14445_v47, 5  ;;  %v3772_v31 = vrot.slane %v14483_v8, 5  ;;  %v17993_v5 = vld [vmem:[#allocation23_spill] sm:$0xff]  ;;  %v17994_v38 = vld [vmem:[#allocation24_spill] sm:$0xff] }
 0x16f   : > { %v3766_v29 = vsel %vm14486_vm14, %v3764_v44, %v3765_v62  ;;  %v14789_v55 = vsel %vm14486_vm14, %v11371_v42, %v3593_v22  ;;  %v3595_v9 = vrot.slane %v3593_v22, 4  ;;  %v14793_v48 = vadd.f32 %v14345_v21, %v14331_v61  ;;  %v17995_v62 = vld [vmem:[#allocation25_spill] sm:$0xff]  ;;  %v17997_v43 = vld [vmem:[#allocation27_spill] sm:$0xff]  ;;  %v17998_v44 = vld [vmem:[#allocation28_spill] sm:$0xff] }
 0x170   : > { %v11444_v7 = vcombine.low %v3763_v14, %v3766_v29  ;;  %v14797_v1 = vsel %vm14486_vm14, %v11387_v63, %v3769_v59  ;;  %v3771_v32 = vrot.slane %v3769_v59, 4  ;;  %v14801_v47 = vadd.f32 %v14359_v36, %v14341_v52  ;;  %v1912_v36 = vpop.f32.mrf.mxu1  ;;  %12489 = vmatmul.mubr.msk.bf16.gmra.mxu0 %vm1429_vm2, %v11405_v45  ;;  %v17996_v45 = vld [vmem:[#allocation26_spill] sm:$0xff]  ;;  %v17999_v22 = vld [vmem:[#allocation29_spill] sm:$0xff]  ;;  %v357_v29 = vld [vmem:[%s13713_s29 + $0x78] sm:$0xf] }
 0x171   : > { %v14805_v8 = vadd.f32 %v14379_v10, %v14357_v34  ;;  %v14809_v53 = vsel %vm14486_vm14, %v3595_v9, %v3596_v51  ;;  %v14813_v61 = vadd.f32 %v14398_v17, %v14372_v35  ;;  %v14817_v21 = vadd.f32 %v14418_v24, %v14391_v37  ;;  %12492 = vmatprep.mubr.msk.bf16.mxu0 %vm1429_vm2, %v11406_v11  ;;  %v358_v59 = vld [vmem:[%s13713_s29 + $0x7c] sm:$0xf] }
 0x172   : > { %v14821_v52 = vadd.f32 %v14430_v26, %v14404_v50  ;;  %v11407_v34 = vcombine.low %v14789_v55, %v14809_v53  ;;  %v14827_v10 = vsel %vm14486_vm14, %v3771_v32, %v3772_v31  ;;  %v14831_v35 = vadd.f32 %v14434_v0, %v14420_v4  ;;  %v1624_v26 = vpop.f32.mrf.mxu0  ;;  %v17984_v0 = vld [vmem:[#allocation12_spill] sm:$0xff]  ;;  %v12386_v63 = vpop.f32.mrf.mxu1  ;;  %v18000_v31 = vld [vmem:[#allocation30_spill] sm:$0xff]  ;;  %v18001_v55 = vld [vmem:[#allocation31_spill] sm:$0xff] }
 0x173   : > { %v14835_v37 = vadd.f32 %v14457_v16, %v14436_v56  ;;  %v11445_v17 = vcombine.low %v14797_v1, %v14827_v10  ;;  %v14841_v50 = vadd.f32 %v14469_v15, %v14460_v2  ;;  %v14845_v24 = vadd.f32 %v14477_v12, %v14465_v49  ;;  %v17985_v56 = vld [vmem:[#allocation14_spill] sm:$0xff]  ;;  %v17988_v15 = vld [vmem:[#allocation15_spill] sm:$0xff]  ;;  %v18002_v32 = vld [vmem:[#allocation32_spill] sm:$0xff] }
 0x174   : > { %v14849_v4 = vadd.f32 %v14493_v39, %v14473_v23  ;;  %v14854_v16 = vadd.f32 %v17985_v56, %v17984_v0  ;;  %v14858_v2 = vadd.f32 %v17987_v46, %v17986_v41  ;;  %v14862_v58 = vadd.f32 %v17989_v33, %v17988_v15  ;;  %v17990_v49 = vld [vmem:[#allocation18_spill] sm:$0xff]  ;;  %v17991_v12 = vld [vmem:[#allocation19_spill] sm:$0xff]  ;;  %v17992_v39 = vld [vmem:[#allocation21_spill] sm:$0xff]  ;;  %v12351_v11 = vpop.f32.mrf.mxu0  ;;  %12525 = vmatmul.mubr.msk.bf16.gmra.mxu1 %vm1429_vm2, %v11443_v13 }
 0x175   : > { %v14866_v23 = vadd.f32 %v17991_v12, %v17990_v49  ;;  %v14871_v54 = vadd.f32 %v17993_v5, %v17992_v39  ;;  %v14875_v42 = vadd.f32 %v17995_v62, %v17994_v38  ;;  %v14879_v14 = vadd.f32 %v17997_v43, %v17996_v45  ;;  %v18003_v53 = vld [vmem:[#allocation33_spill] sm:$0xff]  ;;  %v18004_v56 = vld [vmem:[#allocation34_spill] sm:$0xff]  ;;  %v18005_v41 = vld [vmem:[#allocation35_spill] sm:$0xff]  ;;  %12528 = vmatprep.mubr.msk.bf16.mxu1 %vm1429_vm2, %v11444_v7 }
 0x176   : > { %v14883_v51 = vadd.f32 %v17999_v22, %v17998_v44  ;;  %v14890_v9 = vadd.f32 %v18001_v55, %v18000_v31  ;;  %v14894_v0 = vadd.f32 %v18003_v53, %v18002_v32  ;;  %v14898_v46 = vadd.f32 %v18005_v41, %v18004_v56  ;;  %v18006_v15 = vld [vmem:[#allocation36_spill] sm:$0xff]  ;;  %v5126_v44 = vld [vmem:[#allocation2 + $0xc] sm:$0xf]  ;;  %v14924_v55 = vpop.f32.mrf.mxu0 }
 0x177   : > { %v14902_v33 = vadd.f32 %v14708_v19, %v18006_v15  ;;  %v830_v49 = vld [vmem:[%s13707_s23 + $0x78] sm:$0xf]  ;;  %v831_v12 = vld [vmem:[%s13707_s23 + $0x7c] sm:$0xf]  ;;  %v14909_v13 = vadd.f32 %v14729_v3, %v14714_v25  ;;  %v14913_v39 = vadd.f32 %v14749_v20, %v14736_v6  ;;  %v14917_v5 = vadd.f32 %v14763_v28, %v14746_v40  ;;  %v1925_v19 = vpop.f32.mrf.mxu1  ;;  %v13054_v25 = vld [vmem:[#allocation2 + $0xc] sm:$0xff]   ;;  %s13315_s23 = scalar_lea.vmem %s13314_s5, 8192 }
 0x178   : > { %v14920_v38 = vadd.f32 %v12383_v57, %v14754_v27  ;;  %v14922_v62 = vadd.f32 %v12386_v63, %v12350_v18  ;;  %v618_v45 = vshrl.u32 %v357_v29, 16  ;;  %v621_v7 = vshll.u32 %v357_v29, 16  ;;  %v13055_v18 = vld [vmem:[#allocation3 + $0xc] sm:$0xff]   ;;  %v793_v63 = vld [vmem:[#allocation2 + $0xc0] sm:$0xf]  ;;  %12493 = vmatmul.mubr.msk.bf16.gmra.mxu0 %vm1429_vm2, %v11407_v34  ;;  %v12394_v34 = vpop.f32.mrf.mxu0  ;;  %p13317_p1 = scmp.lt.s32.totalorder %s13315_s23, %s13309_s28 }
 0x179   : > { %v626_v43 = vshrl.u32 %v358_v59, 16  ;;  %v629_v3 = vshll.u32 %v358_v59, 16  ;;  %v1088_v22 = vshrl.u32 %v830_v49, 16  ;;  %v1091_v31 = vshll.u32 %v830_v49, 16  ;;  %v12387_v20 = vpop.f32.mrf.mxu1  ;;  %12536 = vmatprep.mubr.msk.bf16.mxu0 %vm1429_vm2, %v13054_v25 }
 0x17a   : > { %18007 = vst [vmem:[#allocation12_spill] sm:$0xff] %v14922_v62  ;;  %v1096_v6 = vshrl.u32 %v831_v12, 16  ;;  %v620_v40 = vrot.slane %v618_v45, 7  ;;  %v1099_v27 = vshll.u32 %v831_v12, 16  ;;  %v14928_v57 = vadd.f32 %v1925_v19, %v1624_v26  ;;  %v1258_v12 = vld [vmem:[#allocation3 + $0xc0] sm:$0xf]  ;;  %p13318_p2 = por %p13317_p1, %p13316_p0 }
 0x17b   : > { %v14926_v28 = vrot.slane %v626_v43, 7  ;;  %v1090_v32 = vrot.slane %v1088_v22, 7  ;;  %v14932_v53 = vadd.f32 %v12387_v20, %v12351_v11  ;;  %v5175_v59 = vshrl.u32 %v5126_v44, 16  ;;  %v5127_v26 = vld [vmem:[#allocation2 + $0x10] sm:$0xf] }
 0x17c   : > { %18009 = vst [vmem:[#allocation13_spill] sm:$0xff] %v14928_v57  ;;  %v14930_v29 = vrot.slane %v1096_v6, 7  ;;  %v14936_v56 = vadd.f32 %v1912_v36, %v14779_v30  ;;  %v623_v41 = vor.u32 %v621_v7, %v620_v40  ;;  %v624_v15 = vrot.slane %v620_v40, 4  ;;  %v5128_v22 = vld [vmem:[#allocation2 + $0x14] sm:$0x1]  ;;  %12529 = vmatmul.mubr.msk.bf16.gmra.mxu1 %vm1429_vm2, %v11445_v17  ;;  %v13057_v40 = vld [vmem:[#allocation2 + $0x18] sm:$0xff]   ;;  %v1928_v17 = vpop.f32.mrf.mxu1  ;;  %p13319_p3 = pnand %p13318_p2, %p13312_p13 }
 0x17d   : > { %18008 = vst [vmem:[#allocation14_spill] sm:$0xff] %v14926_v28  ;;  %18011 = vst [vmem:[#allocation15_spill] sm:$0xff] %v14932_v53  ;;  %v631_v49 = vor.u32 %v629_v3, %v14926_v28  ;;  %v1093_v45 = vor.u32 %v1091_v31, %v1090_v32  ;;  %v1094_v43 = vrot.slane %v1090_v32, 4  ;;  %v5558_v6 = vld [vmem:[#allocation3 + $0xc] sm:$0xf]  ;;  %v5177_v31 = vrot.slane %v5175_v59, 4  ;;  %12572 = vmatprep.mubr.msk.bf16.mxu1 %vm1429_vm2, %v13055_v18 }
 0x17e   : > { %18010 = vst [vmem:[#allocation16_spill] sm:$0xff] %v14930_v29  ;;  %18012 = vst [vmem:[#allocation17_spill] sm:$0xff] %v14936_v56  ;;  %v1101_v11 = vor.u32 %v1099_v27, %v14930_v29  ;;  %v794_v25 = vsel %vm13727_vm7, %v623_v41, %v793_v63  ;;  %v5559_v20 = vld [vmem:[#allocation3 + $0x10] sm:$0xf]  ;;  %v5178_v32 = vshll.u32 %v5126_v44, 16  ;;  %v5184_v63 = vshll.u32 %v5127_v26, 16  ;;  %v2954_v41 = vpop.f32.mrf.mxu0 }
 0x17f   : > { %v632_v36 = vsel %vm13720_vm6, %v624_v15, %v631_v49  ;;  %v13060_v27 = vld [vmem:[#allocation2 + $0x24] sm:$0xff]   ;;  %795 = vst [vmem:[#allocation2 + $0xc0] sm:$0xf] %v794_v25  ;;  %v1259_v10 = vsel %vm13727_vm7, %v1093_v45, %v1258_v12  ;;  %v5188_v59 = vshrl.u32 %v5127_v26, 16  ;;  %v5194_v18 = vshll.u32 %v5128_v22, 16  ;;  %v13058_v7 = vld [vmem:[#allocation3 + $0x18] sm:$0xff]  }
 0x180   : > { %796 = vst.msk [vmem:[#allocation2 + $0xc4] sm:$0xf] %vm217_vm0, %v632_v36  ;;  %v1102_v1 = vsel %vm13720_vm6, %v1094_v43, %v1101_v11  ;;  %1260 = vst [vmem:[#allocation3 + $0xc0] sm:$0xf] %v1259_v10  ;;  %v5560_v15 = vld [vmem:[#allocation3 + $0x14] sm:$0x1]  ;;  %v12395_v11 = vpop.f32.mrf.mxu0  ;;  %12537 = vmatmul.mubr.msk.bf16.vlgmr.msra.gmra.mxu0 %vm1429_vm2, %v13057_v40  ;;  %v14974_v40 = vadd.f32 %v1928_v17, %v14924_v55  ;;  %v3081_v29 = vadd.f32 %v2954_v41, %v14801_v47 }
 0x181   : > { %1261 = vst.msk [vmem:[#allocation3 + $0xc4] sm:$0xf] %vm217_vm0, %v1102_v1  ;;  %v5607_v49 = vshrl.u32 %v5558_v6, 16  ;;  %v5610_v25 = vshll.u32 %v5558_v6, 16  ;;  %v5180_v3 = vrot.slane %v5178_v32, 5  ;;  %v5186_v36 = vrot.slane %v5184_v63, 5  ;;  %v12430_v32 = vpop.f32.mrf.mxu1  ;;  %12540 = vmatprep.mubr.msk.bf16.mxu0 %vm1429_vm2, %v13060_v27 }
 0x182   : > { %v5616_v19 = vshll.u32 %v5559_v20, 16  ;;  %v5620_v30 = vshrl.u32 %v5559_v20, 16  ;;  %v5129_v43 = vld [vmem:[#allocation2 + $0x18] sm:$0xf]  ;;  %v13074_v44 = vld [vmem:[%s17879_s2 + $0x40] sm:$0xff]   ;;  %v5190_v12 = vrot.slane %v5188_v59, 4 }
 0x183   : > { %v5196_v45 = vrot.slane %v5194_v18, 5  ;;  %v5609_v10 = vrot.slane %v5607_v49, 4  ;;  %v5612_v1 = vrot.slane %v5610_v25, 5  ;;  %v13061_v26 = vld [vmem:[#allocation3 + $0x24] sm:$0xff]   ;;  %v5181_v22 = vor.u32 %v5180_v3, %v5177_v31  ;;  %v2957_v31 = vpop.f32.mrf.mxu0  ;;  %18016 = vst [vmem:[#allocation18_spill] sm:$0xff] %v14974_v40  ;;  %v3260_v17 = vpop.f32.mrf.mxu1 }
 0x184   : > { %v5618_v60 = vrot.slane %v5616_v19, 5  ;;  %v5622_v53 = vrot.slane %v5620_v30, 4  ;;  %v5626_v6 = vshll.u32 %v5560_v15, 16  ;;  %v13077_v20 = vld [vmem:[%s17880_s3 + $0x40] sm:$0xff]   ;;  %v5191_v63 = vor.u32 %v5190_v12, %v5186_v36  ;;  %v14968_v59 = vld [vmem:[%s17879_s2 + $0x58] sm:$0xff]   ;;  %12573 = vmatmul.mubr.msk.bf16.vlgmr.msra.gmra.mxu1 %vm1429_vm2, %v13058_v7 }
 0x185   : > { %v5613_v57 = vor.u32 %v5612_v1, %v5609_v10  ;;  %v3083_v18 = vadd.f32 %v12394_v34, %v14793_v48  ;;  %v5130_v3 = vld [vmem:[#allocation2 + $0x1c] sm:$0xf]  ;;  %v5199_v19 = vshrl.u32 %v5129_v43, 16  ;;  %v5182_v49 = vrot.slane %v5181_v22, 4  ;;  %v5131_v30 = vld [vmem:[#allocation2 + $0x20] sm:$0x1]  ;;  %12576 = vmatprep.mubr.msk.bf16.mxu1 %vm1429_vm2, %v13061_v26 }
 0x186   : > { %v18015_v15 = vld [vmem:[#allocation20_spill] sm:$0xff]  ;;  %v5623_v25 = vor.u32 %v5622_v53, %v5618_v60  ;;  %v5202_v12 = vshll.u32 %v5129_v43, 16  ;;  %v5561_v10 = vld [vmem:[#allocation3 + $0x18] sm:$0xf]  ;;  %v5192_v1 = vrot.slane %v5191_v63, 4  ;;  %v5628_v48 = vrot.slane %v5626_v6, 5 }
 0x187   : > { %12605 = vmatpush3.bf16.msra.mxu0 %v18015_v15  ;;  %v14977_v34 = vadd.f32 %v12430_v32, %v3083_v18  ;;  %v18018_v15 = vld [vmem:[#allocation22_spill] sm:$0xff]  ;;  %v5187_v27 = vsel %vm14102_vm11, %v5182_v49, %v5186_v36  ;;  %v5614_v53 = vrot.slane %v5613_v57, 4  ;;  %v3084_v43 = vadd.f32 %v12395_v11, %v14805_v8  ;;  %v13062_v22 = vld [vmem:[#allocation2 + $0x30] sm:$0xff]   ;;  %v14991_v26 = vld [vmem:[%s17880_s3 + $0x58] sm:$0xff]  }
 0x188   : > { %12606 = vmatprep.subr.bf16.mxu0 %v13074_v44  ;;  %12641 = vmatpush3.bf16.msra.mxu1 %v18018_v15  ;;  %v3082_v7 = vadd.f32 %v2957_v31, %v14813_v61  ;;  %v5197_v6 = vsel %vm14102_vm11, %v5192_v1, %v5196_v45  ;;  %v5624_v32 = vrot.slane %v5623_v25, 4  ;;  %v5201_v47 = vrot.slane %v5199_v19, 4  ;;  %v13064_v36 = vld [vmem:[#allocation2 + $0x3c] sm:$0xff]   ;;  %v5562_v63 = vld [vmem:[#allocation3 + $0x1c] sm:$0xf]  ;;  %v13063_v18 = vld [vmem:[#allocation3 + $0x30] sm:$0xff]  }
 0x189   : > { %18017 = vst [vmem:[#allocation19_spill] sm:$0xff] %v14977_v34  ;;  %12642 = vmatprep.subr.bf16.mxu1 %v13077_v20  ;;  %v5204_v41 = vrot.slane %v5202_v12, 5  ;;  %v14993_v57 = vcombine.low %v5187_v27, %v5197_v6  ;;  %v5619_v8 = vsel %vm14102_vm11, %v5614_v53, %v5618_v60  ;;  %v5208_v61 = vshll.u32 %v5130_v3, 16  ;;  %v5563_v49 = vld [vmem:[#allocation3 + $0x20] sm:$0x1]  ;;  %v12431_v27 = vpop.f32.mrf.mxu1  ;;  %12541 = vmatmul.mubr.msk.bf16.gmra.mxu0 %vm1429_vm2, %v13062_v22 }
 0x18a   : > { %v5212_v11 = vshrl.u32 %v5130_v3, 16  ;;  %v5629_v45 = vsel %vm14102_vm11, %v5624_v32, %v5628_v48  ;;  %v5218_v31 = vshll.u32 %v5131_v30, 16  ;;  %v5631_v25 = vshrl.u32 %v5561_v10, 16  ;;  %v13065_v12 = vld [vmem:[#allocation3 + $0x3c] sm:$0xff]   ;;  %v5132_v32 = vld [vmem:[#allocation2 + $0x24] sm:$0xf]  ;;  %12544 = vmatprep.mubr.msk.bf16.mxu0 %vm1429_vm2, %v13064_v36 }
 0x18b   : > { %12607 = vmatpush3.bf16.msra.mxu0 %v13074_v44  ;;  %v5205_v19 = vor.u32 %v5204_v41, %v5201_v47  ;;  %v15000_v44 = vcombine.low %v5619_v8, %v5629_v45  ;;  %v5210_v1 = vrot.slane %v5208_v61, 5  ;;  %v5634_v60 = vshll.u32 %v5561_v10, 16  ;;  %v5133_v8 = vld [vmem:[#allocation2 + $0x28] sm:$0xf]  ;;  %v5145_v56 = vld [vmem:[#allocation2 + $0x58] sm:$0xf] }
 0x18c   : > { %12676 = vmatprep.subr.bf16.mxu0 %v14968_v59  ;;  %12643 = vmatpush3.bf16.msra.mxu1 %v13077_v20  ;;  %v5214_v15 = vrot.slane %v5212_v11, 4  ;;  %v5220_v53 = vrot.slane %v5218_v31, 5  ;;  %v5633_v6 = vrot.slane %v5631_v25, 4  ;;  %v5640_v48 = vshll.u32 %v5562_v63, 16  ;;  %v13066_v45 = vld [vmem:[#allocation2 + $0x48] sm:$0xff]  }
 0x18d   : > { %v5206_v3 = vrot.slane %v5205_v19, 4  ;;  %12712 = vmatprep.subr.bf16.mxu1 %v14991_v26  ;;  %v5636_v47 = vrot.slane %v5634_v60, 5  ;;  %v5644_v20 = vshrl.u32 %v5562_v63, 16  ;;  %v5650_v41 = vshll.u32 %v5563_v49, 16  ;;  %12577 = vmatmul.mubr.msk.bf16.gmra.mxu1 %vm1429_vm2, %v13063_v18  ;;  %v3263_v63 = vpop.f32.mrf.mxu1  ;;  %v13068_v49 = vld [vmem:[#allocation2 + $0x54] sm:$0xff]  }
 0x18e   : > { %v5215_v30 = vor.u32 %v5214_v15, %v5210_v1  ;;  %v5642_v22 = vrot.slane %v5640_v48, 5  ;;  %v15008_v61 = vadd.f32 %v3260_v17, %v3081_v29  ;;  %v15010_v11 = vadd.f32 %v12431_v27, %v3084_v43  ;;  %12580 = vmatprep.mubr.msk.bf16.mxu1 %vm1429_vm2, %v13065_v12  ;;  %v5134_v18 = vld [vmem:[#allocation2 + $0x2c] sm:$0x1]  ;;  %v5564_v12 = vld [vmem:[#allocation3 + $0x24] sm:$0xf]  ;;  %v13067_v48 = vld [vmem:[#allocation3 + $0x48] sm:$0xff]  }
 0x18f   : > { %v5211_v10 = vsel %vm14102_vm11, %v5206_v3, %v5210_v1  ;;  %v5637_v36 = vor.u32 %v5636_v47, %v5633_v6  ;;  %v5646_v31 = vrot.slane %v5644_v20, 4  ;;  %v5652_v25 = vrot.slane %v5650_v41, 5  ;;  %v5565_v3 = vld [vmem:[#allocation3 + $0x28] sm:$0xf] }
 0x190   : > { %18020 = vst [vmem:[#allocation21_spill] sm:$0xff] %v15008_v61  ;;  %18021 = vst [vmem:[#allocation23_spill] sm:$0xff] %v15010_v11  ;;  %v5216_v19 = vrot.slane %v5215_v30, 4  ;;  %v15013_v15 = vadd.f32 %v3263_v63, %v3082_v7  ;;  %v5223_v60 = vshrl.u32 %v5132_v32, 16  ;;  %v5226_v34 = vshll.u32 %v5132_v32, 16  ;;  %v13069_v7 = vld [vmem:[#allocation3 + $0x54] sm:$0xff]  }
 0x191   : > { %v5232_v1 = vshll.u32 %v5133_v8, 16  ;;  %v5638_v17 = vrot.slane %v5637_v36, 4  ;;  %v5647_v43 = vor.u32 %v5646_v31, %v5642_v22  ;;  %v5236_v27 = vshrl.u32 %v5133_v8, 16  ;;  %v5566_v11 = vld [vmem:[#allocation3 + $0x2c] sm:$0x1]  ;;  %12545 = vmatmul.mubr.msk.bf16.gmra.mxu0 %vm1429_vm2, %v13066_v45  ;;  %v12398_v31 = vpop.f32.mrf.mxu0 }
 0x192   : > { %18022 = vst [vmem:[#allocation24_spill] sm:$0xff] %v15013_v15  ;;  %v5221_v29 = vsel %vm14102_vm11, %v5216_v19, %v5220_v53  ;;  %v5225_v30 = vrot.slane %v5223_v60, 4  ;;  %v5228_v47 = vrot.slane %v5226_v34, 5  ;;  %v5242_v15 = vshll.u32 %v5134_v18, 16  ;;  %12548 = vmatprep.mubr.msk.bf16.mxu0 %vm1429_vm2, %v13068_v49  ;;  %v13070_v18 = vld [vmem:[#allocation2 + $0x60] sm:$0xff]  }
 0x193   : > { %v15017_v6 = vcombine.low %v5211_v10, %v5221_v29  ;;  %v5234_v20 = vrot.slane %v5232_v1, 5  ;;  %v5643_v41 = vsel %vm14102_vm11, %v5638_v17, %v5642_v22  ;;  %v5648_v32 = vrot.slane %v5647_v43, 4  ;;  %v5135_v10 = vld [vmem:[#allocation2 + $0x30] sm:$0xf]  ;;  %v5137_v61 = vld [vmem:[#allocation2 + $0x38] sm:$0x1] }
 0x194   : > { %v5238_v63 = vrot.slane %v5236_v27, 4  ;;  %v5229_v53 = vor.u32 %v5228_v47, %v5225_v30  ;;  %v5655_v8 = vshrl.u32 %v5564_v12, 16  ;;  %v5658_v19 = vshll.u32 %v5564_v12, 16  ;;  %v5136_v27 = vld [vmem:[#allocation2 + $0x34] sm:$0xf] }
 0x195   : > { %v5664_v36 = vshll.u32 %v5565_v3, 16  ;;  %v5653_v34 = vsel %vm14102_vm11, %v5648_v32, %v5652_v25  ;;  %v5244_v1 = vrot.slane %v5242_v15, 5  ;;  %v5668_v22 = vshrl.u32 %v5565_v3, 16  ;;  %12581 = vmatmul.mubr.msk.bf16.gmra.mxu1 %vm1429_vm2, %v13067_v48  ;;  %v5567_v25 = vld [vmem:[#allocation3 + $0x30] sm:$0xf]  ;;  %v13071_v32 = vld [vmem:[#allocation3 + $0x60] sm:$0xff]  }
 0x196   : > { %v5239_v60 = vor.u32 %v5238_v63, %v5234_v20  ;;  %v15026_v29 = vcombine.low %v5643_v41, %v5653_v34  ;;  %v5230_v45 = vrot.slane %v5229_v53, 4  ;;  %v5657_v17 = vrot.slane %v5655_v8, 4  ;;  %12584 = vmatprep.mubr.msk.bf16.mxu1 %vm1429_vm2, %v13069_v7  ;;  %v13072_v15 = vld [vmem:[#allocation2 + $0x6c] sm:$0xff]   ;;  %v12434_v63 = vpop.f32.mrf.mxu1  ;;  %v2970_v8 = vpop.f32.mrf.mxu0 }
 0x197   : > { %v5660_v43 = vrot.slane %v5658_v19, 5  ;;  %v5666_v30 = vrot.slane %v5664_v36, 5  ;;  %v5670_v49 = vrot.slane %v5668_v22, 4  ;;  %v5674_v47 = vshll.u32 %v5566_v11, 16  ;;  %v13073_v19 = vld [vmem:[#allocation3 + $0x6c] sm:$0xff]  }
 0x198   : > { %v5240_v12 = vrot.slane %v5239_v60, 4  ;;  %v5235_v3 = vsel %vm14102_vm11, %v5230_v45, %v5234_v20  ;;  %v3087_v41 = vadd.f32 %v12398_v31, %v14817_v21  ;;  %v5247_v53 = vshrl.u32 %v5135_v10, 16  ;;  %v5568_v20 = vld [vmem:[#allocation3 + $0x34] sm:$0xf] }
 0x199   : > { %v5661_v48 = vor.u32 %v5660_v43, %v5657_v17  ;;  %v5671_v36 = vor.u32 %v5670_v49, %v5666_v30  ;;  %v5676_v34 = vrot.slane %v5674_v47, 5  ;;  %v5250_v11 = vshll.u32 %v5135_v10, 16  ;;  %v5569_v43 = vld [vmem:[#allocation3 + $0x38] sm:$0x1]  ;;  %12549 = vmatmul.mubr.msk.bf16.gmra.mxu0 %vm1429_vm2, %v13070_v18  ;;  %v3276_v47 = vpop.f32.mrf.mxu1 }
 0x19a   : > { %v5245_v7 = vsel %vm14102_vm11, %v5240_v12, %v5244_v1  ;;  %v15036_v40 = vadd.f32 %v12434_v63, %v3087_v41  ;;  %v5249_v28 = vrot.slane %v5247_v53, 4  ;;  %v5256_v21 = vshll.u32 %v5136_v27, 16  ;;  %12552 = vmatprep.mubr.msk.bf16.mxu0 %vm1429_vm2, %v13072_v15 }
 0x19b   : > { %v15034_v60 = vcombine.low %v5235_v3, %v5245_v7  ;;  %v5662_v22 = vrot.slane %v5661_v48, 4  ;;  %v5672_v45 = vrot.slane %v5671_v36, 4  ;;  %v5252_v17 = vrot.slane %v5250_v11, 5  ;;  %v12399_v3 = vpop.f32.mrf.mxu0 }
 0x19c   : > { %18023 = vst [vmem:[#allocation25_spill] sm:$0xff] %v15036_v40  ;;  %v5260_v31 = vshrl.u32 %v5136_v27, 16  ;;  %v5266_v12 = vshll.u32 %v5137_v61, 16  ;;  %v5679_v49 = vshrl.u32 %v5567_v25, 16  ;;  %v5682_v10 = vshll.u32 %v5567_v25, 16  ;;  %v13075_v61 = vld [vmem:[#allocation2 + $0x78] sm:$0xff]  }
 0x19d   : > { %v5667_v1 = vsel %vm14102_vm11, %v5662_v22, %v5666_v30  ;;  %v5677_v48 = vsel %vm14102_vm11, %v5672_v45, %v5676_v34  ;;  %v5253_v41 = vor.u32 %v5252_v17, %v5249_v28  ;;  %v5258_v63 = vrot.slane %v5256_v21, 5  ;;  %12585 = vmatmul.mubr.msk.bf16.gmra.mxu1 %vm1429_vm2, %v13071_v32  ;;  %v13076_v22 = vld [vmem:[#allocation3 + $0x78] sm:$0xff]   ;;  %v12435_v32 = vpop.f32.mrf.mxu1  ;;  %v2973_v17 = vpop.f32.mrf.mxu0  ;;  %v5138_v21 = vld [vmem:[#allocation2 + $0x3c] sm:$0xf] }
 0x19e   : > { %v5262_v53 = vrot.slane %v5260_v31, 4  ;;  %v15045_v27 = vcombine.low %v5667_v1, %v5677_v48  ;;  %v5268_v18 = vrot.slane %v5266_v12, 5  ;;  %v5681_v7 = vrot.slane %v5679_v49, 4  ;;  %12588 = vmatprep.mubr.msk.bf16.mxu1 %vm1429_vm2, %v13073_v19  ;;  %v5139_v31 = vld [vmem:[#allocation2 + $0x40] sm:$0xf]  ;;  %v13078_v1 = vld [vmem:[#allocation2 + $0x84] sm:$0xff]  }
 0x19f   : > { %v5684_v30 = vrot.slane %v5682_v10, 5  ;;  %v5254_v25 = vrot.slane %v5253_v41, 4  ;;  %v5688_v11 = vshll.u32 %v5568_v20, 16  ;;  %v5692_v15 = vshrl.u32 %v5568_v20, 16  ;;  %v5140_v48 = vld [vmem:[#allocation2 + $0x44] sm:$0x1] }
 0x1a0   : > { %v5263_v36 = vor.u32 %v5262_v53, %v5258_v63  ;;  %v5698_v34 = vshll.u32 %v5569_v43, 16  ;;  %v3085_v28 = vadd.f32 %v2970_v8, %v14821_v52  ;;  %v3088_v45 = vadd.f32 %v12399_v3, %v14831_v35  ;;  %v5570_v20 = vld [vmem:[#allocation3 + $0x3c] sm:$0xf]  ;;  %v5571_v35 = vld [vmem:[#allocation3 + $0x40] sm:$0xf]  ;;  %v13079_v8 = vld [vmem:[#allocation3 + $0x84] sm:$0xff]  }
 0x1a1   : > { %v5685_v40 = vor.u32 %v5684_v30, %v5681_v7  ;;  %v5259_v19 = vsel %vm14102_vm11, %v5254_v25, %v5258_v63  ;;  %v5690_v49 = vrot.slane %v5688_v11, 5  ;;  %v5694_v10 = vrot.slane %v5692_v15, 4  ;;  %12553 = vmatmul.mubr.msk.bf16.gmra.mxu0 %vm1429_vm2, %v13075_v61 }
 0x1a2   : > { %v5264_v12 = vrot.slane %v5263_v36, 4  ;;  %v5700_v53 = vrot.slane %v5698_v34, 5  ;;  %v15052_v43 = vadd.f32 %v3276_v47, %v3085_v28  ;;  %v15054_v52 = vadd.f32 %v12435_v32, %v3088_v45  ;;  %v3279_v47 = vpop.f32.mrf.mxu1  ;;  %12556 = vmatprep.mubr.msk.bf16.mxu0 %vm1429_vm2, %v13078_v1  ;;  %v5572_v32 = vld [vmem:[#allocation3 + $0x44] sm:$0x1] }
 0x1a3   : > { %v5686_v41 = vrot.slane %v5685_v40, 4  ;;  %v5695_v7 = vor.u32 %v5694_v10, %v5690_v49  ;;  %v3086_v30 = vadd.f32 %v2973_v17, %v14835_v37  ;;  %v5271_v63 = vshrl.u32 %v5138_v21, 16  ;;  %v5141_v10 = vld [vmem:[#allocation2 + $0x48] sm:$0xf] }
 0x1a4   : > { %18024 = vst [vmem:[#allocation26_spill] sm:$0xff] %v15052_v43  ;;  %18025 = vst [vmem:[#allocation27_spill] sm:$0xff] %v15054_v52  ;;  %v5269_v3 = vsel %vm14102_vm11, %v5264_v12, %v5268_v18  ;;  %v5274_v36 = vshll.u32 %v5138_v21, 16  ;;  %v5280_v11 = vshll.u32 %v5139_v31, 16  ;;  %v5284_v28 = vshrl.u32 %v5139_v31, 16 }
 0x1a5   : > { %v15060_v25 = vcombine.low %v5259_v19, %v5269_v3  ;;  %v5691_v40 = vsel %vm14102_vm11, %v5686_v41, %v5690_v49  ;;  %v5696_v15 = vrot.slane %v5695_v7, 4  ;;  %v15065_v34 = vadd.f32 %v3279_v47, %v3086_v30  ;;  %12589 = vmatmul.mubr.msk.bf16.gmra.mxu1 %vm1429_vm2, %v13076_v22  ;;  %v12402_v19 = vpop.f32.mrf.mxu0  ;;  %v13080_v41 = vld [vmem:[#allocation2 + $0x90] sm:$0xff]   ;;  %v13082_v30 = vld [vmem:[#allocation2 + $0x9c] sm:$0xff]  }
 0x1a6   : > { %v5273_v18 = vrot.slane %v5271_v63, 4  ;;  %v5276_v37 = vrot.slane %v5274_v36, 5  ;;  %v5282_v45 = vrot.slane %v5280_v11, 5  ;;  %v5290_v61 = vshll.u32 %v5140_v48, 16  ;;  %12592 = vmatprep.mubr.msk.bf16.mxu1 %vm1429_vm2, %v13079_v8  ;;  %v5142_v11 = vld [vmem:[#allocation2 + $0x4c] sm:$0xf] }
 0x1a7   : > { %18026 = vst [vmem:[#allocation28_spill] sm:$0xff] %v15065_v34  ;;  %v5703_v17 = vshrl.u32 %v5570_v20, 16  ;;  %v5701_v21 = vsel %vm14102_vm11, %v5696_v15, %v5700_v53  ;;  %v5286_v12 = vrot.slane %v5284_v28, 4  ;;  %v5706_v1 = vshll.u32 %v5570_v20, 16  ;;  %v5143_v8 = vld [vmem:[#allocation2 + $0x50] sm:$0x1]  ;;  %v12438_v15 = vpop.f32.mrf.mxu1 }
 0x1a8   : > { %v5712_v49 = vshll.u32 %v5571_v35, 16  ;;  %v15071_v3 = vcombine.low %v5691_v40, %v5701_v21  ;;  %v5277_v31 = vor.u32 %v5276_v37, %v5273_v18  ;;  %v5292_v22 = vrot.slane %v5290_v61, 5  ;;  %v13081_v34 = vld [vmem:[#allocation3 + $0x90] sm:$0xff]   ;;  %v5573_v43 = vld [vmem:[#allocation3 + $0x48] sm:$0xf]  ;;  %v2986_v40 = vpop.f32.mrf.mxu0  ;;  %v13083_v21 = vld [vmem:[#allocation3 + $0x9c] sm:$0xff]  }
 0x1a9   : > { %v5705_v7 = vrot.slane %v5703_v17, 4  ;;  %v5287_v48 = vor.u32 %v5286_v12, %v5282_v45  ;;  %v5708_v63 = vrot.slane %v5706_v1, 5  ;;  %v5716_v36 = vshrl.u32 %v5571_v35, 16  ;;  %12557 = vmatmul.mubr.msk.bf16.gmra.mxu0 %vm1429_vm2, %v13080_v41 }
 0x1aa   : > { %v5714_v47 = vrot.slane %v5712_v49, 5  ;;  %v5278_v52 = vrot.slane %v5277_v31, 4  ;;  %v5722_v53 = vshll.u32 %v5572_v32, 16  ;;  %v3091_v20 = vadd.f32 %v12402_v19, %v14841_v50  ;;  %12560 = vmatprep.mubr.msk.bf16.mxu0 %vm1429_vm2, %v13082_v30  ;;  %v13086_v30 = vld [vmem:[#allocation2 + $0xb4] sm:$0xff]  }
 0x1ab   : > { %v5295_v28 = vshrl.u32 %v5141_v10, 16  ;;  %v5288_v18 = vrot.slane %v5287_v48, 4  ;;  %v5709_v37 = vor.u32 %v5708_v63, %v5705_v7  ;;  %v5718_v61 = vrot.slane %v5716_v36, 4  ;;  %v12403_v63 = vpop.f32.mrf.mxu0  ;;  %v13084_v36 = vld [vmem:[#allocation2 + $0xa8] sm:$0xff]  }
 0x1ac   : > { %v5298_v17 = vshll.u32 %v5141_v10, 16  ;;  %v5283_v35 = vsel %vm14102_vm11, %v5278_v52, %v5282_v45  ;;  %v5724_v12 = vrot.slane %v5722_v53, 5  ;;  %v15077_v1 = vadd.f32 %v12438_v15, %v3091_v20  ;;  %v5574_v52 = vld [vmem:[#allocation3 + $0x4c] sm:$0xf]  ;;  %v3292_v45 = vpop.f32.mrf.mxu1 }
 0x1ad   : > { %v5297_v32 = vrot.slane %v5295_v28, 4  ;;  %v5293_v50 = vsel %vm14102_vm11, %v5288_v18, %v5292_v22  ;;  %v5710_v19 = vrot.slane %v5709_v37, 4  ;;  %v5719_v49 = vor.u32 %v5718_v61, %v5714_v47  ;;  %12593 = vmatmul.mubr.msk.bf16.gmra.mxu1 %vm1429_vm2, %v13081_v34  ;;  %v13085_v28 = vld [vmem:[#allocation3 + $0xa8] sm:$0xff]   ;;  %v5575_v61 = vld [vmem:[#allocation3 + $0x50] sm:$0x1] }
 0x1ae   : > { %18027 = vst [vmem:[#allocation29_spill] sm:$0xff] %v15077_v1  ;;  %v5300_v31 = vrot.slane %v5298_v17, 5  ;;  %v15083_v10 = vcombine.low %v5283_v35, %v5293_v50  ;;  %v5304_v41 = vshll.u32 %v5142_v11, 16  ;;  %v5308_v7 = vshrl.u32 %v5142_v11, 16  ;;  %12596 = vmatprep.mubr.msk.bf16.mxu1 %vm1429_vm2, %v13083_v21  ;;  %v5144_v1 = vld [vmem:[#allocation2 + $0x54] sm:$0xf] }
 0x1af   : > { %v5314_v48 = vshll.u32 %v5143_v8, 16  ;;  %v5715_v22 = vsel %vm14102_vm11, %v5710_v19, %v5714_v47  ;;  %v5720_v53 = vrot.slane %v5719_v49, 4  ;;  %v5727_v15 = vshrl.u32 %v5573_v43, 16  ;;  %v13087_v8 = vld [vmem:[#allocation3 + $0xb4] sm:$0xff]   ;;  %v12439_v49 = vpop.f32.mrf.mxu1 }
 0x1b0   : > { %v5301_v20 = vor.u32 %v5300_v31, %v5297_v32  ;;  %v5306_v34 = vrot.slane %v5304_v41, 5  ;;  %v5310_v18 = vrot.slane %v5308_v7, 4  ;;  %v5730_v11 = vshll.u32 %v5573_v43, 16  ;;  %v2989_v31 = vpop.f32.mrf.mxu0 }
 0x1b1   : > { %v5316_v37 = vrot.slane %v5314_v48, 5  ;;  %v5725_v17 = vsel %vm14102_vm11, %v5720_v53, %v5724_v12  ;;  %v5729_v21 = vrot.slane %v5727_v15, 4  ;;  %v5736_v50 = vshll.u32 %v5574_v52, 16  ;;  %12561 = vmatmul.mubr.msk.bf16.gmra.mxu0 %vm1429_vm2, %v13084_v36  ;;  %v5146_v15 = vld [vmem:[#allocation2 + $0x5c] sm:$0x1] }
 0x1b2   : > { %v5302_v35 = vrot.slane %v5301_v20, 4  ;;  %v15090_v62 = vcombine.low %v5715_v22, %v5725_v17  ;;  %v5311_v47 = vor.u32 %v5310_v18, %v5306_v34  ;;  %v5732_v19 = vrot.slane %v5730_v11, 5  ;;  %12564 = vmatprep.mubr.msk.bf16.mxu0 %vm1429_vm2, %v13086_v30  ;;  %v3295_v17 = vpop.f32.mrf.mxu1 }
 0x1b3   : > { %v5740_v32 = vshrl.u32 %v5574_v52, 16  ;;  %v5738_v7 = vrot.slane %v5736_v50, 5  ;;  %v5746_v43 = vshll.u32 %v5575_v61, 16  ;;  %v3089_v48 = vadd.f32 %v2986_v40, %v14845_v24 }
 0x1b4   : > { %v5307_v41 = vsel %vm14102_vm11, %v5302_v35, %v5306_v34  ;;  %v5312_v12 = vrot.slane %v5311_v47, 4  ;;  %v5733_v53 = vor.u32 %v5732_v19, %v5729_v21  ;;  %v3092_v22 = vadd.f32 %v12403_v63, %v14849_v4  ;;  %v5576_v4 = vld [vmem:[#allocation3 + $0x54] sm:$0xf]  ;;  %v5577_v35 = vld [vmem:[#allocation3 + $0x58] sm:$0xf]  ;;  %v13088_v21 = vld [vmem:[#allocation2 + $0xc0] sm:$0xff]  }
 0x1b5   : > { %v5742_v20 = vrot.slane %v5740_v32, 4  ;;  %v5748_v52 = vrot.slane %v5746_v43, 5  ;;  %v15098_v18 = vadd.f32 %v3292_v45, %v3089_v48  ;;  %v3090_v34 = vadd.f32 %v2989_v31, %v14854_v16  ;;  %12597 = vmatmul.mubr.msk.bf16.gmra.mxu1 %vm1429_vm2, %v13085_v28  ;;  %v5578_v19 = vld [vmem:[#allocation3 + $0x5c] sm:$0x1]  ;;  %v13089_v48 = vld [vmem:[#allocation3 + $0xc0] sm:$0xff]  }
 0x1b6   : > { %v5319_v11 = vshrl.u32 %v5144_v1, 16  ;;  %v5317_v24 = vsel %vm14102_vm11, %v5312_v12, %v5316_v37  ;;  %v5734_v40 = vrot.slane %v5733_v53, 4  ;;  %v15104_v61 = vadd.f32 %v12439_v49, %v3092_v22  ;;  %12600 = vmatprep.mubr.msk.bf16.mxu1 %vm1429_vm2, %v13087_v8  ;;  %v12406_v8 = vpop.f32.mrf.mxu0 }
 0x1b7   : > { %v5743_v36 = vor.u32 %v5742_v20, %v5738_v7  ;;  %v15107_v63 = vcombine.low %v5307_v41, %v5317_v24  ;;  %v15109_v45 = vadd.f32 %v3295_v17, %v3090_v34  ;;  %v5322_v16 = vshll.u32 %v5144_v1, 16  ;;  %v5147_v41 = vld [vmem:[#allocation2 + $0x60] sm:$0xf]  ;;  %v5149_v17 = vld [vmem:[#allocation2 + $0x68] sm:$0x1] }
 0x1b8   : > { %v5321_v30 = vrot.slane %v5319_v11, 4  ;;  %v5739_v28 = vsel %vm14102_vm11, %v5734_v40, %v5738_v7  ;;  %v5328_v50 = vshll.u32 %v5145_v56, 16  ;;  %v5332_v47 = vshrl.u32 %v5145_v56, 16 }
 0x1b9   : > { %v5744_v37 = vrot.slane %v5743_v36, 4  ;;  %v5324_v32 = vrot.slane %v5322_v16, 5  ;;  %v5338_v49 = vshll.u32 %v5146_v15, 16  ;;  %v5751_v31 = vshrl.u32 %v5576_v4, 16  ;;  %12565 = vmatmul.mubr.msk.bf16.gmra.mxu0 %vm1429_vm2, %v13088_v21  ;;  %v5148_v36 = vld [vmem:[#allocation2 + $0x64] sm:$0xf] }
 0x1ba   : > { %v5754_v43 = vshll.u32 %v5576_v4, 16  ;;  %v5330_v1 = vrot.slane %v5328_v50, 5  ;;  %v5334_v53 = vrot.slane %v5332_v47, 4  ;;  %v5760_v20 = vshll.u32 %v5577_v35, 16  ;;  %12608 = vmatprep.mubr.msk.bf16.mxu0 %vm1429_vm2, %v14993_v57 }
 0x1bb   : > { %v5749_v12 = vsel %vm14102_vm11, %v5744_v37, %v5748_v52  ;;  %v5325_v7 = vor.u32 %v5324_v32, %v5321_v30  ;;  %v5340_v34 = vrot.slane %v5338_v49, 5  ;;  %v5753_v11 = vrot.slane %v5751_v31, 4  ;;  %v3002_v30 = vpop.f32.mrf.mxu0 }
 0x1bc   : > { %v15115_v22 = vcombine.low %v5739_v28, %v5749_v12  ;;  %v5335_v56 = vor.u32 %v5334_v53, %v5330_v1  ;;  %v5756_v15 = vrot.slane %v5754_v43, 5  ;;  %v5762_v24 = vrot.slane %v5760_v20, 5  ;;  %v12442_v28 = vpop.f32.mrf.mxu1 }
 0x1bd   : > { %v5764_v40 = vshrl.u32 %v5577_v35, 16  ;;  %v5326_v52 = vrot.slane %v5325_v7, 4  ;;  %v5770_v4 = vshll.u32 %v5578_v19, 16  ;;  %v3095_v16 = vadd.f32 %v12406_v8, %v14858_v2  ;;  %12601 = vmatmul.mubr.msk.bf16.gmra.mxu1 %vm1429_vm2, %v13089_v48  ;;  %v5579_v2 = vld [vmem:[#allocation3 + $0x60] sm:$0xf] }
 0x1be   : > { %v5343_v37 = vshrl.u32 %v5147_v41, 16  ;;  %v5336_v50 = vrot.slane %v5335_v56, 4  ;;  %v5757_v21 = vor.u32 %v5756_v15, %v5753_v11  ;;  %v5346_v32 = vshll.u32 %v5147_v41, 16  ;;  %12644 = vmatprep.mubr.msk.bf16.mxu1 %vm1429_vm2, %v15000_v44  ;;  %v5580_v44 = vld [vmem:[#allocation3 + $0x64] sm:$0xf]  ;;  %v3308_v7 = vpop.f32.mrf.mxu1  ;;  %v12407_v11 = vpop.f32.mrf.mxu0 }
 0x1bf   : > { %v5766_v47 = vrot.slane %v5764_v40, 4  ;;  %v5331_v35 = vsel %vm14102_vm11, %v5326_v52, %v5330_v1  ;;  %v5772_v57 = vrot.slane %v5770_v4, 5  ;;  %v15126_v49 = vadd.f32 %v12442_v28, %v3095_v16  ;;  %v13092_v1 = vld [vmem:[%s17879_s2 + $0x50] sm:$0xff]   ;;  %v5581_v40 = vld [vmem:[#allocation3 + $0x68] sm:$0x1] }
 0x1c0   : > { %v5345_v19 = vrot.slane %v5343_v37, 4  ;;  %v5341_v31 = vsel %vm14102_vm11, %v5336_v50, %v5340_v34  ;;  %v5758_v43 = vrot.slane %v5757_v21, 4  ;;  %v5348_v48 = vrot.slane %v5346_v32, 5  ;;  %v13093_v4 = vld [vmem:[%s17880_s3 + $0x50] sm:$0xff]   ;;  %v5150_v37 = vld [vmem:[#allocation2 + $0x6c] sm:$0xf] }
 0x1c1   : > { %v5767_v8 = vor.u32 %v5766_v47, %v5762_v24  ;;  %v15130_v12 = vcombine.low %v5331_v35, %v5341_v31  ;;  %v5352_v41 = vshll.u32 %v5148_v36, 16  ;;  %v5356_v53 = vshrl.u32 %v5148_v36, 16  ;;  %12609 = vmatmul.mubr.msk.bf16.vlgmr.msra.gmra.mxu0 %vm1429_vm2, %v15017_v6  ;;  %v13094_v32 = vld [vmem:[%s17879_s2 + $0x68] sm:$0xff]   ;;  %v12443_v31 = vpop.f32.mrf.mxu1 }
 0x1c2   : > { %v5362_v20 = vshll.u32 %v5149_v17, 16  ;;  %v5763_v56 = vsel %vm14102_vm11, %v5758_v43, %v5762_v24  ;;  %v5349_v34 = vor.u32 %v5348_v48, %v5345_v19  ;;  %v5775_v52 = vshrl.u32 %v5579_v2, 16  ;;  %12677 = vmatpush3.bf16.msra.mxu0 %v14968_v59  ;;  %12612 = vmatprep.mubr.msk.bf16.mxu0 %vm1429_vm2, %v15034_v60  ;;  %v3005_v43 = vpop.f32.mrf.mxu0 }
 0x1c3   : > { %v5768_v15 = vrot.slane %v5767_v8, 4  ;;  %v5354_v36 = vrot.slane %v5352_v41, 5  ;;  %v5358_v17 = vrot.slane %v5356_v53, 4  ;;  %v5778_v28 = vshll.u32 %v5579_v2, 16  ;;  %v5151_v41 = vld [vmem:[#allocation2 + $0x70] sm:$0xf]  ;;  %12678 = vmatprep.subr.bf16.mxu0 %v13092_v1 }
 0x1c4   : > { %v5364_v16 = vrot.slane %v5362_v20, 5  ;;  %v5350_v24 = vrot.slane %v5349_v34, 4  ;;  %v5777_v21 = vrot.slane %v5775_v52, 4  ;;  %v5784_v47 = vshll.u32 %v5580_v44, 16  ;;  %v5152_v34 = vld [vmem:[#allocation2 + $0x74] sm:$0x1] }
 0x1c5   : > { %v5773_v50 = vsel %vm14102_vm11, %v5768_v15, %v5772_v57  ;;  %v5359_v19 = vor.u32 %v5358_v17, %v5354_v36  ;;  %v5780_v2 = vrot.slane %v5778_v28, 5  ;;  %v5788_v6 = vshrl.u32 %v5580_v44, 16  ;;  %12645 = vmatmul.mubr.msk.bf16.vlgmr.msra.gmra.mxu1 %vm1429_vm2, %v15026_v29  ;;  %v5583_v28 = vld [vmem:[#allocation3 + $0x70] sm:$0xf] }
 0x1c6   : > { %v15150_v35 = vcombine.low %v5763_v56, %v5773_v50  ;;  %v5355_v57 = vsel %vm14102_vm11, %v5350_v24, %v5354_v36  ;;  %v5786_v8 = vrot.slane %v5784_v47, 5  ;;  %v5794_v48 = vshll.u32 %v5581_v40, 16  ;;  %12713 = vmatpush3.bf16.msra.mxu1 %v14991_v26  ;;  %12648 = vmatprep.mubr.msk.bf16.mxu1 %vm1429_vm2, %v15045_v27  ;;  %v5584_v47 = vld [vmem:[#allocation3 + $0x74] sm:$0x1] }
 0x1c7   : > { %v3093_v59 = vadd.f32 %v3002_v30, %v14862_v58  ;;  %v5360_v60 = vrot.slane %v5359_v19, 4  ;;  %v5781_v53 = vor.u32 %v5780_v2, %v5777_v21  ;;  %v5790_v20 = vrot.slane %v5788_v6, 4  ;;  %12714 = vmatprep.subr.bf16.mxu1 %v13093_v4  ;;  %v13095_v58 = vld [vmem:[%s17880_s3 + $0x68] sm:$0xff]   ;;  %12679 = vmatpush3.bf16.msra.mxu0 %v13092_v1  ;;  %v5153_v19 = vld [vmem:[#allocation2 + $0x78] sm:$0xf] }
 0x1c8   : > { %v3096_v44 = vadd.f32 %v12407_v11, %v14866_v23  ;;  %v5796_v29 = vrot.slane %v5794_v48, 5  ;;  %v3094_v15 = vadd.f32 %v3005_v43, %v14871_v54  ;;  %v5367_v40 = vshrl.u32 %v5150_v37, 16  ;;  %v3311_v23 = vpop.f32.mrf.mxu1  ;;  %v5582_v11 = vld [vmem:[#allocation3 + $0x6c] sm:$0xf]  ;;  %12748 = vmatprep.subr.bf16.mxu0 %v13094_v32  ;;  %v12410_v43 = vpop.f32.mrf.mxu0 }
 0x1c9   : > { %v15161_v56 = vadd.f32 %v3308_v7, %v3093_v59  ;;  %v5365_v26 = vsel %vm14102_vm11, %v5360_v60, %v5364_v16  ;;  %v5782_v27 = vrot.slane %v5781_v53, 4  ;;  %v5791_v30 = vor.u32 %v5790_v20, %v5786_v8  ;;  %12613 = vmatmul.mubr.msk.bf16.gmra.mxu0 %vm1429_vm2, %v15060_v25 }
 0x1ca   : > { %v15169_v52 = vadd.f32 %v12443_v31, %v3096_v44  ;;  %v15171_v7 = vcombine.low %v5355_v57, %v5365_v26  ;;  %v15173_v54 = vadd.f32 %v3311_v23, %v3094_v15  ;;  %v5369_v36 = vrot.slane %v5367_v40, 4  ;;  %12715 = vmatpush3.bf16.msra.mxu1 %v13093_v4  ;;  %12616 = vmatprep.mubr.msk.bf16.mxu0 %vm1429_vm2, %v15083_v10  ;;  %v5154_v44 = vld [vmem:[#allocation2 + $0x7c] sm:$0xf] }
 0x1cb   : > { %v5370_v17 = vshll.u32 %v5150_v37, 16  ;;  %v5787_v50 = vsel %vm14102_vm11, %v5782_v27, %v5786_v8  ;;  %v5792_v24 = vrot.slane %v5791_v30, 4  ;;  %v5376_v16 = vshll.u32 %v5151_v41, 16  ;;  %12784 = vmatprep.subr.bf16.mxu1 %v13095_v58  ;;  %v5155_v30 = vld [vmem:[#allocation2 + $0x80] sm:$0x1] }
 0x1cc   : > { %v5380_v21 = vshrl.u32 %v5151_v41, 16  ;;  %v5386_v2 = vshll.u32 %v5152_v34, 16  ;;  %v5799_v6 = vshrl.u32 %v5582_v11, 16  ;;  %v5802_v31 = vshll.u32 %v5582_v11, 16  ;;  %v12446_v41 = vpop.f32.mrf.mxu1 }
 0x1cd   : > { %v5372_v1 = vrot.slane %v5370_v17, 5  ;;  %v5797_v37 = vsel %vm14102_vm11, %v5792_v24, %v5796_v29  ;;  %v5378_v32 = vrot.slane %v5376_v16, 5  ;;  %v5808_v8 = vshll.u32 %v5583_v28, 16  ;;  %12649 = vmatmul.mubr.msk.bf16.gmra.mxu1 %vm1429_vm2, %v15071_v3  ;;  %v3018_v3 = vpop.f32.mrf.mxu0 }
 0x1ce   : > { %v5382_v57 = vrot.slane %v5380_v21, 4  ;;  %v15185_v4 = vcombine.low %v5787_v50, %v5797_v37  ;;  %v5388_v48 = vrot.slane %v5386_v2, 5  ;;  %v5801_v59 = vrot.slane %v5799_v6, 4  ;;  %12652 = vmatprep.mubr.msk.bf16.mxu1 %vm1429_vm2, %v15090_v62  ;;  %v3324_v50 = vpop.f32.mrf.mxu1 }
 0x1cf   : > { %v5373_v25 = vor.u32 %v5372_v1, %v5369_v36  ;;  %v5804_v10 = vrot.slane %v5802_v31, 5  ;;  %v5810_v53 = vrot.slane %v5808_v8, 5  ;;  %v5812_v20 = vshrl.u32 %v5583_v28, 16  ;;  %v5585_v28 = vld [vmem:[#allocation3 + $0x78] sm:$0xf] }
 0x1d0   : > { %v5383_v60 = vor.u32 %v5382_v57, %v5378_v32  ;;  %v5818_v15 = vshll.u32 %v5584_v47, 16  ;;  %v3099_v34 = vadd.f32 %v12410_v43, %v14875_v42  ;;  %v5391_v40 = vshrl.u32 %v5153_v19, 16  ;;  %v5586_v47 = vld [vmem:[#allocation3 + $0x7c] sm:$0xf]  ;;  %v5587_v31 = vld [vmem:[#allocation3 + $0x80] sm:$0x1]  ;;  %v12411_v43 = vpop.f32.mrf.mxu0 }
 0x1d1   : > { %v5374_v29 = vrot.slane %v5373_v25, 4  ;;  %v5805_v26 = vor.u32 %v5804_v10, %v5801_v59  ;;  %v5814_v27 = vrot.slane %v5812_v20, 4  ;;  %v5394_v23 = vshll.u32 %v5153_v19, 16  ;;  %12617 = vmatmul.mubr.msk.bf16.gmra.mxu0 %vm1429_vm2, %v15107_v63 }
 0x1d2   : > { %v5384_v58 = vrot.slane %v5383_v60, 4  ;;  %v5820_v62 = vrot.slane %v5818_v15, 5  ;;  %v15192_v36 = vadd.f32 %v12446_v41, %v3099_v34  ;;  %v5393_v17 = vrot.slane %v5391_v40, 4  ;;  %12620 = vmatprep.mubr.msk.bf16.mxu0 %vm1429_vm2, %v15130_v12  ;;  %v12447_v41 = vpop.f32.mrf.mxu1  ;;  %v5156_v60 = vld [vmem:[#allocation2 + $0x84] sm:$0xf] }
 0x1d3   : > { %v5379_v11 = vsel %vm14102_vm11, %v5374_v29, %v5378_v32  ;;  %v5806_v42 = vrot.slane %v5805_v26, 4  ;;  %v5815_v16 = vor.u32 %v5814_v27, %v5810_v53  ;;  %v5396_v21 = vrot.slane %v5394_v23, 5 }
 0x1d4   : > { %v5389_v24 = vsel %vm14102_vm11, %v5384_v58, %v5388_v48  ;;  %v5400_v1 = vshll.u32 %v5154_v44, 16  ;;  %v5404_v2 = vshrl.u32 %v5154_v44, 16  ;;  %v5410_v6 = vshll.u32 %v5155_v30, 16 }
 0x1d5   : > { %v11552_v19 = vcombine.low %v5379_v11, %v5389_v24  ;;  %v5811_v37 = vsel %vm14102_vm11, %v5806_v42, %v5810_v53  ;;  %v5816_v32 = vrot.slane %v5815_v16, 4  ;;  %v5397_v57 = vor.u32 %v5396_v21, %v5393_v17  ;;  %12653 = vmatmul.mubr.msk.bf16.gmra.mxu1 %vm1429_vm2, %v15115_v22  ;;  %v3021_v22 = vpop.f32.mrf.mxu0  ;;  %v5157_v17 = vld [vmem:[#allocation2 + $0x88] sm:$0xf]  ;;  %v5158_v16 = vld [vmem:[#allocation2 + $0x8c] sm:$0x1] }
 0x1d6   : > { %v5823_v8 = vshrl.u32 %v5585_v28, 16  ;;  %v5402_v25 = vrot.slane %v5400_v1, 5  ;;  %v5406_v63 = vrot.slane %v5404_v2, 4  ;;  %v5412_v48 = vrot.slane %v5410_v6, 5  ;;  %12656 = vmatprep.mubr.msk.bf16.mxu1 %vm1429_vm2, %v15150_v35  ;;  %v5589_v2 = vld [vmem:[#allocation3 + $0x88] sm:$0xf] }
 0x1d7   : > { %v5826_v59 = vshll.u32 %v5585_v28, 16  ;;  %v5821_v12 = vsel %vm14102_vm11, %v5816_v32, %v5820_v62  ;;  %v5398_v10 = vrot.slane %v5397_v57, 4  ;;  %v5832_v20 = vshll.u32 %v5586_v47, 16  ;;  %v3327_v62 = vpop.f32.mrf.mxu1  ;;  %v12414_v6 = vpop.f32.mrf.mxu0 }
 0x1d8   : > { %v5825_v53 = vrot.slane %v5823_v8, 4  ;;  %v11590_v44 = vcombine.low %v5811_v37, %v5821_v12  ;;  %v5407_v29 = vor.u32 %v5406_v63, %v5402_v25  ;;  %v5836_v34 = vshrl.u32 %v5586_v47, 16  ;;  %v5590_v8 = vld [vmem:[#allocation3 + $0x8c] sm:$0x1]  ;;  %v5159_v63 = vld [vmem:[#allocation2 + $0x90] sm:$0xf] }
 0x1d9   : > { %v5828_v15 = vrot.slane %v5826_v59, 5  ;;  %v5403_v40 = vsel %vm14102_vm11, %v5398_v10, %v5402_v25  ;;  %v5834_v58 = vrot.slane %v5832_v20, 5  ;;  %v5842_v26 = vshll.u32 %v5587_v31, 16  ;;  %12621 = vmatmul.mubr.msk.bf16.gmra.mxu0 %vm1429_vm2, %v15171_v7  ;;  %v12450_v25 = vpop.f32.mrf.mxu1 }
 0x1da   : > { %v3097_v27 = vadd.f32 %v3018_v3, %v14879_v14  ;;  %v5408_v30 = vrot.slane %v5407_v29, 4  ;;  %v5838_v23 = vrot.slane %v5836_v34, 4  ;;  %v3100_v11 = vadd.f32 %v12411_v43, %v14883_v51  ;;  %v5588_v51 = vld [vmem:[#allocation3 + $0x84] sm:$0xf]  ;;  %12624 = vmatprep.mubr.msk.bf16.mxu0 %vm1429_vm2, %v11552_v19 }
 0x1db   : > { %v5829_v35 = vor.u32 %v5828_v15, %v5825_v53  ;;  %v5844_v28 = vrot.slane %v5842_v26, 5  ;;  %v3098_v42 = vadd.f32 %v3021_v22, %v14890_v9  ;;  %v5415_v21 = vshrl.u32 %v5156_v60, 16  ;;  %v3034_v53 = vpop.f32.mrf.mxu0 }
 0x1dc   : > { %v15212_v24 = vadd.f32 %v3324_v50, %v3097_v27  ;;  %v5413_v14 = vsel %vm14102_vm11, %v5408_v30, %v5412_v48  ;;  %v5839_v47 = vor.u32 %v5838_v23, %v5834_v58  ;;  %v15219_v1 = vadd.f32 %v12447_v41, %v3100_v11  ;;  %v3340_v27 = vpop.f32.mrf.mxu1  ;;  %v5161_v11 = vld [vmem:[#allocation2 + $0x98] sm:$0x1] }
 0x1dd   : > { %v5830_v3 = vrot.slane %v5829_v35, 4  ;;  %v11553_v50 = vcombine.low %v5403_v40, %v5413_v14  ;;  %v15222_v31 = vadd.f32 %v3327_v62, %v3098_v42  ;;  %v5417_v9 = vrot.slane %v5415_v21, 4  ;;  %12657 = vmatmul.mubr.msk.bf16.gmra.mxu1 %vm1429_vm2, %v15185_v4  ;;  %v5591_v21 = vld [vmem:[#allocation3 + $0x90] sm:$0xf]  ;;  %v12415_v14 = vpop.f32.mrf.mxu0 }
 0x1de   : > { %v5418_v43 = vshll.u32 %v5156_v60, 16  ;;  %v5840_v37 = vrot.slane %v5839_v47, 4  ;;  %v5424_v32 = vshll.u32 %v5157_v17, 16  ;;  %v5428_v57 = vshrl.u32 %v5157_v17, 16  ;;  %12660 = vmatprep.mubr.msk.bf16.mxu1 %vm1429_vm2, %v11590_v44  ;;  %v5160_v44 = vld [vmem:[#allocation2 + $0x94] sm:$0xf] }
 0x1df   : > { %v5835_v7 = vsel %vm14102_vm11, %v5830_v3, %v5834_v58  ;;  %v5434_v48 = vshll.u32 %v5158_v16, 16  ;;  %v5847_v59 = vshrl.u32 %v5588_v51, 16  ;;  %v5850_v41 = vshll.u32 %v5588_v51, 16 }
 0x1e0   : > { %v5420_v19 = vrot.slane %v5418_v43, 5  ;;  %v5845_v60 = vsel %vm14102_vm11, %v5840_v37, %v5844_v28  ;;  %v5426_v12 = vrot.slane %v5424_v32, 5  ;;  %v5430_v4 = vrot.slane %v5428_v57, 4 }
 0x1e1   : > { %v5856_v10 = vshll.u32 %v5589_v2, 16  ;;  %v11591_v20 = vcombine.low %v5835_v7, %v5845_v60  ;;  %v5436_v15 = vrot.slane %v5434_v48, 5  ;;  %v5849_v34 = vrot.slane %v5847_v59, 4  ;;  %12625 = vmatmul.mubr.msk.bf16.gmra.mxu0 %vm1429_vm2, %v11553_v50  ;;  %v12451_v7 = vpop.f32.mrf.mxu1  ;;  %v3037_v59 = vpop.f32.mrf.mxu0 }
 0x1e2   : > { %v5421_v29 = vor.u32 %v5420_v19, %v5417_v9  ;;  %v5431_v22 = vor.u32 %v5430_v4, %v5426_v12  ;;  %v5852_v40 = vrot.slane %v5850_v41, 5  ;;  %v5860_v26 = vshrl.u32 %v5589_v2, 16  ;;  %v5592_v9 = vld [vmem:[#allocation3 + $0x94] sm:$0xf]  ;;  %v5593_v4 = vld [vmem:[#allocation3 + $0x98] sm:$0x1] }
 0x1e3   : > { %v5858_v58 = vrot.slane %v5856_v10, 5  ;;  %v5866_v35 = vshll.u32 %v5590_v8, 16  ;;  %v3103_v23 = vadd.f32 %v12414_v6, %v14894_v0  ;;  %v5439_v62 = vshrl.u32 %v5159_v63, 16 }
 0x1e4   : > { %v5422_v30 = vrot.slane %v5421_v29, 4  ;;  %v5432_v17 = vrot.slane %v5431_v22, 4  ;;  %v5853_v28 = vor.u32 %v5852_v40, %v5849_v34  ;;  %v5862_v42 = vrot.slane %v5860_v26, 4  ;;  %v3343_v22 = vpop.f32.mrf.mxu1 }
 0x1e5   : > { %v5442_v16 = vshll.u32 %v5159_v63, 16  ;;  %v5868_v47 = vrot.slane %v5866_v35, 5  ;;  %v15235_v51 = vadd.f32 %v12450_v25, %v3103_v23  ;;  %v5441_v2 = vrot.slane %v5439_v62, 4  ;;  %12661 = vmatmul.mubr.msk.bf16.gmra.mxu1 %vm1429_vm2, %v11591_v20 }
 0x1e6   : > { %v5427_v3 = vsel %vm14102_vm11, %v5422_v30, %v5426_v12  ;;  %v5437_v0 = vsel %vm14102_vm11, %v5432_v17, %v5436_v15  ;;  %v5854_v6 = vrot.slane %v5853_v28, 4  ;;  %v5863_v50 = vor.u32 %v5862_v42, %v5858_v58  ;;  %v5162_v30 = vld [vmem:[#allocation2 + $0x9c] sm:$0xf]  ;;  %v12418_v17 = vpop.f32.mrf.mxu0 }
 0x1e7   : > { %v5444_v43 = vrot.slane %v5442_v16, 5  ;;  %v11554_v37 = vcombine.low %v5427_v3, %v5437_v0  ;;  %v5448_v32 = vshll.u32 %v5160_v44, 16  ;;  %v5452_v57 = vshrl.u32 %v5160_v44, 16 }
 0x1e8   : > { %v5458_v8 = vshll.u32 %v5161_v11, 16  ;;  %v5859_v63 = vsel %vm14102_vm11, %v5854_v6, %v5858_v58  ;;  %v5864_v25 = vrot.slane %v5863_v50, 4  ;;  %v5871_v48 = vshrl.u32 %v5591_v21, 16 }
 0x1e9   : > { %v5445_v19 = vor.u32 %v5444_v43, %v5441_v2  ;;  %12628 = vmatprep.mubr.msk.bf16.mxu0 %vm1429_vm2, %v11554_v37  ;;  %v5450_v41 = vrot.slane %v5448_v32, 5  ;;  %v5454_v60 = vrot.slane %v5452_v57, 4  ;;  %v5874_v10 = vshll.u32 %v5591_v21, 16  ;;  %v12454_v6 = vpop.f32.mrf.mxu1  ;;  %v5164_v37 = vld [vmem:[#allocation2 + $0xa4] sm:$0x1] }
 0x1ea   : > { %v5460_v12 = vrot.slane %v5458_v8, 5  ;;  %v5869_v20 = vsel %vm14102_vm11, %v5864_v25, %v5868_v47  ;;  %v5873_v15 = vrot.slane %v5871_v48, 4  ;;  %v5880_v34 = vshll.u32 %v5592_v9, 16  ;;  %v5594_v32 = vld [vmem:[#allocation3 + $0x9c] sm:$0xf] }
 0x1eb   : > { %v5446_v29 = vrot.slane %v5445_v19, 4  ;;  %v11592_v40 = vcombine.low %v5859_v63, %v5869_v20  ;;  %v5455_v58 = vor.u32 %v5454_v60, %v5450_v41  ;;  %v5876_v26 = vrot.slane %v5874_v10, 5  ;;  %v15259_v63 = vpop.f32.mrf.mxu0 }
 0x1ec   : > { %v5884_v44 = vshrl.u32 %v5592_v9, 16  ;;  %v5882_v23 = vrot.slane %v5880_v34, 5  ;;  %v5890_v11 = vshll.u32 %v5593_v4, 16  ;;  %v3101_v62 = vadd.f32 %v3034_v53, %v14898_v46  ;;  %v5163_v9 = vld [vmem:[#allocation2 + $0xa0] sm:$0xf]  ;;  %v15264_v4 = vpop.f32.mrf.mxu1 }
 0x1ed   : > { %v5451_v35 = vsel %vm14102_vm11, %v5446_v29, %v5450_v41  ;;  %12664 = vmatprep.mubr.msk.bf16.mxu1 %vm1429_vm2, %v11592_v40  ;;  %v5456_v28 = vrot.slane %v5455_v58, 4  ;;  %v5877_v42 = vor.u32 %v5876_v26, %v5873_v15  ;;  %v3104_v21 = vadd.f32 %v12415_v14, %v14902_v33  ;;  %v5595_v14 = vld [vmem:[#allocation3 + $0xa0] sm:$0xf]  ;;  %v5596_v41 = vld [vmem:[#allocation3 + $0xa4] sm:$0x1] }
 0x1ee   : > { %v5886_v16 = vrot.slane %v5884_v44, 4  ;;  %v5892_v3 = vrot.slane %v5890_v11, 5  ;;  %v15250_v47 = vadd.f32 %v3340_v27, %v3101_v62  ;;  %v3102_v2 = vadd.f32 %v3037_v59, %v14909_v13  ;;  %v5165_v34 = vld [vmem:[#allocation2 + $0xa8] sm:$0xf]  ;;  %v15268_v44 = vpop.f32.mrf.mxu0 }
 0x1ef   : > { %v5463_v0 = vshrl.u32 %v5162_v30, 16  ;;  %v5461_v50 = vsel %vm14102_vm11, %v5456_v28, %v5460_v12  ;;  %v5878_v46 = vrot.slane %v5877_v42, 4  ;;  %v15255_v43 = vadd.f32 %v12451_v7, %v3104_v21 }
 0x1f0   : > { %v5887_v53 = vor.u32 %v5886_v16, %v5882_v23  ;;  %v11555_v57 = vcombine.low %v5451_v35, %v5461_v50  ;;  %v15257_v8 = vadd.f32 %v3343_v22, %v3102_v2  ;;  %v5466_v27 = vshll.u32 %v5162_v30, 16  ;;  %v5166_v16 = vld [vmem:[#allocation2 + $0xac] sm:$0xf]  ;;  %v5167_v50 = vld [vmem:[#allocation2 + $0xb0] sm:$0x1] }
 0x1f1   : > { %v5465_v33 = vrot.slane %v5463_v0, 4  ;;  %v5883_v13 = vsel %vm14102_vm11, %v5878_v46, %v5882_v23  ;;  %v5472_v19 = vshll.u32 %v5163_v9, 16  ;;  %v5476_v48 = vshrl.u32 %v5163_v9, 16 }
 0x1f2   : > { %v5888_v25 = vrot.slane %v5887_v53, 4  ;;  %12629 = vmatmul.mubr.msk.bf16.gmra.mxu0 %vm1429_vm2, %v11555_v57  ;;  %v5468_v7 = vrot.slane %v5466_v27, 5  ;;  %v5482_v59 = vshll.u32 %v5164_v37, 16  ;;  %v5895_v60 = vshrl.u32 %v5594_v32, 16  ;;  %v3053_v27 = vpop.f32.mrf.mxu0 }
 0x1f3   : > { %v5898_v12 = vshll.u32 %v5594_v32, 16  ;;  %v5474_v20 = vrot.slane %v5472_v19, 5  ;;  %v5478_v29 = vrot.slane %v5476_v48, 4  ;;  %v5904_v15 = vshll.u32 %v5595_v14, 16 }
 0x1f4   : > { %v5893_v10 = vsel %vm14102_vm11, %v5888_v25, %v5892_v3  ;;  %v5469_v40 = vor.u32 %v5468_v7, %v5465_v33  ;;  %v5484_v58 = vrot.slane %v5482_v59, 5  ;;  %v5897_v26 = vrot.slane %v5895_v60, 4  ;;  %v15272_v3 = vpop.f32.mrf.mxu1  ;;  %v5597_v33 = vld [vmem:[#allocation3 + $0xa8] sm:$0xf]  ;;  %v5598_v59 = vld [vmem:[#allocation3 + $0xac] sm:$0xf] }
 0x1f5   : > { %v11593_v22 = vcombine.low %v5883_v13, %v5893_v10  ;;  %v5479_v30 = vor.u32 %v5478_v29, %v5474_v20  ;;  %v5900_v35 = vrot.slane %v5898_v12, 5  ;;  %v5906_v23 = vrot.slane %v5904_v15, 5 }
 0x1f6   : > { %v5908_v11 = vshrl.u32 %v5595_v14, 16  ;;  %v5470_v62 = vrot.slane %v5469_v40, 4  ;;  %v5914_v28 = vshll.u32 %v5596_v41, 16  ;;  %v3107_v42 = vadd.f32 %v12418_v17, %v14913_v39  ;;  %v3359_v41 = vpop.f32.mrf.mxu1 }
 0x1f7   : > { %12665 = vmatmul.mubr.msk.bf16.gmra.mxu1 %vm1429_vm2, %v11593_v22  ;;  %v5487_v21 = vshrl.u32 %v5165_v34, 16  ;;  %v5480_v2 = vrot.slane %v5479_v30, 4  ;;  %v5901_v9 = vor.u32 %v5900_v35, %v5897_v26  ;;  %v5490_v46 = vshll.u32 %v5165_v34, 16  ;;  %v5599_v34 = vld [vmem:[#allocation3 + $0xb0] sm:$0x1] }
 0x1f8   : > { %v5910_v0 = vrot.slane %v5908_v11, 4  ;;  %v5475_v53 = vsel %vm14102_vm11, %v5470_v62, %v5474_v20  ;;  %v5916_v37 = vrot.slane %v5914_v28, 5  ;;  %v15276_v32 = vadd.f32 %v12454_v6, %v3107_v42  ;;  %v15283_v40 = vpop.f32.mrf.mxu0  ;;  %v5168_v42 = vld [vmem:[#allocation2 + $0xb4] sm:$0xf] }
 0x1f9   : > { %v5489_v57 = vrot.slane %v5487_v21, 4  ;;  %v5485_v39 = vsel %vm14102_vm11, %v5480_v2, %v5484_v58  ;;  %v5902_v17 = vrot.slane %v5901_v9, 4  ;;  %v5492_v13 = vrot.slane %v5490_v46, 5 }
 0x1fa   : > { %v5911_v14 = vor.u32 %v5910_v0, %v5906_v23  ;;  %v11556_v25 = vcombine.low %v5475_v53, %v5485_v39  ;;  %v5496_v19 = vshll.u32 %v5166_v16, 16  ;;  %v5500_v48 = vshrl.u32 %v5166_v16, 16  ;;  %v15289_v21 = vpop.f32.mrf.mxu0 }
 0x1fb   : > { %v5506_v7 = vshll.u32 %v5167_v50, 16  ;;  %v5907_v60 = vsel %vm14102_vm11, %v5902_v17, %v5906_v23  ;;  %v5493_v12 = vor.u32 %v5492_v13, %v5489_v57  ;;  %v5919_v10 = vshrl.u32 %v5597_v33, 16  ;;  %v18029_v13 = vld [vmem:[#allocation17_spill] sm:$0xff] }
 0x1fc   : > { %v5912_v6 = vrot.slane %v5911_v14, 4  ;;  %12632 = vmatprep.mubr.msk.bf16.mxu0 %vm1429_vm2, %v11556_v25  ;;  %v5498_v20 = vrot.slane %v5496_v19, 5  ;;  %v5502_v29 = vrot.slane %v5500_v48, 4  ;;  %v5922_v22 = vshll.u32 %v5597_v33, 16  ;;  %v15287_v16 = vpop.f32.mrf.mxu1  ;;  %v15300_v39 = vpop.f32.mrf.mxu0  ;;  %v5169_v19 = vld [vmem:[#allocation2 + $0xb8] sm:$0xf] }
 0x1fd   : > { %v5508_v15 = vrot.slane %v5506_v7, 5  ;;  %v5494_v26 = vrot.slane %v5493_v12, 4  ;;  %v5921_v30 = vrot.slane %v5919_v10, 4  ;;  %v5928_v35 = vshll.u32 %v5598_v59, 16 }
 0x1fe   : > { %v5917_v58 = vsel %vm14102_vm11, %v5912_v6, %v5916_v37  ;;  %v5503_v23 = vor.u32 %v5502_v29, %v5498_v20  ;;  %v5924_v62 = vrot.slane %v5922_v22, 5  ;;  %v5932_v28 = vshrl.u32 %v5598_v59, 16  ;;  %v15298_v33 = vpop.f32.mrf.mxu1  ;;  %v15315_v6 = vpop.f32.mrf.mxu0 }
 0x1ff   : > { %v11594_v11 = vcombine.low %v5907_v60, %v5917_v58  ;;  %v5499_v2 = vsel %vm14102_vm11, %v5494_v26, %v5498_v20  ;;  %v5930_v9 = vrot.slane %v5928_v35, 5  ;;  %v5938_v0 = vshll.u32 %v5599_v34, 16  ;;  %v15319_v20 = vld [vmem:[#allocation3 + $0xb8] sm:$0xf] }
 0x200   : > { %v3105_v50 = vadd.f32 %v15259_v63, %v14917_v5  ;;  %v5504_v46 = vrot.slane %v5503_v23, 4  ;;  %v5925_v53 = vor.u32 %v5924_v62, %v5921_v30  ;;  %v5934_v37 = vrot.slane %v5932_v28, 4  ;;  %v15313_v60 = vpop.f32.mrf.mxu1  ;;  %18033 = vst [vmem:[#allocation34_spill] sm:$0xff] %v15319_v20  ;;  %v15325_v58 = vpop.f32.mrf.mxu0  ;;  %v15329_v30 = vld [vmem:[#allocation3 + $0xbc] sm:$0x1] }
 0x201   : > { %12668 = vmatprep.mubr.msk.bf16.mxu1 %vm1429_vm2, %v11594_v11  ;;  %v3108_v57 = vadd.f32 %v15268_v44, %v14920_v38  ;;  %v5940_v17 = vrot.slane %v5938_v0, 5  ;;  %v3106_v25 = vadd.f32 %v3053_v27, %v18029_v13  ;;  %v5511_v5 = vshrl.u32 %v5168_v42, 16  ;;  %v15311_v38 = vld [vmem:[#allocation2 + $0xbc] sm:$0x1]  ;;  %v5600_v44 = vld [vmem:[#allocation3 + $0xb4] sm:$0xf] }
 0x202   : > { %v15303_v14 = vadd.f32 %v15264_v4, %v3105_v50  ;;  %v5509_v63 = vsel %vm14102_vm11, %v5504_v46, %v5508_v15  ;;  %v5926_v48 = vrot.slane %v5925_v53, 4  ;;  %v5935_v7 = vor.u32 %v5934_v37, %v5930_v9  ;;  %18031 = vst [vmem:[#allocation32_spill] sm:$0xff] %v15311_v38  ;;  %v15323_v22 = vpop.f32.mrf.mxu1  ;;  %18034 = vst [vmem:[#allocation35_spill] sm:$0xff] %v15329_v30  ;;  %v15336_v0 = vpop.f32.mrf.mxu0 }
 0x203   : > { %v15309_v59 = vadd.f32 %v15272_v3, %v3108_v57  ;;  %v11557_v4 = vcombine.low %v5499_v2, %v5509_v63  ;;  %v15317_v12 = vadd.f32 %v3359_v41, %v3106_v25  ;;  %v5513_v27 = vrot.slane %v5511_v5, 4  ;;  %v797_v2 = vld [vmem:[#allocation2 + $0xc8] sm:$0x1]  ;;  %v5171_v57 = vld [vmem:[#allocation2 + $0xc0] sm:$0xf] }
 0x204   : > { %18028 = vst [vmem:[#allocation30_spill] sm:$0xff] %v15303_v14  ;;  %v5514_v10 = vshll.u32 %v5168_v42, 16  ;;  %v5931_v29 = vsel %vm14102_vm11, %v5926_v48, %v5930_v9  ;;  %v5936_v15 = vrot.slane %v5935_v7, 4  ;;  %v5520_v3 = vshll.u32 %v5169_v19, 16  ;;  %v15334_v9 = vpop.f32.mrf.mxu1  ;;  %v15341_v63 = vpop.f32.mrf.mxu0 }
 0x205   : > { %18030 = vst [vmem:[#allocation31_spill] sm:$0xff] %v15309_v59  ;;  %18032 = vst [vmem:[#allocation33_spill] sm:$0xff] %v15317_v12  ;;  %v5524_v34 = vshrl.u32 %v5169_v19, 16  ;;  %12633 = vmatmul.mubr.msk.bf16.gmra.mxu0 %vm1429_vm2, %v11557_v4  ;;  %v5530_v41 = vshll.u32 %v15311_v38, 16  ;;  %v5943_v35 = vshrl.u32 %v5600_v44, 16  ;;  %v5946_v11 = vshll.u32 %v5600_v44, 16 }
 0x206   : > { %v5516_v26 = vrot.slane %v5514_v10, 5  ;;  %v5941_v23 = vsel %vm14102_vm11, %v5936_v15, %v5940_v17  ;;  %v5522_v62 = vrot.slane %v5520_v3, 5  ;;  %v5952_v42 = vshll.u32 %v15319_v20, 16  ;;  %v15339_v17 = vpop.f32.mrf.mxu1  ;;  %v18035_v44 = vld [vmem:[#allocation12_spill] sm:$0xff] }
 0x207   : > { %v5526_v28 = vrot.slane %v5524_v34, 4  ;;  %v11595_v50 = vcombine.low %v5931_v29, %v5941_v23  ;;  %v5532_v53 = vrot.slane %v5530_v41, 5  ;;  %v5945_v37 = vrot.slane %v5943_v35, 4  ;;  %v15351_v41 = vld [vmem:[#allocation2 + $0xc4] sm:$0xf]  ;;  %v15355_v23 = vpop.f32.mrf.mxu0 }
 0x208   : > { %v5517_v46 = vor.u32 %v5516_v26, %v5513_v27  ;;  %v5948_v25 = vrot.slane %v5946_v11, 5  ;;  %v5954_v19 = vrot.slane %v5952_v42, 5  ;;  %v5956_v5 = vshrl.u32 %v15319_v20, 16  ;;  %v18036_v27 = vld [vmem:[#allocation14_spill] sm:$0xff]  ;;  %18039 = vst [vmem:[#allocation36_spill] sm:$0xff] %v15351_v41  ;;  %v15353_v11 = vpop.f32.mrf.mxu1 }
 0x209   : > { %v5527_v13 = vor.u32 %v5526_v28, %v5522_v62  ;;  %12669 = vmatmul.mubr.msk.bf16.gmra.mxu1 %vm1429_vm2, %v11595_v50  ;;  %v5962_v7 = vshll.u32 %v15329_v30, 16  ;;  %v3111_v4 = vadd.f32 %v15283_v40, %v18035_v44  ;;  %v18037_v10 = vrot.slane %v18036_v27, 4  ;;  %v15366_v27 = vpop.f32.mrf.mxu0 }
 0x20a   : > { %v5518_v48 = vrot.slane %v5517_v46, 4  ;;  %v5949_v34 = vor.u32 %v5948_v25, %v5945_v37  ;;  %v5958_v26 = vrot.slane %v5956_v5, 4  ;;  %v5535_v35 = vshrl.u32 %v5171_v57, 16  ;;  %v5603_v46 = vld [vmem:[#allocation3 + $0xc0] sm:$0xf]  ;;  %v15364_v44 = vpop.f32.mrf.mxu1 }
 0x20b   : > { %v798_v15 = vsel %vm13733_vm8, %v18037_v10, %v797_v2  ;;  %v5528_v3 = vrot.slane %v5527_v13, 4  ;;  %v5964_v40 = vrot.slane %v5962_v7, 5  ;;  %v15360_v42 = vadd.f32 %v15287_v16, %v3111_v4  ;;  %v1262_v2 = vld [vmem:[#allocation3 + $0xc8] sm:$0x1] }
 0x20c   : > { %799 = vst [vmem:[#allocation2 + $0xc8] sm:$0x1] %v798_v15  ;;  %v5523_v28 = vsel %vm14102_vm11, %v5518_v48, %v5522_v62  ;;  %v5538_v50 = vshll.u32 %v5171_v57, 16  ;;  %v5950_v13 = vrot.slane %v5949_v34, 4  ;;  %v5959_v25 = vor.u32 %v5958_v26, %v5954_v19  ;;  %v15370_v48 = vld [vmem:[#allocation3 + $0xc4] sm:$0xf]  ;;  %v15378_v26 = vpop.f32.mrf.mxu1 }
 0x20d   : > { %18040 = vst [vmem:[#allocation7_spill] sm:$0xff] %v15360_v42  ;;  %v5533_v37 = vsel %vm14102_vm11, %v5528_v3, %v5532_v53  ;;  %v5537_v5 = vrot.slane %v5535_v35, 4  ;;  %v5544_v62 = vshll.u32 %v15351_v41, 16  ;;  %v5548_v16 = vshrl.u32 %v15351_v41, 16  ;;  %18041 = vst [vmem:[#allocation8_spill] sm:$0xff] %v15370_v48  ;;  %v18042_v53 = vld [vmem:[#allocation16_spill] sm:$0xff]  ;;  %v15380_v35 = vpop.f32.mrf.mxu0 }
 0x20e   : > { %v11558_v10 = vcombine.low %v5523_v28, %v5533_v37  ;;  %v5540_v15 = vrot.slane %v5538_v50, 5  ;;  %v5955_v57 = vsel %vm14102_vm11, %v5950_v13, %v5954_v19  ;;  %v5960_v7 = vrot.slane %v5959_v25, 4 }
 0x20f   : > { %v18043_v4 = vrot.slane %v18042_v53, 4  ;;  %v5967_v34 = vshrl.u32 %v5603_v46, 16  ;;  %v5546_v50 = vrot.slane %v5544_v62, 5  ;;  %v5550_v37 = vrot.slane %v5548_v16, 4  ;;  %v15389_v53 = vpop.f32.mrf.mxu0  ;;  %v18045_v16 = vld [vmem:[#allocation13_spill] sm:$0xff] }
 0x210   : > { %12636 = vmatprep.mubr.msk.bf16.mxu0 %vm1429_vm2, %v11558_v10  ;;  %v5541_v28 = vor.u32 %v5540_v15, %v5537_v5  ;;  %v5970_v41 = vshll.u32 %v5603_v46, 16  ;;  %v5965_v19 = vsel %vm14102_vm11, %v5960_v7, %v5964_v40  ;;  %v5976_v25 = vshll.u32 %v15370_v48, 16 }
 0x211   : > { %v1263_v3 = vsel %vm13733_vm8, %v18043_v4, %v1262_v2  ;;  %v5969_v13 = vrot.slane %v5967_v34, 4  ;;  %v5980_v29 = vshrl.u32 %v15370_v48, 16  ;;  %v15387_v2 = vpop.f32.mrf.mxu1  ;;  %v11596_v4 = vcombine.low %v5955_v57, %v5965_v19  ;;  %v15400_v48 = vpop.f32.mrf.mxu0 }
 0x212   : > { %1264 = vst [vmem:[#allocation3 + $0xc8] sm:$0x1] %v1263_v3  ;;  %v5542_v5 = vrot.slane %v5541_v28, 4  ;;  %v5551_v10 = vor.u32 %v5550_v37, %v5546_v50  ;;  %v5972_v15 = vrot.slane %v5970_v41, 5  ;;  %v15394_v62 = vrot.slane %v5976_v25, 5  ;;  %v18046_v37 = vld [vmem:[#allocation15_spill] sm:$0xff] }
 0x213   : > { %v15391_v42 = vld [vmem:[#allocation2 + $0xc8] sm:$0x1]  ;;  %v5982_v40 = vrot.slane %v5980_v29, 4  ;;  %v3109_v7 = vadd.f32 %v15289_v21, %v18045_v16  ;;  %v6602_v3 = vld [vmem:[#allocation2 + $0xc] sm:$0xe]  ;;  %v15398_v34 = vpop.f32.mrf.mxu1  ;;  %12672 = vmatprep.mubr.msk.bf16.mxu1 %vm1429_vm2, %v11596_v4  ;;  %v3112_v19 = vadd.f32 %v15300_v39, %v18046_v37  ;;  %v15415_v4 = vpop.f32.mrf.mxu0 }
 0x214   : > { %18044 = vst [vmem:[#allocation20_spill] sm:$0xff] %v15391_v42  ;;  %v5554_v46 = vshll.u32 %v15391_v42, 16  ;;  %v5547_v57 = vsel %vm14102_vm11, %v5542_v5, %v5546_v50  ;;  %v5552_v28 = vrot.slane %v5551_v10, 4  ;;  %v5973_v41 = vor.u32 %v5972_v15, %v5969_v13  ;;  %v18048_v16 = vld [vmem:[#allocation18_spill] sm:$0xff]  ;;  %v13196_v5 = vld [vmem:[#allocation2 + $0x10] sm:$0xf] }
 0x215   : > { %v5983_v29 = vor.u32 %v5982_v40, %v15394_v62  ;;  %v15409_v21 = vadd.f32 %v15298_v33, %v3109_v7  ;;  %v3110_v42 = vadd.f32 %v15315_v6, %v18048_v16  ;;  %v15413_v30 = vpop.f32.mrf.mxu1  ;;  %v15418_v50 = vadd.f32 %v15313_v60, %v3112_v19  ;;  %v6778_v10 = vld [vmem:[#allocation3 + $0xc] sm:$0xe]  ;;  %v13197_v40 = vld [vmem:[#allocation2 + $0x14] sm:$0x1]  ;;  %v6603_v37 = vld [vmem:[#allocation2 + $0x18] sm:$0xe]  ;;  %v15429_v60 = vpop.f32.mrf.mxu0 }
 0x216   : > { %v5556_v25 = vrot.slane %v5554_v46, 5  ;;  %v5974_v20 = vrot.slane %v5973_v41, 4  ;;  %v11616_v13 = vrot.slane %v6602_v3, 9  ;;  %v6668_v39 = vrot.slane %v13196_v5, 5 }
 0x217   : > { %18047 = vst [vmem:[#allocation22_spill] sm:$0xff] %v15409_v21  ;;  %18049 = vst [vmem:[#allocation17_spill] sm:$0xff] %v15418_v50  ;;  %v5984_v46 = vrot.slane %v5983_v29, 4  ;;  %v15425_v6 = vadd.f32 %v15323_v22, %v3110_v42  ;;  %v6671_v7 = vrot.slane %v13197_v40, 5  ;;  %v15427_v41 = vpop.f32.mrf.mxu1  ;;  %v11632_v22 = vrot.slane %v6778_v10, 9  ;;  %v15439_v21 = vpop.f32.mrf.mxu0 }
 0x218   : > { %v5557_v15 = vsel %vm14102_vm11, %v5552_v28, %v5556_v25  ;;  %v5979_v19 = vsel %vm14102_vm11, %v5974_v20, %v15394_v62  ;;  %v6669_v29 = vsel %vm14486_vm14, %v11616_v13, %v6668_v39  ;;  %v6670_v16 = vrot.slane %v6668_v39, 4  ;;  %v13198_v42 = vld [vmem:[#allocation3 + $0x10] sm:$0xf]  ;;  %v13199_v40 = vld [vmem:[#allocation3 + $0x14] sm:$0x1] }
 0x219   : > { %v15422_v33 = vld [vmem:[#allocation3 + $0xc8] sm:$0x1]  ;;  %18051 = vst [vmem:[#allocation14_spill] sm:$0xff] %v15425_v6  ;;  %v11559_v3 = vcombine.low %v5547_v57, %v5557_v15  ;;  %v6844_v5 = vrot.slane %v13198_v42, 5  ;;  %v6847_v6 = vrot.slane %v13199_v40, 5  ;;  %v15437_v50 = vpop.f32.mrf.mxu1  ;;  %v18053_v15 = vld [vmem:[#allocation19_spill] sm:$0xff] }
 0x21a   : > { %18050 = vst [vmem:[#allocation12_spill] sm:$0xff] %v15422_v33  ;;  %v5986_v28 = vshll.u32 %v15422_v33, 16  ;;  %v4050_v20 = vadd.f32 %v15325_v58, %v18053_v15  ;;  %v11617_v62 = vrot.slane %v6603_v37, 9  ;;  %v13200_v33 = vld [vmem:[#allocation2 + $0x1c] sm:$0xf]  ;;  %v6672_v39 = vsel %vm14486_vm14, %v6670_v16, %v6671_v7 }
 0x21b   : > { %12637 = vmatmul.mubr.msk.bf16.gmra.mxu0 %vm1429_vm2, %v11559_v3  ;;  %v6675_v38 = vrot.slane %v13200_v33, 5  ;;  %v6779_v13 = vld [vmem:[#allocation3 + $0x18] sm:$0xe]  ;;  %v6845_v10 = vsel %vm14486_vm14, %v11632_v22, %v6844_v5  ;;  %v6846_v42 = vrot.slane %v6844_v5, 4  ;;  %v13201_v40 = vld [vmem:[#allocation2 + $0x20] sm:$0x1]  ;;  %v15448_v59 = vpop.f32.mrf.mxu1  ;;  %v15450_v3 = vpop.f32.mrf.mxu0  ;;  %v11652_v37 = vcombine.low %v6669_v29, %v6672_v39 }
 0x21c   : > { %v5988_v57 = vrot.slane %v5986_v28, 5  ;;  %v6678_v12 = vrot.slane %v13201_v40, 5  ;;  %v15455_v33 = vadd.f32 %v15334_v9, %v4050_v20  ;;  %v6604_v28 = vld [vmem:[#allocation2 + $0x24] sm:$0xe]  ;;  %v11633_v15 = vrot.slane %v6779_v13, 9  ;;  %v18057_v13 = vld [vmem:[#allocation24_spill] sm:$0xff] }
 0x21d   : > { %v6676_v7 = vsel %vm14486_vm14, %v11617_v62, %v6675_v38  ;;  %v6848_v22 = vsel %vm14486_vm14, %v6846_v42, %v6847_v6  ;;  %v6677_v5 = vrot.slane %v6675_v38, 4  ;;  %v15461_v40 = vpop.f32.mrf.mxu1  ;;  %v15463_v14 = vpop.f32.mrf.mxu0  ;;  %12680 = vmatprep.mubr.msk.bf16.mxu0 %vm1429_vm2, %v11652_v37  ;;  %v13202_v29 = vld [vmem:[#allocation3 + $0x1c] sm:$0xf]  ;;  %v18055_v39 = vld [vmem:[#allocation21_spill] sm:$0xff]  ;;  %v4049_v42 = vadd.f32 %v15355_v23, %v18057_v13 }
 0x21e   : > { %v5989_v58 = vsel %vm14102_vm11, %v5984_v46, %v5988_v57  ;;  %18054 = vst [vmem:[#allocation9_spill] sm:$0xff] %v15455_v33  ;;  %v11690_v46 = vcombine.low %v6845_v10, %v6848_v22  ;;  %v6851_v9 = vrot.slane %v13202_v29, 5  ;;  %v13203_v57 = vld [vmem:[#allocation3 + $0x20] sm:$0x1]  ;;  %v4048_v62 = vadd.f32 %v15336_v0, %v18055_v39  ;;  %v18056_v6 = vld [vmem:[#allocation23_spill] sm:$0xff] }
 0x21f   : > { %v11597_v16 = vcombine.low %v5979_v19, %v5989_v58  ;;  %v6854_v20 = vrot.slane %v13203_v57, 5  ;;  %v6679_v38 = vsel %vm14486_vm14, %v6677_v5, %v6678_v12  ;;  %v4051_v19 = vadd.f32 %v15341_v63, %v18056_v6  ;;  %v6780_v10 = vld [vmem:[#allocation3 + $0x24] sm:$0xe]  ;;  %v15475_v37 = vpop.f32.mrf.mxu1  ;;  %v15477_v22 = vpop.f32.mrf.mxu0  ;;  %v13096_v63 = vld [vmem:[%s17879_s2 + $0x60] sm:$0xff]   ;;  %v13204_v5 = vld [vmem:[#allocation2 + $0x28] sm:$0xf] }
 0x220   : > { %v11618_v58 = vrot.slane %v6604_v28, 9  ;;  %v11653_v0 = vcombine.low %v6676_v7, %v6679_v38  ;;  %v6853_v29 = vrot.slane %v6851_v9, 4  ;;  %v15483_v12 = vadd.f32 %v15339_v17, %v4048_v62  ;;  %v13205_v7 = vld [vmem:[#allocation2 + $0x2c] sm:$0x1]  ;;  %v6605_v39 = vld [vmem:[#allocation2 + $0x30] sm:$0xe] }
 0x221   : > { %12673 = vmatmul.mubr.msk.bf16.gmra.mxu1 %vm1429_vm2, %v11597_v16  ;;  %v6852_v16 = vsel %vm14486_vm14, %v11633_v15, %v6851_v9  ;;  %v15489_v23 = vadd.f32 %v15353_v11, %v4051_v19  ;;  %v15492_v28 = vadd.f32 %v15364_v44, %v4049_v42  ;;  %v6685_v57 = vrot.slane %v13205_v7, 5  ;;  %v15494_v15 = vpop.f32.mrf.mxu1  ;;  %v15496_v9 = vpop.f32.mrf.mxu0  ;;  %v13206_v11 = vld [vmem:[#allocation3 + $0x28] sm:$0xf]  ;;  %v13207_v6 = vld [vmem:[#allocation3 + $0x2c] sm:$0x1]  ;;  %v13208_v42 = vld [vmem:[%s17879_s2 + $0x68] sm:$0xff]  }
 0x222   : > { %12716 = vmatprep.mubr.msk.bf16.mxu1 %vm1429_vm2, %v11690_v46  ;;  %18058 = vst [vmem:[#allocation16_spill] sm:$0xff] %v15483_v12  ;;  %v6682_v46 = vrot.slane %v13204_v5, 5  ;;  %v6855_v17 = vsel %vm14486_vm14, %v6853_v29, %v6854_v20  ;;  %v11634_v62 = vrot.slane %v6780_v10, 9  ;;  %v6858_v38 = vrot.slane %v13206_v11, 5  ;;  %v6781_v19 = vld [vmem:[#allocation3 + $0x30] sm:$0xe] }
 0x223   : > { %18059 = vst [vmem:[#allocation13_spill] sm:$0xff] %v15489_v23  ;;  %18060 = vst [vmem:[#allocation15_spill] sm:$0xff] %v15492_v28  ;;  %12681 = vmatmul.mubr.msk.bf16.vlgmr.msra.gmra.mxu0 %vm1429_vm2, %v11653_v0  ;;  %v6861_v44 = vrot.slane %v13207_v6, 5  ;;  %v11691_v13 = vcombine.low %v6852_v16, %v6855_v17  ;;  %v18061_v0 = vld [vmem:[#allocation25_spill] sm:$0xff]  ;;  %v15508_v20 = vpop.f32.mrf.mxu1  ;;  %v15510_v10 = vpop.f32.mrf.mxu0  ;;  %v11619_v17 = vrot.slane %v6605_v39, 9 }
 0x224   : > { %12749 = vmatpush3.bf16.msra.mxu0 %v13208_v42  ;;  %v6683_v5 = vsel %vm14486_vm14, %v11618_v58, %v6682_v46  ;;  %v6684_v7 = vrot.slane %v6682_v46, 4  ;;  %v4054_v55 = vadd.f32 %v15366_v27, %v18061_v0  ;;  %v6859_v29 = vsel %vm14486_vm14, %v11634_v62, %v6858_v38  ;;  %v13209_v11 = vld [vmem:[#allocation2 + $0x34] sm:$0xf]  ;;  %v13210_v46 = vld [vmem:[#allocation2 + $0x38] sm:$0x1]  ;;  %v13097_v39 = vld [vmem:[%s17880_s3 + $0x60] sm:$0xff]  }
 0x225   : > { %v6860_v16 = vrot.slane %v6858_v38, 4  ;;  %v6689_v6 = vrot.slane %v13209_v11, 5  ;;  %12750 = vmatprep.subr.bf16.mxu0 %v13096_v63  ;;  %v6692_v27 = vrot.slane %v13210_v46, 5  ;;  %v11635_v0 = vrot.slane %v6781_v19, 9  ;;  %v6606_v28 = vld [vmem:[#allocation2 + $0x3c] sm:$0xe]  ;;  %v15519_v23 = vpop.f32.mrf.mxu1  ;;  %v15521_v12 = vpop.f32.mrf.mxu0 }
 0x226   : > { %v6686_v42 = vsel %vm14486_vm14, %v6684_v7, %v6685_v57  ;;  %v15517_v58 = vadd.f32 %v15378_v26, %v4054_v55  ;;  %v15533_v57 = vld [vmem:[%s17879_s2 + $0x78] sm:$0xff]   ;;  %v13211_v7 = vld [vmem:[#allocation3 + $0x34] sm:$0xf]  ;;  %v13212_v46 = vld [vmem:[#allocation3 + $0x38] sm:$0x1] }
 0x227   : > { %v11654_v62 = vcombine.low %v6683_v5, %v6686_v42  ;;  %v6862_v38 = vsel %vm14486_vm14, %v6860_v16, %v6861_v44  ;;  %v6690_v55 = vsel %vm14486_vm14, %v11619_v17, %v6689_v6  ;;  %v6691_v26 = vrot.slane %v6689_v6, 4  ;;  %18063 = vst [vmem:[#allocation19_spill] sm:$0xff] %v15533_v57  ;;  %v18064_v5 = vld [vmem:[#allocation26_spill] sm:$0xff]  ;;  %v15538_v44 = vpop.f32.mrf.mxu1  ;;  %v15540_v16 = vpop.f32.mrf.mxu0 }
 0x228   : > { %18062 = vst [vmem:[#allocation18_spill] sm:$0xff] %v15517_v58  ;;  %v11692_v19 = vcombine.low %v6859_v29, %v6862_v38  ;;  %v6865_v11 = vrot.slane %v13211_v7, 5  ;;  %v6868_v58 = vrot.slane %v13212_v46, 5  ;;  %v4052_v42 = vadd.f32 %v15380_v35, %v18064_v5  ;;  %12751 = vmatpush3.bf16.msra.mxu0 %v13096_v63  ;;  %v13213_v17 = vld [vmem:[%s17880_s3 + $0x68] sm:$0xff]   ;;  %v18065_v29 = vld [vmem:[#allocation27_spill] sm:$0xff]  ;;  %v18066_v38 = vld [vmem:[#allocation28_spill] sm:$0xff] }
 0x229   : > { %12717 = vmatmul.mubr.msk.bf16.vlgmr.msra.gmra.mxu1 %vm1429_vm2, %v11691_v13  ;;  %12684 = vmatprep.mubr.msk.bf16.mxu0 %vm1429_vm2, %v11654_v62  ;;  %v6693_v13 = vsel %vm14486_vm14, %v6691_v26, %v6692_v27  ;;  %v4055_v6 = vadd.f32 %v15389_v53, %v18065_v29  ;;  %v4053_v35 = vadd.f32 %v15400_v48, %v18066_v38  ;;  %v11620_v7 = vrot.slane %v6606_v28, 9  ;;  %v6782_v63 = vld [vmem:[#allocation3 + $0x3c] sm:$0xe]  ;;  %v15558_v27 = vpop.f32.mrf.mxu1  ;;  %v15560_v26 = vpop.f32.mrf.mxu0  ;;  %v15565_v48 = vld [vmem:[%s17880_s3 + $0x78] sm:$0xff]  }
 0x22a   : > { %12785 = vmatpush3.bf16.msra.mxu1 %v13213_v17  ;;  %12720 = vmatprep.mubr.msk.bf16.mxu1 %vm1429_vm2, %v11692_v19  ;;  %v11655_v46 = vcombine.low %v6690_v55, %v6693_v13  ;;  %v6866_v5 = vsel %vm14486_vm14, %v11635_v0, %v6865_v11  ;;  %v6867_v17 = vrot.slane %v6865_v11, 4  ;;  %v15556_v62 = vadd.f32 %v15387_v2, %v4052_v42  ;;  %v13214_v0 = vld [vmem:[#allocation2 + $0x40] sm:$0xf]  ;;  %v13215_v2 = vld [vmem:[#allocation2 + $0x44] sm:$0x1] }
 0x22b   : > { %12786 = vmatprep.subr.bf16.mxu1 %v13097_v39  ;;  %18068 = vst [vmem:[#allocation23_spill] sm:$0xff] %v15565_v48  ;;  %v15568_v53 = vadd.f32 %v15398_v34, %v4055_v6  ;;  %v15571_v28 = vadd.f32 %v15413_v30, %v4053_v35  ;;  %v6696_v55 = vrot.slane %v13214_v0, 5  ;;  %v6699_v19 = vrot.slane %v13215_v2, 5  ;;  %v6607_v11 = vld [vmem:[#allocation2 + $0x48] sm:$0xe]  ;;  %12820 = vmatprep.subr.bf16.mxu0 %v15533_v57  ;;  %v15577_v30 = vpop.f32.mrf.mxu1  ;;  %v15579_v35 = vpop.f32.mrf.mxu0 }
 0x22c   : > { %18067 = vst [vmem:[#allocation21_spill] sm:$0xff] %v15556_v62  ;;  %12685 = vmatmul.mubr.msk.bf16.gmra.mxu0 %vm1429_vm2, %v11655_v46  ;;  %v6869_v42 = vsel %vm14486_vm14, %v6867_v17, %v6868_v58  ;;  %v11636_v13 = vrot.slane %v6782_v63, 9  ;;  %v13216_v29 = vld [vmem:[#allocation3 + $0x40] sm:$0xf]  ;;  %v13217_v34 = vld [vmem:[#allocation3 + $0x44] sm:$0x1] }
 0x22d   : > { %18069 = vst [vmem:[#allocation24_spill] sm:$0xff] %v15568_v53  ;;  %18070 = vst [vmem:[#allocation25_spill] sm:$0xff] %v15571_v28  ;;  %v6872_v38 = vrot.slane %v13216_v29, 5  ;;  %v6875_v6 = vrot.slane %v13217_v34, 5  ;;  %v6783_v53 = vld [vmem:[#allocation3 + $0x48] sm:$0xe]  ;;  %v11693_v0 = vcombine.low %v6866_v5, %v6869_v42  ;;  %v6697_v2 = vsel %vm14486_vm14, %v11620_v7, %v6696_v55  ;;  %v15587_v62 = vpop.f32.mrf.mxu1  ;;  %v15589_v33 = vpop.f32.mrf.mxu0 }
 0x22e   : > { %v6698_v57 = vrot.slane %v6696_v55, 4  ;;  %v18071_v28 = vld [vmem:[#allocation29_spill] sm:$0xff]  ;;  %12787 = vmatpush3.bf16.msra.mxu1 %v13097_v39  ;;  %v11621_v17 = vrot.slane %v6607_v11, 9  ;;  %v13218_v29 = vld [vmem:[#allocation2 + $0x4c] sm:$0xf] }
 0x22f   : > { %v4058_v46 = vadd.f32 %v15415_v4, %v18071_v28  ;;  %v6873_v58 = vsel %vm14486_vm14, %v11636_v13, %v6872_v38  ;;  %v6874_v63 = vrot.slane %v6872_v38, 4  ;;  %v6703_v34 = vrot.slane %v13218_v29, 5  ;;  %12856 = vmatprep.subr.bf16.mxu1 %v15565_v48  ;;  %v13219_v4 = vld [vmem:[#allocation2 + $0x50] sm:$0x1]  ;;  %v6608_v55 = vld [vmem:[#allocation2 + $0x54] sm:$0xe]  ;;  %v15602_v29 = vpop.f32.mrf.mxu1 }
 0x230   : > { %v6700_v7 = vsel %vm14486_vm14, %v6698_v57, %v6699_v19  ;;  %v6706_v39 = vrot.slane %v13219_v4, 5  ;;  %v11637_v28 = vrot.slane %v6783_v53, 9  ;;  %v15604_v57 = vpop.f32.mrf.mxu0  ;;  %v13220_v19 = vld [vmem:[#allocation3 + $0x4c] sm:$0xf]  ;;  %v13221_v4 = vld [vmem:[#allocation3 + $0x50] sm:$0x1] }
 0x231   : > { %v15595_v5 = vadd.f32 %v15427_v41, %v4058_v46  ;;  %12721 = vmatmul.mubr.msk.bf16.gmra.mxu1 %vm1429_vm2, %v11693_v0  ;;  %v11656_v11 = vcombine.low %v6697_v2, %v6700_v7  ;;  %v6876_v42 = vsel %vm14486_vm14, %v6874_v63, %v6875_v6  ;;  %v6704_v13 = vsel %vm14486_vm14, %v11621_v17, %v6703_v34 }
 0x232   : > { %v6705_v38 = vrot.slane %v6703_v34, 4  ;;  %v11694_v41 = vcombine.low %v6873_v58, %v6876_v42  ;;  %v6879_v46 = vrot.slane %v13220_v19, 5  ;;  %v6882_v53 = vrot.slane %v13221_v4, 5  ;;  %v6784_v58 = vld [vmem:[#allocation3 + $0x54] sm:$0xe]  ;;  %v15615_v34 = vpop.f32.mrf.mxu1  ;;  %v15617_v7 = vpop.f32.mrf.mxu0 }
 0x233   : > { %v4056_v0 = vadd.f32 %v15429_v60, %v15098_v18  ;;  %12688 = vmatprep.mubr.msk.bf16.mxu0 %vm1429_vm2, %v11656_v11  ;;  %v4059_v2 = vadd.f32 %v15439_v21, %v15104_v61  ;;  %v4057_v63 = vadd.f32 %v15450_v3, %v15109_v45  ;;  %v11622_v17 = vrot.slane %v6608_v55, 9  ;;  %v13222_v21 = vld [vmem:[#allocation2 + $0x58] sm:$0xf]  ;;  %v13223_v55 = vld [vmem:[#allocation2 + $0x5c] sm:$0x1] }
 0x234   : > { %v6707_v6 = vsel %vm14486_vm14, %v6705_v38, %v6706_v39  ;;  %12724 = vmatprep.mubr.msk.bf16.mxu1 %vm1429_vm2, %v11694_v41  ;;  %v6880_v60 = vsel %vm14486_vm14, %v11637_v28, %v6879_v46  ;;  %v6881_v11 = vrot.slane %v6879_v46, 4  ;;  %v6710_v3 = vrot.slane %v13222_v21, 5  ;;  %v6609_v38 = vld [vmem:[#allocation2 + $0x60] sm:$0xe]  ;;  %v15631_v41 = vpop.f32.mrf.mxu1  ;;  %v13225_v46 = vld [vmem:[#allocation3 + $0x5c] sm:$0x1] }
 0x235   : > { %v11657_v18 = vcombine.low %v6704_v13, %v6707_v6  ;;  %v15623_v39 = vadd.f32 %v15437_v50, %v4056_v0  ;;  %v15626_v61 = vadd.f32 %v15448_v59, %v4059_v2  ;;  %v15629_v45 = vadd.f32 %v15461_v40, %v4057_v63  ;;  %v15633_v13 = vpop.f32.mrf.mxu0  ;;  %v13224_v59 = vld [vmem:[#allocation3 + $0x58] sm:$0xf]  ;;  %v6785_v4 = vld [vmem:[#allocation3 + $0x60] sm:$0xe] }
 0x236   : > { %v6713_v42 = vrot.slane %v13223_v55, 5  ;;  %v6883_v50 = vsel %vm14486_vm14, %v6881_v11, %v6882_v53  ;;  %v11638_v28 = vrot.slane %v6784_v58, 9  ;;  %v6886_v19 = vrot.slane %v13224_v59, 5  ;;  %v15642_v21 = vpop.f32.mrf.mxu1  ;;  %v13226_v55 = vld [vmem:[#allocation2 + $0x64] sm:$0xf] }
 0x237   : > { %12689 = vmatmul.mubr.msk.bf16.gmra.mxu0 %vm1429_vm2, %v11657_v18  ;;  %v6889_v40 = vrot.slane %v13225_v46, 5  ;;  %v11695_v0 = vcombine.low %v6880_v60, %v6883_v50  ;;  %v6711_v6 = vsel %vm14486_vm14, %v11622_v17, %v6710_v3  ;;  %v6712_v2 = vrot.slane %v6710_v3, 4  ;;  %v15644_v18 = vpop.f32.mrf.mxu0  ;;  %v6610_v50 = vld [vmem:[#allocation2 + $0x6c] sm:$0xe] }
 0x238   : > { %v4062_v63 = vadd.f32 %v15463_v14, %v15126_v49  ;;  %v6887_v53 = vsel %vm14486_vm14, %v11638_v28, %v6886_v19  ;;  %v6888_v58 = vrot.slane %v6886_v19, 4  ;;  %v11623_v11 = vrot.slane %v6609_v38, 9  ;;  %v13227_v49 = vld [vmem:[#allocation2 + $0x68] sm:$0x1]  ;;  %v15654_v46 = vpop.f32.mrf.mxu1 }
 0x239   : > { %v6717_v59 = vrot.slane %v13226_v55, 5  ;;  %12725 = vmatmul.mubr.msk.bf16.gmra.mxu1 %vm1429_vm2, %v11695_v0  ;;  %v6714_v17 = vsel %vm14486_vm14, %v6712_v2, %v6713_v42  ;;  %v6720_v14 = vrot.slane %v13227_v49, 5  ;;  %v11639_v3 = vrot.slane %v6785_v4, 9  ;;  %v15656_v48 = vpop.f32.mrf.mxu0  ;;  %v13228_v2 = vld [vmem:[#allocation3 + $0x64] sm:$0xf] }
 0x23a   : > { %v15652_v60 = vadd.f32 %v15475_v37, %v4062_v63  ;;  %v11658_v28 = vcombine.low %v6711_v6, %v6714_v17  ;;  %v6890_v38 = vsel %vm14486_vm14, %v6888_v58, %v6889_v40  ;;  %v6893_v37 = vrot.slane %v13228_v2, 5  ;;  %v13229_v63 = vld [vmem:[#allocation3 + $0x68] sm:$0x1]  ;;  %v15664_v49 = vpop.f32.mrf.mxu1  ;;  %v13233_v2 = vld [vmem:[#allocation3 + $0x74] sm:$0x1] }
 0x23b   : > { %v6718_v19 = vsel %vm14486_vm14, %v11623_v11, %v6717_v59  ;;  %v6719_v0 = vrot.slane %v6717_v59, 4  ;;  %v11696_v42 = vcombine.low %v6887_v53, %v6890_v38  ;;  %v6896_v55 = vrot.slane %v13229_v63, 5  ;;  %v6786_v11 = vld [vmem:[#allocation3 + $0x6c] sm:$0xe] }
 0x23c   : > { %18072 = vst [vmem:[#allocation26_spill] sm:$0xff] %v15652_v60  ;;  %v4060_v4 = vadd.f32 %v15477_v22, %v15161_v56  ;;  %v15666_v60 = vpop.f32.mrf.mxu0  ;;  %12692 = vmatprep.mubr.msk.bf16.mxu0 %vm1429_vm2, %v11658_v28  ;;  %v4063_v6 = vadd.f32 %v15496_v9, %v15169_v52  ;;  %v4061_v53 = vadd.f32 %v15510_v10, %v15173_v54  ;;  %v11624_v58 = vrot.slane %v6610_v50, 9  ;;  %v15681_v28 = vpop.f32.mrf.mxu1  ;;  %v13230_v9 = vld [vmem:[#allocation2 + $0x70] sm:$0xf]  ;;  %v13231_v50 = vld [vmem:[#allocation2 + $0x74] sm:$0x1] }
 0x23d   : > { %v6721_v40 = vsel %vm14486_vm14, %v6719_v0, %v6720_v14  ;;  %12728 = vmatprep.mubr.msk.bf16.mxu1 %vm1429_vm2, %v11696_v42  ;;  %v6894_v22 = vsel %vm14486_vm14, %v11639_v3, %v6893_v37  ;;  %v6895_v59 = vrot.slane %v6893_v37, 4  ;;  %v6724_v10 = vrot.slane %v13230_v9, 5  ;;  %v13232_v0 = vld [vmem:[#allocation3 + $0x70] sm:$0xf] }
 0x23e   : > { %v11659_v56 = vcombine.low %v6718_v19, %v6721_v40  ;;  %v15679_v17 = vadd.f32 %v15494_v15, %v4060_v4  ;;  %v15683_v14 = vpop.f32.mrf.mxu0  ;;  %v15686_v52 = vadd.f32 %v15508_v20, %v4063_v6  ;;  %v15689_v54 = vadd.f32 %v15519_v23, %v4061_v53  ;;  %v6611_v19 = vld [vmem:[#allocation2 + $0x78] sm:$0xe]  ;;  %v6787_v20 = vld [vmem:[#allocation3 + $0x78] sm:$0xe]  ;;  %v15694_v63 = vpop.f32.mrf.mxu1 }
 0x23f   : > { %v6727_v38 = vrot.slane %v13231_v50, 5  ;;  %v6897_v15 = vsel %vm14486_vm14, %v6895_v59, %v6896_v55  ;;  %v11640_v3 = vrot.slane %v6786_v11, 9  ;;  %v6900_v42 = vrot.slane %v13232_v0, 5  ;;  %v13234_v59 = vld [vmem:[#allocation2 + $0x7c] sm:$0xf] }
 0x240   : > { %12693 = vmatmul.mubr.msk.bf16.gmra.mxu0 %vm1429_vm2, %v11659_v56  ;;  %v6903_v37 = vrot.slane %v13233_v2, 5  ;;  %v15696_v23 = vpop.f32.mrf.mxu0  ;;  %v11697_v4 = vcombine.low %v6894_v22, %v6897_v15  ;;  %v6725_v40 = vsel %vm14486_vm14, %v11624_v58, %v6724_v10  ;;  %v6726_v6 = vrot.slane %v6724_v10, 4  ;;  %v15704_v50 = vpop.f32.mrf.mxu1  ;;  %v6612_v15 = vld [vmem:[#allocation2 + $0x84] sm:$0xe] }
 0x241   : > { %v4066_v53 = vadd.f32 %v15521_v12, %v15192_v36  ;;  %v6901_v55 = vsel %vm14486_vm14, %v11640_v3, %v6900_v42  ;;  %v6902_v11 = vrot.slane %v6900_v42, 4  ;;  %v11625_v56 = vrot.slane %v6611_v19, 9  ;;  %v13235_v36 = vld [vmem:[#allocation2 + $0x80] sm:$0x1] }
 0x242   : > { %v6731_v9 = vrot.slane %v13234_v59, 5  ;;  %v15706_v0 = vpop.f32.mrf.mxu0  ;;  %12729 = vmatmul.mubr.msk.bf16.gmra.mxu1 %vm1429_vm2, %v11697_v4  ;;  %v6728_v58 = vsel %vm14486_vm14, %v6726_v6, %v6727_v38  ;;  %v6734_v12 = vrot.slane %v13235_v36, 5  ;;  %v11641_v10 = vrot.slane %v6787_v20, 9  ;;  %v15718_v59 = vpop.f32.mrf.mxu1  ;;  %v13236_v6 = vld [vmem:[#allocation3 + $0x7c] sm:$0xf] }
 0x243   : > { %v15712_v22 = vadd.f32 %v15538_v44, %v4066_v53  ;;  %v11660_v3 = vcombine.low %v6725_v40, %v6728_v58  ;;  %v6904_v19 = vsel %vm14486_vm14, %v6902_v11, %v6903_v37  ;;  %v6907_v44 = vrot.slane %v13236_v6, 5  ;;  %v13237_v53 = vld [vmem:[#allocation3 + $0x80] sm:$0x1]  ;;  %v13241_v6 = vld [vmem:[#allocation3 + $0x8c] sm:$0x1] }
 0x244   : > { %v6732_v42 = vsel %vm14486_vm14, %v11625_v56, %v6731_v9  ;;  %v6733_v2 = vrot.slane %v6731_v9, 4  ;;  %v15720_v4 = vpop.f32.mrf.mxu0  ;;  %v11698_v38 = vcombine.low %v6901_v55, %v6904_v19  ;;  %v4064_v20 = vadd.f32 %v15540_v16, %v15212_v24  ;;  %v6788_v55 = vld [vmem:[#allocation3 + $0x84] sm:$0xe]  ;;  %v15731_v9 = vpop.f32.mrf.mxu1  ;;  %v6613_v19 = vld [vmem:[#allocation2 + $0x90] sm:$0xe] }
 0x245   : > { %18073 = vst [vmem:[#allocation27_spill] sm:$0xff] %v15712_v22  ;;  %v6910_v22 = vrot.slane %v13237_v53, 5  ;;  %12696 = vmatprep.mubr.msk.bf16.mxu0 %vm1429_vm2, %v11660_v3  ;;  %v4067_v40 = vadd.f32 %v15560_v26, %v15219_v1  ;;  %v4065_v11 = vadd.f32 %v15579_v35, %v15222_v31  ;;  %v11626_v56 = vrot.slane %v6612_v15, 9  ;;  %v13238_v26 = vld [vmem:[#allocation2 + $0x88] sm:$0xf] }
 0x246   : > { %v6735_v37 = vsel %vm14486_vm14, %v6733_v2, %v6734_v12  ;;  %v15733_v58 = vpop.f32.mrf.mxu0  ;;  %12732 = vmatprep.mubr.msk.bf16.mxu1 %vm1429_vm2, %v11698_v38  ;;  %v6908_v16 = vsel %vm14486_vm14, %v11641_v10, %v6907_v44  ;;  %v6909_v36 = vrot.slane %v6907_v44, 4  ;;  %v15739_v12 = vadd.f32 %v15558_v27, %v4064_v20  ;;  %v13239_v15 = vld [vmem:[#allocation2 + $0x8c] sm:$0x1]  ;;  %v15747_v2 = vpop.f32.mrf.mxu1  ;;  %v6789_v44 = vld [vmem:[#allocation3 + $0x90] sm:$0xe] }
 0x247   : > { %v11661_v24 = vcombine.low %v6732_v42, %v6735_v37  ;;  %v15742_v1 = vadd.f32 %v15577_v30, %v4067_v40  ;;  %v15745_v31 = vadd.f32 %v15587_v62, %v4065_v11  ;;  %v6738_v35 = vrot.slane %v13238_v26, 5  ;;  %v13240_v30 = vld [vmem:[#allocation3 + $0x88] sm:$0xf]  ;;  %v13242_v26 = vld [vmem:[#allocation2 + $0x94] sm:$0xf] }
 0x248   : > { %v6741_v3 = vrot.slane %v13239_v15, 5  ;;  %v15749_v42 = vpop.f32.mrf.mxu0  ;;  %v6911_v27 = vsel %vm14486_vm14, %v6909_v36, %v6910_v22  ;;  %v11642_v10 = vrot.slane %v6788_v55, 9  ;;  %v6914_v38 = vrot.slane %v13240_v30, 5  ;;  %v15758_v11 = vpop.f32.mrf.mxu1 }
 0x249   : > { %12697 = vmatmul.mubr.msk.bf16.gmra.mxu0 %vm1429_vm2, %v11661_v24  ;;  %v6917_v62 = vrot.slane %v13241_v6, 5  ;;  %v11699_v53 = vcombine.low %v6908_v16, %v6911_v27  ;;  %v6739_v20 = vsel %vm14486_vm14, %v11626_v56, %v6738_v35  ;;  %v6740_v37 = vrot.slane %v6738_v35, 4  ;;  %v6614_v27 = vld [vmem:[#allocation2 + $0x9c] sm:$0xe] }
 0x24a   : > { %v4070_v40 = vadd.f32 %v15589_v33, %v15235_v51  ;;  %v15760_v24 = vpop.f32.mrf.mxu0  ;;  %v6915_v22 = vsel %vm14486_vm14, %v11642_v10, %v6914_v38  ;;  %v6916_v55 = vrot.slane %v6914_v38, 4  ;;  %v11627_v36 = vrot.slane %v6613_v19, 9  ;;  %v13243_v51 = vld [vmem:[#allocation2 + $0x98] sm:$0x1]  ;;  %v15770_v30 = vpop.f32.mrf.mxu1 }
 0x24b   : > { %v6745_v15 = vrot.slane %v13242_v26, 5  ;;  %12733 = vmatmul.mubr.msk.bf16.gmra.mxu1 %vm1429_vm2, %v11699_v53  ;;  %v6742_v56 = vsel %vm14486_vm14, %v6740_v37, %v6741_v3  ;;  %v6748_v33 = vrot.slane %v13243_v51, 5  ;;  %v11643_v35 = vrot.slane %v6789_v44, 9  ;;  %v13244_v37 = vld [vmem:[#allocation3 + $0x94] sm:$0xf] }
 0x24c   : > { %v15768_v16 = vadd.f32 %v15602_v29, %v4070_v40  ;;  %v15772_v6 = vpop.f32.mrf.mxu0  ;;  %v11662_v10 = vcombine.low %v6739_v20, %v6742_v56  ;;  %v6918_v19 = vsel %vm14486_vm14, %v6916_v55, %v6917_v62  ;;  %v6921_v29 = vrot.slane %v13244_v37, 5  ;;  %v13245_v40 = vld [vmem:[#allocation3 + $0x98] sm:$0x1]  ;;  %v15780_v51 = vpop.f32.mrf.mxu1  ;;  %v13249_v37 = vld [vmem:[#allocation3 + $0xa4] sm:$0x1] }
 0x24d   : > { %v6746_v38 = vsel %vm14486_vm14, %v11627_v36, %v6745_v15  ;;  %v6747_v53 = vrot.slane %v6745_v15, 4  ;;  %v11700_v3 = vcombine.low %v6915_v22, %v6918_v19  ;;  %v6924_v26 = vrot.slane %v13245_v40, 5  ;;  %v6790_v36 = vld [vmem:[#allocation3 + $0x9c] sm:$0xe] }
 0x24e   : > { %18074 = vst [vmem:[#allocation28_spill] sm:$0xff] %v15768_v16  ;;  %v4068_v44 = vadd.f32 %v15604_v57, %v15250_v47  ;;  %v15782_v16 = vpop.f32.mrf.mxu0  ;;  %12700 = vmatprep.mubr.msk.bf16.mxu0 %vm1429_vm2, %v11662_v10  ;;  %v4071_v20 = vadd.f32 %v15617_v7, %v15255_v43  ;;  %v4069_v22 = vadd.f32 %v15633_v13, %v15257_v8  ;;  %v11628_v55 = vrot.slane %v6614_v27, 9  ;;  %v15797_v10 = vpop.f32.mrf.mxu1  ;;  %v13246_v7 = vld [vmem:[#allocation2 + $0xa0] sm:$0xf]  ;;  %v13247_v27 = vld [vmem:[#allocation2 + $0xa4] sm:$0x1] }
 0x24f   : > { %v6749_v62 = vsel %vm14486_vm14, %v6747_v53, %v6748_v33  ;;  %12736 = vmatprep.mubr.msk.bf16.mxu1 %vm1429_vm2, %v11700_v3  ;;  %v6922_v57 = vsel %vm14486_vm14, %v11643_v35, %v6921_v29  ;;  %v6923_v15 = vrot.slane %v6921_v29, 4  ;;  %v6752_v13 = vrot.slane %v13246_v7, 5  ;;  %v13248_v53 = vld [vmem:[#allocation3 + $0xa0] sm:$0xf] }
 0x250   : > { %v11663_v47 = vcombine.low %v6746_v38, %v6749_v62  ;;  %v15795_v56 = vadd.f32 %v15615_v34, %v4068_v44  ;;  %v15799_v33 = vpop.f32.mrf.mxu0  ;;  %v15802_v43 = vadd.f32 %v15631_v41, %v4071_v20  ;;  %v15805_v8 = vadd.f32 %v15642_v21, %v4069_v22  ;;  %v6615_v38 = vld [vmem:[#allocation2 + $0xa8] sm:$0xe]  ;;  %v6791_v41 = vld [vmem:[#allocation3 + $0xa8] sm:$0xe]  ;;  %v15810_v40 = vpop.f32.mrf.mxu1 }
 0x251   : > { %v6755_v19 = vrot.slane %v13247_v27, 5  ;;  %v6925_v34 = vsel %vm14486_vm14, %v6923_v15, %v6924_v26  ;;  %v11644_v35 = vrot.slane %v6790_v36, 9  ;;  %v6928_v3 = vrot.slane %v13248_v53, 5  ;;  %v13250_v15 = vld [vmem:[#allocation2 + $0xac] sm:$0xf] }
 0x252   : > { %18075 = vst [vmem:[#allocation29_spill] sm:$0xff] %v15805_v8  ;;  %12701 = vmatmul.mubr.msk.bf16.gmra.mxu0 %vm1429_vm2, %v11663_v47  ;;  %v6931_v29 = vrot.slane %v13249_v37, 5  ;;  %v15812_v21 = vpop.f32.mrf.mxu0  ;;  %v11701_v44 = vcombine.low %v6922_v57, %v6925_v34  ;;  %v6753_v62 = vsel %vm14486_vm14, %v11628_v55, %v6752_v13  ;;  %v6754_v20 = vrot.slane %v6752_v13, 4  ;;  %v15820_v27 = vpop.f32.mrf.mxu1  ;;  %v6616_v34 = vld [vmem:[#allocation2 + $0xb4] sm:$0xe] }
 0x253   : > { %v4074_v22 = vadd.f32 %v15644_v18, %v15276_v32  ;;  %v6929_v26 = vsel %vm14486_vm14, %v11644_v35, %v6928_v3  ;;  %v6930_v36 = vrot.slane %v6928_v3, 4  ;;  %v11629_v47 = vrot.slane %v6615_v38, 9  ;;  %v13251_v32 = vld [vmem:[#allocation2 + $0xb0] sm:$0x1] }
 0x254   : > { %v6759_v7 = vrot.slane %v13250_v15, 5  ;;  %v15822_v53 = vpop.f32.mrf.mxu0  ;;  %12737 = vmatmul.mubr.msk.bf16.gmra.mxu1 %vm1429_vm2, %v11701_v44  ;;  %v6756_v55 = vsel %vm14486_vm14, %v6754_v20, %v6755_v19  ;;  %v6762_v18 = vrot.slane %v13251_v32, 5  ;;  %v11645_v13 = vrot.slane %v6791_v41, 9  ;;  %v15834_v15 = vpop.f32.mrf.mxu1  ;;  %v13252_v20 = vld [vmem:[#allocation3 + $0xac] sm:$0xf]  ;;  %v18077_v32 = vld [vmem:[#allocation30_spill] sm:$0xff] }
 0x255   : > { %v15828_v57 = vadd.f32 %v15654_v46, %v4074_v22  ;;  %v11664_v35 = vcombine.low %v6753_v62, %v6756_v55  ;;  %v6932_v38 = vsel %vm14486_vm14, %v6930_v36, %v6931_v29  ;;  %v6935_v46 = vrot.slane %v13252_v20, 5  ;;  %v13253_v22 = vld [vmem:[#allocation3 + $0xb0] sm:$0x1]  ;;  %v18078_v62 = vld [vmem:[#allocation31_spill] sm:$0xff] }
 0x256   : > { %v6760_v3 = vsel %vm14486_vm14, %v11629_v47, %v6759_v7  ;;  %v6761_v37 = vrot.slane %v6759_v7, 4  ;;  %v15836_v44 = vpop.f32.mrf.mxu0  ;;  %v11702_v19 = vcombine.low %v6929_v26, %v6932_v38  ;;  %v4072_v41 = vadd.f32 %v15656_v48, %v18077_v32  ;;  %v18079_v47 = vld [vmem:[#allocation33_spill] sm:$0xff]  ;;  %v6792_v26 = vld [vmem:[#allocation3 + $0xb4] sm:$0xe]  ;;  %v15847_v38 = vpop.f32.mrf.mxu1  ;;  %v18083_v32 = vld [vmem:[#allocation32_spill] sm:$0xff] }
 0x257   : > { %18076 = vst [vmem:[#allocation37_spill] sm:$0xff] %v15828_v57  ;;  %v6938_v57 = vrot.slane %v13253_v22, 5  ;;  %12704 = vmatprep.mubr.msk.bf16.mxu0 %vm1429_vm2, %v11664_v35  ;;  %v4075_v36 = vadd.f32 %v15666_v60, %v18078_v62  ;;  %v4073_v7 = vadd.f32 %v15683_v14, %v18079_v47  ;;  %v11630_v55 = vrot.slane %v6616_v34, 9  ;;  %v13254_v34 = vld [vmem:[#allocation2 + $0xb8] sm:$0xf] }
 0x258   : > { %v6763_v29 = vsel %vm14486_vm14, %v6761_v37, %v6762_v18  ;;  %v15849_v20 = vpop.f32.mrf.mxu0  ;;  %12740 = vmatprep.mubr.msk.bf16.mxu1 %vm1429_vm2, %v11702_v19  ;;  %v6936_v35 = vsel %vm14486_vm14, %v11645_v13, %v6935_v46  ;;  %v6937_v22 = vrot.slane %v6935_v46, 4  ;;  %v15855_v18 = vadd.f32 %v15664_v49, %v4072_v41  ;;  %v6617_v47 = vld [vmem:[#allocation2 + $0xc0] sm:$0xe]  ;;  %v15864_v19 = vpop.f32.mrf.mxu1  ;;  %v18085_v41 = vld [vmem:[#allocation35_spill] sm:$0xff] }
 0x259   : > { %v11665_v48 = vcombine.low %v6760_v3, %v6763_v29  ;;  %v15858_v60 = vadd.f32 %v15681_v28, %v4075_v36  ;;  %v15861_v14 = vadd.f32 %v15694_v63, %v4073_v7  ;;  %v6766_v37 = vrot.slane %v13254_v34, 5  ;;  %v18084_v28 = vld [vmem:[#allocation34_spill] sm:$0xff]  ;;  %v6793_v29 = vld [vmem:[#allocation3 + $0xc0] sm:$0xe] }
 0x25a   : > { %18080 = vst [vmem:[#allocation30_spill] sm:$0xff] %v15855_v18  ;;  %v6769_v62 = vrot.slane %v18083_v32, 5  ;;  %v15866_v3 = vpop.f32.mrf.mxu0  ;;  %v6939_v49 = vsel %vm14486_vm14, %v6937_v22, %v6938_v57  ;;  %v11646_v13 = vrot.slane %v6792_v26, 9  ;;  %v6942_v46 = vrot.slane %v18084_v28, 5  ;;  %v18086_v32 = vld [vmem:[#allocation7_spill] sm:$0xff]  ;;  %v18087_v28 = vld [vmem:[#allocation36_spill] sm:$0xff] }
 0x25b   : > { %18081 = vst [vmem:[#allocation31_spill] sm:$0xff] %v15858_v60  ;;  %18082 = vst [vmem:[#allocation33_spill] sm:$0xff] %v15861_v14  ;;  %12705 = vmatmul.mubr.msk.bf16.gmra.mxu0 %vm1429_vm2, %v11665_v48  ;;  %v6945_v63 = vrot.slane %v18085_v41, 5  ;;  %v11703_v36 = vcombine.low %v6936_v35, %v6939_v49  ;;  %v6767_v7 = vsel %vm14486_vm14, %v11630_v55, %v6766_v37  ;;  %v6768_v34 = vrot.slane %v6766_v37, 4  ;;  %v15877_v60 = vpop.f32.mrf.mxu1 }
 0x25c   : > { %v4078_v14 = vadd.f32 %v15696_v23, %v18086_v32  ;;  %v15879_v48 = vpop.f32.mrf.mxu0  ;;  %v6943_v57 = vsel %vm14486_vm14, %v11646_v13, %v6942_v46  ;;  %v6944_v26 = vrot.slane %v6942_v46, 4  ;;  %v11631_v22 = vrot.slane %v6617_v47, 9  ;;  %v18089_v23 = vld [vmem:[#allocation20_spill] sm:$0xff] }
 0x25d   : > { %v6773_v41 = vrot.slane %v18087_v28, 5  ;;  %12741 = vmatmul.mubr.msk.bf16.gmra.mxu1 %vm1429_vm2, %v11703_v36  ;;  %v6770_v55 = vsel %vm14486_vm14, %v6768_v34, %v6769_v62  ;;  %v6776_v37 = vrot.slane %v18089_v23, 5  ;;  %v11647_v49 = vrot.slane %v6793_v29, 9  ;;  %v15891_v32 = vpop.f32.mrf.mxu1  ;;  %v18090_v28 = vld [vmem:[#allocation8_spill] sm:$0xff] }
 0x25e   : > { %v15888_v35 = vadd.f32 %v15704_v50, %v4078_v14  ;;  %v4664_v18 = vpop.f32.mrf.mxu0  ;;  %v11666_v8 = vcombine.low %v6767_v7, %v6770_v55  ;;  %v6946_v47 = vsel %vm14486_vm14, %v6944_v26, %v6945_v63  ;;  %v6949_v62 = vrot.slane %v18090_v28, 5  ;;  %v18091_v34 = vld [vmem:[#allocation12_spill] sm:$0xff]  ;;  %v18092_v14 = vld [vmem:[#allocation22_spill] sm:$0xff]  ;;  %v18093_v63 = vld [vmem:[#allocation17_spill] sm:$0xff] }
 0x25f   : > { %v6774_v13 = vsel %vm14486_vm14, %v11631_v22, %v6773_v41  ;;  %v6775_v46 = vrot.slane %v6773_v41, 4  ;;  %v11704_v36 = vcombine.low %v6943_v57, %v6946_v47  ;;  %v6952_v50 = vrot.slane %v18091_v34, 5  ;;  %v5002_v29 = vpop.f32.mrf.mxu1  ;;  %v18094_v22 = vld [vmem:[#allocation14_spill] sm:$0xff]  ;;  %v13098_v41 = vld [vmem:[#allocation2 + $0x18] sm:$0xff]   ;;  %v18095_v55 = vld [vmem:[#allocation9_spill] sm:$0xff] }
 0x260   : > { %18088 = vst [vmem:[#allocation32_spill] sm:$0xff] %v15888_v35  ;;  %v4076_v23 = vadd.f32 %v15706_v0, %v18092_v14  ;;  %v12550_v35 = vpop.f32.mrf.mxu0  ;;  %12708 = vmatprep.mubr.msk.bf16.mxu0 %vm1429_vm2, %v11666_v8  ;;  %v4079_v26 = vadd.f32 %v15720_v4, %v18093_v63  ;;  %v4077_v57 = vadd.f32 %v15733_v58, %v18094_v22  ;;  %v6951_v8 = vrot.slane %v6949_v62, 4  ;;  %v18100_v22 = vld [vmem:[#allocation21_spill] sm:$0xff] }
 0x261   : > { %v6777_v7 = vsel %vm14486_vm14, %v6775_v46, %v6776_v37  ;;  %v4758_v47 = vadd.f32 %v15749_v42, %v18095_v55  ;;  %12744 = vmatprep.mubr.msk.bf16.mxu1 %vm1429_vm2, %v11704_v36  ;;  %v6950_v28 = vsel %vm14486_vm14, %v11647_v49, %v6949_v62  ;;  %v12586_v37 = vpop.f32.mrf.mxu1  ;;  %v18096_v36 = vld [vmem:[#allocation16_spill] sm:$0xff]  ;;  %v13099_v49 = vld [vmem:[#allocation3 + $0x18] sm:$0xff]   ;;  %v18097_v62 = vld [vmem:[#allocation13_spill] sm:$0xff] }
 0x262   : > { %v11667_v0 = vcombine.low %v6774_v13, %v6777_v7  ;;  %v15914_v34 = vadd.f32 %v15718_v59, %v4076_v23  ;;  %v4677_v46 = vpop.f32.mrf.mxu0  ;;  %v15917_v4 = vadd.f32 %v15731_v9, %v4079_v26  ;;  %v15920_v58 = vadd.f32 %v15747_v2, %v4077_v57  ;;  %v18098_v9 = vld [vmem:[#allocation15_spill] sm:$0xff]  ;;  %v18099_v2 = vld [vmem:[#allocation18_spill] sm:$0xff]  ;;  %v18101_v57 = vld [vmem:[#allocation24_spill] sm:$0xff] }
 0x263   : > { %v15923_v42 = vadd.f32 %v15758_v11, %v4758_v47  ;;  %v4756_v13 = vadd.f32 %v15760_v24, %v18096_v36  ;;  %v6953_v59 = vsel %vm14486_vm14, %v6951_v8, %v6952_v50  ;;  %v4759_v14 = vadd.f32 %v15772_v6, %v18097_v62  ;;  %v5015_v11 = vpop.f32.mrf.mxu1  ;;  %v18102_v47 = vld [vmem:[#allocation25_spill] sm:$0xff]  ;;  %v18103_v8 = vld [vmem:[#allocation26_spill] sm:$0xff]  ;;  %v18104_v62 = vld [vmem:[#allocation27_spill] sm:$0xff] }
 0x264   : > { %12709 = vmatmul.mubr.msk.bf16.gmra.mxu0 %vm1429_vm2, %v11667_v0  ;;  %v4757_v23 = vadd.f32 %v15782_v16, %v18098_v9  ;;  %v4762_v7 = vadd.f32 %v15799_v33, %v18099_v2  ;;  %v12551_v63 = vpop.f32.mrf.mxu0  ;;  %v11705_v26 = vcombine.low %v6950_v28, %v6953_v59  ;;  %v4760_v50 = vadd.f32 %v15812_v21, %v18100_v22  ;;  %v13104_v59 = vld [vmem:[#allocation2 + $0x30] sm:$0xff]  }
 0x265   : > { %12752 = vmatprep.mubr.msk.bf16.mxu0 %vm1429_vm2, %v13098_v41  ;;  %v15938_v24 = vadd.f32 %v15770_v30, %v4756_v13  ;;  %v4763_v6 = vadd.f32 %v15822_v53, %v18101_v57  ;;  %v15945_v55 = vadd.f32 %v15780_v51, %v4759_v14  ;;  %v4761_v41 = vadd.f32 %v15836_v44, %v18102_v47  ;;  %v12587_v30 = vpop.f32.mrf.mxu1  ;;  %v8310_v14 = vld [vmem:[#allocation2 + $0x20] sm:$0x1]  ;;  %v8741_v47 = vld [vmem:[#allocation3 + $0x1c] sm:$0xf] }
 0x266   : > { %v15948_v16 = vadd.f32 %v15797_v10, %v4757_v23  ;;  %v15951_v33 = vadd.f32 %v15810_v40, %v4762_v7  ;;  %v4680_v0 = vpop.f32.mrf.mxu0  ;;  %12745 = vmatmul.mubr.msk.bf16.gmra.mxu1 %vm1429_vm2, %v11705_v26  ;;  %v15957_v21 = vadd.f32 %v15820_v27, %v4760_v50  ;;  %v4766_v51 = vadd.f32 %v15849_v20, %v15595_v5  ;;  %v13101_v40 = vld [vmem:[#allocation2 + $0x24] sm:$0xff]   ;;  %v8740_v26 = vld [vmem:[#allocation3 + $0x18] sm:$0xf] }
 0x267   : > { %v15960_v53 = vadd.f32 %v15834_v15, %v4763_v6  ;;  %v4764_v10 = vadd.f32 %v15866_v3, %v15623_v39  ;;  %12788 = vmatprep.mubr.msk.bf16.mxu1 %vm1429_vm2, %v13099_v49  ;;  %v15968_v44 = vadd.f32 %v15847_v38, %v4761_v41  ;;  %v4767_v28 = vadd.f32 %v15879_v48, %v15626_v61  ;;  %v5018_v36 = vpop.f32.mrf.mxu1  ;;  %v8308_v3 = vld [vmem:[#allocation2 + $0x18] sm:$0xf]  ;;  %v8309_v49 = vld [vmem:[#allocation2 + $0x1c] sm:$0xf] }
 0x268   : > { %v4765_v27 = vadd.f32 %v4664_v18, %v15629_v45  ;;  %v4770_v15 = vadd.f32 %v12550_v35, %v18103_v8  ;;  %v12554_v13 = vpop.f32.mrf.mxu0  ;;  %v15975_v5 = vadd.f32 %v15864_v19, %v4766_v51  ;;  %v4768_v20 = vadd.f32 %v4677_v46, %v15679_v17  ;;  %v13102_v17 = vld [vmem:[#allocation3 + $0x24] sm:$0xff]  }
 0x269   : > { %v15978_v39 = vadd.f32 %v15877_v60, %v4764_v10  ;;  %v4771_v38 = vadd.f32 %v12551_v63, %v15686_v52  ;;  %v15983_v61 = vadd.f32 %v15891_v32, %v4767_v28  ;;  %v4769_v48 = vadd.f32 %v4680_v0, %v15689_v54  ;;  %v13118_v60 = vld [vmem:[%s17879_s2 + $0x70] sm:$0xff]   ;;  %v12590_v19 = vpop.f32.mrf.mxu1  ;;  %v16015_v28 = vld [vmem:[%s17879_s2 + $0x88] sm:$0xff]  }
 0x26a   : > { %v15985_v45 = vadd.f32 %v5002_v29, %v4765_v27  ;;  %v15987_v18 = vadd.f32 %v12586_v37, %v4770_v15  ;;  %v4693_v35 = vpop.f32.mrf.mxu0  ;;  %v15993_v46 = vadd.f32 %v5015_v11, %v4768_v20  ;;  %v4774_v32 = vadd.f32 %v12554_v13, %v18104_v62  ;;  %v13105_v37 = vld [vmem:[#allocation3 + $0x30] sm:$0xff]   ;;  %v18105_v11 = vld [vmem:[#allocation19_spill] sm:$0xff]  ;;  %v13106_v13 = vld [vmem:[#allocation2 + $0x3c] sm:$0xff]  }
 0x26b   : > { %v15995_v52 = vadd.f32 %v12587_v30, %v4771_v38  ;;  %v4772_v29 = vadd.f32 %v4693_v35, %v15739_v12  ;;  %v16000_v54 = vadd.f32 %v5018_v36, %v4769_v48  ;;  %v5031_v9 = vpop.f32.mrf.mxu1  ;;  %v8357_v2 = vshrl.u32 %v8308_v3, 16  ;;  %v13121_v12 = vld [vmem:[%s17880_s3 + $0x70] sm:$0xff]   ;;  %v13108_v35 = vld [vmem:[#allocation2 + $0x48] sm:$0xff]  }
 0x26c   : > { %12753 = vmatmul.mubr.msk.bf16.vlgmr.msra.gmra.mxu0 %vm1429_vm2, %v13101_v40  ;;  %v12555_v23 = vpop.f32.mrf.mxu0  ;;  %v8360_v7 = vshll.u32 %v8308_v3, 16  ;;  %v8366_v63 = vshll.u32 %v8309_v49, 16  ;;  %v16004_v22 = vadd.f32 %v12590_v19, %v4774_v32  ;;  %v8370_v6 = vshrl.u32 %v8309_v49, 16  ;;  %v18106_v36 = vld [vmem:[#allocation23_spill] sm:$0xff]  ;;  %v8742_v49 = vld [vmem:[#allocation3 + $0x20] sm:$0x1] }
 0x26d   : > { %12821 = vmatpush3.bf16.msra.mxu0 %v18105_v11  ;;  %12756 = vmatprep.mubr.msk.bf16.mxu0 %vm1429_vm2, %v13104_v59  ;;  %v16009_v50 = vadd.f32 %v5031_v9, %v4772_v29  ;;  %v4775_v57 = vadd.f32 %v12555_v23, %v15742_v1  ;;  %v12591_v41 = vpop.f32.mrf.mxu1  ;;  %v8359_v0 = vrot.slane %v8357_v2, 4  ;;  %v8376_v40 = vshll.u32 %v8310_v14, 16  ;;  %v8311_v14 = vld [vmem:[#allocation2 + $0x24] sm:$0xf] }
 0x26e   : > { %12822 = vmatprep.subr.bf16.mxu0 %v13118_v60  ;;  %v4696_v30 = vpop.f32.mrf.mxu0  ;;  %v8362_v51 = vrot.slane %v8360_v7, 5  ;;  %v8368_v10 = vrot.slane %v8366_v63, 5  ;;  %12789 = vmatmul.mubr.msk.bf16.vlgmr.msra.gmra.mxu1 %vm1429_vm2, %v13102_v17  ;;  %v8372_v8 = vrot.slane %v8370_v6, 4  ;;  %v8789_v15 = vshrl.u32 %v8740_v26, 16 }
 0x26f   : > { %v16018_v27 = vadd.f32 %v12591_v41, %v4775_v57  ;;  %v4773_v1 = vadd.f32 %v4696_v30, %v15745_v31  ;;  %12857 = vmatpush3.bf16.msra.mxu1 %v18106_v36  ;;  %12792 = vmatprep.mubr.msk.bf16.mxu1 %vm1429_vm2, %v13105_v37  ;;  %v5034_v59 = vpop.f32.mrf.mxu1  ;;  %v8378_v3 = vrot.slane %v8376_v40, 5  ;;  %v8792_v48 = vshll.u32 %v8740_v26, 16  ;;  %v18107_v31 = vld [vmem:[#allocation28_spill] sm:$0xff]  ;;  %v16029_v37 = vld [vmem:[%s17880_s3 + $0x88] sm:$0xff]   ;;  %v13109_v30 = vld [vmem:[#allocation3 + $0x48] sm:$0xff]  }
 0x270   : > { %v12558_v20 = vpop.f32.mrf.mxu0  ;;  %v8363_v38 = vor.u32 %v8362_v51, %v8359_v0  ;;  %v8798_v19 = vshll.u32 %v8741_v47, 16  ;;  %12858 = vmatprep.subr.bf16.mxu1 %v13121_v12  ;;  %v8373_v32 = vor.u32 %v8372_v8, %v8368_v10  ;;  %v8791_v29 = vrot.slane %v8789_v15, 4  ;;  %v8312_v15 = vld [vmem:[#allocation2 + $0x28] sm:$0xf] }
 0x271   : > { %12823 = vmatpush3.bf16.msra.mxu0 %v13118_v60  ;;  %v16023_v17 = vadd.f32 %v5034_v59, %v4773_v1  ;;  %v4778_v62 = vadd.f32 %v12558_v20, %v18107_v31  ;;  %v12594_v9 = vpop.f32.mrf.mxu1  ;;  %v8794_v7 = vrot.slane %v8792_v48, 5  ;;  %v8802_v26 = vshrl.u32 %v8741_v47, 16  ;;  %v13107_v60 = vld [vmem:[#allocation3 + $0x3c] sm:$0xff]  }
 0x272   : > { %v4709_v23 = vpop.f32.mrf.mxu0  ;;  %v8364_v2 = vrot.slane %v8363_v38, 4  ;;  %v8800_v63 = vrot.slane %v8798_v19, 5  ;;  %12892 = vmatprep.subr.bf16.mxu0 %v16015_v28  ;;  %v8374_v6 = vrot.slane %v8373_v32, 4  ;;  %v8808_v41 = vshll.u32 %v8742_v49, 16 }
 0x273   : > { %v16032_v11 = vadd.f32 %v12594_v9, %v4778_v62  ;;  %v4776_v57 = vadd.f32 %v4709_v23, %v15795_v56  ;;  %12859 = vmatpush3.bf16.msra.mxu1 %v13121_v12  ;;  %v5047_v0 = vpop.f32.mrf.mxu1  ;;  %v8795_v8 = vor.u32 %v8794_v7, %v8791_v29  ;;  %v8804_v47 = vrot.slane %v8802_v26, 4  ;;  %v8313_v12 = vld [vmem:[#allocation2 + $0x2c] sm:$0x1]  ;;  %v18109_v62 = vld [vmem:[#allocation29_spill] sm:$0xff]  ;;  %v13110_v9 = vld [vmem:[#allocation2 + $0x54] sm:$0xff]  }
 0x274   : > { %12757 = vmatmul.mubr.msk.bf16.gmra.mxu0 %vm1429_vm2, %v13106_v13  ;;  %v12559_v51 = vpop.f32.mrf.mxu0  ;;  %v8369_v1 = vsel %vm14102_vm11, %v8364_v2, %v8368_v10  ;;  %v8381_v36 = vshrl.u32 %v8311_v14, 16  ;;  %v8379_v13 = vsel %vm14102_vm11, %v8374_v6, %v8378_v3  ;;  %v8810_v20 = vrot.slane %v8808_v41, 5  ;;  %12928 = vmatprep.subr.bf16.mxu1 %v16029_v37  ;;  %v8743_v3 = vld [vmem:[#allocation3 + $0x24] sm:$0xf]  ;;  %v13112_v41 = vld [vmem:[#allocation2 + $0x60] sm:$0xff]  }
 0x275   : > { %12760 = vmatprep.mubr.msk.bf16.mxu0 %vm1429_vm2, %v13108_v35  ;;  %v16039_v59 = vadd.f32 %v5047_v0, %v4776_v57  ;;  %v4779_v56 = vadd.f32 %v12559_v51, %v15802_v43  ;;  %v12595_v38 = vpop.f32.mrf.mxu1  ;;  %v16045_v10 = vcombine.low %v8369_v1, %v8379_v13  ;;  %v8796_v48 = vrot.slane %v8795_v8, 4  ;;  %v18110_v0 = vld [vmem:[#allocation37_spill] sm:$0xff] }
 0x276   : > { %v4712_v49 = vpop.f32.mrf.mxu0  ;;  %v8805_v19 = vor.u32 %v8804_v47, %v8800_v63  ;;  %v8383_v31 = vrot.slane %v8381_v36, 4  ;;  %12793 = vmatmul.mubr.msk.bf16.gmra.mxu1 %vm1429_vm2, %v13107_v60  ;;  %v8384_v32 = vshll.u32 %v8311_v14, 16  ;;  %v8390_v29 = vshll.u32 %v8312_v15, 16  ;;  %v8744_v8 = vld [vmem:[#allocation3 + $0x28] sm:$0xf] }
 0x277   : > { %v16048_v35 = vadd.f32 %v12595_v38, %v4779_v56  ;;  %v4777_v43 = vadd.f32 %v4712_v49, %v18109_v62  ;;  %12796 = vmatprep.mubr.msk.bf16.mxu1 %vm1429_vm2, %v13109_v30  ;;  %v5050_v23 = vpop.f32.mrf.mxu1  ;;  %v8801_v7 = vsel %vm14102_vm11, %v8796_v48, %v8800_v63  ;;  %v8394_v57 = vshrl.u32 %v8312_v15, 16  ;;  %v13111_v63 = vld [vmem:[#allocation3 + $0x54] sm:$0xff]   ;;  %v8745_v62 = vld [vmem:[#allocation3 + $0x2c] sm:$0x1] }
 0x278   : > { %v12562_v2 = vpop.f32.mrf.mxu0  ;;  %v8806_v26 = vrot.slane %v8805_v19, 4  ;;  %v8400_v6 = vshll.u32 %v8313_v12, 16  ;;  %v8386_v1 = vrot.slane %v8384_v32, 5  ;;  %v8392_v14 = vrot.slane %v8390_v29, 5  ;;  %v18112_v15 = vld [vmem:[#allocation30_spill] sm:$0xff] }
 0x279   : > { %v16054_v60 = vadd.f32 %v5050_v23, %v4777_v43  ;;  %v4782_v51 = vadd.f32 %v12562_v2, %v18110_v0  ;;  %v12598_v47 = vpop.f32.mrf.mxu1  ;;  %v8396_v56 = vrot.slane %v8394_v57, 4  ;;  %v8813_v38 = vshrl.u32 %v8743_v3, 16  ;;  %v13113_v43 = vld [vmem:[#allocation3 + $0x60] sm:$0xff]  }
 0x27a   : > { %v4725_v36 = vpop.f32.mrf.mxu0  ;;  %v8811_v30 = vsel %vm14102_vm11, %v8806_v26, %v8810_v20  ;;  %v8402_v13 = vrot.slane %v8400_v6, 5  ;;  %v8387_v19 = vor.u32 %v8386_v1, %v8383_v31  ;;  %v8816_v20 = vshll.u32 %v8743_v3, 16  ;;  %v18114_v6 = vld [vmem:[#allocation31_spill] sm:$0xff]  ;;  %v18116_v3 = vld [vmem:[#allocation33_spill] sm:$0xff] }
 0x27b   : > { %v16059_v49 = vadd.f32 %v12598_v47, %v4782_v51  ;;  %v4780_v12 = vadd.f32 %v4725_v36, %v18112_v15  ;;  %v16062_v48 = vcombine.low %v8801_v7, %v8811_v30  ;;  %v5063_v32 = vpop.f32.mrf.mxu1  ;;  %v8397_v23 = vor.u32 %v8396_v56, %v8392_v14  ;;  %v8314_v47 = vld [vmem:[#allocation2 + $0x30] sm:$0xf] }
 0x27c   : > { %12761 = vmatmul.mubr.msk.bf16.gmra.mxu0 %vm1429_vm2, %v13110_v9  ;;  %v12563_v29 = vpop.f32.mrf.mxu0  ;;  %v8815_v2 = vrot.slane %v8813_v38, 4  ;;  %v8822_v26 = vshll.u32 %v8744_v8, 16  ;;  %v8388_v51 = vrot.slane %v8387_v19, 4  ;;  %v8826_v7 = vshrl.u32 %v8744_v8, 16  ;;  %v13114_v8 = vld [vmem:[#allocation2 + $0x6c] sm:$0xff]  }
 0x27d   : > { %18111 = vst [vmem:[#allocation34_spill] sm:$0xff] %v16059_v49  ;;  %12764 = vmatprep.mubr.msk.bf16.mxu0 %vm1429_vm2, %v13112_v41  ;;  %v16066_v57 = vadd.f32 %v5063_v32, %v4780_v12  ;;  %v4783_v0 = vadd.f32 %v12563_v29, %v18114_v6  ;;  %v12599_v31 = vpop.f32.mrf.mxu1  ;;  %v8398_v36 = vrot.slane %v8397_v23, 4  ;;  %v8818_v9 = vrot.slane %v8816_v20, 5  ;;  %v8315_v32 = vld [vmem:[#allocation2 + $0x34] sm:$0xf]  ;;  %v13115_v49 = vld [vmem:[#allocation3 + $0x6c] sm:$0xff]  }
 0x27e   : > { %v4728_v1 = vpop.f32.mrf.mxu0  ;;  %v8824_v30 = vrot.slane %v8822_v26, 5  ;;  %v8832_v15 = vshll.u32 %v8745_v62, 16  ;;  %12797 = vmatmul.mubr.msk.bf16.gmra.mxu1 %vm1429_vm2, %v13111_v63  ;;  %v8393_v41 = vsel %vm14102_vm11, %v8388_v51, %v8392_v14  ;;  %v8828_v12 = vrot.slane %v8826_v7, 4  ;;  %v13116_v26 = vld [vmem:[#allocation2 + $0x78] sm:$0xff]  }
 0x27f   : > { %18113 = vst [vmem:[#allocation35_spill] sm:$0xff] %v16066_v57  ;;  %v16070_v56 = vadd.f32 %v12599_v31, %v4783_v0  ;;  %v4781_v38 = vadd.f32 %v4728_v1, %v18116_v3  ;;  %12800 = vmatprep.mubr.msk.bf16.mxu1 %vm1429_vm2, %v13113_v43  ;;  %v5066_v19 = vpop.f32.mrf.mxu1  ;;  %v8403_v23 = vsel %vm14102_vm11, %v8398_v36, %v8402_v13  ;;  %v8405_v63 = vshrl.u32 %v8314_v47, 16  ;;  %v18117_v0 = vld [vmem:[#allocation32_spill] sm:$0xff] }
 0x280   : > { %v12566_v29 = vpop.f32.mrf.mxu0  ;;  %v8819_v62 = vor.u32 %v8818_v9, %v8815_v2  ;;  %v8834_v20 = vrot.slane %v8832_v15, 5  ;;  %v16081_v1 = vcombine.low %v8393_v41, %v8403_v23  ;;  %v8829_v14 = vor.u32 %v8828_v12, %v8824_v30  ;;  %v8316_v51 = vld [vmem:[#allocation2 + $0x38] sm:$0x1]  ;;  %v8746_v15 = vld [vmem:[#allocation3 + $0x30] sm:$0xf] }
 0x281   : > { %18115 = vst [vmem:[#allocation7_spill] sm:$0xff] %v16070_v56  ;;  %v16078_v6 = vadd.f32 %v5066_v19, %v4781_v38  ;;  %v4786_v31 = vadd.f32 %v12566_v29, %v18117_v0  ;;  %v12602_v7 = vpop.f32.mrf.mxu1  ;;  %v8407_v25 = vrot.slane %v8405_v63, 4  ;;  %v8408_v56 = vshll.u32 %v8314_v47, 16  ;;  %v13117_v38 = vld [vmem:[#allocation3 + $0x78] sm:$0xff]  }
 0x282   : > { %v4741_v43 = vpop.f32.mrf.mxu0  ;;  %v8820_v3 = vrot.slane %v8819_v62, 4  ;;  %v8414_v57 = vshll.u32 %v8315_v32, 16  ;;  %v8830_v36 = vrot.slane %v8829_v14, 4  ;;  %v8418_v9 = vshrl.u32 %v8315_v32, 16 }
 0x283   : > { %v16083_v13 = vadd.f32 %v12602_v7, %v4786_v31  ;;  %v4784_v2 = vadd.f32 %v4741_v43, %v15914_v34  ;;  %v5079_v41 = vpop.f32.mrf.mxu1  ;;  %v8410_v29 = vrot.slane %v8408_v56, 5  ;;  %v8424_v47 = vshll.u32 %v8316_v51, 16 }
 0x284   : > { %12765 = vmatmul.mubr.msk.bf16.gmra.mxu0 %vm1429_vm2, %v13114_v8  ;;  %v12567_v12 = vpop.f32.mrf.mxu0  ;;  %v8825_v19 = vsel %vm14102_vm11, %v8820_v3, %v8824_v30  ;;  %v8416_v23 = vrot.slane %v8414_v57, 5  ;;  %v8835_v32 = vsel %vm14102_vm11, %v8830_v36, %v8834_v20  ;;  %v8420_v63 = vrot.slane %v8418_v9, 4  ;;  %v8747_v8 = vld [vmem:[#allocation3 + $0x34] sm:$0xf]  ;;  %v13119_v20 = vld [vmem:[#allocation2 + $0x84] sm:$0xff]  }
 0x285   : > { %12768 = vmatprep.mubr.msk.bf16.mxu0 %vm1429_vm2, %v13116_v26  ;;  %v16090_v62 = vadd.f32 %v5079_v41, %v4784_v2  ;;  %v4787_v34 = vadd.f32 %v12567_v12, %v15917_v4  ;;  %v12603_v0 = vpop.f32.mrf.mxu1  ;;  %v16095_v14 = vcombine.low %v8825_v19, %v8835_v32  ;;  %v8411_v7 = vor.u32 %v8410_v29, %v8407_v25  ;;  %v8748_v4 = vld [vmem:[#allocation3 + $0x38] sm:$0x1] }
 0x286   : > { %v4744_v31 = vpop.f32.mrf.mxu0  ;;  %v8426_v30 = vrot.slane %v8424_v47, 5  ;;  %v8837_v56 = vshrl.u32 %v8746_v15, 16  ;;  %12801 = vmatmul.mubr.msk.bf16.gmra.mxu1 %vm1429_vm2, %v13115_v49  ;;  %v8421_v51 = vor.u32 %v8420_v63, %v8416_v23  ;;  %v8840_v43 = vshll.u32 %v8746_v15, 16  ;;  %v13122_v12 = vld [vmem:[#allocation2 + $0x90] sm:$0xff]  }
 0x287   : > { %18118 = vst [vmem:[#allocation36_spill] sm:$0xff] %v16090_v62  ;;  %v16098_v57 = vadd.f32 %v12603_v0, %v4787_v34  ;;  %v4785_v26 = vadd.f32 %v4744_v31, %v15920_v58  ;;  %12804 = vmatprep.mubr.msk.bf16.mxu1 %vm1429_vm2, %v13117_v38  ;;  %v5082_v3 = vpop.f32.mrf.mxu1  ;;  %v8412_v36 = vrot.slane %v8411_v7, 4  ;;  %v8846_v41 = vshll.u32 %v8747_v8, 16  ;;  %v8317_v58 = vld [vmem:[#allocation2 + $0x3c] sm:$0xf] }
 0x288   : > { %v12610_v2 = vpop.f32.mrf.mxu0  ;;  %v8839_v9 = vrot.slane %v8837_v56, 4  ;;  %v8850_v25 = vshrl.u32 %v8747_v8, 16  ;;  %v8422_v29 = vrot.slane %v8421_v51, 4  ;;  %v8842_v47 = vrot.slane %v8840_v43, 5  ;;  %v13120_v31 = vld [vmem:[#allocation3 + $0x84] sm:$0xff]   ;;  %v13123_v51 = vld [vmem:[#allocation3 + $0x90] sm:$0xff]  }
 0x289   : > { %18119 = vst [vmem:[#allocation20_spill] sm:$0xff] %v16098_v57  ;;  %v16102_v19 = vadd.f32 %v5082_v3, %v4785_v26  ;;  %v6266_v49 = vadd.f32 %v12610_v2, %v15923_v42  ;;  %v12646_v34 = vpop.f32.mrf.mxu1  ;;  %v8417_v15 = vsel %vm14102_vm11, %v8412_v36, %v8416_v23  ;;  %v8848_v38 = vrot.slane %v8846_v41, 5  ;;  %v8318_v26 = vld [vmem:[#allocation2 + $0x40] sm:$0xf]  ;;  %v8756_v57 = vld [vmem:[#allocation3 + $0x58] sm:$0xf] }
 0x28a   : > { %v6137_v32 = vpop.f32.mrf.mxu0  ;;  %v8852_v63 = vrot.slane %v8850_v25, 4  ;;  %v8856_v0 = vshll.u32 %v8748_v4, 16  ;;  %v8427_v56 = vsel %vm14102_vm11, %v8422_v29, %v8426_v30  ;;  %v8843_v42 = vor.u32 %v8842_v47, %v8839_v9  ;;  %v8319_v30 = vld [vmem:[#allocation2 + $0x44] sm:$0x1] }
 0x28b   : > { %18120 = vst [vmem:[#allocation8_spill] sm:$0xff] %v16102_v19  ;;  %v16107_v7 = vadd.f32 %v12646_v34, %v6266_v49  ;;  %v6264_v8 = vadd.f32 %v6137_v32, %v15938_v24  ;;  %v6443_v43 = vpop.f32.mrf.mxu1  ;;  %v16113_v2 = vcombine.low %v8417_v15, %v8427_v56  ;;  %v8429_v4 = vshrl.u32 %v8317_v58, 16 }
 0x28c   : > { %12769 = vmatmul.mubr.msk.bf16.gmra.mxu0 %vm1429_vm2, %v13119_v20  ;;  %v12611_v3 = vpop.f32.mrf.mxu0  ;;  %v8853_v23 = vor.u32 %v8852_v63, %v8848_v38  ;;  %v8858_v36 = vrot.slane %v8856_v0, 5  ;;  %v8844_v25 = vrot.slane %v8843_v42, 4  ;;  %v8432_v9 = vshll.u32 %v8317_v58, 16  ;;  %v13124_v58 = vld [vmem:[#allocation2 + $0x9c] sm:$0xff]  }
 0x28d   : > { %18121 = vst [vmem:[#allocation12_spill] sm:$0xff] %v16107_v7  ;;  %12772 = vmatprep.mubr.msk.bf16.mxu0 %vm1429_vm2, %v13122_v12  ;;  %v16116_v41 = vadd.f32 %v6443_v43, %v6264_v8  ;;  %v6267_v24 = vadd.f32 %v12611_v3, %v15945_v55  ;;  %v12647_v49 = vpop.f32.mrf.mxu1  ;;  %v8431_v47 = vrot.slane %v8429_v4, 4  ;;  %v8438_v34 = vshll.u32 %v8318_v26, 16  ;;  %v8749_v55 = vld [vmem:[#allocation3 + $0x3c] sm:$0xf]  ;;  %v13133_v7 = vld [vmem:[#allocation3 + $0xcc] sm:$0xff]  }
 0x28e   : > { %v6140_v29 = vpop.f32.mrf.mxu0  ;;  %v8854_v20 = vrot.slane %v8853_v23, 4  ;;  %v8442_v32 = vshrl.u32 %v8318_v26, 16  ;;  %12805 = vmatmul.mubr.msk.bf16.gmra.mxu1 %vm1429_vm2, %v13120_v31  ;;  %v8849_v12 = vsel %vm14102_vm11, %v8844_v25, %v8848_v38  ;;  %v8434_v0 = vrot.slane %v8432_v9, 5  ;;  %v8750_v3 = vld [vmem:[#allocation3 + $0x40] sm:$0xf]  ;;  %v13126_v23 = vld [vmem:[#allocation2 + $0xa8] sm:$0xff]  }
 0x28f   : > { %18122 = vst [vmem:[#allocation22_spill] sm:$0xff] %v16116_v41  ;;  %v16120_v15 = vadd.f32 %v12647_v49, %v6267_v24  ;;  %v6265_v63 = vadd.f32 %v6140_v29, %v15948_v16  ;;  %12808 = vmatprep.mubr.msk.bf16.mxu1 %vm1429_vm2, %v13123_v51  ;;  %v6446_v8 = vpop.f32.mrf.mxu1  ;;  %v8440_v26 = vrot.slane %v8438_v34, 5  ;;  %v8448_v31 = vshll.u32 %v8319_v30, 16  ;;  %v8751_v25 = vld [vmem:[#allocation3 + $0x44] sm:$0x1] }
 0x290   : > { %v8859_v56 = vsel %vm14102_vm11, %v8854_v20, %v8858_v36  ;;  %v12614_v42 = vpop.f32.mrf.mxu0  ;;  %v8444_v43 = vrot.slane %v8442_v32, 4  ;;  %v8435_v24 = vor.u32 %v8434_v0, %v8431_v47  ;;  %v8861_v29 = vshrl.u32 %v8749_v55, 16  ;;  %v13125_v20 = vld [vmem:[#allocation3 + $0x9c] sm:$0xff]  }
 0x291   : > { %18123 = vst [vmem:[#allocation17_spill] sm:$0xff] %v16120_v15  ;;  %v16128_v4 = vadd.f32 %v6446_v8, %v6265_v63  ;;  %v16130_v16 = vcombine.low %v8849_v12, %v8859_v56  ;;  %v6270_v38 = vadd.f32 %v12614_v42, %v15951_v33  ;;  %v12650_v51 = vpop.f32.mrf.mxu1  ;;  %v8450_v49 = vrot.slane %v8448_v31, 5  ;;  %v13127_v63 = vld [vmem:[#allocation3 + $0xa8] sm:$0xff]  }
 0x292   : > { %v8445_v9 = vor.u32 %v8444_v43, %v8440_v26  ;;  %v8864_v15 = vshll.u32 %v8749_v55, 16  ;;  %v6153_v36 = vpop.f32.mrf.mxu0  ;;  %v8436_v30 = vrot.slane %v8435_v24, 4  ;;  %v8870_v32 = vshll.u32 %v8750_v3, 16 }
 0x293   : > { %18124 = vst [vmem:[#allocation14_spill] sm:$0xff] %v16128_v4  ;;  %v16133_v34 = vadd.f32 %v12650_v51, %v6270_v38  ;;  %v8874_v41 = vshrl.u32 %v8750_v3, 16  ;;  %v8863_v8 = vrot.slane %v8861_v29, 4  ;;  %v8880_v47 = vshll.u32 %v8751_v25, 16  ;;  %v6459_v0 = vpop.f32.mrf.mxu1  ;;  %v8320_v38 = vld [vmem:[#allocation2 + $0x48] sm:$0xf] }
 0x294   : > { %12773 = vmatmul.mubr.msk.bf16.gmra.mxu0 %vm1429_vm2, %v13124_v58  ;;  %v8446_v12 = vrot.slane %v8445_v9, 4  ;;  %v8866_v33 = vrot.slane %v8864_v15, 5  ;;  %v12615_v56 = vpop.f32.mrf.mxu0  ;;  %v8441_v55 = vsel %vm14102_vm11, %v8436_v30, %v8440_v26  ;;  %v8872_v42 = vrot.slane %v8870_v32, 5  ;;  %v8321_v9 = vld [vmem:[#allocation2 + $0x4c] sm:$0xf] }
 0x295   : > { %18125 = vst [vmem:[#allocation9_spill] sm:$0xff] %v16133_v34  ;;  %12776 = vmatprep.mubr.msk.bf16.mxu0 %vm1429_vm2, %v13126_v23  ;;  %v8876_v43 = vrot.slane %v8874_v41, 4  ;;  %v6268_v31 = vadd.f32 %v6153_v36, %v15957_v21  ;;  %v8882_v24 = vrot.slane %v8880_v47, 5  ;;  %v6271_v15 = vadd.f32 %v12615_v56, %v15960_v53  ;;  %v12651_v25 = vpop.f32.mrf.mxu1  ;;  %v8322_v41 = vld [vmem:[#allocation2 + $0x50] sm:$0x1] }
 0x296   : > { %v8451_v58 = vsel %vm14102_vm11, %v8446_v12, %v8450_v49  ;;  %v8867_v3 = vor.u32 %v8866_v33, %v8863_v8  ;;  %v6156_v51 = vpop.f32.mrf.mxu0  ;;  %12809 = vmatmul.mubr.msk.bf16.gmra.mxu1 %vm1429_vm2, %v13125_v20  ;;  %v13128_v49 = vld [vmem:[#allocation2 + $0xb4] sm:$0xff]   ;;  %v8453_v32 = vshrl.u32 %v8320_v38, 16  ;;  %v8456_v12 = vshll.u32 %v8320_v38, 16  ;;  %v8752_v8 = vld [vmem:[#allocation3 + $0x48] sm:$0xf] }
 0x297   : > { %v16144_v23 = vcombine.low %v8441_v55, %v8451_v58  ;;  %v8877_v26 = vor.u32 %v8876_v43, %v8872_v42  ;;  %v16146_v29 = vadd.f32 %v6459_v0, %v6268_v31  ;;  %v6269_v21 = vadd.f32 %v6156_v51, %v15968_v44  ;;  %12812 = vmatprep.mubr.msk.bf16.mxu1 %vm1429_vm2, %v13127_v63  ;;  %v6462_v53 = vpop.f32.mrf.mxu1  ;;  %v13130_v20 = vld [vmem:[#allocation2 + $0xc0] sm:$0xff]   ;;  %v8324_v4 = vld [vmem:[#allocation2 + $0x58] sm:$0xf] }
 0x298   : > { %v8868_v36 = vrot.slane %v8867_v3, 4  ;;  %v16150_v30 = vadd.f32 %v12651_v25, %v6271_v15  ;;  %v12618_v33 = vpop.f32.mrf.mxu0  ;;  %v8462_v0 = vshll.u32 %v8321_v9, 16  ;;  %v8466_v55 = vshrl.u32 %v8321_v9, 16  ;;  %v8753_v58 = vld [vmem:[#allocation3 + $0x4c] sm:$0xf]  ;;  %v13129_v25 = vld [vmem:[#allocation3 + $0xb4] sm:$0xff]  }
 0x299   : > { %18126 = vst [vmem:[#allocation16_spill] sm:$0xff] %v16146_v29  ;;  %v8878_v47 = vrot.slane %v8877_v26, 4  ;;  %v16152_v56 = vadd.f32 %v6462_v53, %v6269_v21  ;;  %v8455_v43 = vrot.slane %v8453_v32, 4  ;;  %v8458_v63 = vrot.slane %v8456_v12, 5  ;;  %v12654_v3 = vpop.f32.mrf.mxu1  ;;  %v8754_v21 = vld [vmem:[#allocation3 + $0x50] sm:$0x1] }
 0x29a   : > { %18127 = vst [vmem:[#allocation13_spill] sm:$0xff] %v16150_v30  ;;  %v8873_v44 = vsel %vm14102_vm11, %v8868_v36, %v8872_v42  ;;  %v8472_v31 = vshll.u32 %v8322_v41, 16  ;;  %v16156_v15 = vpop.f32.mrf.mxu0  ;;  %v8464_v51 = vrot.slane %v8462_v0, 5  ;;  %v8468_v26 = vrot.slane %v8466_v55, 4  ;;  %v13131_v9 = vld [vmem:[#allocation3 + $0xc0] sm:$0xff]  }
 0x29b   : > { %18128 = vst [vmem:[#allocation15_spill] sm:$0xff] %v16152_v56  ;;  %v8883_v38 = vsel %vm14102_vm11, %v8878_v47, %v8882_v24  ;;  %v8885_v53 = vshrl.u32 %v8752_v8, 16  ;;  %v8459_v42 = vor.u32 %v8458_v63, %v8455_v43  ;;  %v8888_v41 = vshll.u32 %v8752_v8, 16  ;;  %v8323_v32 = vld [vmem:[#allocation2 + $0x54] sm:$0xf]  ;;  %v16163_v12 = vpop.f32.mrf.mxu1 }
 0x29c   : > { %12777 = vmatmul.mubr.msk.bf16.gmra.mxu0 %vm1429_vm2, %v13128_v49  ;;  %v16161_v56 = vcombine.low %v8873_v44, %v8883_v38  ;;  %v8474_v36 = vrot.slane %v8472_v31, 5  ;;  %v16165_v30 = vpop.f32.mrf.mxu0  ;;  %v8469_v24 = vor.u32 %v8468_v26, %v8464_v51  ;;  %v8894_v0 = vshll.u32 %v8753_v58, 16  ;;  %v13132_v26 = vld [vmem:[#allocation2 + $0xcc] sm:$0xff]  }
 0x29d   : > { %12780 = vmatprep.mubr.msk.bf16.mxu0 %vm1429_vm2, %v13130_v20  ;;  %v8887_v47 = vrot.slane %v8885_v53, 4  ;;  %v8898_v55 = vshrl.u32 %v8753_v58, 16  ;;  %v8460_v29 = vrot.slane %v8459_v42, 4  ;;  %v8890_v34 = vrot.slane %v8888_v41, 5  ;;  %v16169_v38 = vpop.f32.mrf.mxu1  ;;  %v8755_v42 = vld [vmem:[#allocation3 + $0x54] sm:$0xf] }
 0x29e   : > { %v8904_v49 = vshll.u32 %v8754_v21, 16  ;;  %v6274_v44 = vadd.f32 %v12618_v33, %v15975_v5  ;;  %v16171_v43 = vpop.f32.mrf.mxu0  ;;  %12813 = vmatmul.mubr.msk.bf16.gmra.mxu1 %vm1429_vm2, %v13129_v25  ;;  %v8470_v8 = vrot.slane %v8469_v24, 4  ;;  %v8896_v63 = vrot.slane %v8894_v0, 5  ;;  %v8325_v33 = vld [vmem:[#allocation2 + $0x5c] sm:$0x1] }
 0x29f   : > { %v8900_v31 = vrot.slane %v8898_v55, 4  ;;  %v8477_v20 = vshrl.u32 %v8323_v32, 16  ;;  %12816 = vmatprep.mubr.msk.bf16.mxu1 %vm1429_vm2, %v13131_v9  ;;  %v8465_v58 = vsel %vm14102_vm11, %v8460_v29, %v8464_v51  ;;  %v8891_v21 = vor.u32 %v8890_v34, %v8887_v47  ;;  %v16179_v41 = vpop.f32.mrf.mxu1 }
 0x2a0   : > { %v8906_v53 = vrot.slane %v8904_v49, 5  ;;  %v16177_v5 = vadd.f32 %v12654_v3, %v6274_v44  ;;  %v16181_v25 = vpop.f32.mrf.mxu0  ;;  %v8475_v24 = vsel %vm14102_vm11, %v8470_v8, %v8474_v36  ;;  %v8480_v9 = vshll.u32 %v8323_v32, 16 }
 0x2a1   : > { %v8901_v0 = vor.u32 %v8900_v31, %v8896_v63  ;;  %v8479_v55 = vrot.slane %v8477_v20, 4  ;;  %v16185_v19 = vcombine.low %v8465_v58, %v8475_v24  ;;  %v8892_v29 = vrot.slane %v8891_v21, 4  ;;  %v16187_v3 = vpop.f32.mrf.mxu1  ;;  %v8757_v31 = vld [vmem:[#allocation3 + $0x5c] sm:$0x1] }
 0x2a2   : > { %18129 = vst [vmem:[#allocation18_spill] sm:$0xff] %v16177_v5  ;;  %v8486_v34 = vshll.u32 %v8324_v4, 16  ;;  %v8490_v51 = vshrl.u32 %v8324_v4, 16  ;;  %v16189_v47 = vpop.f32.mrf.mxu0  ;;  %v8482_v44 = vrot.slane %v8480_v9, 5  ;;  %v8496_v5 = vshll.u32 %v8325_v33, 16 }
 0x2a3   : > { %v8902_v49 = vrot.slane %v8901_v0, 4  ;;  %v8909_v62 = vshrl.u32 %v8755_v42, 16  ;;  %v8897_v36 = vsel %vm14102_vm11, %v8892_v29, %v8896_v63  ;;  %v8912_v20 = vshll.u32 %v8755_v42, 16  ;;  %v16202_v29 = vpop.f32.mrf.mxu1 }
 0x2a4   : > { %12781 = vmatmul.mubr.msk.bf16.gmra.mxu0 %vm1429_vm2, %v13132_v26  ;;  %v8488_v32 = vrot.slane %v8486_v34, 5  ;;  %v8492_v8 = vrot.slane %v8490_v51, 4  ;;  %v8483_v58 = vor.u32 %v8482_v44, %v8479_v55  ;;  %v8498_v21 = vrot.slane %v8496_v5, 5  ;;  %v16198_v24 = vpop.f32.mrf.mxu0 }
 0x2a5   : > { %12824 = vmatprep.mubr.msk.bf16.mxu0 %vm1429_vm2, %v16045_v10  ;;  %v8907_v4 = vsel %vm14102_vm11, %v8902_v49, %v8906_v53  ;;  %v8911_v33 = vrot.slane %v8909_v62, 4  ;;  %v8914_v9 = vrot.slane %v8912_v20, 5  ;;  %v8918_v63 = vshll.u32 %v8756_v57, 16  ;;  %v8326_v49 = vld [vmem:[#allocation2 + $0x60] sm:$0xf] }
 0x2a6   : > { %v16200_v0 = vcombine.low %v8897_v36, %v8907_v4  ;;  %v8493_v26 = vor.u32 %v8492_v8, %v8488_v32  ;;  %12817 = vmatmul.mubr.msk.bf16.gmra.mxu1 %vm1429_vm2, %v13133_v7  ;;  %v8484_v42 = vrot.slane %v8483_v58, 4  ;;  %v8922_v34 = vshrl.u32 %v8756_v57, 16  ;;  %v8327_v8 = vld [vmem:[#allocation2 + $0x64] sm:$0xf] }
 0x2a7   : > { %v8928_v10 = vshll.u32 %v8757_v31, 16  ;;  %v6272_v53 = vadd.f32 %v16156_v15, %v15978_v39  ;;  %12860 = vmatprep.mubr.msk.bf16.mxu1 %vm1429_vm2, %v16062_v48  ;;  %v8915_v5 = vor.u32 %v8914_v9, %v8911_v33  ;;  %v8920_v55 = vrot.slane %v8918_v63, 5  ;;  %v16216_v39 = vpop.f32.mrf.mxu0  ;;  %v8759_v9 = vld [vmem:[#allocation3 + $0x64] sm:$0xf] }
 0x2a8   : > { %v8494_v62 = vrot.slane %v8493_v26, 4  ;;  %v6275_v51 = vadd.f32 %v16165_v30, %v15983_v61  ;;  %v8489_v44 = vsel %vm14102_vm11, %v8484_v42, %v8488_v32  ;;  %v8924_v7 = vrot.slane %v8922_v34, 4  ;;  %v8328_v30 = vld [vmem:[#allocation2 + $0x68] sm:$0x1]  ;;  %v16225_v32 = vpop.f32.mrf.mxu1 }
 0x2a9   : > { %v8930_v36 = vrot.slane %v8928_v10, 5  ;;  %v16214_v57 = vadd.f32 %v16163_v12, %v6272_v53  ;;  %v8916_v15 = vrot.slane %v8915_v5, 4  ;;  %v6273_v61 = vadd.f32 %v16171_v43, %v15985_v45  ;;  %v13136_v12 = vld [vmem:[%s17879_s2 + $0x80] sm:$0xff]   ;;  %v16242_v53 = vpop.f32.mrf.mxu0 }
 0x2aa   : > { %v8499_v48 = vsel %vm14102_vm11, %v8494_v62, %v8498_v21  ;;  %v16221_v31 = vadd.f32 %v16169_v38, %v6275_v51  ;;  %v8925_v4 = vor.u32 %v8924_v7, %v8920_v55  ;;  %v8501_v58 = vshrl.u32 %v8326_v49, 16  ;;  %v8758_v21 = vld [vmem:[#allocation3 + $0x60] sm:$0xf]  ;;  %v8760_v5 = vld [vmem:[#allocation3 + $0x68] sm:$0x1] }
 0x2ab   : > { %v16230_v20 = vcombine.low %v8489_v44, %v8499_v48  ;;  %v8504_v33 = vshll.u32 %v8326_v49, 16  ;;  %v8921_v38 = vsel %vm14102_vm11, %v8916_v15, %v8920_v55  ;;  %v16237_v45 = vadd.f32 %v16179_v41, %v6273_v61  ;;  %v16247_v49 = vpop.f32.mrf.mxu1 }
 0x2ac   : > { %12825 = vmatmul.mubr.msk.bf16.vlgmr.msra.gmra.mxu0 %vm1429_vm2, %v16081_v1  ;;  %v8510_v43 = vshll.u32 %v8327_v8, 16  ;;  %v8514_v26 = vshrl.u32 %v8327_v8, 16  ;;  %v8926_v63 = vrot.slane %v8925_v4, 4  ;;  %v8503_v42 = vrot.slane %v8501_v58, 4  ;;  %v13137_v1 = vld [vmem:[%s17880_s3 + $0x80] sm:$0xff]  }
 0x2ad   : > { %12893 = vmatpush3.bf16.msra.mxu0 %v16015_v28  ;;  %12828 = vmatprep.mubr.msk.bf16.mxu0 %vm1429_vm2, %v16113_v2  ;;  %v8506_v34 = vrot.slane %v8504_v33, 5  ;;  %v8520_v10 = vshll.u32 %v8328_v30, 16  ;;  %v8933_v55 = vshrl.u32 %v8758_v21, 16  ;;  %v8936_v51 = vshll.u32 %v8758_v21, 16  ;;  %v8329_v8 = vld [vmem:[#allocation2 + $0x6c] sm:$0xf] }
 0x2ae   : > { %v8512_v41 = vrot.slane %v8510_v43, 5  ;;  %v8516_v62 = vrot.slane %v8514_v26, 4  ;;  %12894 = vmatprep.subr.bf16.mxu0 %v13136_v12  ;;  %12861 = vmatmul.mubr.msk.bf16.vlgmr.msra.gmra.mxu1 %vm1429_vm2, %v16095_v14  ;;  %v8931_v28 = vsel %vm14102_vm11, %v8926_v63, %v8930_v36  ;;  %v8942_v7 = vshll.u32 %v8759_v9, 16  ;;  %v16258_v36 = vpop.f32.mrf.mxu0  ;;  %v8330_v26 = vld [vmem:[#allocation2 + $0x70] sm:$0xf]  ;;  %v16262_v63 = vpop.f32.mrf.mxu1 }
 0x2af   : > { %v8507_v2 = vor.u32 %v8506_v34, %v8503_v42  ;;  %v8522_v44 = vrot.slane %v8520_v10, 5  ;;  %12929 = vmatpush3.bf16.msra.mxu1 %v16029_v37  ;;  %12864 = vmatprep.mubr.msk.bf16.mxu1 %vm1429_vm2, %v16130_v16  ;;  %v16256_v48 = vcombine.low %v8921_v38, %v8931_v28  ;;  %v8935_v61 = vrot.slane %v8933_v55, 4  ;;  %v8761_v38 = vld [vmem:[#allocation3 + $0x6c] sm:$0xf]  ;;  %v8331_v10 = vld [vmem:[#allocation2 + $0x74] sm:$0x1] }
 0x2b0   : > { %v8517_v15 = vor.u32 %v8516_v62, %v8512_v41  ;;  %v8938_v30 = vrot.slane %v8936_v51, 5  ;;  %v8944_v58 = vrot.slane %v8942_v7, 5  ;;  %v8946_v14 = vshrl.u32 %v8759_v9, 16  ;;  %12930 = vmatprep.subr.bf16.mxu1 %v13137_v1  ;;  %v16275_v7 = vpop.f32.mrf.mxu0 }
 0x2b1   : > { %v8508_v4 = vrot.slane %v8507_v2, 4  ;;  %v8952_v33 = vshll.u32 %v8760_v5, 16  ;;  %12895 = vmatpush3.bf16.msra.mxu0 %v13136_v12  ;;  %v6278_v37 = vadd.f32 %v16181_v25, %v15987_v18  ;;  %v8525_v16 = vshrl.u32 %v8329_v8, 16  ;;  %v8762_v2 = vld [vmem:[#allocation3 + $0x70] sm:$0xf] }
 0x2b2   : > { %v8518_v21 = vrot.slane %v8517_v15, 4  ;;  %v8939_v43 = vor.u32 %v8938_v30, %v8935_v61  ;;  %v8948_v34 = vrot.slane %v8946_v14, 4  ;;  %v8528_v12 = vshll.u32 %v8329_v8, 16  ;;  %v8763_v30 = vld [vmem:[#allocation3 + $0x74] sm:$0x1] }
 0x2b3   : > { %v8513_v42 = vsel %vm14102_vm11, %v8508_v4, %v8512_v41  ;;  %v8954_v9 = vrot.slane %v8952_v33, 5  ;;  %v16271_v18 = vadd.f32 %v16187_v3, %v6278_v37  ;;  %v8527_v25 = vrot.slane %v8525_v16, 4  ;;  %12931 = vmatpush3.bf16.msra.mxu1 %v13137_v1  ;;  %v16279_v3 = vpop.f32.mrf.mxu1 }
 0x2b4   : > { %12829 = vmatmul.mubr.msk.bf16.gmra.mxu0 %vm1429_vm2, %v16144_v23  ;;  %v8523_v62 = vsel %vm14102_vm11, %v8518_v21, %v8522_v44  ;;  %v8940_v5 = vrot.slane %v8939_v43, 4  ;;  %v8949_v55 = vor.u32 %v8948_v34, %v8944_v58  ;;  %v8530_v51 = vrot.slane %v8528_v12, 5 }
 0x2b5   : > { %12832 = vmatprep.mubr.msk.bf16.mxu0 %vm1429_vm2, %v16185_v19  ;;  %v11810_v41 = vcombine.low %v8513_v42, %v8523_v62  ;;  %v8534_v28 = vshll.u32 %v8330_v26, 16  ;;  %v8538_v44 = vshrl.u32 %v8330_v26, 16  ;;  %v8544_v8 = vshll.u32 %v8331_v10, 16  ;;  %v16287_v42 = vpop.f32.mrf.mxu0  ;;  %v16289_v62 = vpop.f32.mrf.mxu1 }
 0x2b6   : > { %v8945_v23 = vsel %vm14102_vm11, %v8940_v5, %v8944_v58  ;;  %v8957_v15 = vshrl.u32 %v8761_v38, 16  ;;  %12865 = vmatmul.mubr.msk.bf16.gmra.mxu1 %vm1429_vm2, %v16161_v56  ;;  %v8950_v1 = vrot.slane %v8949_v55, 4  ;;  %v8531_v19 = vor.u32 %v8530_v51, %v8527_v25 }
 0x2b7   : > { %v8536_v61 = vrot.slane %v8534_v28, 5  ;;  %v8960_v4 = vshll.u32 %v8761_v38, 16  ;;  %12868 = vmatprep.mubr.msk.bf16.mxu1 %vm1429_vm2, %v16200_v0  ;;  %v8540_v14 = vrot.slane %v8538_v44, 4  ;;  %v8546_v33 = vrot.slane %v8544_v8, 5  ;;  %v8332_v38 = vld [vmem:[#allocation2 + $0x78] sm:$0xf] }
 0x2b8   : > { %v8959_v21 = vrot.slane %v8957_v15, 4  ;;  %v8966_v58 = vshll.u32 %v8762_v2, 16  ;;  %v8955_v43 = vsel %vm14102_vm11, %v8950_v1, %v8954_v9  ;;  %v8532_v37 = vrot.slane %v8531_v19, 4  ;;  %v8333_v15 = vld [vmem:[#allocation2 + $0x7c] sm:$0xf]  ;;  %v16305_v1 = vpop.f32.mrf.mxu0  ;;  %v16315_v19 = vpop.f32.mrf.mxu1 }
 0x2b9   : > { %v8962_v26 = vrot.slane %v8960_v4, 5  ;;  %v8970_v16 = vshrl.u32 %v8762_v2, 16  ;;  %v11848_v56 = vcombine.low %v8945_v23, %v8955_v43  ;;  %v8541_v34 = vor.u32 %v8540_v14, %v8536_v61 }
 0x2ba   : > { %v8968_v10 = vrot.slane %v8966_v58, 5  ;;  %v8976_v12 = vshll.u32 %v8763_v30, 16  ;;  %v8537_v0 = vsel %vm14102_vm11, %v8532_v37, %v8536_v61  ;;  %v6276_v9 = vadd.f32 %v16189_v47, %v15993_v46  ;;  %v8334_v46 = vld [vmem:[#allocation2 + $0x80] sm:$0x1]  ;;  %v8766_v58 = vld [vmem:[#allocation3 + $0x80] sm:$0x1] }
 0x2bb   : > { %v8963_v5 = vor.u32 %v8962_v26, %v8959_v21  ;;  %v8972_v25 = vrot.slane %v8970_v16, 4  ;;  %v8542_v55 = vrot.slane %v8541_v34, 4  ;;  %v6279_v28 = vadd.f32 %v16198_v24, %v15995_v52 }
 0x2bc   : > { %12833 = vmatmul.mubr.msk.bf16.gmra.mxu0 %vm1429_vm2, %v16230_v20  ;;  %v8978_v51 = vrot.slane %v8976_v12, 5  ;;  %v6277_v2 = vadd.f32 %v16216_v39, %v16000_v54  ;;  %v16303_v8 = vadd.f32 %v16202_v29, %v6276_v9  ;;  %v8549_v47 = vshrl.u32 %v8332_v38, 16  ;;  %v8764_v39 = vld [vmem:[#allocation3 + $0x78] sm:$0xf] }
 0x2bd   : > { %12836 = vmatprep.mubr.msk.bf16.mxu0 %vm1429_vm2, %v11810_v41  ;;  %v8964_v23 = vrot.slane %v8963_v5, 4  ;;  %v8973_v44 = vor.u32 %v8972_v25, %v8968_v10  ;;  %v8547_v20 = vsel %vm14102_vm11, %v8542_v55, %v8546_v33  ;;  %v16310_v52 = vadd.f32 %v16225_v32, %v6279_v28  ;;  %v8765_v41 = vld [vmem:[#allocation3 + $0x7c] sm:$0xf] }
 0x2be   : > { %v16313_v54 = vadd.f32 %v16247_v49, %v6277_v2  ;;  %v8552_v24 = vshll.u32 %v8332_v38, 16  ;;  %12869 = vmatmul.mubr.msk.bf16.gmra.mxu1 %vm1429_vm2, %v16256_v48  ;;  %v11811_v29 = vcombine.low %v8537_v0, %v8547_v20  ;;  %v8551_v4 = vrot.slane %v8549_v47, 4  ;;  %v16324_v48 = vpop.f32.mrf.mxu0  ;;  %v8335_v38 = vld [vmem:[#allocation2 + $0x84] sm:$0xf]  ;;  %v16326_v0 = vpop.f32.mrf.mxu1 }
 0x2bf   : > { %18130 = vst [vmem:[#allocation21_spill] sm:$0xff] %v16310_v52  ;;  %v8969_v61 = vsel %vm14102_vm11, %v8964_v23, %v8968_v10  ;;  %v8974_v30 = vrot.slane %v8973_v44, 4  ;;  %12872 = vmatprep.mubr.msk.bf16.mxu1 %vm1429_vm2, %v11848_v56  ;;  %v8558_v14 = vshll.u32 %v8333_v15, 16  ;;  %v8562_v49 = vshrl.u32 %v8333_v15, 16  ;;  %v8336_v15 = vld [vmem:[#allocation2 + $0x88] sm:$0xf] }
 0x2c0   : > { %18131 = vst [vmem:[#allocation24_spill] sm:$0xff] %v16313_v54  ;;  %v8554_v32 = vrot.slane %v8552_v24, 5  ;;  %v8568_v33 = vshll.u32 %v8334_v46, 16  ;;  %v8981_v43 = vshrl.u32 %v8764_v39, 16  ;;  %v8984_v37 = vshll.u32 %v8764_v39, 16  ;;  %v16331_v20 = vpop.f32.mrf.mxu0 }
 0x2c1   : > { %v8979_v21 = vsel %vm14102_vm11, %v8974_v30, %v8978_v51  ;;  %v8990_v26 = vshll.u32 %v8765_v41, 16  ;;  %v8560_v10 = vrot.slane %v8558_v14, 5  ;;  %v8564_v12 = vrot.slane %v8562_v49, 4  ;;  %v8767_v14 = vld [vmem:[#allocation3 + $0x84] sm:$0xf] }
 0x2c2   : > { %v11849_v16 = vcombine.low %v8969_v61, %v8979_v21  ;;  %v8555_v34 = vor.u32 %v8554_v32, %v8551_v4  ;;  %v8570_v56 = vrot.slane %v8568_v33, 5  ;;  %v8983_v5 = vrot.slane %v8981_v43, 4  ;;  %v16335_v4 = vpop.f32.mrf.mxu1  ;;  %v8768_v43 = vld [vmem:[#allocation3 + $0x88] sm:$0xf] }
 0x2c3   : > { %v8986_v25 = vrot.slane %v8984_v37, 5  ;;  %v8992_v9 = vrot.slane %v8990_v26, 5  ;;  %v8565_v51 = vor.u32 %v8564_v12, %v8560_v10  ;;  %v8994_v28 = vshrl.u32 %v8765_v41, 16 }
 0x2c4   : > { %12837 = vmatmul.mubr.msk.bf16.gmra.mxu0 %vm1429_vm2, %v11811_v29  ;;  %v8556_v55 = vrot.slane %v8555_v34, 4  ;;  %v9000_v2 = vshll.u32 %v8766_v58, 16  ;;  %v6282_v44 = vadd.f32 %v16242_v53, %v16004_v22  ;;  %v8573_v46 = vshrl.u32 %v8335_v38, 16  ;;  %v8337_v29 = vld [vmem:[#allocation2 + $0x8c] sm:$0x1] }
 0x2c5   : > { %v8987_v23 = vor.u32 %v8986_v25, %v8983_v5  ;;  %v8576_v47 = vshll.u32 %v8335_v38, 16  ;;  %v8566_v39 = vrot.slane %v8565_v51, 4  ;;  %v8996_v61 = vrot.slane %v8994_v28, 4  ;;  %v16347_v25 = vpop.f32.mrf.mxu1  ;;  %v8769_v51 = vld [vmem:[#allocation3 + $0x8c] sm:$0x1] }
 0x2c6   : > { %v8561_v24 = vsel %vm14102_vm11, %v8556_v55, %v8560_v10  ;;  %v9002_v30 = vrot.slane %v9000_v2, 5  ;;  %12873 = vmatmul.mubr.msk.bf16.gmra.mxu1 %vm1429_vm2, %v11849_v16  ;;  %v16339_v32 = vadd.f32 %v16262_v63, %v6282_v44  ;;  %v8575_v22 = vrot.slane %v8573_v46, 4  ;;  %v16345_v10 = vpop.f32.mrf.mxu0  ;;  %v8338_v46 = vld [vmem:[#allocation2 + $0x90] sm:$0xf] }
 0x2c7   : > { %v8988_v41 = vrot.slane %v8987_v23, 4  ;;  %v8578_v53 = vrot.slane %v8576_v47, 5  ;;  %v8571_v49 = vsel %vm14102_vm11, %v8566_v39, %v8570_v56  ;;  %v8997_v33 = vor.u32 %v8996_v61, %v8992_v9 }
 0x2c8   : > { %18132 = vst [vmem:[#allocation25_spill] sm:$0xff] %v16339_v32  ;;  %v8582_v21 = vshll.u32 %v8336_v15, 16  ;;  %v8586_v58 = vshrl.u32 %v8336_v15, 16  ;;  %v11812_v37 = vcombine.low %v8561_v24, %v8571_v49  ;;  %v8592_v16 = vshll.u32 %v8337_v29, 16  ;;  %v16354_v29 = vpop.f32.mrf.mxu0  ;;  %v16358_v49 = vpop.f32.mrf.mxu1 }
 0x2c9   : > { %v8993_v26 = vsel %vm14102_vm11, %v8988_v41, %v8992_v9  ;;  %v8579_v34 = vor.u32 %v8578_v53, %v8575_v22  ;;  %v8998_v63 = vrot.slane %v8997_v33, 4  ;;  %v9005_v5 = vshrl.u32 %v8767_v14, 16 }
 0x2ca   : > { %v8584_v12 = vrot.slane %v8582_v21, 5  ;;  %v8588_v38 = vrot.slane %v8586_v58, 4  ;;  %12840 = vmatprep.mubr.msk.bf16.mxu0 %vm1429_vm2, %v11812_v37  ;;  %v8594_v55 = vrot.slane %v8592_v16, 5  ;;  %v9008_v28 = vshll.u32 %v8767_v14, 16  ;;  %v8339_v58 = vld [vmem:[#allocation2 + $0x94] sm:$0xf] }
 0x2cb   : > { %v8580_v56 = vrot.slane %v8579_v34, 4  ;;  %v9014_v2 = vshll.u32 %v8768_v43, 16  ;;  %v9003_v9 = vsel %vm14102_vm11, %v8998_v63, %v9002_v30  ;;  %v9007_v44 = vrot.slane %v9005_v5, 4  ;;  %v8770_v16 = vld [vmem:[#allocation3 + $0x90] sm:$0xf] }
 0x2cc   : > { %v8589_v23 = vor.u32 %v8588_v38, %v8584_v12  ;;  %v9018_v15 = vshrl.u32 %v8768_v43, 16  ;;  %v11850_v47 = vcombine.low %v8993_v26, %v9003_v9  ;;  %v9010_v39 = vrot.slane %v9008_v28, 5 }
 0x2cd   : > { %v8585_v24 = vsel %vm14102_vm11, %v8580_v56, %v8584_v12  ;;  %v9016_v61 = vrot.slane %v9014_v2, 5  ;;  %v9024_v53 = vshll.u32 %v8769_v51, 16  ;;  %v6280_v14 = vadd.f32 %v16258_v36, %v16009_v50  ;;  %v8340_v36 = vld [vmem:[#allocation2 + $0x98] sm:$0x1]  ;;  %v16378_v51 = vpop.f32.mrf.mxu1  ;;  %v8772_v2 = vld [vmem:[#allocation3 + $0x98] sm:$0x1] }
 0x2ce   : > { %v8590_v41 = vrot.slane %v8589_v23, 4  ;;  %v9020_v22 = vrot.slane %v9018_v15, 4  ;;  %12876 = vmatprep.mubr.msk.bf16.mxu1 %vm1429_vm2, %v11850_v47  ;;  %v9011_v30 = vor.u32 %v9010_v39, %v9007_v44  ;;  %v6283_v33 = vadd.f32 %v16275_v7, %v16018_v27 }
 0x2cf   : > { %v6281_v21 = vadd.f32 %v16287_v42, %v16023_v17  ;;  %v8597_v43 = vshrl.u32 %v8338_v46, 16  ;;  %v9026_v34 = vrot.slane %v9024_v53, 5  ;;  %v16368_v50 = vadd.f32 %v16279_v3, %v6280_v14  ;;  %v16376_v17 = vpop.f32.mrf.mxu0 }
 0x2d0   : > { %v8595_v37 = vsel %vm14102_vm11, %v8590_v41, %v8594_v55  ;;  %v9021_v26 = vor.u32 %v9020_v22, %v9016_v61  ;;  %v9012_v12 = vrot.slane %v9011_v30, 4  ;;  %v16371_v38 = vadd.f32 %v16289_v62, %v6283_v33  ;;  %v8771_v55 = vld [vmem:[#allocation3 + $0x94] sm:$0xf]  ;;  %v16387_v33 = vpop.f32.mrf.mxu1 }
 0x2d1   : > { %18133 = vst [vmem:[#allocation26_spill] sm:$0xff] %v16368_v50  ;;  %v11813_v63 = vcombine.low %v8585_v24, %v8595_v37  ;;  %v16374_v27 = vadd.f32 %v16315_v19, %v6281_v21  ;;  %v8599_v42 = vrot.slane %v8597_v43, 4  ;;  %v8600_v5 = vshll.u32 %v8338_v46, 16  ;;  %v8341_v46 = vld [vmem:[#allocation2 + $0x9c] sm:$0xf]  ;;  %v16385_v22 = vpop.f32.mrf.mxu0 }
 0x2d2   : > { %18134 = vst [vmem:[#allocation27_spill] sm:$0xff] %v16371_v38  ;;  %v9022_v7 = vrot.slane %v9021_v26, 4  ;;  %v8606_v56 = vshll.u32 %v8339_v58, 16  ;;  %v9017_v3 = vsel %vm14102_vm11, %v9012_v12, %v9016_v61  ;;  %v8610_v28 = vshrl.u32 %v8339_v58, 16  ;;  %v8342_v37 = vld [vmem:[#allocation2 + $0xa0] sm:$0xf] }
 0x2d3   : > { %18135 = vst [vmem:[#allocation19_spill] sm:$0xff] %v16374_v27  ;;  %12841 = vmatmul.mubr.msk.bf16.gmra.mxu0 %vm1429_vm2, %v11813_v63  ;;  %v8616_v62 = vshll.u32 %v8340_v36, 16  ;;  %v9029_v9 = vshrl.u32 %v8770_v16, 16  ;;  %v8602_v23 = vrot.slane %v8600_v5, 5  ;;  %v9032_v15 = vshll.u32 %v8770_v16, 16 }
 0x2d4   : > { %v9027_v19 = vsel %vm14102_vm11, %v9022_v7, %v9026_v34  ;;  %v8608_v44 = vrot.slane %v8606_v56, 5  ;;  %v8612_v24 = vrot.slane %v8610_v28, 4  ;;  %v9038_v61 = vshll.u32 %v8771_v55, 16  ;;  %v8343_v12 = vld [vmem:[#allocation2 + $0xa4] sm:$0x1] }
 0x2d5   : > { %v11851_v47 = vcombine.low %v9017_v3, %v9027_v19  ;;  %v8618_v39 = vrot.slane %v8616_v62, 5  ;;  %v9031_v41 = vrot.slane %v9029_v9, 4  ;;  %v8603_v53 = vor.u32 %v8602_v23, %v8599_v42  ;;  %v8773_v62 = vld [vmem:[#allocation3 + $0x9c] sm:$0xf] }
 0x2d6   : > { %v9034_v14 = vrot.slane %v9032_v15, 5  ;;  %v9042_v30 = vshrl.u32 %v8771_v55, 16  ;;  %v8613_v21 = vor.u32 %v8612_v24, %v8608_v44  ;;  %v9048_v58 = vshll.u32 %v8772_v2, 16  ;;  %v16395_v55 = vpop.f32.mrf.mxu0  ;;  %v16399_v2 = vpop.f32.mrf.mxu1 }
 0x2d7   : > { %12877 = vmatmul.mubr.msk.bf16.gmra.mxu1 %vm1429_vm2, %v11851_v47  ;;  %v6286_v43 = vadd.f32 %v16305_v1, %v16032_v11  ;;  %v8621_v26 = vshrl.u32 %v8341_v46, 16  ;;  %v8604_v34 = vrot.slane %v8603_v53, 4  ;;  %v9040_v16 = vrot.slane %v9038_v61, 5 }
 0x2d8   : > { %v9035_v36 = vor.u32 %v9034_v14, %v9031_v41  ;;  %v9044_v63 = vrot.slane %v9042_v30, 4  ;;  %v8614_v7 = vrot.slane %v8613_v21, 4  ;;  %v9050_v42 = vrot.slane %v9048_v58, 5 }
 0x2d9   : > { %v16393_v5 = vadd.f32 %v16326_v0, %v6286_v43  ;;  %v8623_v56 = vrot.slane %v8621_v26, 4  ;;  %v8609_v3 = vsel %vm14102_vm11, %v8604_v34, %v8608_v44  ;;  %v8624_v1 = vshll.u32 %v8341_v46, 16  ;;  %v8774_v0 = vld [vmem:[#allocation3 + $0xa0] sm:$0xf]  ;;  %v8775_v46 = vld [vmem:[#allocation3 + $0xa4] sm:$0x1]  ;;  %v16410_v26 = vpop.f32.mrf.mxu1 }
 0x2da   : > { %v9036_v28 = vrot.slane %v9035_v36, 4  ;;  %v9045_v11 = vor.u32 %v9044_v63, %v9040_v16  ;;  %v8619_v9 = vsel %vm14102_vm11, %v8614_v7, %v8618_v39  ;;  %v8630_v19 = vshll.u32 %v8342_v37, 16 }
 0x2db   : > { %18136 = vst [vmem:[#allocation23_spill] sm:$0xff] %v16393_v5  ;;  %v8634_v23 = vshrl.u32 %v8342_v37, 16  ;;  %v8640_v15 = vshll.u32 %v8343_v12, 16  ;;  %v11814_v47 = vcombine.low %v8609_v3, %v8619_v9  ;;  %v8626_v53 = vrot.slane %v8624_v1, 5  ;;  %v16405_v21 = vpop.f32.mrf.mxu0  ;;  %v18144_v5 = vld [vmem:[#allocation35_spill] sm:$0xff] }
 0x2dc   : > { %v9041_v24 = vsel %vm14102_vm11, %v9036_v28, %v9040_v16  ;;  %v9046_v41 = vrot.slane %v9045_v11, 4  ;;  %v8632_v44 = vrot.slane %v8630_v19, 5  ;;  %v9053_v30 = vshrl.u32 %v8773_v62, 16 }
 0x2dd   : > { %v8636_v14 = vrot.slane %v8634_v23, 4  ;;  %v8642_v61 = vrot.slane %v8640_v15, 5  ;;  %12844 = vmatprep.mubr.msk.bf16.mxu0 %vm1429_vm2, %v11814_v47  ;;  %v8627_v58 = vor.u32 %v8626_v53, %v8623_v56  ;;  %v9056_v43 = vshll.u32 %v8773_v62, 16  ;;  %v16412_v12 = vpop.f32.mrf.mxu0  ;;  %v8344_v62 = vld [vmem:[#allocation2 + $0xa8] sm:$0xf] }
 0x2de   : > { %v9051_v39 = vsel %vm14102_vm11, %v9046_v41, %v9050_v42  ;;  %v9062_v37 = vshll.u32 %v8774_v0, 16  ;;  %v9055_v16 = vrot.slane %v9053_v30, 4  ;;  %v9066_v63 = vshrl.u32 %v8774_v0, 16  ;;  %v8346_v53 = vld [vmem:[#allocation2 + $0xb0] sm:$0x1] }
 0x2df   : > { %v11852_v34 = vcombine.low %v9041_v24, %v9051_v39  ;;  %v8637_v36 = vor.u32 %v8636_v14, %v8632_v44  ;;  %v8628_v7 = vrot.slane %v8627_v58, 4  ;;  %v9058_v3 = vrot.slane %v9056_v43, 5  ;;  %v16419_v19 = vpop.f32.mrf.mxu0  ;;  %v8345_v24 = vld [vmem:[#allocation2 + $0xac] sm:$0xf] }
 0x2e0   : > { %v9064_v28 = vrot.slane %v9062_v37, 5  ;;  %v9072_v11 = vshll.u32 %v8775_v46, 16  ;;  %v9068_v9 = vrot.slane %v9066_v63, 4  ;;  %v6284_v42 = vadd.f32 %v16324_v48, %v16039_v59  ;;  %v8777_v37 = vld [vmem:[#allocation3 + $0xac] sm:$0xf] }
 0x2e1   : > { %12880 = vmatprep.mubr.msk.bf16.mxu1 %vm1429_vm2, %v11852_v34  ;;  %v8638_v1 = vrot.slane %v8637_v36, 4  ;;  %v6287_v56 = vadd.f32 %v16331_v20, %v16048_v35  ;;  %v8633_v23 = vsel %vm14102_vm11, %v8628_v7, %v8632_v44  ;;  %v9059_v15 = vor.u32 %v9058_v3, %v9055_v16  ;;  %v16425_v41 = vpop.f32.mrf.mxu1  ;;  %v8776_v44 = vld [vmem:[#allocation3 + $0xa8] sm:$0xf]  ;;  %v16435_v14 = vpop.f32.mrf.mxu0  ;;  %v8778_v63 = vld [vmem:[#allocation3 + $0xb0] sm:$0x1] }
 0x2e2   : > { %v9074_v0 = vrot.slane %v9072_v11, 5  ;;  %v6285_v47 = vadd.f32 %v16345_v10, %v16054_v60  ;;  %v9069_v48 = vor.u32 %v9068_v9, %v9064_v28  ;;  %v16430_v35 = vadd.f32 %v16335_v4, %v6284_v42  ;;  %v8347_v42 = vld [vmem:[#allocation2 + $0xb4] sm:$0xf] }
 0x2e3   : > { %v8643_v59 = vsel %vm14102_vm11, %v8638_v1, %v8642_v61  ;;  %v16433_v20 = vadd.f32 %v16347_v25, %v6287_v56  ;;  %v9060_v30 = vrot.slane %v9059_v15, 4  ;;  %v8645_v10 = vshrl.u32 %v8344_v62, 16  ;;  %v16440_v39 = vpop.f32.mrf.mxu1  ;;  %v16442_v34 = vpop.f32.mrf.mxu0 }
 0x2e4   : > { %18137 = vst [vmem:[#allocation28_spill] sm:$0xff] %v16430_v35  ;;  %v11815_v46 = vcombine.low %v8633_v23, %v8643_v59  ;;  %v16438_v60 = vadd.f32 %v16358_v49, %v6285_v47  ;;  %v9070_v61 = vrot.slane %v9069_v48, 4  ;;  %v8648_v58 = vshll.u32 %v8344_v62, 16 }
 0x2e5   : > { %18138 = vst [vmem:[#allocation10_spill] sm:$0xff] %v16433_v20  ;;  %v8654_v43 = vshll.u32 %v8345_v24, 16  ;;  %v8658_v4 = vshrl.u32 %v8345_v24, 16  ;;  %v9065_v25 = vsel %vm14102_vm11, %v9060_v30, %v9064_v28  ;;  %v8647_v36 = vrot.slane %v8645_v10, 4  ;;  %v16447_v7 = vpop.f32.mrf.mxu1  ;;  %v16451_v56 = vpop.f32.mrf.mxu0  ;;  %v18140_v10 = vld [vmem:[#allocation34_spill] sm:$0xff] }
 0x2e6   : > { %18139 = vst [vmem:[#allocation29_spill] sm:$0xff] %v16438_v60  ;;  %12845 = vmatmul.mubr.msk.bf16.gmra.mxu0 %vm1429_vm2, %v11815_v46  ;;  %v8664_v16 = vshll.u32 %v8346_v53, 16  ;;  %v9077_v49 = vshrl.u32 %v8776_v44, 16  ;;  %v9075_v3 = vsel %vm14102_vm11, %v9070_v61, %v9074_v0  ;;  %v8650_v11 = vrot.slane %v8648_v58, 5  ;;  %v16477_v60 = vld [vmem:[#allocation3 + $0xb8] sm:$0xf] }
 0x2e7   : > { %v8656_v1 = vrot.slane %v8654_v43, 5  ;;  %v8660_v9 = vrot.slane %v8658_v4, 4  ;;  %v11853_v62 = vcombine.low %v9065_v25, %v9075_v3  ;;  %v9080_v47 = vshll.u32 %v8776_v44, 16  ;;  %v16453_v28 = vpop.f32.mrf.mxu1  ;;  %v16455_v46 = vpop.f32.mrf.mxu0  ;;  %18142 = vst [vmem:[#allocation30_spill] sm:$0xff] %v16477_v60 }
 0x2e8   : > { %v8666_v23 = vrot.slane %v8664_v16, 5  ;;  %v9079_v15 = vrot.slane %v9077_v49, 4  ;;  %v8651_v24 = vor.u32 %v8650_v11, %v8647_v36  ;;  %v9086_v48 = vshll.u32 %v8777_v37, 16  ;;  %v8348_v36 = vld [vmem:[#allocation2 + $0xb8] sm:$0xf] }
 0x2e9   : > { %v8661_v59 = vor.u32 %v8660_v9, %v8656_v1  ;;  %v9090_v53 = vshrl.u32 %v8777_v37, 16  ;;  %12881 = vmatmul.mubr.msk.bf16.gmra.mxu1 %vm1429_vm2, %v11853_v62  ;;  %v9082_v0 = vrot.slane %v9080_v47, 5  ;;  %v9096_v30 = vshll.u32 %v8778_v63, 16  ;;  %v16460_v43 = vpop.f32.mrf.mxu1  ;;  %v16462_v49 = vpop.f32.mrf.mxu0  ;;  %v8349_v9 = vld [vmem:[#allocation2 + $0xbc] sm:$0x1] }
 0x2ea   : > { %v6290_v61 = vadd.f32 %v16354_v29, %v18140_v10  ;;  %v8669_v58 = vshrl.u32 %v8347_v42, 16  ;;  %v8652_v4 = vrot.slane %v8651_v24, 4  ;;  %v9088_v25 = vrot.slane %v9086_v48, 5  ;;  %v8779_v62 = vld [vmem:[#allocation3 + $0xb4] sm:$0xf] }
 0x2eb   : > { %v8662_v44 = vrot.slane %v8661_v59, 4  ;;  %v9092_v16 = vrot.slane %v9090_v53, 4  ;;  %v9083_v37 = vor.u32 %v9082_v0, %v9079_v15  ;;  %v9098_v3 = vrot.slane %v9096_v30, 5  ;;  %v16467_v47 = vpop.f32.mrf.mxu1 }
 0x2ec   : > { %v16465_v11 = vadd.f32 %v16378_v51, %v6290_v61  ;;  %v8671_v63 = vrot.slane %v8669_v58, 4  ;;  %v8657_v29 = vsel %vm14102_vm11, %v8652_v4, %v8656_v1  ;;  %v8672_v48 = vshll.u32 %v8347_v42, 16  ;;  %v16475_v51 = vpop.f32.mrf.mxu0  ;;  %v16482_v4 = vld [vmem:[#allocation3 + $0xbc] sm:$0x1] }
 0x2ed   : > { %v8667_v24 = vsel %vm14102_vm11, %v8662_v44, %v8666_v23  ;;  %v9093_v59 = vor.u32 %v9092_v16, %v9088_v25  ;;  %v9084_v10 = vrot.slane %v9083_v37, 4  ;;  %v8678_v15 = vshll.u32 %v8348_v36, 16  ;;  %v16473_v30 = vpop.f32.mrf.mxu1  ;;  %18143 = vst [vmem:[#allocation31_spill] sm:$0xff] %v16482_v4 }
 0x2ee   : > { %18141 = vst [vmem:[#allocation37_spill] sm:$0xff] %v16465_v11  ;;  %v11816_v53 = vcombine.low %v8657_v29, %v8667_v24  ;;  %v8682_v0 = vshrl.u32 %v8348_v36, 16  ;;  %v8674_v58 = vrot.slane %v8672_v48, 5  ;;  %v8688_v11 = vshll.u32 %v8349_v9, 16  ;;  %v16486_v36 = vpop.f32.mrf.mxu0 }
 0x2ef   : > { %v9094_v61 = vrot.slane %v9093_v59, 4  ;;  %v9101_v20 = vshrl.u32 %v8779_v62, 16  ;;  %v9089_v1 = vsel %vm14102_vm11, %v9084_v10, %v9088_v25  ;;  %v8680_v42 = vrot.slane %v8678_v15, 5  ;;  %v16484_v16 = vpop.f32.mrf.mxu1 }
 0x2f0   : > { %12848 = vmatprep.mubr.msk.bf16.mxu0 %vm1429_vm2, %v11816_v53  ;;  %v8684_v23 = vrot.slane %v8682_v0, 4  ;;  %v9104_v44 = vshll.u32 %v8779_v62, 16  ;;  %v8675_v9 = vor.u32 %v8674_v58, %v8671_v63  ;;  %v8690_v29 = vrot.slane %v8688_v11, 5  ;;  %v16493_v15 = vpop.f32.mrf.mxu0 }
 0x2f1   : > { %v9099_v37 = vsel %vm14102_vm11, %v9094_v61, %v9098_v3  ;;  %v9103_v24 = vrot.slane %v9101_v20, 4  ;;  %v9110_v25 = vshll.u32 %v16477_v60, 16  ;;  %v16491_v10 = vpop.f32.mrf.mxu1  ;;  %v9114_v0 = vshrl.u32 %v16477_v60, 16  ;;  %v18145_v61 = vld [vmem:[#allocation7_spill] sm:$0xff] }
 0x2f2   : > { %v11854_v59 = vcombine.low %v9089_v1, %v9099_v37  ;;  %v8685_v48 = vor.u32 %v8684_v23, %v8680_v42  ;;  %v9106_v53 = vrot.slane %v9104_v44, 5  ;;  %v8676_v62 = vrot.slane %v8675_v9, 4  ;;  %v8350_v1 = vld [vmem:[#allocation2 + $0xc0] sm:$0xf]  ;;  %v16504_v44 = vpop.f32.mrf.mxu0 }
 0x2f3   : > { %v9120_v35 = vshll.u32 %v16482_v4, 16  ;;  %v6288_v3 = vadd.f32 %v16376_v17, %v18144_v5  ;;  %v9112_v63 = vrot.slane %v9110_v25, 5  ;;  %v6291_v58 = vadd.f32 %v16385_v22, %v18145_v61  ;;  %v16502_v23 = vpop.f32.mrf.mxu1  ;;  %v16511_v5 = vld [vmem:[#allocation2 + $0xc4] sm:$0xf] }
 0x2f4   : > { %12884 = vmatprep.mubr.msk.bf16.mxu1 %vm1429_vm2, %v11854_v59  ;;  %v8686_v20 = vrot.slane %v8685_v48, 4  ;;  %v9107_v11 = vor.u32 %v9106_v53, %v9103_v24  ;;  %v8681_v37 = vsel %vm14102_vm11, %v8676_v62, %v8680_v42  ;;  %v9116_v9 = vrot.slane %v9114_v0, 4  ;;  %18147 = vst [vmem:[#allocation32_spill] sm:$0xff] %v16511_v5  ;;  %v16520_v53 = vld [vmem:[#allocation2 + $0xc8] sm:$0x1] }
 0x2f5   : > { %v9122_v4 = vrot.slane %v9120_v35, 5  ;;  %v16509_v17 = vadd.f32 %v16387_v33, %v6288_v3  ;;  %v16516_v22 = vadd.f32 %v16399_v2, %v6291_v58  ;;  %v6289_v48 = vadd.f32 %v16395_v55, %v16078_v6  ;;  %18149 = vst [vmem:[#allocation35_spill] sm:$0xff] %v16520_v53  ;;  %v16522_v42 = vpop.f32.mrf.mxu1  ;;  %v8782_v0 = vld [vmem:[#allocation3 + $0xc0] sm:$0xf]  ;;  %v16533_v55 = vld [vmem:[#allocation3 + $0xc4] sm:$0xf] }
 0x2f6   : > { %v8691_v24 = vsel %vm14102_vm11, %v8686_v20, %v8690_v29  ;;  %v9108_v59 = vrot.slane %v9107_v11, 4  ;;  %v9117_v25 = vor.u32 %v9116_v9, %v9112_v63  ;;  %v8693_v33 = vshrl.u32 %v8350_v1, 16  ;;  %18151 = vst [vmem:[#allocation38_spill] sm:$0xff] %v16533_v55 }
 0x2f7   : > { %18146 = vst [vmem:[#allocation33_spill] sm:$0xff] %v16509_v17  ;;  %18148 = vst [vmem:[#allocation34_spill] sm:$0xff] %v16516_v22  ;;  %v11817_v35 = vcombine.low %v8681_v37, %v8691_v24  ;;  %v8696_v62 = vshll.u32 %v8350_v1, 16  ;;  %v16524_v3 = vpop.f32.mrf.mxu0  ;;  %v16529_v2 = vadd.f32 %v16410_v26, %v6289_v48  ;;  %v8702_v20 = vshll.u32 %v16511_v5, 16  ;;  %v16535_v11 = vpop.f32.mrf.mxu1  ;;  %v16541_v24 = vld [vmem:[#allocation3 + $0xc8] sm:$0x1] }
 0x2f8   : > { %v9113_v29 = vsel %vm14102_vm11, %v9108_v59, %v9112_v63  ;;  %v8706_v6 = vshrl.u32 %v16511_v5, 16  ;;  %v9118_v61 = vrot.slane %v9117_v25, 4  ;;  %v8695_v58 = vrot.slane %v8693_v33, 4  ;;  %18152 = vst [vmem:[#allocation39_spill] sm:$0xff] %v16541_v24  ;;  %v8353_v33 = vld [vmem:[#allocation2 + $0xcc] sm:$0xf] }
 0x2f9   : > { %18150 = vst [vmem:[#allocation7_spill] sm:$0xff] %v16529_v2  ;;  %12849 = vmatmul.mubr.msk.bf16.gmra.mxu0 %vm1429_vm2, %v11817_v35  ;;  %v8698_v1 = vrot.slane %v8696_v62, 5  ;;  %v8712_v37 = vshll.u32 %v16520_v53, 16  ;;  %v16539_v9 = vpop.f32.mrf.mxu0  ;;  %v8704_v63 = vrot.slane %v8702_v20, 5  ;;  %v9125_v59 = vshrl.u32 %v8782_v0, 16  ;;  %v16543_v5 = vpop.f32.mrf.mxu1 }
 0x2fa   : > { %v8708_v26 = vrot.slane %v8706_v6, 4  ;;  %v9128_v48 = vshll.u32 %v8782_v0, 16  ;;  %v9123_v2 = vsel %vm14102_vm11, %v9118_v61, %v9122_v4  ;;  %v9134_v25 = vshll.u32 %v16533_v55, 16 }
 0x2fb   : > { %v8699_v22 = vor.u32 %v8698_v1, %v8695_v58  ;;  %v8714_v35 = vrot.slane %v8712_v37, 5  ;;  %v16548_v62 = vpop.f32.mrf.mxu0  ;;  %v11855_v53 = vcombine.low %v9113_v29, %v9123_v2  ;;  %v9127_v20 = vrot.slane %v9125_v59, 4  ;;  %v16550_v60 = vpop.f32.mrf.mxu1  ;;  %v16559_v2 = vld [vmem:[#allocation2 + $0xd0] sm:$0xf]  ;;  %v16561_v1 = vld [vmem:[#allocation2 + $0xd4] sm:$0x1] }
 0x2fc   : > { %v8709_v17 = vor.u32 %v8708_v26, %v8704_v63  ;;  %v9130_v6 = vrot.slane %v9128_v48, 5  ;;  %v9136_v0 = vrot.slane %v9134_v25, 5  ;;  %v9138_v38 = vshrl.u32 %v16533_v55, 16  ;;  %18153 = vst [vmem:[#allocation40_spill] sm:$0xff] %v16559_v2  ;;  %18154 = vst [vmem:[#allocation41_spill] sm:$0xff] %v16561_v1 }
 0x2fd   : > { %v8700_v27 = vrot.slane %v8699_v22, 4  ;;  %v9144_v50 = vshll.u32 %v16541_v24, 16  ;;  %v16554_v4 = vpop.f32.mrf.mxu0  ;;  %12885 = vmatmul.mubr.msk.bf16.gmra.mxu1 %vm1429_vm2, %v11855_v53  ;;  %v6294_v29 = vadd.f32 %v16405_v21, %v16083_v13  ;;  %v8717_v37 = vshrl.u32 %v8353_v33, 16  ;;  %v16563_v22 = vpop.f32.mrf.mxu1  ;;  %v8785_v24 = vld [vmem:[#allocation3 + $0xcc] sm:$0xf] }
 0x2fe   : > { %v8710_v61 = vrot.slane %v8709_v17, 4  ;;  %v9131_v58 = vor.u32 %v9130_v6, %v9127_v20  ;;  %v9140_v59 = vrot.slane %v9138_v38, 4  ;;  %v8720_v25 = vshll.u32 %v8353_v33, 16 }
 0x2ff   : > { %v8705_v26 = vsel %vm14102_vm11, %v8700_v27, %v8704_v63  ;;  %v9146_v48 = vrot.slane %v9144_v50, 5  ;;  %v16570_v13 = vadd.f32 %v16425_v41, %v6294_v29  ;;  %v8719_v21 = vrot.slane %v8717_v37, 4  ;;  %v16572_v20 = vpop.f32.mrf.mxu1  ;;  %v16577_v50 = vld [vmem:[#allocation3 + $0xd0] sm:$0xf]  ;;  %v16586_v37 = vld [vmem:[#allocation3 + $0xd4] sm:$0x1] }
 0x300   : > { %v8715_v17 = vsel %vm14102_vm11, %v8710_v61, %v8714_v35  ;;  %v9132_v53 = vrot.slane %v9131_v58, 4  ;;  %v16574_v6 = vpop.f32.mrf.mxu0  ;;  %v9141_v32 = vor.u32 %v9140_v59, %v9136_v0  ;;  %v8722_v54 = vrot.slane %v8720_v25, 5  ;;  %18156 = vst [vmem:[#allocation43_spill] sm:$0xff] %v16577_v50  ;;  %18158 = vst [vmem:[#allocation45_spill] sm:$0xff] %v16586_v37 }
 0x301   : > { %18155 = vst [vmem:[#allocation42_spill] sm:$0xff] %v16570_v13  ;;  %v11818_v55 = vcombine.low %v8705_v26, %v8715_v17  ;;  %v8726_v38 = vshll.u32 %v16559_v2, 16  ;;  %v8730_v63 = vshrl.u32 %v16559_v2, 16  ;;  %v8736_v41 = vshll.u32 %v16561_v1, 16 }
 0x302   : > { %v9137_v27 = vsel %vm14102_vm11, %v9132_v53, %v9136_v0  ;;  %v9149_v35 = vshrl.u32 %v8785_v24, 16  ;;  %v16583_v33 = vpop.f32.mrf.mxu0  ;;  %v9142_v61 = vrot.slane %v9141_v32, 4  ;;  %v8723_v58 = vor.u32 %v8722_v54, %v8719_v21  ;;  %v16588_v59 = vpop.f32.mrf.mxu1 }
 0x303   : > { %18157 = vst [vmem:[#allocation44_spill] sm:$0xff] %v16583_v33  ;;  %12852 = vmatprep.mubr.msk.bf16.mxu0 %vm1429_vm2, %v11818_v55  ;;  %v8728_v29 = vrot.slane %v8726_v38, 5  ;;  %v9152_v26 = vshll.u32 %v8785_v24, 16  ;;  %v8732_v25 = vrot.slane %v8730_v63, 4  ;;  %v8738_v17 = vrot.slane %v8736_v41, 5 }
 0x304   : > { %v9151_v0 = vrot.slane %v9149_v35, 4  ;;  %v9158_v53 = vshll.u32 %v16577_v50, 16  ;;  %v16591_v2 = vpop.f32.mrf.mxu0  ;;  %v9147_v1 = vsel %vm14102_vm11, %v9142_v61, %v9146_v48  ;;  %v8724_v13 = vrot.slane %v8723_v58, 4  ;;  %v16596_v32 = vpop.f32.mrf.mxu1  ;;  %v9784_v41 = vld [vmem:[#allocation2 + $0x18] sm:$0xe] }
 0x305   : > { %18159 = vst [vmem:[#allocation46_spill] sm:$0xff] %v16591_v2  ;;  %v9154_v55 = vrot.slane %v9152_v26, 5  ;;  %v9162_v54 = vshrl.u32 %v16577_v50, 16  ;;  %18160 = vst [vmem:[#allocation47_spill] sm:$0xff] %v16596_v32  ;;  %v11856_v21 = vcombine.low %v9137_v27, %v9147_v1  ;;  %v8733_v24 = vor.u32 %v8732_v25, %v8728_v29  ;;  %v18161_v48 = vld [vmem:[#allocation36_spill] sm:$0xff] }
 0x306   : > { %v9160_v38 = vrot.slane %v9158_v53, 5  ;;  %v9168_v63 = vshll.u32 %v16586_v37, 16  ;;  %v16599_v35 = vpop.f32.mrf.mxu0  ;;  %v8729_v2 = vsel %vm14102_vm11, %v8724_v13, %v8728_v29  ;;  %v6292_v61 = vadd.f32 %v16412_v12, %v18161_v48  ;;  %v16605_v58 = vpop.f32.mrf.mxu1  ;;  %v18162_v26 = vld [vmem:[#allocation20_spill] sm:$0xff] }
 0x307   : > { %v9155_v52 = vor.u32 %v9154_v55, %v9151_v0  ;;  %v9164_v33 = vrot.slane %v9162_v54, 4  ;;  %12888 = vmatprep.mubr.msk.bf16.mxu1 %vm1429_vm2, %v11856_v21  ;;  %v8734_v1 = vrot.slane %v8733_v24, 4  ;;  %v6295_v25 = vadd.f32 %v16419_v19, %v18162_v26  ;;  %v18163_v53 = vld [vmem:[#allocation8_spill] sm:$0xff]  ;;  %v9960_v0 = vld [vmem:[#allocation3 + $0x18] sm:$0xe] }
 0x308   : > { %v9170_v27 = vrot.slane %v9168_v63, 5  ;;  %v6293_v37 = vadd.f32 %v16435_v14, %v18163_v53  ;;  %v16613_v13 = vadd.f32 %v16440_v39, %v6292_v61  ;;  %v11876_v29 = vrot.slane %v9784_v41, 9  ;;  %v16615_v12 = vpop.f32.mrf.mxu1  ;;  %v13256_v41 = vld [vmem:[#allocation2 + $0x20] sm:$0x1] }
 0x309   : > { %v9156_v50 = vrot.slane %v9155_v52, 4  ;;  %v9165_v32 = vor.u32 %v9164_v33, %v9160_v38  ;;  %v16617_v55 = vpop.f32.mrf.mxu0  ;;  %v8739_v54 = vsel %vm14102_vm11, %v8734_v1, %v8738_v17  ;;  %v16622_v21 = vadd.f32 %v16447_v7, %v6295_v25  ;;  %v13255_v52 = vld [vmem:[#allocation2 + $0x1c] sm:$0xf]  ;;  %v9785_v33 = vld [vmem:[#allocation2 + $0x24] sm:$0xe] }
 0x30a   : > { %v16625_v19 = vadd.f32 %v16453_v28, %v6293_v37  ;;  %v9850_v14 = vrot.slane %v13255_v52, 5  ;;  %v11819_v39 = vcombine.low %v8729_v2, %v8739_v54  ;;  %v9853_v48 = vrot.slane %v13256_v41, 5  ;;  %v13257_v25 = vld [vmem:[#allocation3 + $0x1c] sm:$0xf]  ;;  %v9961_v52 = vld [vmem:[#allocation3 + $0x24] sm:$0xe] }
 0x30b   : > { %v9161_v24 = vsel %vm14102_vm11, %v9156_v50, %v9160_v38  ;;  %v9166_v63 = vrot.slane %v9165_v32, 4  ;;  %v16629_v61 = vpop.f32.mrf.mxu0  ;;  %v11892_v1 = vrot.slane %v9960_v0, 9  ;;  %v10026_v28 = vrot.slane %v13257_v25, 5  ;;  %v16633_v37 = vpop.f32.mrf.mxu1  ;;  %v13258_v50 = vld [vmem:[#allocation3 + $0x20] sm:$0x1] }
 0x30c   : > { %18164 = vst [vmem:[#allocation36_spill] sm:$0xff] %v16625_v19  ;;  %v9851_v17 = vsel %vm14486_vm14, %v11876_v29, %v9850_v14  ;;  %v9852_v7 = vrot.slane %v9850_v14, 4  ;;  %12853 = vmatmul.mubr.msk.bf16.gmra.mxu0 %vm1429_vm2, %v11819_v39  ;;  %v10029_v32 = vrot.slane %v13258_v50, 5  ;;  %v18166_v38 = vld [vmem:[#allocation12_spill] sm:$0xff]  ;;  %v11877_v54 = vrot.slane %v9785_v33, 9 }
 0x30d   : > { %v9171_v2 = vsel %vm14102_vm11, %v9166_v63, %v9170_v27  ;;  %v7230_v53 = vadd.f32 %v16442_v34, %v18166_v38  ;;  %v16640_v41 = vpop.f32.mrf.mxu0  ;;  %v10027_v14 = vsel %vm14486_vm14, %v11892_v1, %v10026_v28  ;;  %v10028_v39 = vrot.slane %v10026_v28, 4  ;;  %v16646_v25 = vpop.f32.mrf.mxu1  ;;  %v13259_v63 = vld [vmem:[#allocation2 + $0x28] sm:$0xf]  ;;  %v13260_v33 = vld [vmem:[#allocation2 + $0x2c] sm:$0x1] }
 0x30e   : > { %v11857_v29 = vcombine.low %v9161_v24, %v9171_v2  ;;  %v9854_v0 = vsel %vm14486_vm14, %v9852_v7, %v9853_v48  ;;  %v9857_v34 = vrot.slane %v13259_v63, 5  ;;  %v9860_v50 = vrot.slane %v13260_v33, 5  ;;  %v13261_v7 = vld [vmem:[#allocation3 + $0x28] sm:$0xf]  ;;  %v13262_v28 = vld [vmem:[#allocation3 + $0x2c] sm:$0x1] }
 0x30f   : > { %v11912_v40 = vcombine.low %v9851_v17, %v9854_v0  ;;  %v16649_v27 = vadd.f32 %v16460_v43, %v7230_v53  ;;  %v16651_v38 = vpop.f32.mrf.mxu0  ;;  %v10030_v24 = vsel %vm14486_vm14, %v10028_v39, %v10029_v32  ;;  %v11893_v48 = vrot.slane %v9961_v52, 9  ;;  %v9786_v17 = vld [vmem:[#allocation2 + $0x30] sm:$0xe]  ;;  %v16656_v0 = vpop.f32.mrf.mxu1  ;;  %v18168_v33 = vld [vmem:[#allocation22_spill] sm:$0xff]  ;;  %v18169_v39 = vld [vmem:[#allocation17_spill] sm:$0xff] }
 0x310   : > { %12889 = vmatmul.mubr.msk.bf16.gmra.mxu1 %vm1429_vm2, %v11857_v29  ;;  %v10033_v1 = vrot.slane %v13261_v7, 5  ;;  %v10036_v2 = vrot.slane %v13262_v28, 5  ;;  %v11950_v43 = vcombine.low %v10027_v14, %v10030_v24  ;;  %v9858_v53 = vsel %vm14486_vm14, %v11877_v54, %v9857_v34  ;;  %v18170_v28 = vld [vmem:[#allocation14_spill] sm:$0xff] }
 0x311   : > { %18167 = vst [vmem:[#allocation20_spill] sm:$0xff] %v16649_v27  ;;  %12896 = vmatprep.mubr.msk.bf16.mxu0 %vm1429_vm2, %v11912_v40  ;;  %v9859_v63 = vrot.slane %v9857_v34, 4  ;;  %v7228_v29 = vadd.f32 %v16451_v56, %v18168_v33  ;;  %v7231_v7 = vadd.f32 %v16455_v46, %v18169_v39  ;;  %v7229_v27 = vadd.f32 %v16462_v49, %v18170_v28  ;;  %v16669_v19 = vpop.f32.mrf.mxu1  ;;  %v13263_v34 = vld [vmem:[#allocation2 + $0x34] sm:$0xf] }
 0x312   : > { %v10034_v32 = vsel %vm14486_vm14, %v11893_v48, %v10033_v1  ;;  %v10035_v52 = vrot.slane %v10033_v1, 4  ;;  %v16671_v14 = vpop.f32.mrf.mxu0  ;;  %12932 = vmatprep.mubr.msk.bf16.mxu1 %vm1429_vm2, %v11950_v43  ;;  %v11878_v40 = vrot.slane %v9786_v17, 9  ;;  %v9864_v24 = vrot.slane %v13263_v34, 5  ;;  %v9962_v48 = vld [vmem:[#allocation3 + $0x30] sm:$0xe] }
 0x313   : > { %v9861_v54 = vsel %vm14486_vm14, %v9859_v63, %v9860_v50  ;;  %v16677_v56 = vadd.f32 %v16467_v47, %v7228_v29  ;;  %v16682_v1 = vadd.f32 %v16473_v30, %v7231_v7  ;;  %v16685_v33 = vadd.f32 %v16484_v16, %v7229_v27  ;;  %v9787_v43 = vld [vmem:[#allocation2 + $0x3c] sm:$0xe]  ;;  %v13264_v63 = vld [vmem:[#allocation2 + $0x38] sm:$0x1]  ;;  %v13265_v30 = vld [vmem:[#allocation3 + $0x34] sm:$0xf] }
 0x314   : > { %v11913_v46 = vcombine.low %v9858_v53, %v9861_v54  ;;  %v10037_v49 = vsel %vm14486_vm14, %v10035_v52, %v10036_v2  ;;  %v16687_v39 = vpop.f32.mrf.mxu0  ;;  %v9865_v47 = vsel %vm14486_vm14, %v11878_v40, %v9864_v24  ;;  %v9866_v17 = vrot.slane %v9864_v24, 4  ;;  %v16691_v53 = vpop.f32.mrf.mxu1  ;;  %v13266_v7 = vld [vmem:[#allocation3 + $0x38] sm:$0x1]  ;;  %v18174_v27 = vld [vmem:[#allocation9_spill] sm:$0xff]  ;;  %v9963_v54 = vld [vmem:[#allocation3 + $0x3c] sm:$0xe] }
 0x315   : > { %18171 = vst [vmem:[#allocation8_spill] sm:$0xff] %v16677_v56  ;;  %18172 = vst [vmem:[#allocation11_spill] sm:$0xff] %v16682_v1  ;;  %v11951_v50 = vcombine.low %v10034_v32, %v10037_v49  ;;  %v9867_v29 = vrot.slane %v13264_v63, 5  ;;  %v11894_v2 = vrot.slane %v9962_v48, 9  ;;  %v10040_v52 = vrot.slane %v13265_v30, 5 }
 0x316   : > { %18173 = vst [vmem:[#allocation12_spill] sm:$0xff] %v16685_v33  ;;  %12897 = vmatmul.mubr.msk.bf16.vlgmr.msra.gmra.mxu0 %vm1429_vm2, %v11913_v46  ;;  %v10043_v16 = vrot.slane %v13266_v7, 5  ;;  %v7234_v28 = vadd.f32 %v16475_v51, %v18174_v27  ;;  %v16696_v32 = vpop.f32.mrf.mxu0  ;;  %v11879_v34 = vrot.slane %v9787_v43, 9  ;;  %v13267_v24 = vld [vmem:[#allocation2 + $0x40] sm:$0xf]  ;;  %v16700_v46 = vpop.f32.mrf.mxu1 }
 0x317   : > { %v9868_v40 = vsel %vm14486_vm14, %v9866_v17, %v9867_v29  ;;  %v9871_v49 = vrot.slane %v13267_v24, 5  ;;  %v13268_v63 = vld [vmem:[#allocation2 + $0x44] sm:$0x1]  ;;  %v10041_v30 = vsel %vm14486_vm14, %v11894_v2, %v10040_v52  ;;  %v10042_v51 = vrot.slane %v10040_v52, 4  ;;  %v13269_v24 = vld [vmem:[#allocation3 + $0x40] sm:$0xf] }
 0x318   : > { %v9874_v33 = vrot.slane %v13268_v63, 5  ;;  %12933 = vmatmul.mubr.msk.bf16.vlgmr.msra.gmra.mxu1 %vm1429_vm2, %v11951_v50  ;;  %v11914_v48 = vcombine.low %v9865_v47, %v9868_v40  ;;  %v16706_v7 = vadd.f32 %v16491_v10, %v7234_v28  ;;  %v16708_v27 = vpop.f32.mrf.mxu0  ;;  %v11895_v29 = vrot.slane %v9963_v54, 9  ;;  %v16712_v1 = vpop.f32.mrf.mxu1  ;;  %v13270_v47 = vld [vmem:[#allocation3 + $0x44] sm:$0x1]  ;;  %v18177_v28 = vld [vmem:[#allocation13_spill] sm:$0xff] }
 0x319   : > { %v9872_v43 = vsel %vm14486_vm14, %v11879_v34, %v9871_v49  ;;  %v9873_v17 = vrot.slane %v9871_v49, 4  ;;  %v10047_v63 = vrot.slane %v13269_v24, 5  ;;  %v10044_v50 = vsel %vm14486_vm14, %v10042_v51, %v10043_v16  ;;  %v18176_v10 = vld [vmem:[#allocation16_spill] sm:$0xff]  ;;  %v9788_v34 = vld [vmem:[#allocation2 + $0x48] sm:$0xe] }
 0x31a   : > { %18175 = vst [vmem:[#allocation22_spill] sm:$0xff] %v16706_v7  ;;  %12900 = vmatprep.mubr.msk.bf16.mxu0 %vm1429_vm2, %v11914_v48  ;;  %v10050_v2 = vrot.slane %v13270_v47, 5  ;;  %v7232_v52 = vadd.f32 %v16486_v36, %v18176_v10  ;;  %v7235_v40 = vadd.f32 %v16493_v15, %v18177_v28  ;;  %v11952_v49 = vcombine.low %v10041_v30, %v10044_v50  ;;  %v9964_v7 = vld [vmem:[#allocation3 + $0x48] sm:$0xe]  ;;  %v16725_v56 = vpop.f32.mrf.mxu1  ;;  %v18179_v30 = vld [vmem:[#allocation15_spill] sm:$0xff] }
 0x31b   : > { %v9875_v54 = vsel %vm14486_vm14, %v9873_v17, %v9874_v33  ;;  %v10048_v24 = vsel %vm14486_vm14, %v11895_v29, %v10047_v63  ;;  %v10049_v48 = vrot.slane %v10047_v63, 4  ;;  %v16727_v16 = vpop.f32.mrf.mxu0  ;;  %v7233_v50 = vadd.f32 %v16504_v44, %v18179_v30  ;;  %v13271_v29 = vld [vmem:[#allocation2 + $0x4c] sm:$0xf]  ;;  %v13272_v47 = vld [vmem:[#allocation2 + $0x50] sm:$0x1] }
 0x31c   : > { %v11915_v51 = vcombine.low %v9872_v43, %v9875_v54  ;;  %v16730_v36 = vadd.f32 %v16502_v23, %v7232_v52  ;;  %v16733_v15 = vadd.f32 %v16522_v42, %v7235_v40  ;;  %12936 = vmatprep.mubr.msk.bf16.mxu1 %vm1429_vm2, %v11952_v49  ;;  %v11880_v17 = vrot.slane %v9788_v34, 9  ;;  %v9789_v43 = vld [vmem:[#allocation2 + $0x54] sm:$0xe]  ;;  %v13273_v52 = vld [vmem:[#allocation3 + $0x4c] sm:$0xf] }
 0x31d   : > { %v10051_v33 = vsel %vm14486_vm14, %v10049_v48, %v10050_v2  ;;  %v9878_v63 = vrot.slane %v13271_v29, 5  ;;  %v9881_v10 = vrot.slane %v13272_v47, 5  ;;  %v16740_v28 = vpop.f32.mrf.mxu0  ;;  %v16744_v42 = vadd.f32 %v16535_v11, %v7233_v50  ;;  %v9965_v49 = vld [vmem:[#allocation3 + $0x54] sm:$0xe]  ;;  %v16746_v54 = vpop.f32.mrf.mxu1  ;;  %v13274_v48 = vld [vmem:[#allocation3 + $0x50] sm:$0x1] }
 0x31e   : > { %18178 = vst [vmem:[#allocation17_spill] sm:$0xff] %v16733_v15  ;;  %12901 = vmatmul.mubr.msk.bf16.gmra.mxu0 %vm1429_vm2, %v11915_v51  ;;  %v11953_v23 = vcombine.low %v10048_v24, %v10051_v33  ;;  %v11896_v44 = vrot.slane %v9964_v7, 9  ;;  %v10054_v40 = vrot.slane %v13273_v52, 5  ;;  %v10057_v30 = vrot.slane %v13274_v48, 5  ;;  %v18181_v29 = vld [vmem:[#allocation18_spill] sm:$0xff] }
 0x31f   : > { %18180 = vst [vmem:[#allocation14_spill] sm:$0xff] %v16744_v42  ;;  %v9879_v2 = vsel %vm14486_vm14, %v11880_v17, %v9878_v63  ;;  %v9880_v34 = vrot.slane %v9878_v63, 4  ;;  %v7238_v47 = vadd.f32 %v16524_v3, %v18181_v29  ;;  %v16752_v51 = vpop.f32.mrf.mxu0  ;;  %v11881_v24 = vrot.slane %v9789_v43, 9  ;;  %v13275_v50 = vld [vmem:[#allocation2 + $0x58] sm:$0xf]  ;;  %v16757_v52 = vpop.f32.mrf.mxu1 }
 0x320   : > { %12937 = vmatmul.mubr.msk.bf16.gmra.mxu1 %vm1429_vm2, %v11953_v23  ;;  %v10055_v11 = vsel %vm14486_vm14, %v11896_v44, %v10054_v40  ;;  %v10056_v7 = vrot.slane %v10054_v40, 4  ;;  %v9885_v33 = vrot.slane %v13275_v50, 5  ;;  %v13276_v3 = vld [vmem:[#allocation2 + $0x5c] sm:$0x1]  ;;  %v11897_v29 = vrot.slane %v9965_v49, 9 }
 0x321   : > { %v9882_v17 = vsel %vm14486_vm14, %v9880_v34, %v9881_v10  ;;  %v16762_v63 = vadd.f32 %v16543_v5, %v7238_v47  ;;  %v9888_v48 = vrot.slane %v13276_v3, 5  ;;  %v9790_v42 = vld [vmem:[#allocation2 + $0x60] sm:$0xe]  ;;  %v16764_v23 = vpop.f32.mrf.mxu0  ;;  %v16770_v50 = vpop.f32.mrf.mxu1  ;;  %v13277_v34 = vld [vmem:[#allocation3 + $0x58] sm:$0xf]  ;;  %v7236_v49 = vadd.f32 %v16539_v9, %v16214_v57 }
 0x322   : > { %v11916_v15 = vcombine.low %v9879_v2, %v9882_v17  ;;  %v10058_v43 = vsel %vm14486_vm14, %v10056_v7, %v10057_v30  ;;  %v9886_v44 = vsel %vm14486_vm14, %v11881_v24, %v9885_v33  ;;  %v9887_v40 = vrot.slane %v9885_v33, 4  ;;  %v13278_v47 = vld [vmem:[#allocation3 + $0x5c] sm:$0x1] }
 0x323   : > { %18182 = vst [vmem:[#allocation9_spill] sm:$0xff] %v16762_v63  ;;  %v11954_v10 = vcombine.low %v10055_v11, %v10058_v43  ;;  %v10061_v5 = vrot.slane %v13277_v34, 5  ;;  %v10064_v63 = vrot.slane %v13278_v47, 5  ;;  %v7239_v30 = vadd.f32 %v16548_v62, %v16221_v31  ;;  %v9966_v11 = vld [vmem:[#allocation3 + $0x60] sm:$0xe]  ;;  %v16781_v33 = vpop.f32.mrf.mxu1 }
 0x324   : > { %12904 = vmatprep.mubr.msk.bf16.mxu0 %vm1429_vm2, %v11916_v15  ;;  %v9889_v2 = vsel %vm14486_vm14, %v9887_v40, %v9888_v48  ;;  %v7237_v7 = vadd.f32 %v16554_v4, %v16237_v45  ;;  %v11882_v24 = vrot.slane %v9790_v42, 9  ;;  %v16783_v17 = vpop.f32.mrf.mxu0  ;;  %v16789_v3 = vadd.f32 %v16550_v60, %v7236_v49  ;;  %v13279_v62 = vld [vmem:[#allocation2 + $0x64] sm:$0xf]  ;;  %v13280_v42 = vld [vmem:[#allocation2 + $0x68] sm:$0x1] }
 0x325   : > { %12940 = vmatprep.mubr.msk.bf16.mxu1 %vm1429_vm2, %v11954_v10  ;;  %v11917_v57 = vcombine.low %v9886_v44, %v9889_v2  ;;  %v10062_v9 = vsel %vm14486_vm14, %v11897_v29, %v10061_v5  ;;  %v10063_v15 = vrot.slane %v10061_v5, 4  ;;  %v16792_v31 = vadd.f32 %v16563_v22, %v7239_v30  ;;  %v9791_v43 = vld [vmem:[#allocation2 + $0x6c] sm:$0xe]  ;;  %v13281_v44 = vld [vmem:[#allocation3 + $0x64] sm:$0xf] }
 0x326   : > { %18183 = vst [vmem:[#allocation16_spill] sm:$0xff] %v16789_v3  ;;  %v16795_v45 = vadd.f32 %v16572_v20, %v7237_v7  ;;  %v9892_v4 = vrot.slane %v13279_v62, 5  ;;  %v9895_v48 = vrot.slane %v13280_v42, 5  ;;  %v16797_v40 = vpop.f32.mrf.mxu0  ;;  %v11898_v60 = vrot.slane %v9966_v11, 9  ;;  %v13282_v22 = vld [vmem:[#allocation3 + $0x68] sm:$0x1]  ;;  %v16802_v20 = vpop.f32.mrf.mxu1 }
 0x327   : > { %18184 = vst [vmem:[#allocation13_spill] sm:$0xff] %v16792_v31  ;;  %12905 = vmatmul.mubr.msk.bf16.gmra.mxu0 %vm1429_vm2, %v11917_v57  ;;  %v10065_v29 = vsel %vm14486_vm14, %v10063_v15, %v10064_v63  ;;  %v10068_v10 = vrot.slane %v13281_v44, 5  ;;  %v10071_v34 = vrot.slane %v13282_v22, 5  ;;  %v9967_v5 = vld [vmem:[#allocation3 + $0x6c] sm:$0xe]  ;;  %v7242_v30 = vadd.f32 %v16574_v6, %v16271_v18 }
 0x328   : > { %18185 = vst [vmem:[#allocation15_spill] sm:$0xff] %v16795_v45  ;;  %v11955_v47 = vcombine.low %v10062_v9, %v10065_v29  ;;  %v9893_v49 = vsel %vm14486_vm14, %v11882_v24, %v9892_v4  ;;  %v9894_v2 = vrot.slane %v9892_v4, 4  ;;  %v16808_v7 = vpop.f32.mrf.mxu0  ;;  %v11883_v57 = vrot.slane %v9791_v43, 9  ;;  %v13283_v15 = vld [vmem:[#allocation2 + $0x70] sm:$0xf]  ;;  %v16812_v42 = vpop.f32.mrf.mxu1 }
 0x329   : > { %v10069_v63 = vsel %vm14486_vm14, %v11898_v60, %v10068_v10  ;;  %v10070_v11 = vrot.slane %v10068_v10, 4  ;;  %v9899_v62 = vrot.slane %v13283_v15, 5  ;;  %v16818_v9 = vadd.f32 %v16588_v59, %v7242_v30  ;;  %v13284_v18 = vld [vmem:[#allocation2 + $0x74] sm:$0x1]  ;;  %v9792_v29 = vld [vmem:[#allocation2 + $0x78] sm:$0xe] }
 0x32a   : > { %12941 = vmatmul.mubr.msk.bf16.gmra.mxu1 %vm1429_vm2, %v11955_v47  ;;  %v9896_v24 = vsel %vm14486_vm14, %v9894_v2, %v9895_v48  ;;  %v9902_v6 = vrot.slane %v13284_v18, 5  ;;  %v11899_v4 = vrot.slane %v9967_v5, 9  ;;  %v16820_v44 = vpop.f32.mrf.mxu0  ;;  %v16826_v47 = vpop.f32.mrf.mxu1  ;;  %v13285_v2 = vld [vmem:[#allocation3 + $0x70] sm:$0xf]  ;;  %v13286_v30 = vld [vmem:[#allocation3 + $0x74] sm:$0x1] }
 0x32b   : > { %18186 = vst [vmem:[#allocation18_spill] sm:$0xff] %v16818_v9  ;;  %v11918_v60 = vcombine.low %v9893_v49, %v9896_v24  ;;  %v10072_v43 = vsel %vm14486_vm14, %v10070_v11, %v10071_v34  ;;  %v9900_v10 = vsel %vm14486_vm14, %v11883_v57, %v9899_v62  ;;  %v9901_v22 = vrot.slane %v9899_v62, 4  ;;  %v18187_v5 = vld [vmem:[#allocation44_spill] sm:$0xff]  ;;  %v18188_v49 = vld [vmem:[#allocation21_spill] sm:$0xff]  ;;  %v18189_v11 = vld [vmem:[#allocation46_spill] sm:$0xff] }
 0x32c   : > { %v11956_v48 = vcombine.low %v10069_v63, %v10072_v43  ;;  %v10075_v59 = vrot.slane %v13285_v2, 5  ;;  %v10078_v15 = vrot.slane %v13286_v30, 5  ;;  %v7240_v18 = vadd.f32 %v18187_v5, %v16303_v8  ;;  %v16830_v9 = vpop.f32.mrf.mxu0  ;;  %v18190_v62 = vld [vmem:[#allocation24_spill] sm:$0xff]  ;;  %v9968_v43 = vld [vmem:[#allocation3 + $0x78] sm:$0xe]  ;;  %v16839_v2 = vpop.f32.mrf.mxu1 }
 0x32d   : > { %12908 = vmatprep.mubr.msk.bf16.mxu0 %vm1429_vm2, %v11918_v60  ;;  %v9903_v34 = vsel %vm14486_vm14, %v9901_v22, %v9902_v6  ;;  %v7243_v57 = vadd.f32 %v18189_v11, %v18188_v49  ;;  %v7241_v63 = vadd.f32 %v16599_v35, %v18190_v62  ;;  %v11884_v24 = vrot.slane %v9792_v29, 9  ;;  %v18191_v5 = vld [vmem:[#allocation47_spill] sm:$0xff]  ;;  %v13287_v29 = vld [vmem:[#allocation2 + $0x7c] sm:$0xf]  ;;  %v13288_v11 = vld [vmem:[#allocation2 + $0x80] sm:$0x1] }
 0x32e   : > { %12944 = vmatprep.mubr.msk.bf16.mxu1 %vm1429_vm2, %v11956_v48  ;;  %v11919_v8 = vcombine.low %v9900_v10, %v9903_v34  ;;  %v10076_v30 = vsel %vm14486_vm14, %v11899_v4, %v10075_v59  ;;  %v10077_v60 = vrot.slane %v10075_v59, 4  ;;  %v16845_v45 = vadd.f32 %v18191_v5, %v7240_v18  ;;  %v16847_v6 = vpop.f32.mrf.mxu0  ;;  %v9793_v10 = vld [vmem:[#allocation2 + $0x84] sm:$0xe]  ;;  %v16855_v34 = vpop.f32.mrf.mxu1  ;;  %v13289_v18 = vld [vmem:[#allocation3 + $0x7c] sm:$0xf] }
 0x32f   : > { %v16850_v22 = vadd.f32 %v16605_v58, %v7243_v57  ;;  %v16853_v35 = vadd.f32 %v16615_v12, %v7241_v63  ;;  %v9906_v49 = vrot.slane %v13287_v29, 5  ;;  %v9909_v48 = vrot.slane %v13288_v11, 5  ;;  %v13290_v58 = vld [vmem:[#allocation3 + $0x80] sm:$0x1]  ;;  %v9969_v5 = vld [vmem:[#allocation3 + $0x84] sm:$0xe] }
 0x330   : > { %18192 = vst [vmem:[#allocation44_spill] sm:$0xff] %v16845_v45  ;;  %12909 = vmatmul.mubr.msk.bf16.gmra.mxu0 %vm1429_vm2, %v11919_v8  ;;  %v10079_v4 = vsel %vm14486_vm14, %v10077_v60, %v10078_v15  ;;  %v11900_v59 = vrot.slane %v9968_v43, 9  ;;  %v10082_v62 = vrot.slane %v13289_v18, 5  ;;  %v10085_v57 = vrot.slane %v13290_v58, 5  ;;  %v16860_v12 = vpop.f32.mrf.mxu0  ;;  %v16866_v8 = vpop.f32.mrf.mxu1  ;;  %v13291_v18 = vld [vmem:[#allocation2 + $0x88] sm:$0xf] }
 0x331   : > { %18193 = vst [vmem:[#allocation21_spill] sm:$0xff] %v16850_v22  ;;  %18194 = vst [vmem:[#allocation46_spill] sm:$0xff] %v16853_v35  ;;  %v11957_v63 = vcombine.low %v10076_v30, %v10079_v4  ;;  %v9907_v29 = vsel %vm14486_vm14, %v11884_v24, %v9906_v49  ;;  %v9908_v11 = vrot.slane %v9906_v49, 4  ;;  %v18195_v35 = vld [vmem:[#allocation25_spill] sm:$0xff]  ;;  %v11885_v60 = vrot.slane %v9793_v10, 9 }
 0x332   : > { %v7246_v22 = vadd.f32 %v16617_v55, %v18195_v35  ;;  %v10083_v15 = vsel %vm14486_vm14, %v11900_v59, %v10082_v62  ;;  %v10084_v43 = vrot.slane %v10082_v62, 4  ;;  %v9913_v58 = vrot.slane %v13291_v18, 5  ;;  %v16870_v45 = vpop.f32.mrf.mxu0  ;;  %v13292_v55 = vld [vmem:[#allocation2 + $0x8c] sm:$0x1]  ;;  %v9794_v4 = vld [vmem:[#allocation2 + $0x90] sm:$0xe]  ;;  %v16878_v31 = vpop.f32.mrf.mxu1 }
 0x333   : > { %12945 = vmatmul.mubr.msk.bf16.gmra.mxu1 %vm1429_vm2, %v11957_v63  ;;  %v9910_v24 = vsel %vm14486_vm14, %v9908_v11, %v9909_v48  ;;  %v9916_v35 = vrot.slane %v13292_v55, 5  ;;  %v11901_v49 = vrot.slane %v9969_v5, 9  ;;  %v13293_v11 = vld [vmem:[#allocation3 + $0x88] sm:$0xf]  ;;  %v18197_v55 = vld [vmem:[#allocation26_spill] sm:$0xff] }
 0x334   : > { %v16876_v30 = vadd.f32 %v16633_v37, %v7246_v22  ;;  %v11920_v59 = vcombine.low %v9907_v29, %v9910_v24  ;;  %v10086_v10 = vsel %vm14486_vm14, %v10084_v43, %v10085_v57  ;;  %v9914_v62 = vsel %vm14486_vm14, %v11885_v60, %v9913_v58  ;;  %v16884_v18 = vpop.f32.mrf.mxu0  ;;  %v13294_v22 = vld [vmem:[#allocation3 + $0x8c] sm:$0x1]  ;;  %v16888_v3 = vpop.f32.mrf.mxu1  ;;  %v18198_v29 = vld [vmem:[#allocation27_spill] sm:$0xff]  ;;  %v9970_v24 = vld [vmem:[#allocation3 + $0x90] sm:$0xe] }
 0x335   : > { %v9915_v63 = vrot.slane %v9913_v58, 4  ;;  %v11958_v48 = vcombine.low %v10083_v15, %v10086_v10  ;;  %v10089_v37 = vrot.slane %v13293_v11, 5  ;;  %v7244_v5 = vadd.f32 %v16629_v61, %v18197_v55  ;;  %v18199_v60 = vld [vmem:[#allocation19_spill] sm:$0xff]  ;;  %v13296_v55 = vld [vmem:[#allocation2 + $0x98] sm:$0x1] }
 0x336   : > { %18196 = vst [vmem:[#allocation24_spill] sm:$0xff] %v16876_v30  ;;  %v10092_v30 = vrot.slane %v13294_v22, 5  ;;  %12912 = vmatprep.mubr.msk.bf16.mxu0 %vm1429_vm2, %v11920_v59  ;;  %v7247_v43 = vadd.f32 %v16640_v41, %v18198_v29  ;;  %v7245_v15 = vadd.f32 %v16651_v38, %v18199_v60  ;;  %v11886_v58 = vrot.slane %v9794_v4, 9  ;;  %v16897_v10 = vpop.f32.mrf.mxu0  ;;  %v13295_v4 = vld [vmem:[#allocation2 + $0x94] sm:$0xf] }
 0x337   : > { %v9917_v57 = vsel %vm14486_vm14, %v9915_v63, %v9916_v35  ;;  %12948 = vmatprep.mubr.msk.bf16.mxu1 %vm1429_vm2, %v11958_v48  ;;  %v10090_v11 = vsel %vm14486_vm14, %v11901_v49, %v10089_v37  ;;  %v10091_v59 = vrot.slane %v10089_v37, 4  ;;  %v16903_v22 = vadd.f32 %v16646_v25, %v7244_v5  ;;  %v16905_v35 = vpop.f32.mrf.mxu1  ;;  %v13297_v37 = vld [vmem:[#allocation3 + $0x94] sm:$0xf] }
 0x338   : > { %v11921_v61 = vcombine.low %v9914_v62, %v9917_v57  ;;  %v16908_v41 = vadd.f32 %v16656_v0, %v7247_v43  ;;  %v16911_v38 = vadd.f32 %v16669_v19, %v7245_v15  ;;  %v9920_v63 = vrot.slane %v13295_v4, 5  ;;  %v9795_v62 = vld [vmem:[#allocation2 + $0x9c] sm:$0xe]  ;;  %v16913_v57 = vpop.f32.mrf.mxu0  ;;  %v13298_v0 = vld [vmem:[#allocation3 + $0x98] sm:$0x1] }
 0x339   : > { %18200 = vst [vmem:[#allocation47_spill] sm:$0xff] %v16903_v22  ;;  %v9923_v48 = vrot.slane %v13296_v55, 5  ;;  %v10093_v25 = vsel %vm14486_vm14, %v10091_v59, %v10092_v30  ;;  %v11902_v49 = vrot.slane %v9970_v24, 9  ;;  %v10096_v5 = vrot.slane %v13297_v37, 5  ;;  %v9971_v43 = vld [vmem:[#allocation3 + $0x9c] sm:$0xe]  ;;  %v16918_v19 = vpop.f32.mrf.mxu1 }
 0x33a   : > { %18201 = vst [vmem:[#allocation25_spill] sm:$0xff] %v16908_v41  ;;  %18202 = vst [vmem:[#allocation26_spill] sm:$0xff] %v16911_v38  ;;  %12913 = vmatmul.mubr.msk.bf16.gmra.mxu0 %vm1429_vm2, %v11921_v61  ;;  %v10099_v29 = vrot.slane %v13298_v0, 5  ;;  %v11959_v60 = vcombine.low %v10090_v11, %v10093_v25  ;;  %v9921_v15 = vsel %vm14486_vm14, %v11886_v58, %v9920_v63  ;;  %v9922_v4 = vrot.slane %v9920_v63, 4  ;;  %v18203_v55 = vld [vmem:[#allocation23_spill] sm:$0xff]  ;;  %v16924_v61 = vpop.f32.mrf.mxu0 }
 0x33b   : > { %v7250_v38 = vadd.f32 %v16671_v14, %v18203_v55  ;;  %v10097_v30 = vsel %vm14486_vm14, %v11902_v49, %v10096_v5  ;;  %v10098_v24 = vrot.slane %v10096_v5, 4  ;;  %v11887_v59 = vrot.slane %v9795_v62, 9  ;;  %v13299_v37 = vld [vmem:[#allocation2 + $0xa0] sm:$0xf]  ;;  %v16928_v41 = vpop.f32.mrf.mxu1  ;;  %v13300_v14 = vld [vmem:[#allocation2 + $0xa4] sm:$0x1] }
 0x33c   : > { %v9927_v0 = vrot.slane %v13299_v37, 5  ;;  %18204 = vst [vmem:[#allocation27_spill] sm:$0xff] %v16928_v41  ;;  %12949 = vmatmul.mubr.msk.bf16.gmra.mxu1 %vm1429_vm2, %v11959_v60  ;;  %v9924_v58 = vsel %vm14486_vm14, %v9922_v4, %v9923_v48  ;;  %v9930_v63 = vrot.slane %v13300_v14, 5  ;;  %v11903_v25 = vrot.slane %v9971_v43, 9  ;;  %v9796_v55 = vld [vmem:[#allocation2 + $0xa8] sm:$0xe]  ;;  %v16936_v22 = vpop.f32.mrf.mxu0 }
 0x33d   : > { %v16934_v11 = vadd.f32 %v16691_v53, %v7250_v38  ;;  %v11922_v49 = vcombine.low %v9921_v15, %v9924_v58  ;;  %v10100_v62 = vsel %vm14486_vm14, %v10098_v24, %v10099_v29  ;;  %v16942_v37 = vpop.f32.mrf.mxu1  ;;  %v13301_v4 = vld [vmem:[#allocation3 + $0xa0] sm:$0xf]  ;;  %v13302_v38 = vld [vmem:[#allocation3 + $0xa4] sm:$0x1]  ;;  %v18207_v15 = vld [vmem:[#allocation10_spill] sm:$0xff] }
 0x33e   : > { %v9928_v5 = vsel %vm14486_vm14, %v11887_v59, %v9927_v0  ;;  %v9929_v60 = vrot.slane %v9927_v0, 4  ;;  %v11960_v48 = vcombine.low %v10097_v30, %v10100_v62  ;;  %v10103_v53 = vrot.slane %v13301_v4, 5  ;;  %v18206_v14 = vld [vmem:[#allocation28_spill] sm:$0xff]  ;;  %v16946_v41 = vpop.f32.mrf.mxu0  ;;  %v18208_v59 = vld [vmem:[#allocation29_spill] sm:$0xff] }
 0x33f   : > { %18205 = vst [vmem:[#allocation19_spill] sm:$0xff] %v16934_v11  ;;  %v10106_v11 = vrot.slane %v13302_v38, 5  ;;  %v7248_v43 = vadd.f32 %v16687_v39, %v18206_v14  ;;  %12916 = vmatprep.mubr.msk.bf16.mxu0 %vm1429_vm2, %v11922_v49  ;;  %v7251_v24 = vadd.f32 %v16696_v32, %v18207_v15  ;;  %v7249_v30 = vadd.f32 %v16708_v27, %v18208_v59  ;;  %v9972_v58 = vld [vmem:[#allocation3 + $0xa8] sm:$0xe]  ;;  %v16955_v62 = vpop.f32.mrf.mxu1  ;;  %v13304_v14 = vld [vmem:[#allocation2 + $0xb0] sm:$0x1] }
 0x340   : > { %v9931_v29 = vsel %vm14486_vm14, %v9929_v60, %v9930_v63  ;;  %v11888_v0 = vrot.slane %v9796_v55, 9  ;;  %12952 = vmatprep.mubr.msk.bf16.mxu1 %vm1429_vm2, %v11960_v48  ;;  %v10104_v4 = vsel %vm14486_vm14, %v11903_v25, %v10103_v53  ;;  %v10105_v49 = vrot.slane %v10103_v53, 4  ;;  %v16963_v63 = vpop.f32.mrf.mxu0  ;;  %v13303_v55 = vld [vmem:[#allocation2 + $0xac] sm:$0xf]  ;;  %v13305_v53 = vld [vmem:[#allocation3 + $0xac] sm:$0xf] }
 0x341   : > { %v11923_v39 = vcombine.low %v9928_v5, %v9931_v29  ;;  %v16961_v38 = vadd.f32 %v16700_v46, %v7248_v43  ;;  %v16966_v32 = vadd.f32 %v16712_v1, %v7251_v24  ;;  %v16969_v27 = vadd.f32 %v16725_v56, %v7249_v30  ;;  %v9797_v5 = vld [vmem:[#allocation2 + $0xb4] sm:$0xe]  ;;  %v16971_v29 = vpop.f32.mrf.mxu1  ;;  %v13306_v1 = vld [vmem:[#allocation3 + $0xb0] sm:$0x1]  ;;  %v9973_v24 = vld [vmem:[#allocation3 + $0xb4] sm:$0xe] }
 0x342   : > { %v9934_v60 = vrot.slane %v13303_v55, 5  ;;  %v9937_v48 = vrot.slane %v13304_v14, 5  ;;  %v10107_v46 = vsel %vm14486_vm14, %v10105_v49, %v10106_v11  ;;  %v11904_v25 = vrot.slane %v9972_v58, 9  ;;  %v16976_v56 = vpop.f32.mrf.mxu0  ;;  %v18212_v14 = vld [vmem:[#allocation37_spill] sm:$0xff] }
 0x343   : > { %18209 = vst [vmem:[#allocation23_spill] sm:$0xff] %v16961_v38  ;;  %18210 = vst [vmem:[#allocation28_spill] sm:$0xff] %v16966_v32  ;;  %12917 = vmatmul.mubr.msk.bf16.gmra.mxu0 %vm1429_vm2, %v11923_v39  ;;  %v10110_v43 = vrot.slane %v13305_v53, 5  ;;  %v10113_v15 = vrot.slane %v13306_v1, 5  ;;  %v11961_v59 = vcombine.low %v10104_v4, %v10107_v46  ;;  %v16982_v39 = vpop.f32.mrf.mxu1  ;;  %v11889_v49 = vrot.slane %v9797_v5, 9 }
 0x344   : > { %18211 = vst [vmem:[#allocation10_spill] sm:$0xff] %v16969_v27  ;;  %v9935_v30 = vsel %vm14486_vm14, %v11888_v0, %v9934_v60  ;;  %v9936_v55 = vrot.slane %v9934_v60, 4  ;;  %v7254_v27 = vadd.f32 %v16727_v16, %v18212_v14  ;;  %18213 = vst [vmem:[#allocation29_spill] sm:$0xff] %v16982_v39  ;;  %v13307_v53 = vld [vmem:[#allocation2 + $0xb8] sm:$0xf]  ;;  %v16986_v32 = vpop.f32.mrf.mxu0  ;;  %v11905_v46 = vrot.slane %v9973_v24, 9 }
 0x345   : > { %v10111_v11 = vsel %vm14486_vm14, %v11904_v25, %v10110_v43  ;;  %v10112_v58 = vrot.slane %v10110_v43, 4  ;;  %v9941_v1 = vrot.slane %v13307_v53, 5  ;;  %12953 = vmatmul.mubr.msk.bf16.gmra.mxu1 %vm1429_vm2, %v11961_v59  ;;  %v13308_v16 = vld [vmem:[#allocation2 + $0xbc] sm:$0x1]  ;;  %v9798_v14 = vld [vmem:[#allocation2 + $0xc0] sm:$0xe]  ;;  %v16994_v38 = vpop.f32.mrf.mxu1 }
 0x346   : > { %v9938_v0 = vsel %vm14486_vm14, %v9936_v55, %v9937_v48  ;;  %v16992_v4 = vadd.f32 %v16746_v54, %v7254_v27  ;;  %v9944_v60 = vrot.slane %v13308_v16, 5  ;;  %v17000_v53 = vpop.f32.mrf.mxu0  ;;  %v18215_v55 = vld [vmem:[#allocation30_spill] sm:$0xff]  ;;  %v18216_v27 = vld [vmem:[#allocation31_spill] sm:$0xff]  ;;  %v18217_v16 = vld [vmem:[#allocation33_spill] sm:$0xff] }
 0x347   : > { %v11924_v25 = vcombine.low %v9935_v30, %v9938_v0  ;;  %v10114_v5 = vsel %vm14486_vm14, %v10112_v58, %v10113_v15  ;;  %v9942_v43 = vsel %vm14486_vm14, %v11889_v49, %v9941_v1  ;;  %v9943_v59 = vrot.slane %v9941_v1, 4  ;;  %v17006_v39 = vpop.f32.mrf.mxu1  ;;  %v18218_v30 = vld [vmem:[#allocation34_spill] sm:$0xff]  ;;  %v18219_v49 = vld [vmem:[#allocation7_spill] sm:$0xff]  ;;  %v9974_v0 = vld [vmem:[#allocation3 + $0xc0] sm:$0xe] }
 0x348   : > { %18214 = vst [vmem:[#allocation37_spill] sm:$0xff] %v16992_v4  ;;  %v11962_v48 = vcombine.low %v10111_v11, %v10114_v5  ;;  %v10117_v54 = vrot.slane %v18215_v55, 5  ;;  %v10120_v4 = vrot.slane %v18216_v27, 5  ;;  %v7252_v24 = vadd.f32 %v16740_v28, %v18217_v16  ;;  %v17015_v5 = vpop.f32.mrf.mxu0  ;;  %v18224_v16 = vld [vmem:[#allocation35_spill] sm:$0xff] }
 0x349   : > { %12920 = vmatprep.mubr.msk.bf16.mxu0 %vm1429_vm2, %v11924_v25  ;;  %v9945_v15 = vsel %vm14486_vm14, %v9943_v59, %v9944_v60  ;;  %v7255_v58 = vadd.f32 %v16752_v51, %v18218_v30  ;;  %v7253_v11 = vadd.f32 %v16764_v23, %v18219_v49  ;;  %v11890_v1 = vrot.slane %v9798_v14, 9  ;;  %v17023_v60 = vpop.f32.mrf.mxu1  ;;  %v18223_v14 = vld [vmem:[#allocation32_spill] sm:$0xff] }
 0x34a   : > { %12956 = vmatprep.mubr.msk.bf16.mxu1 %vm1429_vm2, %v11962_v48  ;;  %v11925_v28 = vcombine.low %v9942_v43, %v9945_v15  ;;  %v10118_v55 = vsel %vm14486_vm14, %v11905_v46, %v10117_v54  ;;  %v10119_v25 = vrot.slane %v10117_v54, 4  ;;  %v17021_v27 = vadd.f32 %v16757_v52, %v7252_v24  ;;  %v9799_v43 = vld [vmem:[#allocation2 + $0xcc] sm:$0xe]  ;;  %v17033_v15 = vpop.f32.mrf.mxu0 }
 0x34b   : > { %v17026_v51 = vadd.f32 %v16770_v50, %v7255_v58  ;;  %v17029_v23 = vadd.f32 %v16781_v33, %v7253_v11  ;;  %v9948_v59 = vrot.slane %v18223_v14, 5  ;;  %v9951_v48 = vrot.slane %v18224_v16, 5  ;;  %v18225_v54 = vld [vmem:[#allocation38_spill] sm:$0xff]  ;;  %v18226_v50 = vld [vmem:[#allocation39_spill] sm:$0xff]  ;;  %v9975_v58 = vld [vmem:[#allocation3 + $0xcc] sm:$0xe]  ;;  %v17040_v33 = vpop.f32.mrf.mxu1 }
 0x34c   : > { %18220 = vst [vmem:[#allocation30_spill] sm:$0xff] %v17021_v27  ;;  %12921 = vmatmul.mubr.msk.bf16.gmra.mxu0 %vm1429_vm2, %v11925_v28  ;;  %v10121_v52 = vsel %vm14486_vm14, %v10119_v25, %v10120_v4  ;;  %v11906_v46 = vrot.slane %v9974_v0, 9  ;;  %v10124_v24 = vrot.slane %v18225_v54, 5  ;;  %v10127_v30 = vrot.slane %v18226_v50, 5  ;;  %v18227_v16 = vld [vmem:[#allocation42_spill] sm:$0xff]  ;;  %v17046_v28 = vpop.f32.mrf.mxu0  ;;  %v18228_v54 = vld [vmem:[#allocation40_spill] sm:$0xff] }
 0x34d   : > { %18221 = vst [vmem:[#allocation31_spill] sm:$0xff] %v17026_v51  ;;  %18222 = vst [vmem:[#allocation33_spill] sm:$0xff] %v17029_v23  ;;  %v11963_v49 = vcombine.low %v10118_v55, %v10121_v52  ;;  %v9949_v11 = vsel %vm14486_vm14, %v11890_v1, %v9948_v59  ;;  %v9950_v14 = vrot.slane %v9948_v59, 4  ;;  %v7258_v23 = vadd.f32 %v16783_v17, %v18227_v16  ;;  %v17051_v51 = vpop.f32.mrf.mxu1  ;;  %v18229_v17 = vld [vmem:[#allocation41_spill] sm:$0xff] }
 0x34e   : > { %v10125_v4 = vsel %vm14486_vm14, %v11906_v46, %v10124_v24  ;;  %v10126_v0 = vrot.slane %v10124_v24, 4  ;;  %v11891_v25 = vrot.slane %v9799_v43, 9  ;;  %v9955_v50 = vrot.slane %v18228_v54, 5  ;;  %v17060_v16 = vpop.f32.mrf.mxu0 }
 0x34f   : > { %12957 = vmatmul.mubr.msk.bf16.gmra.mxu1 %vm1429_vm2, %v11963_v49  ;;  %v9952_v1 = vsel %vm14486_vm14, %v9950_v14, %v9951_v48  ;;  %v17057_v55 = vadd.f32 %v16802_v20, %v7258_v23  ;;  %v9958_v59 = vrot.slane %v18229_v17, 5  ;;  %v11907_v52 = vrot.slane %v9975_v58, 9  ;;  %v17066_v49 = vpop.f32.mrf.mxu1  ;;  %v18230_v48 = vld [vmem:[#allocation43_spill] sm:$0xff]  ;;  %v18231_v20 = vld [vmem:[#allocation45_spill] sm:$0xff] }
 0x350   : > { %v11926_v46 = vcombine.low %v9949_v11, %v9952_v1  ;;  %v10128_v43 = vsel %vm14486_vm14, %v10126_v0, %v10127_v30  ;;  %v9956_v24 = vsel %vm14486_vm14, %v11891_v25, %v9955_v50  ;;  %v9957_v54 = vrot.slane %v9955_v50, 4  ;;  %v12771_v17 = vpop.f32.mrf.mxu0  ;;  %v18232_v0 = vld [vmem:[#allocation36_spill] sm:$0xff] }
 0x351   : > { %v11964_v27 = vcombine.low %v10125_v4, %v10128_v43  ;;  %v10131_v14 = vrot.slane %v18230_v48, 5  ;;  %v10134_v23 = vrot.slane %v18231_v20, 5  ;;  %v7256_v58 = vadd.f32 %v16797_v40, %v16613_v13  ;;  %v18233_v4 = vld [vmem:[#allocation20_spill] sm:$0xff]  ;;  %v8213_v1 = vpop.f32.mrf.mxu1 }
 0x352   : > { %12924 = vmatprep.mubr.msk.bf16.mxu0 %vm1429_vm2, %v11926_v46  ;;  %v9959_v30 = vsel %vm14486_vm14, %v9957_v54, %v9958_v59  ;;  %v7259_v11 = vadd.f32 %v16808_v7, %v16622_v21  ;;  %v7257_v25 = vadd.f32 %v16820_v44, %v18232_v0  ;;  %v7940_v50 = vadd.f32 %v16830_v9, %v18233_v4  ;;  %v7878_v59 = vpop.f32.mrf.mxu0  ;;  %v18234_v44 = vld [vmem:[#allocation8_spill] sm:$0xff] }
 0x353   : > { %12960 = vmatprep.mubr.msk.bf16.mxu1 %vm1429_vm2, %v11964_v27  ;;  %v11927_v43 = vcombine.low %v9956_v24, %v9959_v30  ;;  %v10132_v13 = vsel %vm14486_vm14, %v11907_v52, %v10131_v14  ;;  %v10133_v40 = vrot.slane %v10131_v14, 4  ;;  %v17085_v46 = vadd.f32 %v16812_v42, %v7256_v58  ;;  %v12807_v24 = vpop.f32.mrf.mxu1  ;;  %v18235_v52 = vld [vmem:[#allocation11_spill] sm:$0xff]  ;;  %v18238_v30 = vld [vmem:[#allocation17_spill] sm:$0xff] }
 0x354   : > { %v17088_v21 = vadd.f32 %v16826_v47, %v7259_v11  ;;  %v17091_v7 = vadd.f32 %v16839_v2, %v7257_v25  ;;  %v17094_v9 = vadd.f32 %v16855_v34, %v7940_v50  ;;  %v7938_v27 = vadd.f32 %v16847_v6, %v18234_v44  ;;  %v18236_v47 = vld [vmem:[#allocation12_spill] sm:$0xff]  ;;  %v18237_v2 = vld [vmem:[#allocation22_spill] sm:$0xff]  ;;  %v12774_v34 = vpop.f32.mrf.mxu0 }
 0x355   : > { %12925 = vmatmul.mubr.msk.bf16.gmra.mxu0 %vm1429_vm2, %v11927_v43  ;;  %v10135_v42 = vsel %vm14486_vm14, %v10133_v40, %v10134_v23  ;;  %v7941_v54 = vadd.f32 %v16860_v12, %v18235_v52  ;;  %v7939_v48 = vadd.f32 %v16870_v45, %v18236_v47  ;;  %v7944_v14 = vadd.f32 %v16884_v18, %v18237_v2  ;;  %v8216_v23 = vpop.f32.mrf.mxu1  ;;  %v18239_v11 = vld [vmem:[#allocation14_spill] sm:$0xff]  ;;  %v18247_v52 = vld [vmem:[#allocation21_spill] sm:$0xff] }
 0x356   : > { %v11965_v20 = vcombine.low %v10132_v13, %v10135_v42  ;;  %v17108_v58 = vadd.f32 %v16866_v8, %v7938_v27  ;;  %v7942_v6 = vadd.f32 %v16897_v10, %v16730_v36  ;;  %v7945_v26 = vadd.f32 %v16913_v57, %v18238_v30  ;;  %v7891_v0 = vpop.f32.mrf.mxu0  ;;  %v18240_v10 = vld [vmem:[#allocation27_spill] sm:$0xff]  ;;  %v18245_v40 = vld [vmem:[#allocation18_spill] sm:$0xff]  ;;  %v18248_v47 = vld [vmem:[#allocation29_spill] sm:$0xff] }
 0x357   : > { %v17115_v12 = vadd.f32 %v16878_v31, %v7941_v54  ;;  %v17118_v45 = vadd.f32 %v16888_v3, %v7939_v48  ;;  %v17121_v18 = vadd.f32 %v16905_v35, %v7944_v14  ;;  %v7943_v8 = vadd.f32 %v16924_v61, %v18239_v11  ;;  %v18241_v31 = vld [vmem:[#allocation9_spill] sm:$0xff]  ;;  %v18242_v3 = vld [vmem:[#allocation16_spill] sm:$0xff]  ;;  %v12810_v35 = vpop.f32.mrf.mxu1  ;;  %v18244_v13 = vld [vmem:[#allocation15_spill] sm:$0xff] }
 0x358   : > { %12961 = vmatmul.mubr.msk.bf16.gmra.mxu1 %vm1429_vm2, %v11965_v20  ;;  %v17127_v36 = vadd.f32 %v16918_v19, %v7942_v6  ;;  %v17130_v57 = vadd.f32 %v18240_v10, %v7945_v26  ;;  %v7948_v25 = vadd.f32 %v16936_v22, %v18241_v31  ;;  %v7946_v4 = vadd.f32 %v16946_v41, %v18242_v3  ;;  %v18243_v61 = vld [vmem:[#allocation13_spill] sm:$0xff]  ;;  %v12775_v27 = vpop.f32.mrf.mxu0  ;;  %v18246_v41 = vld [vmem:[#allocation44_spill] sm:$0xff]  ;;  %v18251_v6 = vld [vmem:[#allocation47_spill] sm:$0xff] }
 0x359   : > { %v17137_v50 = vadd.f32 %v16942_v37, %v7943_v8  ;;  %v7949_v43 = vadd.f32 %v16963_v63, %v18243_v61  ;;  %v7947_v19 = vadd.f32 %v16976_v56, %v18244_v13  ;;  %v7952_v44 = vadd.f32 %v16986_v32, %v18245_v40  ;;  %v8229_v63 = vpop.f32.mrf.mxu1  ;;  %v18252_v26 = vld [vmem:[#allocation25_spill] sm:$0xff]  ;;  %v18254_v10 = vld [vmem:[#allocation19_spill] sm:$0xff] }
 0x35a   : > { %v17146_v42 = vadd.f32 %v16955_v62, %v7948_v25  ;;  %v17149_v22 = vadd.f32 %v16971_v29, %v7946_v4  ;;  %v7950_v37 = vadd.f32 %v17000_v53, %v18246_v41  ;;  %v7953_v54 = vadd.f32 %v17015_v5, %v18247_v52  ;;  %v18249_v62 = vld [vmem:[#allocation46_spill] sm:$0xff]  ;;  %v7894_v2 = vpop.f32.mrf.mxu0  ;;  %v18250_v5 = vld [vmem:[#allocation24_spill] sm:$0xff] }
 0x35b   : > { %v17156_v48 = vadd.f32 %v18248_v47, %v7949_v43  ;;  %v17159_v56 = vadd.f32 %v16994_v38, %v7947_v19  ;;  %v17162_v32 = vadd.f32 %v17006_v39, %v7952_v44  ;;  %v7951_v29 = vadd.f32 %v17033_v15, %v18249_v62  ;;  %v12811_v30 = vpop.f32.mrf.mxu1  ;;  %v18253_v15 = vld [vmem:[#allocation26_spill] sm:$0xff]  ;;  %v18256_v4 = vld [vmem:[#allocation28_spill] sm:$0xff]  ;;  %v18261_v62 = vld [vmem:[#allocation33_spill] sm:$0xff] }
 0x35c   : > { %v17167_v14 = vadd.f32 %v17023_v60, %v7950_v37  ;;  %v17170_v53 = vadd.f32 %v17040_v33, %v7953_v54  ;;  %v7956_v20 = vadd.f32 %v17046_v28, %v18250_v5  ;;  %v7954_v38 = vadd.f32 %v17060_v16, %v18251_v6  ;;  %v12778_v31 = vpop.f32.mrf.mxu0  ;;  %v18255_v28 = vld [vmem:[#allocation23_spill] sm:$0xff] }
 0x35d   : > { %v17177_v39 = vadd.f32 %v17051_v51, %v7951_v29  ;;  %v7957_v11 = vadd.f32 %v12771_v17, %v18252_v26  ;;  %v7955_v8 = vadd.f32 %v7878_v59, %v18253_v15  ;;  %v7960_v60 = vadd.f32 %v12774_v34, %v18254_v10  ;;  %v8232_v61 = vpop.f32.mrf.mxu1  ;;  %v18257_v59 = vld [vmem:[#allocation10_spill] sm:$0xff] }
 0x35e   : > { %v17183_v33 = vadd.f32 %v17066_v49, %v7956_v20  ;;  %v17185_v25 = vadd.f32 %v8213_v1, %v7954_v38  ;;  %v7958_v3 = vadd.f32 %v7891_v0, %v18255_v28  ;;  %v7961_v16 = vadd.f32 %v12775_v27, %v18256_v4  ;;  %v7907_v34 = vpop.f32.mrf.mxu0  ;;  %v18258_v1 = vld [vmem:[#allocation37_spill] sm:$0xff]  ;;  %v18259_v0 = vld [vmem:[#allocation30_spill] sm:$0xff] }
 0x35f   : > { %v17189_v43 = vadd.f32 %v12807_v24, %v7957_v11  ;;  %v17191_v51 = vadd.f32 %v8216_v23, %v7955_v8  ;;  %v17193_v17 = vadd.f32 %v12810_v35, %v7960_v60  ;;  %v7959_v13 = vadd.f32 %v7894_v2, %v18257_v59  ;;  %v12814_v44 = vpop.f32.mrf.mxu1  ;;  %v18260_v35 = vld [vmem:[#allocation31_spill] sm:$0xff] }
 0x360   : > { %v17196_v19 = vadd.f32 %v8229_v63, %v7958_v3  ;;  %v17198_v49 = vadd.f32 %v12811_v30, %v7961_v16  ;;  %v7964_v40 = vadd.f32 %v12778_v31, %v18258_v1  ;;  %v7962_v41 = vadd.f32 %v7907_v34, %v18259_v0  ;;  %v12779_v24 = vpop.f32.mrf.mxu0 }
 0x361   : > { %v17202_v27 = vadd.f32 %v8232_v61, %v7959_v13  ;;  %v8245_v23 = vpop.f32.mrf.mxu1  ;;  %v7965_v52 = vadd.f32 %v12779_v24, %v18260_v35 }
 0x362   : > { %v17204_v37 = vadd.f32 %v12814_v44, %v7964_v40  ;;  %v17207_v54 = vadd.f32 %v8245_v23, %v7962_v41  ;;  %v7910_v47 = vpop.f32.mrf.mxu0 }
 0x363   : > { %v12815_v63 = vpop.f32.mrf.mxu1  ;;  %v7963_v29 = vadd.f32 %v7910_v47, %v18261_v62 }
 0x364   : > { %v17210_v2 = vadd.f32 %v12815_v63, %v7965_v52  ;;  %v12782_v5 = vpop.f32.mrf.mxu0 }
 0x365   : > { %v8248_v20 = vpop.f32.mrf.mxu1  ;;  %v7968_v6 = vadd.f32 %v12782_v5, %v17057_v55 }
 0x366   : > { %v17213_v38 = vadd.f32 %v8248_v20, %v7963_v29  ;;  %v7923_v30 = vpop.f32.mrf.mxu0 }
 0x367   : > { %v12818_v26 = vpop.f32.mrf.mxu1  ;;  %v7966_v11 = vadd.f32 %v7923_v30, %v17085_v46 }
 0x368   : > { %18262 = vst [vmem:[#allocation34_spill] sm:$0xff] %v17213_v38  ;;  %v17216_v15 = vadd.f32 %v12818_v26, %v7968_v6  ;;  %v12783_v8 = vpop.f32.mrf.mxu0 }
 0x369   : > { %v8261_v10 = vpop.f32.mrf.mxu1  ;;  %v7969_v60 = vadd.f32 %v12783_v8, %v17088_v21 }
 0x36a   : > { %v17219_v31 = vadd.f32 %v8261_v10, %v7966_v11  ;;  %v7926_v28 = vpop.f32.mrf.mxu0 }
 0x36b   : > { %v12819_v3 = vpop.f32.mrf.mxu1  ;;  %v7967_v4 = vadd.f32 %v7926_v28, %v17091_v7 }
 0x36c   : > { %18263 = vst [vmem:[#allocation7_spill] sm:$0xff] %v17219_v31  ;;  %v17222_v16 = vadd.f32 %v12819_v3, %v7969_v60  ;;  %v12826_v55 = vpop.f32.mrf.mxu0 }
 0x36d   : > { %v8264_v61 = vpop.f32.mrf.mxu1  ;;  %v9448_v59 = vadd.f32 %v12826_v55, %v17094_v9 }
 0x36e   : > { %v17225_v13 = vadd.f32 %v8264_v61, %v7967_v4  ;;  %v9319_v46 = vpop.f32.mrf.mxu0 }
 0x36f   : > { %v12862_v34 = vpop.f32.mrf.mxu1  ;;  %v9446_v1 = vadd.f32 %v9319_v46, %v17108_v58 }
 0x370   : > { %18264 = vst [vmem:[#allocation32_spill] sm:$0xff] %v17225_v13  ;;  %v17228_v40 = vadd.f32 %v12862_v34, %v9448_v59  ;;  %v12827_v21 = vpop.f32.mrf.mxu0 }
 0x371   : > { %v9625_v44 = vpop.f32.mrf.mxu1  ;;  %v9449_v0 = vadd.f32 %v12827_v21, %v17115_v12 }
 0x372   : > { %v17231_v41 = vadd.f32 %v9625_v44, %v9446_v1  ;;  %v17233_v7 = vpop.f32.mrf.mxu0 }
 0x373   : > { %v12863_v24 = vpop.f32.mrf.mxu1 }
 0x374   : > { %v17235_v23 = vadd.f32 %v12863_v24, %v9449_v0  ;;  %v12830_v9 = vpop.f32.mrf.mxu0 }
 0x375   : > { %v17237_v35 = vpop.f32.mrf.mxu1  ;;  %v9452_v52 = vadd.f32 %v12830_v9, %v17121_v18 }
 0x376   : > { %v17240_v47 = vpop.f32.mrf.mxu0 }
 0x377   : > { %v12866_v58 = vpop.f32.mrf.mxu1 }
 0x378   : > { %v17242_v63 = vadd.f32 %v12866_v58, %v9452_v52  ;;  %v12831_v62 = vpop.f32.mrf.mxu0 }
 0x379   : > { %v17244_v29 = vpop.f32.mrf.mxu1  ;;  %v9453_v12 = vadd.f32 %v12831_v62, %v17130_v57 }
 0x37a   : > { %v17247_v5 = vpop.f32.mrf.mxu0 }
 0x37b   : > { %v12867_v20 = vpop.f32.mrf.mxu1 }
 0x37c   : > { %v17249_v6 = vadd.f32 %v12867_v20, %v9453_v12  ;;  %v12834_v30 = vpop.f32.mrf.mxu0 }
 0x37d   : > { %v17251_v26 = vpop.f32.mrf.mxu1  ;;  %v9456_v18 = vadd.f32 %v12834_v30, %v17146_v42 }
 0x37e   : > { %v17254_v11 = vpop.f32.mrf.mxu0 }
 0x37f   : > { %v12870_v8 = vpop.f32.mrf.mxu1 }
 0x380   : > { %v17256_v10 = vadd.f32 %v12870_v8, %v9456_v18  ;;  %v12835_v60 = vpop.f32.mrf.mxu0 }
 0x381   : > { %v17258_v28 = vpop.f32.mrf.mxu1  ;;  %v9457_v57 = vadd.f32 %v12835_v60, %v17156_v48 }
 0x382   : > { %v17261_v3 = vpop.f32.mrf.mxu0 }
 0x383   : > { %v12871_v4 = vpop.f32.mrf.mxu1 }
 0x384   : > { %v17263_v55 = vadd.f32 %v12871_v4, %v9457_v57  ;;  %v12838_v61 = vpop.f32.mrf.mxu0 }
 0x385   : > { %v17265_v59 = vpop.f32.mrf.mxu1  ;;  %v9460_v42 = vadd.f32 %v12838_v61, %v17162_v32 }
 0x386   : > { %v17268_v46 = vpop.f32.mrf.mxu0 }
 0x387   : > { %v12874_v34 = vpop.f32.mrf.mxu1 }
 0x388   : > { %v17270_v1 = vadd.f32 %v12874_v34, %v9460_v42  ;;  %v12839_v21 = vpop.f32.mrf.mxu0 }
 0x389   : > { %v17272_v44 = vpop.f32.mrf.mxu1  ;;  %v9461_v48 = vadd.f32 %v12839_v21, %v17170_v53 }
 0x38a   : > { %v17277_v9 = vpop.f32.mrf.mxu0 }
 0x38b   : > { %v12875_v0 = vpop.f32.mrf.mxu1 }
 0x38c   : > { %v17275_v24 = vadd.f32 %v12875_v0, %v9461_v48 }
 0x38d   : > { %v17279_v52 = vpop.f32.mrf.mxu1 }
 0x393   : > { %v12842_v58 = vpop.f32.mrf.mxu0 }
 0x394   : > { %v9464_v32 = vadd.f32 %v12842_v58, %v17183_v33 }
 0x395   : > { %v17282_v62 = vpop.f32.mrf.mxu0 }
 0x397   : > { %v12878_v12 = vpop.f32.mrf.mxu1  ;;  %v12843_v20 = vpop.f32.mrf.mxu0 }
 0x398   : > { %v17284_v30 = vadd.f32 %v12878_v12, %v9464_v32  ;;  %v9465_v18 = vadd.f32 %v12843_v20, %v17189_v43 }
 0x399   : > { %v17287_v8 = vpop.f32.mrf.mxu1  ;;  %v17291_v57 = vpop.f32.mrf.mxu0 }
 0x39b   : > { %v12879_v53 = vpop.f32.mrf.mxu1 }
 0x39c   : > { %v17289_v60 = vadd.f32 %v12879_v53, %v9465_v18 }
 0x39d   : > { %v17293_v4 = vpop.f32.mrf.mxu1 }
 0x3a6   : > { %v12846_v61 = vpop.f32.mrf.mxu0 }
 0x3a7   : > { %v9468_v33 = vadd.f32 %v12846_v61, %v17193_v17 }
 0x3a8   : > { %v17296_v42 = vpop.f32.mrf.mxu0 }
 0x3a9   : > { %v12882_v34 = vpop.f32.mrf.mxu1 }
 0x3aa   : > { %v12847_v21 = vpop.f32.mrf.mxu0  ;;  %v17298_v48 = vadd.f32 %v12882_v34, %v9468_v33 }
 0x3ab   : > { %v9469_v43 = vadd.f32 %v12847_v21, %v17198_v49  ;;  %v17301_v0 = vpop.f32.mrf.mxu1 }
 0x3ac   : > { %v17305_v12 = vpop.f32.mrf.mxu0 }
 0x3ad   : > { %v12883_v58 = vpop.f32.mrf.mxu1 }
 0x3ae   : > { %v17303_v32 = vadd.f32 %v12883_v58, %v9469_v43 }
 0x3af   : > { %v17307_v18 = vpop.f32.mrf.mxu1 }
 0x3b0   : > { %18265 = vst [vmem:[#allocation35_spill] sm:$0xff] %v17303_v32 }
 0x3b9   : > { %v12850_v20 = vpop.f32.mrf.mxu0 }
 0x3ba   : > { %v9472_v17 = vadd.f32 %v12850_v20, %v17204_v37 }
 0x3bb   : > { %v17310_v53 = vpop.f32.mrf.mxu0 }
 0x3bc   : > { %18266 = vst [vmem:[#allocation38_spill] sm:$0xff] %v17310_v53 }
 0x3bd   : > { %v12851_v61 = vpop.f32.mrf.mxu0  ;;  %v12886_v13 = vpop.f32.mrf.mxu1 }
 0x3be   : > { %v9473_v33 = vadd.f32 %v12851_v61, %v17210_v2  ;;  %v17313_v34 = vadd.f32 %v12886_v13, %v9472_v17 }
 0x3bf   : > { %v17315_v49 = vpop.f32.mrf.mxu1  ;;  %v17319_v58 = vpop.f32.mrf.mxu0 }
 0x3c0   : > { %18267 = vst [vmem:[#allocation39_spill] sm:$0xff] %v17313_v34 }
 0x3c1   : > { %v12887_v21 = vpop.f32.mrf.mxu1 }
 0x3c2   : > { %v17317_v43 = vadd.f32 %v12887_v21, %v9473_v33 }
 0x3c3   : > { %v17321_v31 = vpop.f32.mrf.mxu1 }
 0x3c4   : > { %18268 = vst [vmem:[#allocation42_spill] sm:$0xff] %v17317_v43  ;;  %18269 = vst [vmem:[#allocation40_spill] sm:$0xff] %v17321_v31 }
 0x3cc   : > { %v12854_v38 = vpop.f32.mrf.mxu0 }
 0x3cd   : > { %v9476_v37 = vadd.f32 %v12854_v38, %v17216_v15  ;;  %v9447_v38 = vadd.f32 %v17233_v7, %v17118_v45 }
 0x3ce   : > { %v17324_v20 = vpop.f32.mrf.mxu0 }
 0x3cf   : > { %18270 = vst [vmem:[#allocation41_spill] sm:$0xff] %v17324_v20 }
 0x3d0   : > { %v12890_v32 = vpop.f32.mrf.mxu1  ;;  %v12855_v2 = vpop.f32.mrf.mxu0 }
 0x3d1   : > { %v17326_v53 = vadd.f32 %v12890_v32, %v9476_v37  ;;  %v9477_v17 = vadd.f32 %v12855_v2, %v17222_v16  ;;  %v9450_v16 = vadd.f32 %v17240_v47, %v17127_v36 }
 0x3d2   : > { %v17328_v13 = vpop.f32.mrf.mxu1  ;;  %v17331_v61 = vpop.f32.mrf.mxu0 }
 0x3d3   : > { %18271 = vst [vmem:[#allocation43_spill] sm:$0xff] %v17326_v53  ;;  %18272 = vst [vmem:[#allocation45_spill] sm:$0xff] %v17328_v13 }
 0x3d4   : > { %18273 = vst [vmem:[#allocation36_spill] sm:$0xff] %v17331_v61  ;;  %v12891_v33 = vpop.f32.mrf.mxu1 }
 0x3d5   : > { %v17333_v21 = vadd.f32 %v12891_v33, %v9477_v17  ;;  %v9753_v33 = vadd.f32 %v17237_v35, %v9447_v38 }
 0x3d6   : > { %v17335_v43 = vpop.f32.mrf.mxu1  ;;  %v12898_v31 = vpop.f32.mrf.mxu0 }
 0x3d7   : > { %18274 = vst [vmem:[#allocation20_spill] sm:$0xff] %v17333_v21  ;;  %18275 = vst [vmem:[#allocation8_spill] sm:$0xff] %v17335_v43  ;;  %v10412_v15 = vadd.f32 %v12898_v31, %v17228_v40 }
 0x3d8   : > { %v12934_v32 = vpop.f32.mrf.mxu1  ;;  %v10283_v37 = vpop.f32.mrf.mxu0 }
 0x3d9   : > { %v10410_v53 = vadd.f32 %v10283_v37, %v17231_v41  ;;  %v10718_v21 = vadd.f32 %v12934_v32, %v10412_v15  ;;  %v9756_v41 = vadd.f32 %v17244_v29, %v9450_v16  ;;  %v9451_v37 = vadd.f32 %v17247_v5, %v17137_v50 }
 0x3da   : > { %v10589_v13 = vpop.f32.mrf.mxu1  ;;  %v12899_v20 = vpop.f32.mrf.mxu0  ;;  %v9454_v5 = vadd.f32 %v17254_v11, %v17149_v22 }
 0x3db   : > { %v10716_v2 = vadd.f32 %v10589_v13, %v10410_v53  ;;  %v10413_v17 = vadd.f32 %v12899_v20, %v17235_v23  ;;  %v10782_v36 = vmul.f32 0.01, %v10718_v21  ;;  %vm10750_vm0 = vcmp.ge.f32.partialorder %v10718_v21, 0.0 }
 0x3dc   : > { %v12935_v43 = vpop.f32.mrf.mxu1  ;;  %v10286_v61 = vpop.f32.mrf.mxu0  ;;  %v9757_v29 = vadd.f32 %v17251_v26, %v9451_v37 }
 0x3dd   : > { %v10780_v45 = vmul.f32 0.01, %v10716_v2  ;;  %vm10748_vm15 = vcmp.ge.f32.partialorder %v10716_v2, 0.0  ;;  %v10719_v31 = vadd.f32 %v12935_v43, %v10413_v17  ;;  %v10411_v40 = vadd.f32 %v10286_v61, %v9753_v33 }
 0x3de   : > { %v10592_v7 = vpop.f32.mrf.mxu1  ;;  %v12902_v34 = vpop.f32.mrf.mxu0  ;;  %v17355_v16 = vsel %vm10750_vm0, %v10718_v21, %v10782_v36  ;;  %v9760_v36 = vadd.f32 %v17258_v28, %v9454_v5 }
 0x3df   : > { %v10717_v47 = vadd.f32 %v10592_v7, %v10411_v40  ;;  %v17348_v35 = vsel %vm10748_vm15, %v10716_v2, %v10780_v45  ;;  %v10416_v20 = vadd.f32 %v12902_v34, %v17242_v63  ;;  %v10783_v38 = vmul.f32 0.01, %v10719_v31 }
 0x3e0   : > { %v12938_v53 = vpop.f32.mrf.mxu1  ;;  %v10299_v23 = vpop.f32.mrf.mxu0  ;;  %vm10751_vm3 = vcmp.ge.f32.partialorder %v10719_v31, 0.0  ;;  %v10844_v63 = vsel %vm1429_vm2, %v17348_v35, 0.0  ;;  %v10847_v7 = vsel %vm1429_vm2, %v17355_v16, 0.0 }
 0x3e1   : > { %v10414_v13 = vadd.f32 %v10299_v23, %v9756_v41  ;;  %vm10749_vm1 = vcmp.ge.f32.partialorder %v10717_v47, 0.0  ;;  %v10781_v43 = vmul.f32 0.01, %v10717_v47  ;;  %v10722_v26 = vadd.f32 %v12938_v53, %v10416_v20 }
 0x3e2   : > { %v10605_v61 = vpop.f32.mrf.mxu1  ;;  %v12903_v15 = vpop.f32.mrf.mxu0  ;;  %v17365_v40 = vsel %vm10751_vm3, %v10719_v31, %v10783_v38 }
 0x3e3   : > { %v10720_v32 = vadd.f32 %v10605_v61, %v10414_v13  ;;  %v10417_v50 = vadd.f32 %v12903_v15, %v17249_v6  ;;  %v17359_v34 = vsel %vm10749_vm1, %v10717_v47, %v10781_v43  ;;  %v9455_v6 = vadd.f32 %v17261_v3, %v17159_v56 }
 0x3e4   : > { %v12939_v2 = vpop.f32.mrf.mxu1  ;;  %v10302_v17 = vpop.f32.mrf.mxu0  ;;  %v10845_v33 = vsel %vm1429_vm2, %v17359_v34, 0.0  ;;  %v10849_v53 = vsel %vm1429_vm2, %v17365_v40, 0.0  ;;  %v10786_v20 = vmul.f32 0.01, %v10722_v26  ;;  %vm10754_vm5 = vcmp.ge.f32.partialorder %v10722_v26, 0.0 }
 0x3e5   : > { %vm10752_vm4 = vcmp.ge.f32.partialorder %v10720_v32, 0.0  ;;  %v10784_v45 = vmul.f32 0.01, %v10720_v32  ;;  %v10846_v22 = vadd.f32 %v10845_v33, %v10844_v63  ;;  %v10415_v11 = vadd.f32 %v10302_v17, %v9757_v29 }
 0x3e6   : > { %v10608_v21 = vpop.f32.mrf.mxu1  ;;  %v10723_v41 = vadd.f32 %v12939_v2, %v10417_v50  ;;  %v9761_v13 = vadd.f32 %v17265_v59, %v9455_v6  ;;  %v9458_v50 = vadd.f32 %v17268_v46, %v17167_v14  ;;  %v17381_v59 = vsel %vm10754_vm5, %v10722_v26, %v10786_v20 }
 0x3e7   : > { %v12906_v37 = vpop.f32.mrf.mxu0  ;;  %v10848_v47 = vadd.f32 %v10847_v7, %v10846_v22  ;;  %v17370_v23 = vsel %vm10752_vm4, %v10720_v32, %v10784_v45  ;;  %v10721_v56 = vadd.f32 %v10608_v21, %v10415_v11  ;;  %v10855_v26 = vsel %vm1429_vm2, %v17381_v59, 0.0 }
 0x3e8   : > { %v10420_v3 = vadd.f32 %v12906_v37, %v17256_v10  ;;  %v10851_v28 = vsel %vm1429_vm2, %v17370_v23, 0.0  ;;  %v10787_v15 = vmul.f32 0.01, %v10723_v41  ;;  %vm10755_vm7 = vcmp.ge.f32.partialorder %v10723_v41, 0.0 }
 0x3e9   : > { %v10315_v31 = vpop.f32.mrf.mxu0  ;;  %v10850_v38 = vadd.f32 %v10849_v53, %v10848_v47  ;;  %vm10753_vm6 = vcmp.ge.f32.partialorder %v10721_v56, 0.0  ;;  %v10785_v29 = vmul.f32 0.01, %v10721_v56  ;;  %v9764_v7 = vadd.f32 %v17272_v44, %v9458_v50 }
 0x3ea   : > { %v12942_v43 = vpop.f32.mrf.mxu1  ;;  %v10418_v61 = vadd.f32 %v10315_v31, %v9760_v36  ;;  %v17387_v21 = vsel %vm10755_vm7, %v10723_v41, %v10787_v15 }
 0x3eb   : > { %v12907_v32 = vpop.f32.mrf.mxu0  ;;  %v10852_v5 = vadd.f32 %v10851_v28, %v10850_v38  ;;  %v17383_v2 = vsel %vm10753_vm6, %v10721_v56, %v10785_v29  ;;  %v10726_v17 = vadd.f32 %v12942_v43, %v10420_v3  ;;  %v10857_v3 = vsel %vm1429_vm2, %v17387_v21, 0.0 }
 0x3ec   : > { %v10621_v10 = vpop.f32.mrf.mxu1  ;;  %v10421_v63 = vadd.f32 %v12907_v32, %v17263_v55  ;;  %v10853_v6 = vsel %vm1429_vm2, %v17383_v2, 0.0  ;;  %v9459_v55 = vadd.f32 %v17277_v9, %v17177_v39  ;;  %v9462_v28 = vadd.f32 %v17282_v62, %v17185_v25 }
 0x3ed   : > { %v10724_v33 = vadd.f32 %v10621_v10, %v10418_v61  ;;  %v10318_v45 = vpop.f32.mrf.mxu0  ;;  %v10854_v14 = vadd.f32 %v10853_v6, %v10852_v5  ;;  %v10790_v20 = vmul.f32 0.01, %v10726_v17  ;;  %vm10758_vm9 = vcmp.ge.f32.partialorder %v10726_v17, 0.0 }
 0x3ee   : > { %v12943_v22 = vpop.f32.mrf.mxu1  ;;  %v10419_v11 = vadd.f32 %v10318_v45, %v9761_v13  ;;  %v9765_v61 = vadd.f32 %v17279_v52, %v9459_v55 }
 0x3ef   : > { %vm10756_vm8 = vcmp.ge.f32.partialorder %v10724_v33, 0.0  ;;  %v10788_v46 = vmul.f32 0.01, %v10724_v33  ;;  %v10727_v37 = vadd.f32 %v12943_v22, %v10421_v63  ;;  %v10856_v53 = vadd.f32 %v10855_v26, %v10854_v14 }
 0x3f0   : > { %v10624_v36 = vpop.f32.mrf.mxu1  ;;  %v12910_v47 = vpop.f32.mrf.mxu0  ;;  %v17404_v32 = vsel %vm10758_vm9, %v10726_v17, %v10790_v20 }
 0x3f1   : > { %v17394_v56 = vsel %vm10756_vm8, %v10724_v33, %v10788_v46  ;;  %v10725_v41 = vadd.f32 %v10624_v36, %v10419_v11  ;;  %v10791_v31 = vmul.f32 0.01, %v10727_v37  ;;  %v10424_v44 = vadd.f32 %v12910_v47, %v17270_v1 }
 0x3f2   : > { %v10331_v13 = vpop.f32.mrf.mxu0  ;;  %v10858_v39 = vadd.f32 %v10857_v3, %v10856_v53  ;;  %v10859_v15 = vsel %vm1429_vm2, %v17394_v56, 0.0  ;;  %vm10759_vm11 = vcmp.ge.f32.partialorder %v10727_v37, 0.0  ;;  %v10863_v17 = vsel %vm1429_vm2, %v17404_v32, 0.0 }
 0x3f3   : > { %vm10757_vm10 = vcmp.ge.f32.partialorder %v10725_v41, 0.0  ;;  %v10789_v9 = vmul.f32 0.01, %v10725_v41  ;;  %v12946_v38 = vpop.f32.mrf.mxu1  ;;  %v10422_v43 = vadd.f32 %v10331_v13, %v9764_v7  ;;  %v17411_v25 = vsel %vm10759_vm11, %v10727_v37, %v10791_v31 }
 0x3f4   : > { %v12911_v29 = vpop.f32.mrf.mxu0  ;;  %v10860_v50 = vadd.f32 %v10859_v15, %v10858_v39  ;;  %v10730_v52 = vadd.f32 %v12946_v38, %v10424_v44  ;;  %v9768_v46 = vadd.f32 %v17287_v8, %v9462_v28  ;;  %v10865_v37 = vsel %vm1429_vm2, %v17411_v25, 0.0 }
 0x3f5   : > { %v17406_v1 = vsel %vm10757_vm10, %v10725_v41, %v10789_v9  ;;  %v10637_v5 = vpop.f32.mrf.mxu1  ;;  %v10425_v10 = vadd.f32 %v12911_v29, %v17275_v24  ;;  %v9463_v24 = vadd.f32 %v17291_v57, %v17191_v51  ;;  %v9466_v38 = vadd.f32 %v17296_v42, %v17196_v19 }
 0x3f6   : > { %v10861_v63 = vsel %vm1429_vm2, %v17406_v1, 0.0  ;;  %v10728_v33 = vadd.f32 %v10637_v5, %v10422_v43  ;;  %v10334_v45 = vpop.f32.mrf.mxu0  ;;  %v10794_v36 = vmul.f32 0.01, %v10730_v52  ;;  %vm10762_vm13 = vcmp.ge.f32.partialorder %v10730_v52, 0.0 }
 0x3f7   : > { %v10862_v62 = vadd.f32 %v10861_v63, %v10860_v50  ;;  %v12947_v6 = vpop.f32.mrf.mxu1  ;;  %v10423_v22 = vadd.f32 %v10334_v45, %v9765_v61  ;;  %v9769_v13 = vadd.f32 %v17293_v4, %v9463_v24  ;;  %v9772_v45 = vadd.f32 %v17301_v0, %v9466_v38 }
 0x3f8   : > { %vm10760_vm12 = vcmp.ge.f32.partialorder %v10728_v33, 0.0  ;;  %v10792_v11 = vmul.f32 0.01, %v10728_v33  ;;  %v10731_v14 = vadd.f32 %v12947_v6, %v10425_v10  ;;  %v17428_v43 = vsel %vm10762_vm13, %v10730_v52, %v10794_v36 }
 0x3f9   : > { %v10864_v7 = vadd.f32 %v10863_v17, %v10862_v62  ;;  %v10640_v55 = vpop.f32.mrf.mxu1  ;;  %v10871_v19 = vsel %vm1429_vm2, %v17428_v43, 0.0 }
 0x3fa   : > { %v12914_v26 = vpop.f32.mrf.mxu0  ;;  %v17420_v47 = vsel %vm10760_vm12, %v10728_v33, %v10792_v11  ;;  %v10729_v53 = vadd.f32 %v10640_v55, %v10423_v22  ;;  %v10795_v41 = vmul.f32 0.01, %v10731_v14  ;;  %vm10763_vm15 = vcmp.ge.f32.partialorder %v10731_v14, 0.0 }
 0x3fb   : > { %v10866_v20 = vadd.f32 %v10865_v37, %v10864_v7  ;;  %v10428_v3 = vadd.f32 %v12914_v26, %v17284_v30  ;;  %v10867_v8 = vsel %vm1429_vm2, %v17420_v47, 0.0 }
 0x3fc   : > { %v10347_v31 = vpop.f32.mrf.mxu0  ;;  %vm10761_vm14 = vcmp.ge.f32.partialorder %v10729_v53, 0.0  ;;  %v10793_v51 = vmul.f32 0.01, %v10729_v53  ;;  %v12950_v57 = vpop.f32.mrf.mxu1  ;;  %v17435_v4 = vsel %vm10763_vm15, %v10731_v14, %v10795_v41  ;;  %v18276_v41 = vld [vmem:[#allocation38_spill] sm:$0xff] }
 0x3fd   : > { %v10426_v44 = vadd.f32 %v10347_v31, %v9768_v46  ;;  %v10868_v39 = vadd.f32 %v10867_v8, %v10866_v20  ;;  %v10734_v29 = vadd.f32 %v12950_v57, %v10428_v3  ;;  %v10873_v17 = vsel %vm1429_vm2, %v17435_v4, 0.0 }
 0x3fe   : > { %v12915_v9 = vpop.f32.mrf.mxu0  ;;  %v17430_v61 = vsel %vm10761_vm14, %v10729_v53, %v10793_v51  ;;  %v10653_v30 = vpop.f32.mrf.mxu1  ;;  %v9470_v3 = vadd.f32 %v18276_v41, %v17207_v54  ;;  %v18277_v51 = vld [vmem:[#allocation35_spill] sm:$0xff]  ;;  %v18283_v41 = vld [vmem:[#allocation42_spill] sm:$0xff] }
 0x3ff   : > { %v10429_v28 = vadd.f32 %v12915_v9, %v17289_v60  ;;  %v10869_v15 = vsel %vm1429_vm2, %v17430_v61, 0.0  ;;  %v10732_v50 = vadd.f32 %v10653_v30, %v10426_v44  ;;  %v9467_v60 = vadd.f32 %v17305_v12, %v17202_v27 }
 0x400   : > { %v10350_v5 = vpop.f32.mrf.mxu0  ;;  %v10870_v10 = vadd.f32 %v10869_v15, %v10868_v39  ;;  %v12951_v63 = vpop.f32.mrf.mxu1  ;;  %v10798_v11 = vmul.f32 0.01, %v10734_v29  ;;  %vm10766_vm1 = vcmp.ge.f32.partialorder %v10734_v29, 0.0 }
 0x401   : > { %v10427_v33 = vadd.f32 %v10350_v5, %v9769_v13  ;;  %vm10764_vm0 = vcmp.ge.f32.partialorder %v10732_v50, 0.0  ;;  %v10796_v42 = vmul.f32 0.01, %v10732_v50  ;;  %v10735_v52 = vadd.f32 %v12951_v63, %v10429_v28  ;;  %v18278_v5 = vld [vmem:[#allocation34_spill] sm:$0xff] }
 0x402   : > { %v10872_v62 = vadd.f32 %v10871_v19, %v10870_v10  ;;  %v10656_v6 = vpop.f32.mrf.mxu1  ;;  %v9773_v36 = vadd.f32 %v17307_v18, %v9467_v60  ;;  %v17452_v31 = vsel %vm10766_vm1, %v10734_v29, %v10798_v11  ;;  %v9471_v10 = vadd.f32 %v17319_v58, %v18278_v5  ;;  %v18285_v5 = vld [vmem:[#allocation32_spill] sm:$0xff] }
 0x403   : > { %v12918_v22 = vpop.f32.mrf.mxu0  ;;  %v17444_v14 = vsel %vm10764_vm0, %v10732_v50, %v10796_v42  ;;  %v10733_v46 = vadd.f32 %v10656_v6, %v10427_v33  ;;  %v10799_v7 = vmul.f32 0.01, %v10735_v52  ;;  %vm10767_vm4 = vcmp.ge.f32.partialorder %v10735_v52, 0.0 }
 0x404   : > { %v10874_v24 = vadd.f32 %v10873_v17, %v10872_v62  ;;  %v10432_v55 = vadd.f32 %v12918_v22, %v17298_v48  ;;  %v10875_v0 = vsel %vm1429_vm2, %v17444_v14, 0.0  ;;  %v10879_v54 = vsel %vm1429_vm2, %v17452_v31, 0.0  ;;  %v18279_v22 = vld [vmem:[#allocation39_spill] sm:$0xff] }
 0x405   : > { %v10363_v26 = vpop.f32.mrf.mxu0  ;;  %vm10765_vm3 = vcmp.ge.f32.partialorder %v10733_v46, 0.0  ;;  %v10797_v27 = vmul.f32 0.01, %v10733_v46  ;;  %v12954_v12 = vpop.f32.mrf.mxu1  ;;  %v17459_v18 = vsel %vm10767_vm4, %v10735_v52, %v10799_v7  ;;  %v9776_v50 = vadd.f32 %v17315_v49, %v9470_v3  ;;  %v18280_v7 = vld [vmem:[#allocation40_spill] sm:$0xff] }
 0x406   : > { %v10430_v37 = vadd.f32 %v10363_v26, %v9772_v45  ;;  %v10876_v53 = vadd.f32 %v10875_v0, %v10874_v24  ;;  %v10738_v13 = vadd.f32 %v12954_v12, %v10432_v55  ;;  %v10881_v42 = vsel %vm1429_vm2, %v17459_v18, 0.0  ;;  %v18282_v12 = vld [vmem:[#allocation41_spill] sm:$0xff] }
 0x407   : > { %v12919_v20 = vpop.f32.mrf.mxu0  ;;  %v17454_v8 = vsel %vm10765_vm3, %v10733_v46, %v10797_v27  ;;  %v10669_v48 = vpop.f32.mrf.mxu1  ;;  %v9777_v55 = vadd.f32 %v18280_v7, %v9471_v10  ;;  %v18281_v27 = vld [vmem:[#allocation7_spill] sm:$0xff]  ;;  %v18286_v10 = vld [vmem:[#allocation36_spill] sm:$0xff] }
 0x408   : > { %v10433_v57 = vadd.f32 %v12919_v20, %v18277_v51  ;;  %v10877_v44 = vsel %vm1429_vm2, %v17454_v8, 0.0  ;;  %v10736_v39 = vadd.f32 %v10669_v48, %v10430_v37  ;;  %v10802_v52 = vmul.f32 0.01, %v10738_v13 }
 0x409   : > { %v10366_v9 = vpop.f32.mrf.mxu0  ;;  %v10878_v38 = vadd.f32 %v10877_v44, %v10876_v53  ;;  %v12955_v30 = vpop.f32.mrf.mxu1  ;;  %vm10770_vm6 = vcmp.ge.f32.partialorder %v10738_v13, 0.0  ;;  %v9474_v37 = vadd.f32 %v18282_v12, %v18281_v27 }
 0x40a   : > { %v10431_v28 = vadd.f32 %v10366_v9, %v9773_v36  ;;  %vm10768_vm5 = vcmp.ge.f32.partialorder %v10736_v39, 0.0  ;;  %v10800_v15 = vmul.f32 0.01, %v10736_v39  ;;  %v10739_v29 = vadd.f32 %v12955_v30, %v10433_v57 }
 0x40b   : > { %v10880_v63 = vadd.f32 %v10879_v54, %v10878_v38  ;;  %v10672_v33 = vpop.f32.mrf.mxu1  ;;  %v17476_v36 = vsel %vm10770_vm6, %v10738_v13, %v10802_v52 }
 0x40c   : > { %v12922_v19 = vpop.f32.mrf.mxu0  ;;  %v17468_v45 = vsel %vm10768_vm5, %v10736_v39, %v10800_v15  ;;  %v10737_v60 = vadd.f32 %v10672_v33, %v10431_v28  ;;  %v10803_v6 = vmul.f32 0.01, %v10739_v29  ;;  %vm10771_vm8 = vcmp.ge.f32.partialorder %v10739_v29, 0.0  ;;  %v18284_v15 = vld [vmem:[#allocation45_spill] sm:$0xff] }
 0x40d   : > { %v10882_v62 = vadd.f32 %v10881_v42, %v10880_v63  ;;  %v10436_v17 = vadd.f32 %v12922_v19, %v18279_v22  ;;  %v10883_v49 = vsel %vm1429_vm2, %v17468_v45, 0.0  ;;  %v10887_v13 = vsel %vm1429_vm2, %v17476_v36, 0.0 }
 0x40e   : > { %v10379_v11 = vpop.f32.mrf.mxu0  ;;  %vm10769_vm7 = vcmp.ge.f32.partialorder %v10737_v60, 0.0  ;;  %v10801_v58 = vmul.f32 0.01, %v10737_v60  ;;  %v17483_v39 = vsel %vm10771_vm8, %v10739_v29, %v10803_v6  ;;  %v9475_v63 = vadd.f32 %v18286_v10, %v18285_v5 }
 0x40f   : > { %v12958_v46 = vpop.f32.mrf.mxu1  ;;  %v10434_v24 = vadd.f32 %v10379_v11, %v9776_v50  ;;  %v10884_v26 = vadd.f32 %v10883_v49, %v10882_v62  ;;  %v9780_v50 = vadd.f32 %v18284_v15, %v9474_v37  ;;  %v10889_v29 = vsel %vm1429_vm2, %v17483_v39, 0.0 }
 0x410   : > { %v12923_v0 = vpop.f32.mrf.mxu0  ;;  %v17478_v53 = vsel %vm10769_vm7, %v10737_v60, %v10801_v58  ;;  %v10742_v51 = vadd.f32 %v12958_v46, %v10436_v17  ;;  %v18287_v17 = vld [vmem:[#allocation43_spill] sm:$0xff] }
 0x411   : > { %v10685_v20 = vpop.f32.mrf.mxu1  ;;  %v10437_v3 = vadd.f32 %v12923_v0, %v18283_v41  ;;  %v10885_v48 = vsel %vm1429_vm2, %v17478_v53, 0.0  ;;  %v18288_v0 = vld [vmem:[#allocation8_spill] sm:$0xff] }
 0x412   : > { %v10740_v57 = vadd.f32 %v10685_v20, %v10434_v24  ;;  %v10382_v44 = vpop.f32.mrf.mxu0  ;;  %v10886_v9 = vadd.f32 %v10885_v48, %v10884_v26  ;;  %v10806_v52 = vmul.f32 0.01, %v10742_v51  ;;  %vm10774_vm10 = vcmp.ge.f32.partialorder %v10742_v51, 0.0  ;;  %v18289_v41 = vld [vmem:[#allocation20_spill] sm:$0xff] }
 0x413   : > { %v12959_v38 = vpop.f32.mrf.mxu1  ;;  %v10435_v30 = vadd.f32 %v10382_v44, %v9777_v55  ;;  %v9781_v27 = vadd.f32 %v18288_v0, %v9475_v63 }
 0x414   : > { %vm10772_vm9 = vcmp.ge.f32.partialorder %v10740_v57, 0.0  ;;  %v10804_v28 = vmul.f32 0.01, %v10740_v57  ;;  %v10743_v54 = vadd.f32 %v12959_v38, %v10437_v3  ;;  %v10888_v33 = vadd.f32 %v10887_v13, %v10886_v9 }
 0x415   : > { %v10688_v19 = vpop.f32.mrf.mxu1  ;;  %v12926_v42 = vpop.f32.mrf.mxu0  ;;  %v10838_v12 = vsel %vm10774_vm10, %v10742_v51, %v10806_v52 }
 0x416   : > { %v17492_v60 = vsel %vm10772_vm9, %v10740_v57, %v10804_v28  ;;  %v10741_v62 = vadd.f32 %v10688_v19, %v10435_v30  ;;  %v10890_v6 = vadd.f32 %v10889_v29, %v10888_v33  ;;  %v10807_v22 = vmul.f32 0.01, %v10743_v54 }
 0x417   : > { %v10440_v11 = vadd.f32 %v12926_v42, %v18287_v17  ;;  %v10395_v49 = vpop.f32.mrf.mxu0  ;;  %v10891_v58 = vsel %vm1429_vm2, %v17492_v60, 0.0  ;;  %vm10775_vm12 = vcmp.ge.f32.partialorder %v10743_v54, 0.0  ;;  %v10895_v15 = vsel %vm1429_vm2, %v10838_v12, 0.0 }
 0x418   : > { %vm10773_vm11 = vcmp.ge.f32.partialorder %v10741_v62, 0.0  ;;  %v10805_v46 = vmul.f32 0.01, %v10741_v62  ;;  %v12962_v24 = vpop.f32.mrf.mxu1  ;;  %v10438_v7 = vadd.f32 %v10395_v49, %v9780_v50  ;;  %v10892_v55 = vadd.f32 %v10891_v58, %v10890_v6 }
 0x419   : > { %v12927_v26 = vpop.f32.mrf.mxu0  ;;  %v10746_v57 = vadd.f32 %v12962_v24, %v10440_v11  ;;  %v10839_v38 = vsel %vm10775_vm12, %v10743_v54, %v10807_v22 }
 0x41a   : > { %v10837_v37 = vsel %vm10773_vm11, %v10741_v62, %v10805_v46  ;;  %v10701_v20 = vpop.f32.mrf.mxu1  ;;  %v10441_v3 = vadd.f32 %v12927_v26, %v18289_v41  ;;  %v10897_v63 = vsel %vm1429_vm2, %v10839_v38, 0.0 }
 0x41b   : > { %v10893_v48 = vsel %vm1429_vm2, %v10837_v37, 0.0  ;;  %v10744_v44 = vadd.f32 %v10701_v20, %v10438_v7  ;;  %v10398_v9 = vpop.f32.mrf.mxu0  ;;  %v10810_v33 = vmul.f32 0.01, %v10746_v57  ;;  %vm10778_vm14 = vcmp.ge.f32.partialorder %v10746_v57, 0.0 }
 0x41c   : > { %v10894_v30 = vadd.f32 %v10893_v48, %v10892_v55  ;;  %v12963_v13 = vpop.f32.mrf.mxu1  ;;  %v10439_v28 = vadd.f32 %v10398_v9, %v9781_v27 }
 0x41d   : > { %vm10776_vm13 = vcmp.ge.f32.partialorder %v10744_v44, 0.0  ;;  %v10808_v50 = vmul.f32 0.01, %v10744_v44  ;;  %v10747_v5 = vadd.f32 %v12963_v13, %v10441_v3  ;;  %v10842_v22 = vsel %vm10778_vm14, %v10746_v57, %v10810_v33 }
 0x41e   : > { %v10896_v10 = vadd.f32 %v10895_v15, %v10894_v30  ;;  %v10704_v51 = vpop.f32.mrf.mxu1  ;;  %v10903_v46 = vsel %vm1429_vm2, %v10842_v22, 0.0 }
 0x41f   : > { %v10840_v19 = vsel %vm10776_vm13, %v10744_v44, %v10808_v50  ;;  %v10745_v42 = vadd.f32 %v10704_v51, %v10439_v28  ;;  %v10811_v54 = vmul.f32 0.01, %v10747_v5  ;;  %vm10779_vm0 = vcmp.ge.f32.partialorder %v10747_v5, 0.0 }
 0x420   : > { %v10898_v29 = vadd.f32 %v10897_v63, %v10896_v10  ;;  %v10899_v52 = vsel %vm1429_vm2, %v10840_v19, 0.0 }
 0x421   : > { %vm10777_vm15 = vcmp.ge.f32.partialorder %v10745_v42, 0.0  ;;  %v10809_v62 = vmul.f32 0.01, %v10745_v42  ;;  %v10843_v49 = vsel %vm10779_vm0, %v10747_v5, %v10811_v54 }
 0x422   : > { %v10900_v6 = vadd.f32 %v10899_v52, %v10898_v29  ;;  %v10905_v7 = vsel %vm1429_vm2, %v10843_v49, 0.0 }
 0x423   : > { %v10841_v17 = vsel %vm10777_vm15, %v10745_v42, %v10809_v62 }
 0x424   : > { %v10901_v11 = vsel %vm1429_vm2, %v10841_v17, 0.0 }
 0x425   : > { %v10902_v58 = vadd.f32 %v10901_v11, %v10900_v6 }
 0x427   : > { %v10904_v24 = vadd.f32 %v10903_v46, %v10902_v58 }
 0x429   : > { %v10906_v55 = vadd.f32 %v10905_v7, %v10904_v24 }
 0x42b   : > { %v10907_v26 = vrot.slane %v10906_v55, 4 }
 0x42d   : > { %v10908_v0 = vadd.f32 %v10907_v26, %v10906_v55 }
 0x42f   : > { %v10909_v27 = vrot.slane %v10908_v0, 2 }
 0x431   : > { %v10910_v20 = vadd.f32 %v10909_v27, %v10908_v0 }
 0x433   : > { %v10911_v41 = vrot.slane %v10910_v20, 1 }
 0x435   : > { %v10912_v3 = vadd.f32 %v10911_v41, %v10910_v20 }
 0x437   : > { %v17506_v48 = vmul.f32 0.00390625, %v10912_v3 }
 0x439   : > { %v17510_v57 = vsub.f32 %v17420_v47, %v17506_v48  ;;  %v17514_v44 = vsub.f32 %v17430_v61, %v17506_v48  ;;  %v17518_v9 = vsub.f32 %v17435_v4, %v17506_v48  ;;  %v17522_v30 = vsub.f32 %v17444_v14, %v17506_v48 }
 0x43a   : > { %v17526_v13 = vsub.f32 %v17454_v8, %v17506_v48  ;;  %v17530_v47 = vsub.f32 %v17452_v31, %v17506_v48  ;;  %v17534_v61 = vsub.f32 %v17459_v18, %v17506_v48  ;;  %v17538_v4 = vsub.f32 %v17468_v45, %v17506_v48 }
 0x43b   : > { %v17542_v14 = vsub.f32 %v17478_v53, %v17506_v48  ;;  %v17546_v8 = vsub.f32 %v17476_v36, %v17506_v48  ;;  %v17550_v31 = vsub.f32 %v17483_v39, %v17506_v48  ;;  %v17554_v18 = vsub.f32 %v17492_v60, %v17506_v48 }
 0x43c   : > { %v17557_v28 = vsub.f32 %v10837_v37, %v17506_v48  ;;  %v17560_v45 = vsub.f32 %v10838_v12, %v17506_v48  ;;  %v17563_v53 = vsub.f32 %v10839_v38, %v17506_v48  ;;  %v17566_v36 = vsub.f32 %v10840_v19, %v17506_v48 }
 0x43d   : > { %v17569_v15 = vsub.f32 %v10841_v17, %v17506_v48  ;;  %v17572_v39 = vsub.f32 %v10842_v22, %v17506_v48  ;;  %v17575_v60 = vsub.f32 %v10843_v49, %v17506_v48  ;;  %v17579_v37 = vsub.f32 %v17348_v35, %v17506_v48 }
 0x43e   : > { %v17583_v12 = vsub.f32 %v17359_v34, %v17506_v48  ;;  %v17587_v38 = vsub.f32 %v17355_v16, %v17506_v48  ;;  %v17591_v50 = vsub.f32 %v17365_v40, %v17506_v48  ;;  %v17599_v35 = vsub.f32 %v17370_v23, %v17506_v48 }
 0x43f   : > { %v10947_v5 = vmul.f32 %v17579_v37, %v17579_v37  ;;  %v17605_v16 = vsub.f32 %v17383_v2, %v17506_v48  ;;  %v17613_v19 = vsub.f32 %v17381_v59, %v17506_v48  ;;  %v17620_v2 = vsub.f32 %v17387_v21, %v17506_v48 }
 0x440   : > { %v10948_v10 = vmul.f32 %v17583_v12, %v17583_v12  ;;  %v10949_v34 = vmul.f32 %v17587_v38, %v17587_v38  ;;  %v10950_v40 = vmul.f32 %v17591_v50, %v17591_v50  ;;  %v10951_v23 = vmul.f32 %v17599_v35, %v17599_v35 }
 0x441   : > { %v10979_v51 = vsel %vm1429_vm2, %v10947_v5, 0.0  ;;  %v10952_v52 = vmul.f32 %v17605_v16, %v17605_v16  ;;  %v17627_v59 = vsub.f32 %v17394_v56, %v17506_v48  ;;  %v10953_v6 = vmul.f32 %v17613_v19, %v17613_v19 }
 0x442   : > { %v10980_v63 = vsel %vm1429_vm2, %v10948_v10, 0.0  ;;  %v10982_v42 = vsel %vm1429_vm2, %v10949_v34, 0.0  ;;  %v10984_v54 = vsel %vm1429_vm2, %v10950_v40, 0.0  ;;  %v10986_v22 = vsel %vm1429_vm2, %v10951_v23, 0.0 }
 0x443   : > { %v10981_v33 = vadd.f32 %v10980_v63, %v10979_v51  ;;  %v17634_v21 = vsub.f32 %v17406_v1, %v17506_v48  ;;  %v10954_v11 = vmul.f32 %v17620_v2, %v17620_v2  ;;  %v10988_v49 = vsel %vm1429_vm2, %v10952_v52, 0.0 }
 0x444   : > { %v17641_v56 = vsub.f32 %v17404_v32, %v17506_v48  ;;  %v10955_v46 = vmul.f32 %v17627_v59, %v17627_v59  ;;  %v10990_v24 = vsel %vm1429_vm2, %v10953_v6, 0.0  ;;  %v17648_v1 = vsub.f32 %v17411_v25, %v17506_v48 }
 0x445   : > { %v10983_v29 = vadd.f32 %v10982_v42, %v10981_v33  ;;  %v10956_v55 = vmul.f32 %v17634_v21, %v17634_v21  ;;  %v10992_v26 = vsel %vm1429_vm2, %v10954_v11, 0.0  ;;  %v17661_v25 = vsub.f32 %v17428_v43, %v17506_v48 }
 0x446   : > { %v10957_v32 = vmul.f32 %v17641_v56, %v17641_v56  ;;  %v10994_v27 = vsel %vm1429_vm2, %v10955_v46, 0.0  ;;  %v10958_v41 = vmul.f32 %v17648_v1, %v17648_v1  ;;  %v10959_v10 = vmul.f32 %v17510_v57, %v17510_v57 }
 0x447   : > { %v10985_v62 = vadd.f32 %v10984_v54, %v10983_v29  ;;  %v10996_v3 = vsel %vm1429_vm2, %v10956_v55, 0.0  ;;  %v10960_v51 = vmul.f32 %v17514_v44, %v17514_v44  ;;  %v10961_v23 = vmul.f32 %v17661_v25, %v17661_v25 }
 0x448   : > { %v10998_v34 = vsel %vm1429_vm2, %v10957_v32, 0.0  ;;  %v11000_v63 = vsel %vm1429_vm2, %v10958_v41, 0.0  ;;  %v11002_v42 = vsel %vm1429_vm2, %v10959_v10, 0.0  ;;  %v10962_v43 = vmul.f32 %v17518_v9, %v17518_v9 }
 0x449   : > { %v10987_v17 = vadd.f32 %v10986_v22, %v10985_v62  ;;  %v11004_v48 = vsel %vm1429_vm2, %v10960_v51, 0.0  ;;  %v10963_v54 = vmul.f32 %v17522_v30, %v17522_v30  ;;  %v11006_v62 = vsel %vm1429_vm2, %v10961_v23, 0.0 }
 0x44a   : > { %v10964_v22 = vmul.f32 %v17526_v13, %v17526_v13 }
 0x44b   : > { %v10989_v58 = vadd.f32 %v10988_v49, %v10987_v17  ;;  %v11008_v17 = vsel %vm1429_vm2, %v10962_v43, 0.0  ;;  %v10965_v49 = vmul.f32 %v17530_v47, %v17530_v47 }
 0x44d   : > { %v10991_v7 = vadd.f32 %v10990_v24, %v10989_v58  ;;  %v11010_v58 = vsel %vm1429_vm2, %v10963_v54, 0.0  ;;  %v10966_v24 = vmul.f32 %v17534_v61, %v17534_v61 }
 0x44f   : > { %v10993_v0 = vadd.f32 %v10992_v26, %v10991_v7  ;;  %v11012_v7 = vsel %vm1429_vm2, %v10964_v22, 0.0  ;;  %v10967_v26 = vmul.f32 %v17538_v4, %v17538_v4 }
 0x451   : > { %v10995_v20 = vadd.f32 %v10994_v27, %v10993_v0  ;;  %v11014_v0 = vsel %vm1429_vm2, %v10965_v49, 0.0  ;;  %v10968_v27 = vmul.f32 %v17542_v14, %v17542_v14 }
 0x453   : > { %v10997_v5 = vadd.f32 %v10996_v3, %v10995_v20  ;;  %v11016_v20 = vsel %vm1429_vm2, %v10966_v24, 0.0  ;;  %v10969_v3 = vmul.f32 %v17546_v8, %v17546_v8 }
 0x455   : > { %v10999_v40 = vadd.f32 %v10998_v34, %v10997_v5  ;;  %v11018_v5 = vsel %vm1429_vm2, %v10967_v26, 0.0  ;;  %v10970_v34 = vmul.f32 %v17550_v31, %v17550_v31 }
 0x457   : > { %v11001_v33 = vadd.f32 %v11000_v63, %v10999_v40  ;;  %v11020_v40 = vsel %vm1429_vm2, %v10968_v27, 0.0  ;;  %v10971_v63 = vmul.f32 %v17554_v18, %v17554_v18 }
 0x459   : > { %v11003_v29 = vadd.f32 %v11002_v42, %v11001_v33  ;;  %v11022_v33 = vsel %vm1429_vm2, %v10969_v3, 0.0  ;;  %v10972_v42 = vmul.f32 %v17557_v28, %v17557_v28 }
 0x45b   : > { %v11005_v52 = vadd.f32 %v11004_v48, %v11003_v29  ;;  %v11024_v29 = vsel %vm1429_vm2, %v10970_v34, 0.0  ;;  %v10973_v48 = vmul.f32 %v17560_v45, %v17560_v45 }
 0x45d   : > { %v11007_v6 = vadd.f32 %v11006_v62, %v11005_v52  ;;  %v11026_v52 = vsel %vm1429_vm2, %v10971_v63, 0.0  ;;  %v10974_v62 = vmul.f32 %v17563_v53, %v17563_v53 }
 0x45f   : > { %v11009_v11 = vadd.f32 %v11008_v17, %v11007_v6  ;;  %v11028_v6 = vsel %vm1429_vm2, %v10972_v42, 0.0  ;;  %v10975_v17 = vmul.f32 %v17566_v36, %v17566_v36 }
 0x461   : > { %v11011_v46 = vadd.f32 %v11010_v58, %v11009_v11  ;;  %v11030_v11 = vsel %vm1429_vm2, %v10973_v48, 0.0  ;;  %v10976_v58 = vmul.f32 %v17569_v15, %v17569_v15 }
 0x463   : > { %v11013_v55 = vadd.f32 %v11012_v7, %v11011_v46  ;;  %v11032_v46 = vsel %vm1429_vm2, %v10974_v62, 0.0  ;;  %v10977_v7 = vmul.f32 %v17572_v39, %v17572_v39 }
 0x465   : > { %v11015_v32 = vadd.f32 %v11014_v0, %v11013_v55  ;;  %v11034_v55 = vsel %vm1429_vm2, %v10975_v17, 0.0  ;;  %v10978_v0 = vmul.f32 %v17575_v60, %v17575_v60 }
 0x467   : > { %v11017_v41 = vadd.f32 %v11016_v20, %v11015_v32  ;;  %v11036_v32 = vsel %vm1429_vm2, %v10976_v58, 0.0  ;;  %v11038_v20 = vsel %vm1429_vm2, %v10977_v7, 0.0  ;;  %v11040_v3 = vsel %vm1429_vm2, %v10978_v0, 0.0 }
 0x469   : > { %v11019_v10 = vadd.f32 %v11018_v5, %v11017_v41 }
 0x46b   : > { %v11021_v51 = vadd.f32 %v11020_v40, %v11019_v10 }
 0x46d   : > { %v11023_v23 = vadd.f32 %v11022_v33, %v11021_v51 }
 0x46f   : > { %v11025_v43 = vadd.f32 %v11024_v29, %v11023_v23 }
 0x471   : > { %v11027_v54 = vadd.f32 %v11026_v52, %v11025_v43 }
 0x473   : > { %v11029_v22 = vadd.f32 %v11028_v6, %v11027_v54 }
 0x475   : > { %v11031_v49 = vadd.f32 %v11030_v11, %v11029_v22 }
 0x477   : > { %v11033_v24 = vadd.f32 %v11032_v46, %v11031_v49 }
 0x479   : > { %v11035_v26 = vadd.f32 %v11034_v55, %v11033_v24 }
 0x47b   : > { %v11037_v27 = vadd.f32 %v11036_v32, %v11035_v26 }
 0x47d   : > { %v11039_v41 = vadd.f32 %v11038_v20, %v11037_v27 }
 0x47f   : > { %v11041_v5 = vadd.f32 %v11040_v3, %v11039_v41 }
 0x481   : > { %v11042_v10 = vrot.slane %v11041_v5, 4 }
 0x483   : > { %v11043_v34 = vadd.f32 %v11042_v10, %v11041_v5 }
 0x485   : > { %v11044_v40 = vrot.slane %v11043_v34, 2 }
 0x487   : > { %v11045_v51 = vadd.f32 %v11044_v40, %v11043_v34 }
 0x489   : > { %v11046_v63 = vrot.slane %v11045_v51, 1 }
 0x48b   : > { %v11047_v33 = vadd.f32 %v11046_v63, %v11045_v51 }
 0x48d   : > { %v11048_v23 = vmul.f32 0.00390625, %v11047_v33 }
 0x48f   : > { %v11049_v42 = vadd.f32 1e-05, %v11048_v23 }
 0x491   : > { %13138 = vrsqrt.f32 %v11049_v42 }
 0x49e   : > { %v13139_v29 = vpop.eup %13138 }
 0x49f   : > { %v11080_v43 = vmul.f32 %v13139_v29, %v17569_v15  ;;  %v11051_v48 = vmul.f32 %v13139_v29, %v17579_v37  ;;  %v11052_v52 = vmul.f32 %v13139_v29, %v17583_v12  ;;  %v11053_v54 = vmul.f32 %v13139_v29, %v17587_v38 }
 0x4a0   : > { %v11054_v62 = vmul.f32 %v13139_v29, %v17591_v50  ;;  %v11055_v6 = vmul.f32 %v13139_v29, %v17599_v35  ;;  %v11056_v22 = vmul.f32 %v13139_v29, %v17605_v16  ;;  %v11057_v17 = vmul.f32 %v13139_v29, %v17613_v19 }
 0x4a1   : > { %11112 = vst.msk [vmem:[%s17736_s12 + $0xe8] sm:$0xff] %vm1429_vm2, %v11080_v43  ;;  %v11058_v15 = vmul.f32 %v13139_v29, %v17620_v2  ;;  %v11059_v37 = vmul.f32 %v13139_v29, %v17627_v59  ;;  %v11060_v12 = vmul.f32 %v13139_v29, %v17634_v21  ;;  %v11061_v38 = vmul.f32 %v13139_v29, %v17641_v56 }
 0x4a2   : > { %11083 = vst.msk [vmem:[%s17736_s12] sm:$0xff] %vm1429_vm2, %v11051_v48  ;;  %11084 = vst.msk [vmem:[%s17736_s12 + $0x8] sm:$0xff] %vm1429_vm2, %v11052_v52  ;;  %v11062_v50 = vmul.f32 %v13139_v29, %v17648_v1  ;;  %v11063_v35 = vmul.f32 %v13139_v29, %v17510_v57  ;;  %v11064_v16 = vmul.f32 %v13139_v29, %v17514_v44 }
 0x4a3   : > { %11085 = vst.msk [vmem:[%s17736_s12 + $0x10] sm:$0xff] %vm1429_vm2, %v11053_v54  ;;  %v11065_v19 = vmul.f32 %v13139_v29, %v17661_v25  ;;  %11086 = vst.msk [vmem:[%s17736_s12 + $0x18] sm:$0xff] %vm1429_vm2, %v11054_v62  ;;  %v11066_v57 = vmul.f32 %v13139_v29, %v17518_v9  ;;  %v11067_v44 = vmul.f32 %v13139_v29, %v17522_v30 }
 0x4a4   : > { %11087 = vst.msk [vmem:[%s17736_s12 + $0x20] sm:$0xff] %vm1429_vm2, %v11055_v6  ;;  %11088 = vst.msk [vmem:[%s17736_s12 + $0x28] sm:$0xff] %vm1429_vm2, %v11056_v22  ;;  %v11068_v2 = vmul.f32 %v13139_v29, %v17526_v13  ;;  %v11069_v59 = vmul.f32 %v13139_v29, %v17530_v47  ;;  %v11070_v9 = vmul.f32 %v13139_v29, %v17534_v61 }
 0x4a5   : > { %11089 = vst.msk [vmem:[%s17736_s12 + $0x30] sm:$0xff] %vm1429_vm2, %v11057_v17  ;;  %11090 = vst.msk [vmem:[%s17736_s12 + $0x38] sm:$0xff] %vm1429_vm2, %v11058_v15  ;;  %v11071_v30 = vmul.f32 %v13139_v29, %v17538_v4  ;;  %v11072_v13 = vmul.f32 %v13139_v29, %v17542_v14  ;;  %v11073_v47 = vmul.f32 %v13139_v29, %v17546_v8 }
 0x4a6   : > { %11091 = vst.msk [vmem:[%s17736_s12 + $0x40] sm:$0xff] %vm1429_vm2, %v11059_v37  ;;  %11092 = vst.msk [vmem:[%s17736_s12 + $0x48] sm:$0xff] %vm1429_vm2, %v11060_v12  ;;  %v11074_v21 = vmul.f32 %v13139_v29, %v17550_v31  ;;  %v11075_v61 = vmul.f32 %v13139_v29, %v17554_v18  ;;  %v11076_v4 = vmul.f32 %v13139_v29, %v17557_v28 }
 0x4a7   : > { %11093 = vst.msk [vmem:[%s17736_s12 + $0x50] sm:$0xff] %vm1429_vm2, %v11061_v38  ;;  %11094 = vst.msk [vmem:[%s17736_s12 + $0x58] sm:$0xff] %vm1429_vm2, %v11062_v50  ;;  %v11077_v14 = vmul.f32 %v13139_v29, %v17560_v45  ;;  %v11078_v8 = vmul.f32 %v13139_v29, %v17563_v53  ;;  %v11079_v31 = vmul.f32 %v13139_v29, %v17566_v36 }
 0x4a8   : > { %11095 = vst.msk [vmem:[%s17736_s12 + $0x60] sm:$0xff] %vm1429_vm2, %v11063_v35  ;;  %11096 = vst.msk [vmem:[%s17736_s12 + $0x68] sm:$0xff] %vm1429_vm2, %v11064_v16  ;;  %v11081_v18 = vmul.f32 %v13139_v29, %v17572_v39  ;;  %v11082_v28 = vmul.f32 %v13139_v29, %v17575_v60 }
 0x4a9   : > { %11097 = vst.msk [vmem:[%s17736_s12 + $0x70] sm:$0xff] %vm1429_vm2, %v11065_v19  ;;  %11098 = vst.msk [vmem:[%s17736_s12 + $0x78] sm:$0xff] %vm1429_vm2, %v11066_v57 }
 0x4aa   : > { %11099 = vst.msk [vmem:[%s17736_s12 + $0x80] sm:$0xff] %vm1429_vm2, %v11067_v44  ;;  %11100 = vst.msk [vmem:[%s17736_s12 + $0x88] sm:$0xff] %vm1429_vm2, %v11068_v2 }
 0x4ab   : > { %11101 = vst.msk [vmem:[%s17736_s12 + $0x90] sm:$0xff] %vm1429_vm2, %v11069_v59  ;;  %11102 = vst.msk [vmem:[%s17736_s12 + $0x98] sm:$0xff] %vm1429_vm2, %v11070_v9 }
 0x4ac   : > { %11103 = vst.msk [vmem:[%s17736_s12 + $0xa0] sm:$0xff] %vm1429_vm2, %v11071_v30  ;;  %11104 = vst.msk [vmem:[%s17736_s12 + $0xa8] sm:$0xff] %vm1429_vm2, %v11072_v13 }
 0x4ad   : > { %11105 = vst.msk [vmem:[%s17736_s12 + $0xb0] sm:$0xff] %vm1429_vm2, %v11073_v47  ;;  %11106 = vst.msk [vmem:[%s17736_s12 + $0xb8] sm:$0xff] %vm1429_vm2, %v11074_v21 }
 0x4ae   : > { %11107 = vst.msk [vmem:[%s17736_s12 + $0xc0] sm:$0xff] %vm1429_vm2, %v11075_v61  ;;  %11108 = vst.msk [vmem:[%s17736_s12 + $0xc8] sm:$0xff] %vm1429_vm2, %v11076_v4 }
 0x4af   : > { %11109 = vst.msk [vmem:[%s17736_s12 + $0xd0] sm:$0xff] %vm1429_vm2, %v11077_v14  ;;  %11110 = vst.msk [vmem:[%s17736_s12 + $0xd8] sm:$0xff] %vm1429_vm2, %v11078_v8 }
 0x4b0   : > { %11111 = vst.msk [vmem:[%s17736_s12 + $0xe0] sm:$0xff] %vm1429_vm2, %v11079_v31  ;;  %11113 = vst.msk [vmem:[%s17736_s12 + $0xf0] sm:$0xff] %vm1429_vm2, %v11081_v18 }
 0x4b1   : > { %11114 = vst.msk [vmem:[%s17736_s12 + $0xf8] sm:$0xff] %vm1429_vm2, %v11082_v28 }
 0x4b2   : > { %13322 = shalt.err (!%p13319_p3)
}
 0x4b3   : > { %s13323_s29 = scalar_lea.hbm %s17803_s22, 4096  ;;  %s13327_s8 = scalar_lea.hbm %s17881_s4, 8192 }
 0x4b4   : > { %p13324_p4 = scmp.ne.s32.totalorder %s17803_s22, %s13323_s29  ;;  %p13328_p9 = scmp.lt.s32.totalorder %s17803_s22, %s17881_s4 }
 0x4b5   : > { %p13329_p10 = scmp.lt.s32.totalorder %s13327_s8, %s13323_s29 }
 0x4b6   : > { %p13325_p7 = pnand %p13324_p4, %p13438_p5 }
 0x4b7   : > { %p13330_p11 = por %p13329_p10, %p13328_p9 }
 0x4b8   : > { %p13326_p8 = pneg %p13325_p7 }
 0x4ba   : > { %p13331_p12 = pnand %p13330_p11, %p13326_p8 }
 0x4bc   : > { %13334 = shalt.err (!%p13331_p12)
}
 0x4bd   : > { %s13373_s11 = smov 128   ;;  %s13374_s12 = smov 8  }
 0x4be   : > { %12964 = dma.vmem_to_hbm [thread:$0]  (%p13438_p5), %s17805_s14, 4096, %s17803_s22, %s17837_s27, %s13373_s11, %s13373_s11, %s13374_s12  }
 0x4bf PF: > { %p12970_p13 = scmp.ge.s32.totalorder %s13369_s18, 2  ;;  %s11144_s13 = sand.u32 1, %s13357_s15  }
 0x4c0   : > { %s11145_s19 = scalar_lea.sflag [#allocation5], %s11144_s13 }
 0x4c1   : > { %p12967_p0 = pnand %p12970_p13, %p13442_p6 }
 0x4c3   : > { %p12968_p1 = pneg %p12967_p0 }
 0x4c5   : > { %13352 = dma.done.wait (%p12968_p1), %s11145_s19, 4096  }
 0x4c6   : > { %13354 = vsyncadd (%p12968_p1), %s11145_s19, 4294963200  ;;  %p14_p2 = scmp.ge.s32.totalorder %s13425_s21, 4   ;;  %s18290_s15 = smov %s13361_s16 }
 0x4c7   : > { %s18291_s16 = smov %s13365_s17  ;;  %s18292_s17 = smov %s13436_s24 }
 0x4c8   : > { %s18293_s18 = smov %s13425_s21  ;;  %16 = sbr.rel (!%p14_p2) target bundleno = 3 (0x3), region = 94 }
 0x4cd   :  { %11150 = vsyncpa [#allocation5], 1 }
 0x4ce   :  { %11152 = vsyncpa [#allocation5 + $0x1], 1 }

</bundles_post_ra>
